<compile_context>
chip_gen: v5e
topology: v5e:2x2
jax: 0.10.0
libtpu: 0.0.40
codegen_flags: <defaults>
</compile_context>

<pallas_src>
import functools

import jax
import jax.numpy as jnp
from jax.experimental import pallas as pl
from jax.experimental.pallas import tpu as pltpu

IN_FEATURES = 28 * 28  # 784

# Raw PyTorch layer widths (8 Linears).
ENC_DIMS = [(IN_FEATURES, 128), (128, 64), (64, 12), (12, 3)]
DEC_DIMS = [(3, 12), (12, 64), (64, 128), (128, IN_FEATURES)]
RAW_DIMS = ENC_DIMS + DEC_DIMS

# After fusing the linear bottleneck pair (layer 3: 12->3, no activation;
# layer 4: 3->12) into one 12->12 linear, the kernel sees 7 layers.
FUSED_DIMS = [(IN_FEATURES, 128), (128, 64), (64, 12), (12, 12),
              (12, 64), (64, 128), (128, IN_FEATURES)]
N_FUSED = len(FUSED_DIMS)
# ReLU after layers 0..5 (the fused 12->12 inherits the decoder's ReLU);
# layer 6 ends with Sigmoid.
RELU_LAYERS = tuple(range(N_FUSED - 1))


def autoencoder_kernel(x_ref, *refs):
    """refs = (w1, b1, ..., w7, b7, out_ref).

    x_ref:   (TM, 784) bf16 batch tile
    w_k:     (in_k, out_k) bf16, VMEM-resident across the whole grid
    b_k:     (1, out_k) f32
    out_ref: (TM, 784) f32 or bf16
    """
    out_ref = refs[-1]
    param_refs = refs[:-1]
    n_layers = len(param_refs) // 2

    h = x_ref[...]                                    # (TM, 784) bf16
    for li in range(n_layers):
        w = param_refs[2 * li][...]                   # (in, out) bf16
        b = param_refs[2 * li + 1][...]               # (1, out)  f32
        # bf16 x bf16 on the MXU with f32 accumulation; bias/activation in f32.
        h = jnp.dot(h.astype(jnp.bfloat16), w,
                    preferred_element_type=jnp.float32) + b
        if li in RELU_LAYERS:
            h = jnp.maximum(h, 0.0)
    # Final activation of the decoder: Sigmoid (EUP), cast to the output dtype.
    out_ref[...] = jax.nn.sigmoid(h).astype(out_ref.dtype)


def init_params(key):
    """PyTorch-Linear-like init (uniform +-1/sqrt(in)), kept in f32.

    Returns a list of (w, b) with w shaped (in, out) (kernel computes x @ W)
    and b shaped (1, out).
    """
    params = []
    for (d_in, d_out) in RAW_DIMS:
        kw, kb, key = jax.random.split(key, 3)
        bound = 1.0 / jnp.sqrt(jnp.float32(d_in))
        w = jax.random.uniform(kw, (d_in, d_out), jnp.float32, -bound, bound)
        b = jax.random.uniform(kb, (1, d_out), jnp.float32, -bound, bound)
        params.append((w, b))
    return params


def prepare_params(raw_params):
    """Fuse the 12->3 / 3->12 bottleneck (both linear, no activation between)
    into a single 12->12 layer in f32, then cast weights to bf16 for the MXU.

    Returns the flat list [w1, b1, ..., w7, b7] consumed by the kernel.
    """
    (w3, b3), (w4, b4) = raw_params[3], raw_params[4]
    w34 = w3 @ w4                    # (12, 12)  exact same linear map
    b34 = b3 @ w4 + b4               # (1, 12)
    fused = raw_params[:3] + [(w34, b34)] + raw_params[5:]
    flat = []
    for w, b in fused:
        flat.append(w.astype(jnp.bfloat16))
        flat.append(b.astype(jnp.float32))
    return flat


def _effective_tile(batch, tm):
    """Pick the batch tile: multiple of 8, <= requested tm, and (when the
    batch allows) small enough that the grid has >= 2 steps so both v7x
    TensorCores get work under dimension_semantics=("parallel",)."""
    tm = max(8, min(tm, pl.cdiv(batch, 8) * 8))
    if batch >= 16:
        half = max(8, (batch // 2) // 8 * 8)
        tm = min(tm, half)
    return tm


@functools.partial(jax.jit, static_argnames=("tm", "out_dtype"))
def autoencoder_forward(x, params, *, tm=512, out_dtype=jnp.float32):
    """Forward pass over a (B, 784) batch; returns (B, 784) in out_dtype."""
    B, F = x.shape
    assert F == IN_FEATURES, F

    tm = _effective_tile(B, tm)
    b_pad = pl.cdiv(B, tm) * tm

    # Stream the input as bf16 (halves input HBM bytes; drops the in-kernel cast).
    x = x.astype(jnp.bfloat16)
    if b_pad != B:
        x = jnp.pad(x, ((0, b_pad - B), (0, 0)))
    n_blocks = b_pad // tm

    # x / out: streamed (TM, 784) tiles (auto double-buffered).
    # Weights / biases: constant index_map => fetched once, VMEM-resident.
    in_specs = [pl.BlockSpec((tm, F), lambda i: (i, 0))]
    for (d_in, d_out) in FUSED_DIMS:
        in_specs.append(pl.BlockSpec((d_in, d_out), lambda i: (0, 0)))   # weight
        in_specs.append(pl.BlockSpec((1, d_out), lambda i: (0, 0)))      # bias

    out = pl.pallas_call(
        autoencoder_kernel,
        out_shape=jax.ShapeDtypeStruct((b_pad, F), out_dtype),
        grid_spec=pltpu.PrefetchScalarGridSpec(
            num_scalar_prefetch=0,
            grid=(n_blocks,),
            in_specs=in_specs,
            out_specs=pl.BlockSpec((tm, F), lambda i: (i, 0)),
        ),
        compiler_params=pltpu.CompilerParams(
            dimension_semantics=("parallel",),     # shard batch tiles across TCs
            vmem_limit_bytes=32 * 1024 * 1024,     # fits v5e's scoped-VMEM too
        ),
    )(x, *params)

    return out[:B] if b_pad != B else out


def reference_forward(x, kernel_params, out_dtype=jnp.float32):
    """Pure-JAX reference with the exact same fused params / precision policy."""
    h = x.astype(jnp.bfloat16)
    n_layers = len(kernel_params) // 2
    for li in range(n_layers):
        w = kernel_params[2 * li]
        b = kernel_params[2 * li + 1]
        h = jnp.dot(h.astype(jnp.bfloat16), w,
                    preferred_element_type=jnp.float32) + b
        if li in RELU_LAYERS:
            h = jnp.maximum(h, 0.0)
    return jax.nn.sigmoid(h).astype(out_dtype)


if __name__ == "__main__":
    key = jax.random.PRNGKey(0)
    kx, kp = jax.random.split(key)

    # Small batch; the wrapper caps the tile at B/2 so the grid still has
    # two full tiles (exercises pipelining and v7x megacore sharding).
    B = 512
    x = jax.random.uniform(kx, (B, IN_FEATURES), jnp.float32)
    raw_params = init_params(kp)
    params = prepare_params(raw_params)

    # Default path: bf16 streaming input, f32 output (matches PyTorch dtype).
    out = jax.block_until_ready(autoencoder_forward(x, params))
    ref = reference_forward(x, params, jnp.float32)
    assert out.shape == (B, IN_FEATURES), out.shape
    assert out.dtype == jnp.float32, out.dtype
    assert jnp.allclose(out, ref, atol=2e-3, rtol=2e-3), "mismatch vs pure-JAX reference (f32 out)"

    # bf16-output variant (halves output HBM traffic on a mem-bound kernel).
    out_bf16 = jax.block_until_ready(
        autoencoder_forward(x, params, out_dtype=jnp.bfloat16))
    ref_bf16 = reference_forward(x, params, jnp.bfloat16)
    assert out_bf16.dtype == jnp.bfloat16, out_bf16.dtype
    assert jnp.allclose(out_bf16.astype(jnp.float32), ref_bf16.astype(jnp.float32),
                        atol=8e-3, rtol=8e-3), "mismatch vs pure-JAX reference (bf16 out)"

    print("KERNEL_OK")
</pallas_src>

<mosaic_0001>
module attributes {stable_mosaic.version = 11 : i64} {
  func.func @autoencoder_kernel(%arg0: i32, %arg1: memref<256x784xbf16, #tpu.memory_space<vmem>>, %arg2: memref<784x128xbf16, #tpu.memory_space<vmem>>, %arg3: memref<1x128xf32, #tpu.memory_space<vmem>>, %arg4: memref<128x64xbf16, #tpu.memory_space<vmem>>, %arg5: memref<1x64xf32, #tpu.memory_space<vmem>>, %arg6: memref<64x12xbf16, #tpu.memory_space<vmem>>, %arg7: memref<1x12xf32, #tpu.memory_space<vmem>>, %arg8: memref<12x12xbf16, #tpu.memory_space<vmem>>, %arg9: memref<1x12xf32, #tpu.memory_space<vmem>>, %arg10: memref<12x64xbf16, #tpu.memory_space<vmem>>, %arg11: memref<1x64xf32, #tpu.memory_space<vmem>>, %arg12: memref<64x128xbf16, #tpu.memory_space<vmem>>, %arg13: memref<1x128xf32, #tpu.memory_space<vmem>>, %arg14: memref<128x784xbf16, #tpu.memory_space<vmem>>, %arg15: memref<1x784xf32, #tpu.memory_space<vmem>>, %arg16: memref<256x784xf32, #tpu.memory_space<vmem>>) attributes {dimension_semantics = [#tpu.dimension_semantics<parallel>], iteration_bounds = array<i64: 2>, scalar_prefetch = 0 : i64, scratch_operands = 0 : i64, tpu.core_type = #tpu.core_type<tc>, window_params = [{transform_indices = @transform_0, window_bounds = array<i64: 256, 784>}, {pipeline_mode = #tpu.pipeline_mode<synchronous>, transform_indices = @transform_1, window_bounds = array<i64: 784, 128>}, {pipeline_mode = #tpu.pipeline_mode<synchronous>, transform_indices = @transform_2, window_bounds = array<i64: 1, 128>}, {pipeline_mode = #tpu.pipeline_mode<synchronous>, transform_indices = @transform_3, window_bounds = array<i64: 128, 64>}, {pipeline_mode = #tpu.pipeline_mode<synchronous>, transform_indices = @transform_4, window_bounds = array<i64: 1, 64>}, {pipeline_mode = #tpu.pipeline_mode<synchronous>, transform_indices = @transform_5, window_bounds = array<i64: 64, 12>}, {pipeline_mode = #tpu.pipeline_mode<synchronous>, transform_indices = @transform_6, window_bounds = array<i64: 1, 12>}, {pipeline_mode = #tpu.pipeline_mode<synchronous>, transform_indices = @transform_7, window_bounds = array<i64: 12, 12>}, {pipeline_mode = #tpu.pipeline_mode<synchronous>, transform_indices = @transform_8, window_bounds = array<i64: 1, 12>}, {pipeline_mode = #tpu.pipeline_mode<synchronous>, transform_indices = @transform_9, window_bounds = array<i64: 12, 64>}, {pipeline_mode = #tpu.pipeline_mode<synchronous>, transform_indices = @transform_10, window_bounds = array<i64: 1, 64>}, {pipeline_mode = #tpu.pipeline_mode<synchronous>, transform_indices = @transform_11, window_bounds = array<i64: 64, 128>}, {pipeline_mode = #tpu.pipeline_mode<synchronous>, transform_indices = @transform_12, window_bounds = array<i64: 1, 128>}, {pipeline_mode = #tpu.pipeline_mode<synchronous>, transform_indices = @transform_13, window_bounds = array<i64: 128, 784>}, {pipeline_mode = #tpu.pipeline_mode<synchronous>, transform_indices = @transform_14, window_bounds = array<i64: 1, 784>}, {transform_indices = @transform_15, window_bounds = array<i64: 256, 784>}]} {
    %c0 = arith.constant 0 : index
    %c0_0 = arith.constant 0 : index
    %0 = vector.load %arg1[%c0, %c0_0] : memref<256x784xbf16, #tpu.memory_space<vmem>>, vector<256x784xbf16>
    %c0_1 = arith.constant 0 : index
    %c0_2 = arith.constant 0 : index
    %1 = vector.load %arg2[%c0_1, %c0_2] : memref<784x128xbf16, #tpu.memory_space<vmem>>, vector<784x128xbf16>
    %c0_3 = arith.constant 0 : index
    %c0_4 = arith.constant 0 : index
    %2 = vector.load %arg3[%c0_3, %c0_4] : memref<1x128xf32, #tpu.memory_space<vmem>>, vector<1x128xf32>
    %cst = arith.constant dense<0.000000e+00> : vector<256x128xf32>
    %3 = tpu.matmul %0, %1, %cst {dimension_numbers = #tpu.dot_dimension_numbers<[1], [0], [0], [1], [0, 0, 1, 1], [], []>} : vector<256x784xbf16>, vector<784x128xbf16>, vector<256x128xf32> -> vector<256x128xf32>
    %4 = vector.broadcast %2 : vector<1x128xf32> to vector<256x128xf32>
    %5 = arith.addf %3, %4 : vector<256x128xf32>
    %cst_5 = arith.constant 0.000000e+00 : f32
    %6 = vector.broadcast %cst_5 : f32 to vector<256x128xf32>
    %7 = arith.maximumf %5, %6 : vector<256x128xf32>
    %c0_6 = arith.constant 0 : index
    %c0_7 = arith.constant 0 : index
    %8 = vector.load %arg4[%c0_6, %c0_7] : memref<128x64xbf16, #tpu.memory_space<vmem>>, vector<128x64xbf16>
    %c0_8 = arith.constant 0 : index
    %c0_9 = arith.constant 0 : index
    %9 = vector.load %arg5[%c0_8, %c0_9] : memref<1x64xf32, #tpu.memory_space<vmem>>, vector<1x64xf32>
    %10 = arith.truncf %7 : vector<256x128xf32> to vector<256x128xbf16>
    %cst_10 = arith.constant dense<0.000000e+00> : vector<256x64xf32>
    %11 = tpu.matmul %10, %8, %cst_10 {dimension_numbers = #tpu.dot_dimension_numbers<[1], [0], [0], [1], [0, 0, 1, 1], [], []>} : vector<256x128xbf16>, vector<128x64xbf16>, vector<256x64xf32> -> vector<256x64xf32>
    %12 = vector.broadcast %9 : vector<1x64xf32> to vector<256x64xf32>
    %13 = arith.addf %11, %12 : vector<256x64xf32>
    %cst_11 = arith.constant 0.000000e+00 : f32
    %14 = vector.broadcast %cst_11 : f32 to vector<256x64xf32>
    %15 = arith.maximumf %13, %14 : vector<256x64xf32>
    %c0_12 = arith.constant 0 : index
    %c0_13 = arith.constant 0 : index
    %16 = vector.load %arg6[%c0_12, %c0_13] : memref<64x12xbf16, #tpu.memory_space<vmem>>, vector<64x12xbf16>
    %c0_14 = arith.constant 0 : index
    %c0_15 = arith.constant 0 : index
    %17 = vector.load %arg7[%c0_14, %c0_15] : memref<1x12xf32, #tpu.memory_space<vmem>>, vector<1x12xf32>
    %18 = arith.truncf %15 : vector<256x64xf32> to vector<256x64xbf16>
    %cst_16 = arith.constant dense<0.000000e+00> : vector<256x12xf32>
    %19 = tpu.matmul %18, %16, %cst_16 {dimension_numbers = #tpu.dot_dimension_numbers<[1], [0], [0], [1], [0, 0, 1, 1], [], []>} : vector<256x64xbf16>, vector<64x12xbf16>, vector<256x12xf32> -> vector<256x12xf32>
    %20 = vector.broadcast %17 : vector<1x12xf32> to vector<256x12xf32>
    %21 = arith.addf %19, %20 : vector<256x12xf32>
    %cst_17 = arith.constant 0.000000e+00 : f32
    %22 = vector.broadcast %cst_17 : f32 to vector<256x12xf32>
    %23 = arith.maximumf %21, %22 : vector<256x12xf32>
    %c0_18 = arith.constant 0 : index
    %c0_19 = arith.constant 0 : index
    %24 = vector.load %arg8[%c0_18, %c0_19] : memref<12x12xbf16, #tpu.memory_space<vmem>>, vector<12x12xbf16>
    %c0_20 = arith.constant 0 : index
    %c0_21 = arith.constant 0 : index
    %25 = vector.load %arg9[%c0_20, %c0_21] : memref<1x12xf32, #tpu.memory_space<vmem>>, vector<1x12xf32>
    %26 = arith.truncf %23 : vector<256x12xf32> to vector<256x12xbf16>
    %cst_22 = arith.constant dense<0.000000e+00> : vector<256x12xf32>
    %27 = tpu.matmul %26, %24, %cst_22 {dimension_numbers = #tpu.dot_dimension_numbers<[1], [0], [0], [1], [0, 0, 1, 1], [], []>} : vector<256x12xbf16>, vector<12x12xbf16>, vector<256x12xf32> -> vector<256x12xf32>
    %28 = vector.broadcast %25 : vector<1x12xf32> to vector<256x12xf32>
    %29 = arith.addf %27, %28 : vector<256x12xf32>
    %cst_23 = arith.constant 0.000000e+00 : f32
    %30 = vector.broadcast %cst_23 : f32 to vector<256x12xf32>
    %31 = arith.maximumf %29, %30 : vector<256x12xf32>
    %c0_24 = arith.constant 0 : index
    %c0_25 = arith.constant 0 : index
    %32 = vector.load %arg10[%c0_24, %c0_25] : memref<12x64xbf16, #tpu.memory_space<vmem>>, vector<12x64xbf16>
    %c0_26 = arith.constant 0 : index
    %c0_27 = arith.constant 0 : index
    %33 = vector.load %arg11[%c0_26, %c0_27] : memref<1x64xf32, #tpu.memory_space<vmem>>, vector<1x64xf32>
    %34 = arith.truncf %31 : vector<256x12xf32> to vector<256x12xbf16>
    %cst_28 = arith.constant dense<0.000000e+00> : vector<256x64xf32>
    %35 = tpu.matmul %34, %32, %cst_28 {dimension_numbers = #tpu.dot_dimension_numbers<[1], [0], [0], [1], [0, 0, 1, 1], [], []>} : vector<256x12xbf16>, vector<12x64xbf16>, vector<256x64xf32> -> vector<256x64xf32>
    %36 = vector.broadcast %33 : vector<1x64xf32> to vector<256x64xf32>
    %37 = arith.addf %35, %36 : vector<256x64xf32>
    %cst_29 = arith.constant 0.000000e+00 : f32
    %38 = vector.broadcast %cst_29 : f32 to vector<256x64xf32>
    %39 = arith.maximumf %37, %38 : vector<256x64xf32>
    %c0_30 = arith.constant 0 : index
    %c0_31 = arith.constant 0 : index
    %40 = vector.load %arg12[%c0_30, %c0_31] : memref<64x128xbf16, #tpu.memory_space<vmem>>, vector<64x128xbf16>
    %c0_32 = arith.constant 0 : index
    %c0_33 = arith.constant 0 : index
    %41 = vector.load %arg13[%c0_32, %c0_33] : memref<1x128xf32, #tpu.memory_space<vmem>>, vector<1x128xf32>
    %42 = arith.truncf %39 : vector<256x64xf32> to vector<256x64xbf16>
    %cst_34 = arith.constant dense<0.000000e+00> : vector<256x128xf32>
    %43 = tpu.matmul %42, %40, %cst_34 {dimension_numbers = #tpu.dot_dimension_numbers<[1], [0], [0], [1], [0, 0, 1, 1], [], []>} : vector<256x64xbf16>, vector<64x128xbf16>, vector<256x128xf32> -> vector<256x128xf32>
    %44 = vector.broadcast %41 : vector<1x128xf32> to vector<256x128xf32>
    %45 = arith.addf %43, %44 : vector<256x128xf32>
    %cst_35 = arith.constant 0.000000e+00 : f32
    %46 = vector.broadcast %cst_35 : f32 to vector<256x128xf32>
    %47 = arith.maximumf %45, %46 : vector<256x128xf32>
    %c0_36 = arith.constant 0 : index
    %c0_37 = arith.constant 0 : index
    %48 = vector.load %arg14[%c0_36, %c0_37] : memref<128x784xbf16, #tpu.memory_space<vmem>>, vector<128x784xbf16>
    %c0_38 = arith.constant 0 : index
    %c0_39 = arith.constant 0 : index
    %49 = vector.load %arg15[%c0_38, %c0_39] : memref<1x784xf32, #tpu.memory_space<vmem>>, vector<1x784xf32>
    %50 = arith.truncf %47 : vector<256x128xf32> to vector<256x128xbf16>
    %cst_40 = arith.constant dense<0.000000e+00> : vector<256x784xf32>
    %51 = tpu.matmul %50, %48, %cst_40 {dimension_numbers = #tpu.dot_dimension_numbers<[1], [0], [0], [1], [0, 0, 1, 1], [], []>} : vector<256x128xbf16>, vector<128x784xbf16>, vector<256x784xf32> -> vector<256x784xf32>
    %52 = vector.broadcast %49 : vector<1x784xf32> to vector<256x784xf32>
    %53 = arith.addf %51, %52 : vector<256x784xf32>
    %54 = arith.negf %53 : vector<256x784xf32>
    %55 = math.exp %54 : vector<256x784xf32>
    %cst_41 = arith.constant 1.000000e+00 : f32
    %56 = vector.broadcast %cst_41 : f32 to vector<256x784xf32>
    %57 = arith.addf %56, %55 : vector<256x784xf32>
    %58 = arith.divf %56, %57 : vector<256x784xf32>
    %c0_42 = arith.constant 0 : index
    %c0_43 = arith.constant 0 : index
    %59 = vector.load %arg16[%c0_42, %c0_43] : memref<256x784xf32, #tpu.memory_space<vmem>>, vector<256x784xf32>
    tpu.vector_store %arg16[%c0_42, %c0_43], %58 {strides = array<i32>} : memref<256x784xf32, #tpu.memory_space<vmem>>, vector<256x784xf32>,
    return
  }
  func.func @transform_0(%arg0: i32) -> (i32, i32) {
    %c0_i32 = arith.constant 0 : i32
    %c0_i32_0 = arith.constant 0 : i32
    return %arg0, %c0_i32 : i32, i32
  }
  func.func @transform_1(%arg0: i32) -> (i32, i32) {
    %c0_i32 = arith.constant 0 : i32
    %c0_i32_0 = arith.constant 0 : i32
    %c0_i32_1 = arith.constant 0 : i32
    return %c0_i32, %c0_i32_0 : i32, i32
  }
  func.func @transform_2(%arg0: i32) -> (i32, i32) {
    %c0_i32 = arith.constant 0 : i32
    %c0_i32_0 = arith.constant 0 : i32
    %c0_i32_1 = arith.constant 0 : i32
    return %c0_i32, %c0_i32_0 : i32, i32
  }
  func.func @transform_3(%arg0: i32) -> (i32, i32) {
    %c0_i32 = arith.constant 0 : i32
    %c0_i32_0 = arith.constant 0 : i32
    %c0_i32_1 = arith.constant 0 : i32
    return %c0_i32, %c0_i32_0 : i32, i32
  }
  func.func @transform_4(%arg0: i32) -> (i32, i32) {
    %c0_i32 = arith.constant 0 : i32
    %c0_i32_0 = arith.constant 0 : i32
    %c0_i32_1 = arith.constant 0 : i32
    return %c0_i32, %c0_i32_0 : i32, i32
  }
  func.func @transform_5(%arg0: i32) -> (i32, i32) {
    %c0_i32 = arith.constant 0 : i32
    %c0_i32_0 = arith.constant 0 : i32
    %c0_i32_1 = arith.constant 0 : i32
    return %c0_i32, %c0_i32_0 : i32, i32
  }
  func.func @transform_6(%arg0: i32) -> (i32, i32) {
    %c0_i32 = arith.constant 0 : i32
    %c0_i32_0 = arith.constant 0 : i32
    %c0_i32_1 = arith.constant 0 : i32
    return %c0_i32, %c0_i32_0 : i32, i32
  }
  func.func @transform_7(%arg0: i32) -> (i32, i32) {
    %c0_i32 = arith.constant 0 : i32
    %c0_i32_0 = arith.constant 0 : i32
    %c0_i32_1 = arith.constant 0 : i32
    return %c0_i32, %c0_i32_0 : i32, i32
  }
  func.func @transform_8(%arg0: i32) -> (i32, i32) {
    %c0_i32 = arith.constant 0 : i32
    %c0_i32_0 = arith.constant 0 : i32
    %c0_i32_1 = arith.constant 0 : i32
    return %c0_i32, %c0_i32_0 : i32, i32
  }
  func.func @transform_9(%arg0: i32) -> (i32, i32) {
    %c0_i32 = arith.constant 0 : i32
    %c0_i32_0 = arith.constant 0 : i32
    %c0_i32_1 = arith.constant 0 : i32
    return %c0_i32, %c0_i32_0 : i32, i32
  }
  func.func @transform_10(%arg0: i32) -> (i32, i32) {
    %c0_i32 = arith.constant 0 : i32
    %c0_i32_0 = arith.constant 0 : i32
    %c0_i32_1 = arith.constant 0 : i32
    return %c0_i32, %c0_i32_0 : i32, i32
  }
  func.func @transform_11(%arg0: i32) -> (i32, i32) {
    %c0_i32 = arith.constant 0 : i32
    %c0_i32_0 = arith.constant 0 : i32
    %c0_i32_1 = arith.constant 0 : i32
    return %c0_i32, %c0_i32_0 : i32, i32
  }
  func.func @transform_12(%arg0: i32) -> (i32, i32) {
    %c0_i32 = arith.constant 0 : i32
    %c0_i32_0 = arith.constant 0 : i32
    %c0_i32_1 = arith.constant 0 : i32
    return %c0_i32, %c0_i32_0 : i32, i32
  }
  func.func @transform_13(%arg0: i32) -> (i32, i32) {
    %c0_i32 = arith.constant 0 : i32
    %c0_i32_0 = arith.constant 0 : i32
    %c0_i32_1 = arith.constant 0 : i32
    return %c0_i32, %c0_i32_0 : i32, i32
  }
  func.func @transform_14(%arg0: i32) -> (i32, i32) {
    %c0_i32 = arith.constant 0 : i32
    %c0_i32_0 = arith.constant 0 : i32
    %c0_i32_1 = arith.constant 0 : i32
    return %c0_i32, %c0_i32_0 : i32, i32
  }
  func.func @transform_15(%arg0: i32) -> (i32, i32) {
    %c0_i32 = arith.constant 0 : i32
    %c0_i32_0 = arith.constant 0 : i32
    return %arg0, %c0_i32 : i32, i32
  }
}

</mosaic_0001>

<bundles_post_ra>
// kernel: autoencoder_forward.1
= control target key start
LH: loop header
LB: loop body
LE: loop exit
PB: predicated region body
PF: predicated region fallthrough
CT: control target
= control target key end

     0   :  { %s11403_s18 = smov 0   ;;  %s16968_s0 = inlined_call_operand.vmem [shape: bf16[512,784], index: 0, kind: input, shape index: {}]   ;;  %s16969_s1 = inlined_call_operand.vmem [shape: bf16[784,128], index: 1, kind: input, shape index: {}]   ;;  %s16970_s2 = inlined_call_operand.vmem [shape: f32[1,128], index: 2, kind: input, shape index: {}]   ;;  %s16971_s3 = inlined_call_operand.vmem [shape: bf16[128,64], index: 3, kind: input, shape index: {}]   ;;  %s16972_s4 = inlined_call_operand.vmem [shape: f32[1,64], index: 4, kind: input, shape index: {}]   ;;  %s16973_s5 = inlined_call_operand.vmem [shape: bf16[64,12], index: 5, kind: input, shape index: {}]   ;;  %s16974_s6 = inlined_call_operand.vmem [shape: f32[1,12], index: 6, kind: input, shape index: {}]   ;;  %s16975_s7 = inlined_call_operand.vmem [shape: bf16[12,12], index: 7, kind: input, shape index: {}]   ;;  %s16976_s8 = inlined_call_operand.vmem [shape: f32[1,12], index: 8, kind: input, shape index: {}]   ;;  %s16977_s9 = inlined_call_operand.vmem [shape: bf16[12,64], index: 9, kind: input, shape index: {}]   ;;  %s16978_s10 = inlined_call_operand.vmem [shape: f32[1,64], index: 10, kind: input, shape index: {}]   ;;  %s16979_s11 = inlined_call_operand.vmem [shape: bf16[64,128], index: 11, kind: input, shape index: {}]   ;;  %s16980_s12 = inlined_call_operand.vmem [shape: f32[1,128], index: 12, kind: input, shape index: {}]   ;;  %s16981_s13 = inlined_call_operand.vmem [shape: bf16[128,784], index: 13, kind: input, shape index: {}]   ;;  %s16982_s14 = inlined_call_operand.vmem [shape: f32[1,784], index: 14, kind: input, shape index: {}]   ;;  %s16983_s15 = inlined_call_operand.vmem [shape: f32[512,784], index: 15, kind: output, shape index: {}]  }
   0x1 LB: > { %s8885_s19 = sadd.s32 4294967295, %s11321_s18   ;;  %p8889_p0 = scmp.ge.s32.totalorder %s11321_s18, 1  ;;  %s11321_s18 = sphi %s11403_s18, %s25_s18  }
   0x2   : > { %p439_p1 = scmp.lt.s32.totalorder %s11321_s18, 3 }
   0x4   : > { %p440_p2 = pnand %p8889_p0, %p439_p1 }
   0x5   : > { %s8890_s25 = sshll.u32 (!%p440_p2), %s8885_s19, 5 }
   0x6   : > { %443 = sbr.rel (%p440_p2) target bundleno = 2321 (0x911), region = 80  ;;  %p490_p3 = scmp.lt.s32.totalorder (!%p440_p2), %s8890_s25, 63 }
   0xb   : > { %v10259_v0 = vld [vmem:[%s16969_s1 + $0x38] sm:$0xff]  ;;  %v10258_v3 = vld [vmem:[%s16969_s1 + $0x30] sm:$0xff]  ;;  %v10257_v6 = vld [vmem:[%s16969_s1 + $0x28] sm:$0xff]  ;;  %s17371_s25 = smov (!%p490_p3, %s8890_s25), 63  ;;  %vm1588_vm0 = vcmask 130048   ;;  %vm2795_vm1 = vcmask 1045504  }
   0xc   : > { %v11417_v1 = vld [vmem:[%s16969_s1 + $0xb8] sm:$0xff]  ;;  %10375 = vmatpush.bf16.msra.mxu3 %v10259_v0  ;;  %v11431_v4 = vld [vmem:[%s16969_s1 + $0xb0] sm:$0xff]  ;;  %1637 = vmatpush.bf16.msra.mxu0 %v10259_v0  ;;  %v11446_v7 = vld [vmem:[%s16969_s1 + $0xa8] sm:$0xff]  ;;  %s10399_s29 = smul.u32 28, %s17371_s25  ;;  %vm2549_vm2 = vcmask 523264   ;;  %vm2746_vm3 = vcmask 97280  }
   0xd   : > { %v11422_v2 = vld [vmem:[%s16969_s1 + $0x78] sm:$0xff]  ;;  %1815 = vmatpush.bf16.msra.mxu2 %v11417_v1  ;;  %v11437_v5 = vld [vmem:[%s16969_s1 + $0x70] sm:$0xff]  ;;  %v10265_v8 = vld [vmem:[%s16969_s1 + $0x68] sm:$0xff]  ;;  %s10400_s17 = smul.u32 56, %s17371_s25 }
   0xe   : > { %1726 = vmatpush.bf16.msra.mxu1 %v11422_v2  ;;  %v10256_v9 = vld [vmem:[%s16969_s1 + $0x20] sm:$0xff]  ;;  %v10255_v12 = vld [vmem:[%s16969_s1 + $0x18] sm:$0xff]  ;;  %v10254_v15 = vld [vmem:[%s16969_s1 + $0x10] sm:$0xff]  ;;  %s11503_s24 = scalar_lea.vmem %s16968_s0, %s10399_s29 }
   0xf   : > { %v11459_v10 = vld [vmem:[%s16969_s1 + $0xa0] sm:$0xff]  ;;  %v11471_v13 = vld [vmem:[%s16969_s1 + $0x98] sm:$0xff]  ;;  %v11485_v16 = vld [vmem:[%s16969_s1 + $0x90] sm:$0xff]  ;;  %s12764_s20 = scalar_lea.vmem %s16983_s15, %s10400_s17 }
  0x10   : > { %10376 = vmatpush.bf16.msra.mxu3 %v10258_v3  ;;  %1638 = vmatpush.bf16.msra.mxu0 %v10258_v3  ;;  %v10264_v11 = vld [vmem:[%s16969_s1 + $0x60] sm:$0xff]  ;;  %v10263_v14 = vld [vmem:[%s16969_s1 + $0x58] sm:$0xff]  ;;  %v10262_v17 = vld [vmem:[%s16969_s1 + $0x50] sm:$0xff] }
  0x11   : > { %1816 = vmatpush.bf16.msra.mxu2 %v11431_v4  ;;  %v10253_v18 = vld [vmem:[%s16969_s1 + $0x8] sm:$0xff]  ;;  %v10252_v21 = vld [vmem:[%s16969_s1] sm:$0xff]  ;;  %v10227_v24 = vld [vmem:[%s11503_s24 + $0x2b8] sm:$0xf0] }
  0x12   : > { %1727 = vmatpush.bf16.msra.mxu1 %v11437_v5  ;;  %v11498_v19 = vld [vmem:[%s16969_s1 + $0x88] sm:$0xff]  ;;  %v9232_v22 = vld [vmem:[%s11503_s24 + $0x2a0] sm:$0xf]  ;;  %v10144_v26 = vld [vmem:[%s11503_s24 + $0x20] sm:$0xf0] }
  0x13   : > { %v10261_v20 = vld [vmem:[%s16969_s1 + $0x48] sm:$0xff]  ;;  %v11515_v23 = vld [vmem:[%s16969_s1 + $0x80] sm:$0xff]  ;;  %v10143_v28 = vld [vmem:[%s11503_s24 + $0x18] sm:$0xf0]  ;;  %v9233_v32 = vor.u32 %v10227_v24, %v9232_v22 }
  0x14   : > { %10377 = vmatpush.bf16.msra.mxu3 %v10257_v6  ;;  %1639 = vmatpush.bf16.msra.mxu0 %v10257_v6  ;;  %v8904_v25 = vld [vmem:[%s11503_s24 + $0x8] sm:$0xf]  ;;  %v8896_v27 = vld [vmem:[%s11503_s24] sm:$0xf]  ;;  %v10140_v30 = vld [vmem:[%s11503_s24 + $0x4] sm:$0xf] }
  0x15   : > { %1817 = vmatpush.bf16.msra.mxu2 %v11446_v7  ;;  %v10260_v29 = vld [vmem:[%s16969_s1 + $0x40] sm:$0xff]  ;;  %v8905_v33 = vor.u32 %v10144_v26, %v8904_v25  ;;  %v8897_v34 = vor.u32 %v10143_v28, %v8896_v27  ;;  %v9260_v36 = vld [vmem:[%s11503_s24 + $0x2d8] sm:$0xf]  ;;  %v10234_v37 = vld [vmem:[%s11503_s24 + $0x2f0] sm:$0xf0] }
  0x16   : > { %1728 = vmatpush.bf16.msra.mxu1 %v10265_v8  ;;  %v8898_v31 = vld [vmem:[%s11503_s24 + $0x1c] sm:$0xf0]  ;;  %v10151_v39 = vld [vmem:[%s11503_s24 + $0x58] sm:$0xf0]  ;;  %v8924_v40 = vld [vmem:[%s11503_s24 + $0x38] sm:$0xf]  ;;  %v9261_v44 = vor.u32 %v10234_v37, %v9260_v36 }
  0x17   : > { %v8901_v35 = vor.u32 %v10140_v30, %v8898_v31  ;;  %v8932_v38 = vld [vmem:[%s11503_s24 + $0x40] sm:$0xf]  ;;  %v10150_v41 = vld [vmem:[%s11503_s24 + $0x50] sm:$0xf0]  ;;  %v10147_v42 = vld [vmem:[%s11503_s24 + $0x3c] sm:$0xf] }
  0x18   : > { %10378 = vmatpush.bf16.msra.mxu3 %v10256_v9  ;;  %1640 = vmatpush.bf16.msra.mxu0 %v10256_v9  ;;  %v8926_v43 = vld [vmem:[%s11503_s24 + $0x54] sm:$0xf0]  ;;  %v8933_v45 = vor.u32 %v10151_v39, %v8932_v38  ;;  %v8925_v46 = vor.u32 %v10150_v41, %v8924_v40  ;;  %v9288_v48 = vld [vmem:[%s11503_s24 + $0x310] sm:$0xf]  ;;  %v10241_v49 = vld [vmem:[%s11503_s24 + $0x328] sm:$0xf0] }
  0x19   : > { %1818 = vmatpush.bf16.msra.mxu2 %v11459_v10  ;;  %v8929_v47 = vor.u32 %v10147_v42, %v8926_v43  ;;  %v8960_v50 = vld [vmem:[%s11503_s24 + $0x78] sm:$0xf]  ;;  %v10158_v51 = vld [vmem:[%s11503_s24 + $0x90] sm:$0xf0]  ;;  %v8952_v52 = vld [vmem:[%s11503_s24 + $0x70] sm:$0xf]  ;;  %v9289_v56 = vor.u32 %v10241_v49, %v9288_v48 }
  0x1a   : > { %1729 = vmatpush.bf16.msra.mxu1 %v10264_v11  ;;  %v10157_v53 = vld [vmem:[%s11503_s24 + $0x88] sm:$0xf0]  ;;  %v10154_v54 = vld [vmem:[%s11503_s24 + $0x74] sm:$0xf]  ;;  %v8954_v55 = vld [vmem:[%s11503_s24 + $0x8c] sm:$0xf0]  ;;  %v8961_v57 = vor.u32 %v10158_v51, %v8960_v50 }
  0x1b   : > { %v8953_v58 = vor.u32 %v10157_v53, %v8952_v52  ;;  %v8957_v59 = vor.u32 %v10154_v54, %v8954_v55  ;;  %v9316_v60 = vld [vmem:[%s11503_s24 + $0x348] sm:$0xf]  ;;  %v10248_v61 = vld [vmem:[%s11503_s24 + $0x360] sm:$0xf0]  ;;  %v8988_v62 = vld [vmem:[%s11503_s24 + $0xb0] sm:$0xf] }
  0x1c   : > { %10379 = vmatpush.bf16.msra.mxu3 %v10255_v12  ;;  %1641 = vmatpush.bf16.msra.mxu0 %v10255_v12  ;;  %v10165_v63 = vld [vmem:[%s11503_s24 + $0xc8] sm:$0xf0]  ;;  %v8980_v0 = vld [vmem:[%s11503_s24 + $0xa8] sm:$0xf]  ;;  %v9234_v9 = vld [vmem:[%s11503_s24 + $0x2bc] sm:$0xf0] }
  0x1d   : > { %1819 = vmatpush.bf16.msra.mxu2 %v11471_v13  ;;  %v8982_v3 = vld [vmem:[%s11503_s24 + $0xc4] sm:$0xf0]  ;;  %v9008_v12 = vld [vmem:[%s11503_s24 + $0xe0] sm:$0xf]  ;;  %v9262_v22 = vld [vmem:[%s11503_s24 + $0x2f4] sm:$0xf0] }
  0x1e   : > { %1730 = vmatpush.bf16.msra.mxu1 %v10263_v14  ;;  %v10179_v24 = vld [vmem:[%s11503_s24 + $0x138] sm:$0xf0]  ;;  %v9036_v25 = vld [vmem:[%s11503_s24 + $0x118] sm:$0xf]  ;;  %v10178_v26 = vld [vmem:[%s11503_s24 + $0x130] sm:$0xf0] }
  0x1f   : > { %v10175_v27 = vld [vmem:[%s11503_s24 + $0x11c] sm:$0xf]  ;;  %v9038_v28 = vld [vmem:[%s11503_s24 + $0x134] sm:$0xf0]  ;;  %v9037_v31 = vor.u32 %v10178_v26, %v9036_v25  ;;  %v9290_v36 = vld [vmem:[%s11503_s24 + $0x32c] sm:$0xf0] }
  0x20   : > { %10380 = vmatpush.bf16.msra.mxu3 %v10254_v15  ;;  %1642 = vmatpush.bf16.msra.mxu0 %v10254_v15  ;;  %v9010_v15 = vld [vmem:[%s11503_s24 + $0xfc] sm:$0xf0]  ;;  %v9072_v37 = vld [vmem:[%s11503_s24 + $0x158] sm:$0xf]  ;;  %v10186_v38 = vld [vmem:[%s11503_s24 + $0x170] sm:$0xf0] }
  0x21   : > { %1820 = vmatpush.bf16.msra.mxu2 %v11485_v16  ;;  %v9064_v39 = vld [vmem:[%s11503_s24 + $0x150] sm:$0xf]  ;;  %v10185_v40 = vld [vmem:[%s11503_s24 + $0x168] sm:$0xf0]  ;;  %v10182_v41 = vld [vmem:[%s11503_s24 + $0x154] sm:$0xf] }
  0x22   : > { %1731 = vmatpush.bf16.msra.mxu1 %v10262_v17  ;;  %v9066_v42 = vld [vmem:[%s11503_s24 + $0x16c] sm:$0xf0]  ;;  %v10245_v51 = vld [vmem:[%s11503_s24 + $0x34c] sm:$0xf]  ;;  %v9318_v52 = vld [vmem:[%s11503_s24 + $0x364] sm:$0xf0] }
  0x23   : > { %v10282_v48 = vld [vmem:[%s16969_s1 + $0xf0] sm:$0xff]  ;;  %v10193_v54 = vld [vmem:[%s11503_s24 + $0x1a8] sm:$0xf0]  ;;  %v9092_v55 = vld [vmem:[%s11503_s24 + $0x188] sm:$0xf] }
  0x24   : > { %10381 = vmatpush.bf16.msra.mxu3 %v10253_v18  ;;  %1643 = vmatpush.bf16.msra.mxu0 %v10253_v18  ;;  %v10290_v49 = vld [vmem:[%s16969_s1 + $0x130] sm:$0xff] }
  0x25   : > { %1821 = vmatpush.bf16.msra.mxu2 %v11498_v19  ;;  %v10298_v50 = vld [vmem:[%s16969_s1 + $0x170] sm:$0xff] }
  0x26   : > { %1732 = vmatpush.bf16.msra.mxu1 %v10261_v20  ;;  %v9100_v53 = vld [vmem:[%s11503_s24 + $0x190] sm:$0xf] }
  0x28   : > { %10382 = vmatpush.bf16.msra.mxu3 %v10252_v21  ;;  %1644 = vmatpush.bf16.msra.mxu0 %v10252_v21  ;;  %v10231_v21 = vld [vmem:[%s11503_s24 + $0x2dc] sm:$0xf] }
  0x29   : > { %1822 = vmatpush.bf16.msra.mxu2 %v11515_v23 }
  0x2a   : > { %1733 = vmatpush.bf16.msra.mxu1 %v10260_v29 }
  0x2b   : > { %1705 = vmatmul.bf16.vlgmr.msra.gmra.mxu3 %v9233_v32  ;;  %1645 = vmatmul.bf16.vlgmr.msra.gmra.mxu0 %v8897_v34  ;;  %v9041_v32 = vor.u32 %v10175_v27, %v9038_v28  ;;  %v10299_v34 = vld [vmem:[%s16969_s1 + $0x178] sm:$0xff]  ;;  %v9268_v28 = vld [vmem:[%s11503_s24 + $0x2e0] sm:$0xf] }
  0x2c   : > { %10383 = vmatpush.bf16.msrb.mxu3 %v11422_v2  ;;  %1823 = vmatmul.bf16.vlgmr.msra.gmra.mxu2 %v8905_v33  ;;  %v10161_v2 = vld [vmem:[%s11503_s24 + $0xac] sm:$0xf]  ;;  %v10291_v33 = vld [vmem:[%s16969_s1 + $0x138] sm:$0xff] }
  0x2d   : > { %1734 = vmatmul.bf16.vlgmr.msra.gmra.mxu1 %v8901_v35  ;;  %1993 = vmatpush.bf16.msrb.mxu0 %v10291_v33  ;;  %v10238_v35 = vld [vmem:[%s11503_s24 + $0x314] sm:$0xf]  ;;  %v9148_v33 = vld [vmem:[%s11503_s24 + $0x1f8] sm:$0xf] }
  0x2e   : > { %2082 = vmatpush.bf16.msrb.mxu1 %v10299_v34  ;;  %v9293_v43 = vor.u32 %v10238_v35, %v9290_v36  ;;  %v10206_v34 = vld [vmem:[%s11503_s24 + $0x210] sm:$0xf0] }
  0x30   : > { %10384 = vmatpush.bf16.msrb.mxu3 %v11437_v5  ;;  %v8989_v5 = vor.u32 %v10165_v63, %v8988_v62  ;;  %v10281_v63 = vld [vmem:[%s16969_s1 + $0xe8] sm:$0xff] }
  0x31   : > { %1994 = vmatpush.bf16.msrb.mxu0 %v10290_v49 }
  0x32   : > { %2083 = vmatpush.bf16.msrb.mxu1 %v10298_v50 }
  0x34   : > { %10385 = vmatpush.bf16.msrb.mxu3 %v10265_v8  ;;  %v10224_v8 = vld [vmem:[%s11503_s24 + $0x2a4] sm:$0xf] }
  0x38   : > { %10386 = vmatpush.bf16.msrb.mxu3 %v10264_v11  ;;  %v10172_v11 = vld [vmem:[%s11503_s24 + $0x100] sm:$0xf0] }
  0x3b   : > { %1710 = vmatmul.bf16.gmra.mxu3 %v9261_v44  ;;  %1650 = vmatmul.bf16.gmra.mxu0 %v8925_v46  ;;  %v9073_v44 = vor.u32 %v10186_v38, %v9072_v37  ;;  %v9069_v46 = vor.u32 %v10182_v41, %v9066_v42  ;;  %v10203_v37 = vld [vmem:[%s11503_s24 + $0x1fc] sm:$0xf]  ;;  %v9150_v38 = vld [vmem:[%s11503_s24 + $0x214] sm:$0xf0]  ;;  %v9149_v42 = vor.u32 %v10206_v34, %v9148_v33  ;;  %v10249_v34 = vld [vmem:[%s11503_s24 + $0x368] sm:$0xf0] }
  0x3c   : > { %10387 = vmatpush.bf16.msrb.mxu3 %v10263_v14  ;;  %1828 = vmatmul.bf16.gmra.mxu2 %v8933_v45  ;;  %v10168_v14 = vld [vmem:[%s11503_s24 + $0xe4] sm:$0xf]  ;;  %v9065_v45 = vor.u32 %v10185_v40, %v9064_v39 }
  0x3d   : > { %1739 = vmatmul.bf16.gmra.mxu1 %v8929_v47  ;;  %v10283_v47 = vld [vmem:[%s16969_s1 + $0xf8] sm:$0xff] }
  0x40   : > { %10388 = vmatpush.bf16.msrb.mxu3 %v10262_v17 }
  0x44   : > { %10389 = vmatpush.bf16.msrb.mxu3 %v10261_v20  ;;  %v10300_v20 = vld [vmem:[%s16969_s1 + $0x180] sm:$0xff] }
  0x45   : > { %2178 = vmatpush.bf16.msrb.mxu2 %v10300_v20 }
  0x48   : > { %10390 = vmatpush.bf16.msrb.mxu3 %v10260_v29  ;;  %v9265_v29 = vor.u32 %v10231_v21, %v9262_v22 }
  0x4b   : > { %1715 = vmatmul.bf16.gmra.mxu3 %v9289_v56  ;;  %1655 = vmatmul.bf16.gmra.mxu0 %v8953_v58  ;;  %v10192_v56 = vld [vmem:[%s11503_s24 + $0x1a0] sm:$0xf0]  ;;  %v9094_v58 = vld [vmem:[%s11503_s24 + $0x1a4] sm:$0xf0] }
  0x4c   : > { %10391 = vmatpush.bf16.msra.mxu3 %v11417_v1  ;;  %1833 = vmatmul.bf16.gmra.mxu2 %v8961_v57  ;;  %v10164_v1 = vld [vmem:[%s11503_s24 + $0xc0] sm:$0xf0]  ;;  %v10189_v57 = vld [vmem:[%s11503_s24 + $0x18c] sm:$0xf] }
  0x4d   : > { %1744 = vmatmul.bf16.gmra.mxu1 %v8957_v59  ;;  %v8981_v6 = vor.u32 %v10164_v1, %v8980_v0  ;;  %v9321_v59 = vor.u32 %v10245_v51, %v9318_v52  ;;  %v9097_v62 = vor.u32 %v10189_v57, %v9094_v58  ;;  %v10280_v0 = vld [vmem:[%s16969_s1 + $0xe0] sm:$0xff]  ;;  %v9240_v1 = vld [vmem:[%s11503_s24 + $0x2a8] sm:$0xf] }
  0x4e   : > { %v10288_v51 = vld [vmem:[%s16969_s1 + $0x120] sm:$0xff] }
  0x50   : > { %10392 = vmatpush.bf16.msra.mxu3 %v11431_v4  ;;  %v9317_v4 = vor.u32 %v10248_v61, %v9316_v60  ;;  %v9101_v60 = vor.u32 %v10193_v54, %v9100_v53  ;;  %v9093_v61 = vor.u32 %v10192_v56, %v9092_v55  ;;  %v10296_v53 = vld [vmem:[%s16969_s1 + $0x160] sm:$0xff]  ;;  %v10287_v55 = vld [vmem:[%s16969_s1 + $0x118] sm:$0xff] }
  0x51   : > { %v10276_v54 = vld [vmem:[%s16969_s1 + $0xc0] sm:$0xff] }
  0x54   : > { %10393 = vmatpush.bf16.msra.mxu3 %v11446_v7  ;;  %v8985_v7 = vor.u32 %v10161_v2, %v8982_v3  ;;  %v10228_v2 = vld [vmem:[%s11503_s24 + $0x2c0] sm:$0xf0]  ;;  %v9128_v3 = vld [vmem:[%s11503_s24 + $0x1c8] sm:$0xf] }
  0x58   : > { %10394 = vmatpush.bf16.msra.mxu3 %v11459_v10  ;;  %v9016_v10 = vld [vmem:[%s11503_s24 + $0xe8] sm:$0xf] }
  0x59   : > { %v9017_v17 = vor.u32 %v10172_v11, %v9016_v10  ;;  %v11633_v11 = vld [vmem:[%s16970_s2] ss:$0 sm:$0xff] }
  0x5b   : > { %1720 = vmatmul.bf16.gmra.mxu3 %v9317_v4  ;;  %1660 = vmatmul.bf16.gmra.mxu0 %v8981_v6  ;;  %v10200_v4 = vld [vmem:[%s11503_s24 + $0x1e0] sm:$0xf0]  ;;  %v10199_v6 = vld [vmem:[%s11503_s24 + $0x1d8] sm:$0xf0] }
  0x5c   : > { %10395 = vmatpush.bf16.msra.mxu3 %v11471_v13  ;;  %1838 = vmatmul.bf16.gmra.mxu2 %v8989_v5  ;;  %v10171_v13 = vld [vmem:[%s11503_s24 + $0xf8] sm:$0xf0]  ;;  %v9120_v5 = vld [vmem:[%s11503_s24 + $0x1c0] sm:$0xf]  ;;  %v9129_v10 = vor.u32 %v10200_v4, %v9128_v3 }
  0x5d   : > { %1749 = vmatmul.bf16.gmra.mxu1 %v8985_v7  ;;  %v9009_v18 = vor.u32 %v10171_v13, %v9008_v12  ;;  %v10196_v7 = vld [vmem:[%s11503_s24 + $0x1c4] sm:$0xf]  ;;  %v9121_v12 = vor.u32 %v10199_v6, %v9120_v5  ;;  %v10210_v5 = vld [vmem:[%s11503_s24 + $0x234] sm:$0xf]  ;;  %v9178_v6 = vld [vmem:[%s11503_s24 + $0x24c] sm:$0xf0] }
  0x60   : > { %10396 = vmatpush.bf16.msra.mxu3 %v11485_v16  ;;  %v9237_v16 = vor.u32 %v10224_v8, %v9234_v9  ;;  %v9122_v8 = vld [vmem:[%s11503_s24 + $0x1dc] sm:$0xf0]  ;;  %v9241_v9 = vor.u32 %v10228_v2, %v9240_v1  ;;  %v9176_v1 = vld [vmem:[%s11503_s24 + $0x230] sm:$0xf]  ;;  %v10213_v2 = vld [vmem:[%s11503_s24 + $0x248] sm:$0xf0] }
  0x64   : > { %10397 = vmatpush.bf16.msra.mxu3 %v11498_v19  ;;  %v9013_v19 = vor.u32 %v10168_v14, %v9010_v15  ;;  %v9125_v14 = vor.u32 %v10196_v7, %v9122_v8  ;;  %v10286_v7 = vld [vmem:[%s16969_s1 + $0x110] sm:$0xff] }
  0x68   : > { %10398 = vmatpush.bf16.msra.mxu3 %v11515_v23  ;;  %v9044_v23 = vld [vmem:[%s11503_s24 + $0x120] sm:$0xf] }
  0x69   : > { %v9045_v30 = vor.u32 %v10179_v24, %v9044_v23  ;;  %v10278_v24 = vld [vmem:[%s16969_s1 + $0xd0] sm:$0xff] }
  0x6b   : > { %1794 = vmatmul.bf16.vlgmr.msrb.gmra.mxu3 %v9237_v16  ;;  %1665 = vmatmul.bf16.gmra.mxu0 %v9009_v18  ;;  %v10289_v18 = vld [vmem:[%s16969_s1 + $0x128] sm:$0xff] }
  0x6c   : > { %1843 = vmatmul.bf16.gmra.mxu2 %v9017_v17  ;;  %1904 = vmatpush.bf16.msrb.mxu3 %v10283_v47  ;;  %v10279_v17 = vld [vmem:[%s16969_s1 + $0xd8] sm:$0xff]  ;;  %v10277_v47 = vld [vmem:[%s16969_s1 + $0xc8] sm:$0xff] }
  0x6d   : > { %1754 = vmatmul.bf16.gmra.mxu1 %v9013_v19  ;;  %v10297_v19 = vld [vmem:[%s16969_s1 + $0x168] sm:$0xff]  ;;  %1995 = vmatpush.bf16.msrb.mxu0 %v10289_v18 }
  0x6e   : > { %2084 = vmatpush.bf16.msrb.mxu1 %v10297_v19  ;;  %v10285_v18 = vld [vmem:[%s16969_s1 + $0x108] sm:$0xff]  ;;  %v10308_v19 = vld [vmem:[%s16971_s3 + $0x38] sm:$0xff] }
  0x70   : > { %1905 = vmatpush.bf16.msrb.mxu3 %v10282_v48 }
  0x71   : > { %1996 = vmatpush.bf16.msrb.mxu0 %v10288_v51 }
  0x72   : > { %2085 = vmatpush.bf16.msrb.mxu1 %v10296_v53 }
  0x74   : > { %1906 = vmatpush.bf16.msrb.mxu3 %v10281_v63  ;;  %v10214_v63 = vld [vmem:[%s11503_s24 + $0x250] sm:$0xf0] }
  0x75   : > { %1997 = vmatpush.bf16.msrb.mxu0 %v10287_v55 }
  0x78   : > { %1907 = vmatpush.bf16.msrb.mxu3 %v10280_v0  ;;  %v10295_v0 = vld [vmem:[%s16969_s1 + $0x158] sm:$0xff] }
  0x79   : > { %2086 = vmatpush.bf16.msrb.mxu1 %v10295_v0  ;;  %1998 = vmatpush.bf16.msrb.mxu0 %v10286_v7  ;;  %v8906_v0 = vld [vmem:[%s11503_s24 + $0x24] sm:$0xf0] }
  0x7b   : > { %1799 = vmatmul.bf16.gmra.mxu3 %v9265_v29  ;;  %1670 = vmatmul.bf16.gmra.mxu0 %v9037_v31  ;;  %v9156_v31 = vld [vmem:[%s11503_s24 + $0x200] sm:$0xf] }
  0x7c   : > { %1848 = vmatmul.bf16.gmra.mxu2 %v9045_v30  ;;  %1908 = vmatpush.bf16.msrb.mxu3 %v10279_v17  ;;  %v10235_v30 = vld [vmem:[%s11503_s24 + $0x2f8] sm:$0xf0] }
  0x7d   : > { %1759 = vmatmul.bf16.gmra.mxu1 %v9041_v32  ;;  %v10207_v32 = vld [vmem:[%s11503_s24 + $0x218] sm:$0xf0]  ;;  %v9269_v39 = vor.u32 %v10235_v30, %v9268_v28  ;;  %1999 = vmatpush.bf16.msrb.mxu0 %v10285_v18  ;;  %v10292_v28 = vld [vmem:[%s16969_s1 + $0x140] sm:$0xff] }
  0x7e   : > { %v9157_v41 = vor.u32 %v10207_v32, %v9156_v31  ;;  %v9324_v32 = vld [vmem:[%s11503_s24 + $0x350] sm:$0xf] }
  0x80   : > { %1909 = vmatpush.bf16.msrb.mxu3 %v10278_v24 }
  0x84   : > { %1910 = vmatpush.bf16.msrb.mxu3 %v10277_v47 }
  0x88   : > { %1911 = vmatpush.bf16.msrb.mxu3 %v10276_v54 }
  0x8b   : > { %1804 = vmatmul.bf16.gmra.mxu3 %v9293_v43  ;;  %1675 = vmatmul.bf16.gmra.mxu0 %v9065_v45 }
  0x8c   : > { %1853 = vmatmul.bf16.gmra.mxu2 %v9073_v44  ;;  %v9153_v44 = vor.u32 %v10203_v37, %v9150_v38  ;;  %v10221_v37 = vld [vmem:[%s11503_s24 + $0x288] sm:$0xf0]  ;;  %v9204_v38 = vld [vmem:[%s11503_s24 + $0x268] sm:$0xf] }
  0x8d   : > { %1764 = vmatmul.bf16.gmra.mxu1 %v9069_v46 }
  0x9b   : > { %1809 = vmatmul.bf16.gmra.mxu3 %v9321_v59  ;;  %1680 = vmatmul.bf16.gmra.mxu0 %v9093_v61  ;;  %v9296_v59 = vld [vmem:[%s11503_s24 + $0x318] sm:$0xf] }
  0x9c   : > { %1858 = vmatmul.bf16.gmra.mxu2 %v9101_v60  ;;  %v10242_v60 = vld [vmem:[%s11503_s24 + $0x330] sm:$0xf0] }
  0x9d   : > { %1769 = vmatmul.bf16.gmra.mxu1 %v9097_v62  ;;  %v9184_v62 = vld [vmem:[%s11503_s24 + $0x238] sm:$0xf]  ;;  %v9297_v8 = vor.u32 %v10242_v60, %v9296_v59 }
  0xa8   : > { %v1646_v13 = vpop.f32.mrf.mxu0 }
  0xa9   : > { %v1647_v15 = vadd.f32 %v11633_v11, %v1646_v13  ;;  %v9177_v13 = vor.u32 %v10213_v2, %v9176_v1  ;;  %v8920_v1 = vld [vmem:[%s11503_s24 + $0x18] sm:$0xf]  ;;  %v10146_v2 = vld [vmem:[%s11503_s24 + $0x30] sm:$0xf0] }
  0xaa   : > { %v1735_v16 = vpop.f32.mrf.mxu1 }
  0xab   : > { %1883 = vmatmul.bf16.vlgmr.msra.gmra.mxu3 %v9241_v9  ;;  %v1736_v20 = vadd.f32 %v1735_v16, %v1647_v15  ;;  %1685 = vmatmul.bf16.gmra.mxu0 %v9121_v12  ;;  %v10294_v12 = vld [vmem:[%s16969_s1 + $0x150] sm:$0xff]  ;;  %v9181_v15 = vor.u32 %v10210_v5, %v9178_v6  ;;  %v10145_v5 = vld [vmem:[%s11503_s24 + $0x28] sm:$0xf0] }
  0xac   : > { %1863 = vmatmul.bf16.gmra.mxu2 %v9129_v10  ;;  %v9185_v10 = vor.u32 %v10214_v63, %v9184_v62  ;;  %2087 = vmatpush.bf16.msrb.mxu1 %v10294_v12  ;;  %v10141_v62 = vld [vmem:[%s11503_s24 + $0xc] sm:$0xf] }
  0xad   : > { %1774 = vmatmul.bf16.gmra.mxu1 %v9125_v14  ;;  %2376 = vmatpush.bf16.msra.mxu3 %v10308_v19  ;;  %v8909_v12 = vor.u32 %v10141_v62, %v8906_v0 }
  0xae   : > { %v11645_v21 = vpop.f32.mrf.mxu3 }
  0xaf   : > { %v1824_v22 = vpop.f32.mrf.mxu2 }
  0xb0   : > { %v11647_v23 = vadd.f32 %v1824_v22, %v1736_v20  ;;  %v1648_v25 = vpop.f32.mrf.mxu0  ;;  %v10293_v22 = vld [vmem:[%s16969_s1 + $0x148] sm:$0xff] }
  0xb1   : > { %v1649_v26 = vadd.f32 %v11633_v11, %v1648_v25  ;;  %2088 = vmatpush.bf16.msrb.mxu1 %v10293_v22 }
  0xb2   : > { %v1737_v27 = vpop.f32.mrf.mxu1 }
  0xb3   : > { %v1738_v29 = vadd.f32 %v1737_v27, %v1649_v26  ;;  %v10284_v26 = vld [vmem:[%s16969_s1 + $0x100] sm:$0xff] }
  0xb4   : > { %2000 = vmatpush.bf16.msrb.mxu0 %v10284_v26 }
  0xb5   : > { %2089 = vmatpush.bf16.msrb.mxu1 %v10292_v28 }
  0xb6   : > { %v11659_v35 = vpop.f32.mrf.mxu3 }
  0xb7   : > { %v1826_v36 = vpop.f32.mrf.mxu2 }
  0xb8   : > { %v11663_v40 = vadd.f32 %v1826_v36, %v1738_v29  ;;  %v1651_v43 = vpop.f32.mrf.mxu0  ;;  %v9212_v36 = vld [vmem:[%s11503_s24 + $0x270] sm:$0xf] }
  0xb9   : > { %v1652_v45 = vadd.f32 %v11633_v11, %v1651_v43  ;;  %v10217_v43 = vld [vmem:[%s11503_s24 + $0x26c] sm:$0xf]  ;;  %v9213_v47 = vor.u32 %v10221_v37, %v9212_v36  ;;  %v8934_v37 = vld [vmem:[%s11503_s24 + $0x5c] sm:$0xf0] }
  0xba   : > { %v1740_v46 = vpop.f32.mrf.mxu1 }
  0xbb   : > { %1888 = vmatmul.bf16.gmra.mxu3 %v9269_v39  ;;  %v1741_v48 = vadd.f32 %v1740_v46, %v1652_v45  ;;  %1690 = vmatmul.bf16.gmra.mxu0 %v9149_v42  ;;  %v10220_v39 = vld [vmem:[%s11503_s24 + $0x280] sm:$0xf0]  ;;  %v9325_v45 = vor.u32 %v10249_v34, %v9324_v32 }
  0xbc   : > { %1868 = vmatmul.bf16.gmra.mxu2 %v9157_v41  ;;  %v10148_v34 = vld [vmem:[%s11503_s24 + $0x44] sm:$0xf] }
  0xbd   : > { %1779 = vmatmul.bf16.gmra.mxu1 %v9153_v44  ;;  %v9206_v44 = vld [vmem:[%s11503_s24 + $0x284] sm:$0xf0] }
  0xbe   : > { %v11669_v49 = vpop.f32.mrf.mxu3  ;;  %v9209_v51 = vor.u32 %v10217_v43, %v9206_v44  ;;  %v10152_v43 = vld [vmem:[%s11503_s24 + $0x60] sm:$0xf0] }
  0xbf   : > { %v1829_v50 = vpop.f32.mrf.mxu2  ;;  %v1712_v62 = vadd.f32 %v11633_v11, %v11669_v49 }
  0xc0   : > { %v11674_v52 = vadd.f32 %v1829_v50, %v1741_v48  ;;  %v1653_v56 = vpop.f32.mrf.mxu0  ;;  %v9205_v48 = vor.u32 %v10220_v39, %v9204_v38  ;;  %v10153_v38 = vld [vmem:[%s11503_s24 + $0x68] sm:$0xf0]  ;;  %v1709_v39 = vadd.f32 %v11633_v11, %v11659_v35 }
  0xc1   : > { %v1654_v57 = vadd.f32 %v11633_v11, %v1653_v56 }
  0xc2   : > { %v1742_v58 = vpop.f32.mrf.mxu1 }
  0xc3   : > { %v1743_v61 = vadd.f32 %v1742_v58, %v1654_v57 }
  0xc6   : > { %v11695_v3 = vpop.f32.mrf.mxu3 }
  0xc7   : > { %v1831_v4 = vpop.f32.mrf.mxu2  ;;  %v1714_v49 = vadd.f32 %v11633_v11, %v11695_v3  ;;  %v10306_v3 = vld [vmem:[%s16971_s3 + $0x28] sm:$0xff] }
  0xc8   : > { %v11702_v9 = vadd.f32 %v1831_v4, %v1743_v61  ;;  %v1656_v14 = vpop.f32.mrf.mxu0  ;;  %v8912_v4 = vld [vmem:[%s11503_s24 + $0x10] sm:$0xf] }
  0xc9   : > { %v1657_v16 = vadd.f32 %v11633_v11, %v1656_v14  ;;  %v8921_v14 = vor.u32 %v10146_v2, %v8920_v1 }
  0xca   : > { %v1745_v17 = vpop.f32.mrf.mxu1 }
  0xcb   : > { %1893 = vmatmul.bf16.gmra.mxu3 %v9297_v8  ;;  %v1746_v20 = vadd.f32 %v1745_v17, %v1657_v16  ;;  %1695 = vmatmul.bf16.gmra.mxu0 %v9177_v13  ;;  %v10142_v8 = vld [vmem:[%s11503_s24 + $0x14] sm:$0xf] }
  0xcc   : > { %1873 = vmatmul.bf16.gmra.mxu2 %v9185_v10  ;;  %v8914_v10 = vld [vmem:[%s11503_s24 + $0x2c] sm:$0xf0] }
  0xcd   : > { %1784 = vmatmul.bf16.gmra.mxu1 %v9181_v15  ;;  %v8913_v15 = vor.u32 %v10145_v5, %v8912_v4  ;;  %v8917_v17 = vor.u32 %v10142_v8, %v8914_v10  ;;  %v10155_v8 = vld [vmem:[%s11503_s24 + $0x7c] sm:$0xf] }
  0xce   : > { %v11717_v24 = vpop.f32.mrf.mxu3 }
  0xcf   : > { %v1834_v25 = vpop.f32.mrf.mxu2 }
  0xd0   : > { %v11722_v27 = vadd.f32 %v1834_v25, %v1746_v20  ;;  %v1658_v29 = vpop.f32.mrf.mxu0  ;;  %v10307_v20 = vld [vmem:[%s16971_s3 + $0x30] sm:$0xff]  ;;  %v1707_v25 = vadd.f32 %v11633_v11, %v11645_v21 }
  0xd1   : > { %v1659_v30 = vadd.f32 %v11633_v11, %v1658_v29  ;;  %2377 = vmatpush.bf16.msra.mxu3 %v10307_v20  ;;  %v8948_v21 = vld [vmem:[%s11503_s24 + $0x50] sm:$0xf]  ;;  %v10156_v20 = vld [vmem:[%s11503_s24 + $0x84] sm:$0xf] }
  0xd2   : > { %v1747_v31 = vpop.f32.mrf.mxu1 }
  0xd3   : > { %v1748_v33 = vadd.f32 %v1747_v31, %v1659_v30 }
  0xd5   : > { %2378 = vmatpush.bf16.msra.mxu3 %v10306_v3  ;;  %v9024_v3 = vld [vmem:[%s11503_s24 + $0xf0] sm:$0xf] }
  0xd6   : > { %v11734_v41 = vpop.f32.mrf.mxu3 }
  0xd7   : > { %v1836_v42 = vpop.f32.mrf.mxu2 }
  0xd8   : > { %v11738_v46 = vadd.f32 %v1836_v42, %v1748_v33  ;;  %v1661_v50 = vpop.f32.mrf.mxu0  ;;  %v8940_v42 = vld [vmem:[%s11503_s24 + $0x48] sm:$0xf] }
  0xd9   : > { %v1662_v53 = vadd.f32 %v11633_v11, %v1661_v50 }
  0xda   : > { %v1750_v54 = vpop.f32.mrf.mxu1 }
  0xdb   : > { %1898 = vmatmul.bf16.gmra.mxu3 %v9325_v45  ;;  %v1751_v55 = vadd.f32 %v1750_v54, %v1662_v53  ;;  %1700 = vmatmul.bf16.gmra.mxu0 %v9205_v48  ;;  %v8942_v48 = vld [vmem:[%s11503_s24 + $0x64] sm:$0xf0]  ;;  %v8949_v54 = vor.u32 %v10153_v38, %v8948_v21  ;;  %v1717_v38 = vadd.f32 %v11633_v11, %v11717_v24  ;;  %v9004_v24 = vld [vmem:[%s11503_s24 + $0xc0] sm:$0xf] }
  0xdc   : > { %1878 = vmatmul.bf16.gmra.mxu2 %v9213_v47  ;;  %v10149_v47 = vld [vmem:[%s11503_s24 + $0x4c] sm:$0xf] }
  0xdd   : > { %1789 = vmatmul.bf16.gmra.mxu1 %v9209_v51  ;;  %v8937_v51 = vor.u32 %v10148_v34, %v8934_v37 }
  0xde   : > { %v11741_v56 = vpop.f32.mrf.mxu3 }
  0xdf   : > { %v1839_v57 = vpop.f32.mrf.mxu2 }
  0xe0   : > { %v11743_v58 = vadd.f32 %v1839_v57, %v1751_v55  ;;  %v1663_v59 = vpop.f32.mrf.mxu0  ;;  %v8941_v55 = vor.u32 %v10152_v43, %v8940_v42 }
  0xe1   : > { %v1664_v60 = vadd.f32 %v11633_v11, %v1663_v59  ;;  %v8945_v59 = vor.u32 %v10149_v47, %v8942_v48 }
  0xe2   : > { %v1752_v61 = vpop.f32.mrf.mxu1 }
  0xe3   : > { %v1753_v63 = vadd.f32 %v1752_v61, %v1664_v60 }
  0xe6   : > { %v11752_v6 = vpop.f32.mrf.mxu3 }
  0xe7   : > { %v1841_v7 = vpop.f32.mrf.mxu2 }
  0xe8   : > { %v11756_v13 = vadd.f32 %v1841_v7, %v1753_v63  ;;  %v1666_v16 = vpop.f32.mrf.mxu0 }
  0xe9   : > { %v1667_v18 = vadd.f32 %v11633_v11, %v1666_v16  ;;  %v8968_v16 = vld [vmem:[%s11503_s24 + $0x80] sm:$0xf] }
  0xea   : > { %v1755_v19 = vpop.f32.mrf.mxu1 }
  0xeb   : > { %1912 = vmatmul.bf16.vlgmr.msrb.gmra.mxu3 %v8909_v12  ;;  %v1756_v22 = vadd.f32 %v1755_v19, %v1667_v18  ;;  %2001 = vmatmul.bf16.vlgmr.msrb.gmra.mxu0 %v8913_v15  ;;  %v8962_v12 = vld [vmem:[%s11503_s24 + $0x94] sm:$0xf0]  ;;  %v10160_v15 = vld [vmem:[%s11503_s24 + $0xa0] sm:$0xf0] }
  0xec   : > { %9538 = vmatmul.msk.bf16.vlgmr.msrb.gmra.mxu2 %vm1588_vm0, %v8921_v14  ;;  %v8976_v14 = vld [vmem:[%s11503_s24 + $0x88] sm:$0xf] }
  0xed   : > { %2090 = vmatmul.bf16.vlgmr.msrb.gmra.mxu1 %v8917_v17  ;;  %v10159_v17 = vld [vmem:[%s11503_s24 + $0x98] sm:$0xf0] }
  0xee   : > { %v1795_v26 = vpop.f32.mrf.mxu3 }
  0xef   : > { %v1844_v28 = vpop.f32.mrf.mxu2  ;;  %v11765_v29 = vadd.f32 %v1795_v26, %v1707_v25  ;;  %v8965_v26 = vor.u32 %v10155_v8, %v8962_v12 }
  0xf0   : > { %v11767_v30 = vadd.f32 %v1844_v28, %v1756_v22  ;;  %v1668_v31 = vpop.f32.mrf.mxu0  ;;  %v8970_v22 = vld [vmem:[%s11503_s24 + $0x9c] sm:$0xf0] }
  0xf1   : > { %v1669_v32 = vadd.f32 %v11633_v11, %v1668_v31  ;;  %v8977_v31 = vor.u32 %v10160_v15, %v8976_v14  ;;  %v8973_v34 = vor.u32 %v10156_v20, %v8970_v22 }
  0xf2   : > { %v1757_v33 = vpop.f32.mrf.mxu1 }
  0xf3   : > { %v1758_v36 = vadd.f32 %v1757_v33, %v1669_v32  ;;  %v8969_v32 = vor.u32 %v10159_v17, %v8968_v16  ;;  %v1722_v16 = vadd.f32 %v11633_v11, %v11741_v56  ;;  %v1724_v56 = vadd.f32 %v11633_v11, %v11752_v6  ;;  %v10305_v6 = vld [vmem:[%s16971_s3 + $0x20] sm:$0xff] }
  0xf4   : > { %2379 = vmatpush.bf16.msra.mxu3 %v10305_v6  ;;  %v10188_v6 = vld [vmem:[%s11503_s24 + $0x180] sm:$0xf0] }
  0xf6   : > { %v1797_v44 = vpop.f32.mrf.mxu3 }
  0xf7   : > { %v1846_v45 = vpop.f32.mrf.mxu2  ;;  %v11780_v50 = vadd.f32 %v1797_v44, %v1709_v39 }
  0xf8   : > { %v11782_v53 = vadd.f32 %v1846_v45, %v1758_v36  ;;  %v1671_v57 = vpop.f32.mrf.mxu0 }
  0xf9   : > { %v1672_v60 = vadd.f32 %v11633_v11, %v1671_v57  ;;  %v10167_v57 = vld [vmem:[%s11503_s24 + $0xd8] sm:$0xf0] }
  0xfa   : > { %v1760_v61 = vpop.f32.mrf.mxu1  ;;  %v9005_v8 = vor.u32 %v10167_v57, %v9004_v24 }
  0xfb   : > { %1917 = vmatmul.bf16.gmra.mxu3 %v8937_v51  ;;  %v1761_v35 = vadd.f32 %v1760_v61, %v1672_v60  ;;  %2006 = vmatmul.bf16.gmra.mxu0 %v8941_v55  ;;  %v10162_v51 = vld [vmem:[%s11503_s24 + $0xb4] sm:$0xf]  ;;  %v8990_v55 = vld [vmem:[%s11503_s24 + $0xcc] sm:$0xf0]  ;;  %v8996_v60 = vld [vmem:[%s11503_s24 + $0xb8] sm:$0xf] }
  0xfc   : > { %9539 = vmatmul.msk.bf16.gmra.mxu2 %vm1588_vm0, %v8949_v54  ;;  %v10166_v61 = vld [vmem:[%s11503_s24 + $0xd0] sm:$0xf0] }
  0xfd   : > { %2095 = vmatmul.bf16.gmra.mxu1 %v8945_v59  ;;  %v1719_v59 = vadd.f32 %v11633_v11, %v11734_v41 }
  0xfe   : > { %v1800_v63 = vpop.f32.mrf.mxu3 }
  0xff   : > { %v1849_v0 = vpop.f32.mrf.mxu2  ;;  %v11788_v1 = vadd.f32 %v1800_v63, %v1712_v62  ;;  %v10163_v63 = vld [vmem:[%s11503_s24 + $0xbc] sm:$0xf] }
 0x100   : > { %v11790_v2 = vadd.f32 %v1849_v0, %v1761_v35  ;;  %v1673_v4 = vpop.f32.mrf.mxu0  ;;  %v8998_v0 = vld [vmem:[%s11503_s24 + $0xd4] sm:$0xf0] }
 0x101   : > { %v1674_v5 = vadd.f32 %v11633_v11, %v1673_v4  ;;  %v9001_v14 = vor.u32 %v10163_v63, %v8998_v0 }
 0x102   : > { %v1762_v7 = vpop.f32.mrf.mxu1 }
 0x103   : > { %v1763_v10 = vadd.f32 %v1762_v7, %v1674_v5  ;;  %v8993_v5 = vor.u32 %v10162_v51, %v8990_v55 }
 0x106   : > { %v1802_v18 = vpop.f32.mrf.mxu3 }
 0x107   : > { %v1851_v19 = vpop.f32.mrf.mxu2  ;;  %v11803_v25 = vadd.f32 %v1802_v18, %v1714_v49 }
 0x108   : > { %v11805_v28 = vadd.f32 %v1851_v19, %v1763_v10  ;;  %v1676_v33 = vpop.f32.mrf.mxu0  ;;  %v8997_v10 = vor.u32 %v10166_v61, %v8996_v60 }
 0x109   : > { %v1677_v36 = vadd.f32 %v11633_v11, %v1676_v33 }
 0x10a   : > { %v1765_v37 = vpop.f32.mrf.mxu1 }
 0x10b   : > { %1922 = vmatmul.bf16.gmra.mxu3 %v8965_v26  ;;  %v1766_v21 = vadd.f32 %v1765_v37, %v1677_v36  ;;  %2011 = vmatmul.bf16.gmra.mxu0 %v8969_v32  ;;  %v10169_v32 = vld [vmem:[%s11503_s24 + $0xec] sm:$0xf]  ;;  %v9032_v36 = vld [vmem:[%s11503_s24 + $0xf8] sm:$0xf]  ;;  %v10174_v37 = vld [vmem:[%s11503_s24 + $0x110] sm:$0xf0] }
 0x10c   : > { %9540 = vmatmul.msk.bf16.gmra.mxu2 %vm1588_vm0, %v8977_v31 }
 0x10d   : > { %2100 = vmatmul.bf16.gmra.mxu1 %v8973_v34  ;;  %v9018_v34 = vld [vmem:[%s11503_s24 + $0x104] sm:$0xf0] }
 0x10e   : > { %v1805_v39 = vpop.f32.mrf.mxu3 }
 0x10f   : > { %v1854_v42 = vpop.f32.mrf.mxu2  ;;  %v11814_v43 = vadd.f32 %v1805_v39, %v1717_v38 }
 0x110   : > { %v11816_v44 = vadd.f32 %v1854_v42, %v1766_v21  ;;  %v1678_v45 = vpop.f32.mrf.mxu0  ;;  %v10173_v21 = vld [vmem:[%s11503_s24 + $0x108] sm:$0xf0]  ;;  %v10170_v42 = vld [vmem:[%s11503_s24 + $0xf4] sm:$0xf] }
 0x111   : > { %v1679_v47 = vadd.f32 %v11633_v11, %v1678_v45  ;;  %v9026_v45 = vld [vmem:[%s11503_s24 + $0x10c] sm:$0xf0]  ;;  %v9025_v55 = vor.u32 %v10173_v21, %v9024_v3 }
 0x112   : > { %v1767_v48 = vpop.f32.mrf.mxu1  ;;  %v9029_v57 = vor.u32 %v10170_v42, %v9026_v45 }
 0x113   : > { %v1768_v54 = vadd.f32 %v1767_v48, %v1679_v47  ;;  %v9021_v48 = vor.u32 %v10169_v32, %v9018_v34 }
 0x116   : > { %v1807_v35 = vpop.f32.mrf.mxu3 }
 0x117   : > { %v1856_v62 = vpop.f32.mrf.mxu2  ;;  %v11829_v4 = vadd.f32 %v1807_v35, %v1719_v59 }
 0x118   : > { %v11831_v7 = vadd.f32 %v1856_v62, %v1768_v54  ;;  %v1681_v12 = vpop.f32.mrf.mxu0  ;;  %v9033_v54 = vor.u32 %v10174_v37, %v9032_v36 }
 0x119   : > { %v1682_v15 = vadd.f32 %v11633_v11, %v1681_v12  ;;  %v10176_v12 = vld [vmem:[%s11503_s24 + $0x124] sm:$0xf] }
 0x11a   : > { %v1770_v49 = vpop.f32.mrf.mxu1 }
 0x11b   : > { %1927 = vmatmul.bf16.gmra.mxu3 %v8993_v5  ;;  %v1771_v41 = vadd.f32 %v1770_v49, %v1682_v15  ;;  %2016 = vmatmul.bf16.gmra.mxu0 %v8997_v10  ;;  %v9046_v15 = vld [vmem:[%s11503_s24 + $0x13c] sm:$0xf0]  ;;  %v9060_v49 = vld [vmem:[%s11503_s24 + $0x130] sm:$0xf] }
 0x11c   : > { %9541 = vmatmul.msk.bf16.gmra.mxu2 %vm1588_vm0, %v9005_v8  ;;  %v9049_v32 = vor.u32 %v10176_v12, %v9046_v15 }
 0x11d   : > { %2105 = vmatmul.bf16.gmra.mxu1 %v9001_v14 }
 0x11e   : > { %v1810_v17 = vpop.f32.mrf.mxu3 }
 0x11f   : > { %v1859_v18 = vpop.f32.mrf.mxu2  ;;  %v11837_v19 = vadd.f32 %v1810_v17, %v1722_v16  ;;  %v9052_v16 = vld [vmem:[%s11503_s24 + $0x128] sm:$0xf]  ;;  %v10180_v17 = vld [vmem:[%s11503_s24 + $0x140] sm:$0xf0] }
 0x120   : > { %v11839_v20 = vadd.f32 %v1859_v18, %v1771_v41  ;;  %v1683_v22 = vpop.f32.mrf.mxu0  ;;  %v10181_v41 = vld [vmem:[%s11503_s24 + $0x148] sm:$0xf0]  ;;  %v9053_v36 = vor.u32 %v10180_v17, %v9052_v16 }
 0x121   : > { %v1684_v26 = vadd.f32 %v11633_v11, %v1683_v22  ;;  %v9061_v34 = vor.u32 %v10181_v41, %v9060_v49 }
 0x122   : > { %v1772_v31 = vpop.f32.mrf.mxu1 }
 0x123   : > { %v1773_v33 = vadd.f32 %v1772_v31, %v1684_v26  ;;  %v10177_v26 = vld [vmem:[%s11503_s24 + $0x12c] sm:$0xf]  ;;  %v9054_v31 = vld [vmem:[%s11503_s24 + $0x144] sm:$0xf0] }
 0x126   : > { %v1812_v38 = vpop.f32.mrf.mxu3 }
 0x127   : > { %v1861_v39 = vpop.f32.mrf.mxu2  ;;  %v11852_v47 = vadd.f32 %v1812_v38, %v1724_v56  ;;  %v9057_v56 = vor.u32 %v10177_v26, %v9054_v31 }
 0x128   : > { %v11854_v51 = vadd.f32 %v1861_v39, %v1773_v33  ;;  %v1686_v24 = vpop.f32.mrf.mxu0 }
 0x129   : > { %v1687_v59 = vadd.f32 %v11633_v11, %v1686_v24  ;;  %v10183_v24 = vld [vmem:[%s11503_s24 + $0x15c] sm:$0xf] }
 0x12a   : > { %v1775_v60 = vpop.f32.mrf.mxu1 }
 0x12b   : > { %1932 = vmatmul.bf16.gmra.mxu3 %v9021_v48  ;;  %v1776_v61 = vadd.f32 %v1775_v60, %v1687_v59  ;;  %2021 = vmatmul.bf16.gmra.mxu0 %v9025_v55  ;;  %v9074_v59 = vld [vmem:[%s11503_s24 + $0x174] sm:$0xf0]  ;;  %v9088_v60 = vld [vmem:[%s11503_s24 + $0x168] sm:$0xf] }
 0x12c   : > { %9542 = vmatmul.msk.bf16.gmra.mxu2 %vm1588_vm0, %v9033_v54  ;;  %v9077_v12 = vor.u32 %v10183_v24, %v9074_v59  ;;  %v9089_v15 = vor.u32 %v10188_v6, %v9088_v60  ;;  %v9110_v59 = vld [vmem:[%s11503_s24 + $0x1b4] sm:$0xf0] }
 0x12d   : > { %2110 = vmatmul.bf16.gmra.mxu1 %v9029_v57 }
 0x12e   : > { %v1884_v35 = vpop.f32.mrf.mxu3 }
 0x12f   : > { %v1864_v62 = vpop.f32.mrf.mxu2  ;;  %v11862_v63 = vadd.f32 %v1884_v35, %v11765_v29  ;;  %v10187_v35 = vld [vmem:[%s11503_s24 + $0x178] sm:$0xf0] }
 0x130   : > { %v11864_v0 = vadd.f32 %v1864_v62, %v1776_v61  ;;  %v1688_v5 = vpop.f32.mrf.mxu0  ;;  %v9080_v61 = vld [vmem:[%s11503_s24 + $0x160] sm:$0xf] }
 0x131   : > { %v1689_v8 = vadd.f32 %v11633_v11, %v1688_v5  ;;  %v9081_v49 = vor.u32 %v10187_v35, %v9080_v61 }
 0x132   : > { %v1777_v10 = vpop.f32.mrf.mxu1 }
 0x133   : > { %v1778_v14 = vadd.f32 %v1777_v10, %v1689_v8  ;;  %v10184_v8 = vld [vmem:[%s11503_s24 + $0x164] sm:$0xf]  ;;  %v9082_v10 = vld [vmem:[%s11503_s24 + $0x17c] sm:$0xf0] }
 0x134   : > { %v9085_v16 = vor.u32 %v10184_v8, %v9082_v10 }
 0x136   : > { %v1886_v18 = vpop.f32.mrf.mxu3 }
 0x137   : > { %v1866_v22 = vpop.f32.mrf.mxu2  ;;  %v11876_v29 = vadd.f32 %v1886_v18, %v11780_v50 }
 0x138   : > { %v11878_v33 = vadd.f32 %v1866_v22, %v1778_v14  ;;  %v1691_v37 = vpop.f32.mrf.mxu0 }
 0x139   : > { %v1692_v3 = vadd.f32 %v11633_v11, %v1691_v37 }
 0x13a   : > { %v1780_v21 = vpop.f32.mrf.mxu1 }
 0x13b   : > { %1937 = vmatmul.bf16.gmra.mxu3 %v9049_v32  ;;  %v1781_v50 = vadd.f32 %v1780_v21, %v1692_v3  ;;  %2026 = vmatmul.bf16.gmra.mxu0 %v9053_v36  ;;  %v10190_v3 = vld [vmem:[%s11503_s24 + $0x194] sm:$0xf] }
 0x13c   : > { %9543 = vmatmul.msk.bf16.gmra.mxu2 %vm1588_vm0, %v9061_v34 }
 0x13d   : > { %2115 = vmatmul.bf16.gmra.mxu1 %v9057_v56 }
 0x13e   : > { %v1889_v38 = vpop.f32.mrf.mxu3 }
 0x13f   : > { %v1869_v39 = vpop.f32.mrf.mxu2  ;;  %v11883_v42 = vadd.f32 %v1889_v38, %v11788_v1  ;;  %v9116_v38 = vld [vmem:[%s11503_s24 + $0x1a0] sm:$0xf] }
 0x140   : > { %v11885_v45 = vadd.f32 %v1869_v39, %v1781_v50  ;;  %v1693_v48 = vpop.f32.mrf.mxu0  ;;  %v9102_v50 = vld [vmem:[%s11503_s24 + $0x1ac] sm:$0xf0]  ;;  %v10195_v39 = vld [vmem:[%s11503_s24 + $0x1b8] sm:$0xf0] }
 0x141   : > { %v1694_v54 = vadd.f32 %v11633_v11, %v1693_v48  ;;  %v9108_v48 = vld [vmem:[%s11503_s24 + $0x198] sm:$0xf]  ;;  %v9105_v60 = vor.u32 %v10190_v3, %v9102_v50  ;;  %v9117_v61 = vor.u32 %v10195_v39, %v9116_v38  ;;  %v10198_v50 = vld [vmem:[%s11503_s24 + $0x1d4] sm:$0xf]  ;;  %v9138_v38 = vld [vmem:[%s11503_s24 + $0x1ec] sm:$0xf0] }
 0x142   : > { %v1782_v55 = vpop.f32.mrf.mxu1 }
 0x143   : > { %v1783_v57 = vadd.f32 %v1782_v55, %v1694_v54  ;;  %v10194_v54 = vld [vmem:[%s11503_s24 + $0x1b0] sm:$0xf0] }
 0x144   : > { %v9109_v35 = vor.u32 %v10194_v54, %v9108_v48 }
 0x146   : > { %v1891_v62 = vpop.f32.mrf.mxu3 }
 0x147   : > { %v1871_v5 = vpop.f32.mrf.mxu2  ;;  %v11897_v1 = vadd.f32 %v1891_v62, %v11803_v25  ;;  %v10304_v25 = vld [vmem:[%s16971_s3 + $0x18] sm:$0xff] }
 0x148   : > { %v11899_v14 = vadd.f32 %v1871_v5, %v1783_v57  ;;  %v1696_v41 = vpop.f32.mrf.mxu0  ;;  %2380 = vmatpush.bf16.msra.mxu3 %v10304_v25  ;;  %v10191_v57 = vld [vmem:[%s11503_s24 + $0x19c] sm:$0xf] }
 0x149   : > { %v1697_v17 = vadd.f32 %v11633_v11, %v1696_v41  ;;  %v9113_v5 = vor.u32 %v10191_v57, %v9110_v59  ;;  %v9141_v57 = vor.u32 %v10198_v50, %v9138_v38 }
 0x14a   : > { %v1785_v18 = vpop.f32.mrf.mxu1 }
 0x14b   : > { %1942 = vmatmul.bf16.gmra.mxu3 %v9077_v12  ;;  %v1786_v22 = vadd.f32 %v1785_v18, %v1697_v17  ;;  %2031 = vmatmul.bf16.gmra.mxu0 %v9081_v49  ;;  %v10312_v17 = vld [vmem:[%s16973_s5 + $0x18] sm:$0xff] }
 0x14c   : > { %9544 = vmatmul.msk.bf16.gmra.mxu2 %vm1588_vm0, %v9089_v15  ;;  %2602 = vmatpush.bf16.msra.mxu0 %v10312_v17 }
 0x14d   : > { %2120 = vmatmul.bf16.gmra.mxu1 %v9085_v16 }
 0x14e   : > { %v1894_v26 = vpop.f32.mrf.mxu3 }
 0x14f   : > { %v1874_v31 = vpop.f32.mrf.mxu2  ;;  %v11907_v32 = vadd.f32 %v1894_v26, %v11814_v43 }
 0x150   : > { %v11909_v34 = vadd.f32 %v1874_v31, %v1786_v22  ;;  %v1698_v36 = vpop.f32.mrf.mxu0  ;;  %v10197_v22 = vld [vmem:[%s11503_s24 + $0x1cc] sm:$0xf]  ;;  %v9130_v31 = vld [vmem:[%s11503_s24 + $0x1e4] sm:$0xf0] }
 0x151   : > { %v1699_v37 = vadd.f32 %v11633_v11, %v1698_v36  ;;  %v9144_v36 = vld [vmem:[%s11503_s24 + $0x1d8] sm:$0xf]  ;;  %v9133_v48 = vor.u32 %v10197_v22, %v9130_v31  ;;  %v10205_v31 = vld [vmem:[%s11503_s24 + $0x20c] sm:$0xf] }
 0x152   : > { %v1787_v56 = vpop.f32.mrf.mxu1 }
 0x153   : > { %v1788_v21 = vadd.f32 %v1787_v56, %v1699_v37  ;;  %v10202_v37 = vld [vmem:[%s11503_s24 + $0x1f0] sm:$0xf0]  ;;  %v10201_v56 = vld [vmem:[%s11503_s24 + $0x1e8] sm:$0xf0] }
 0x156   : > { %v1896_v55 = vpop.f32.mrf.mxu3 }
 0x157   : > { %v1876_v24 = vpop.f32.mrf.mxu2  ;;  %v11921_v43 = vadd.f32 %v1896_v55, %v11829_v4 }
 0x158   : > { %v11923_v6 = vadd.f32 %v1876_v24, %v1788_v21  ;;  %v1701_v62 = vpop.f32.mrf.mxu0 }
 0x159   : > { %v1702_v8 = vadd.f32 %v11633_v11, %v1701_v62 }
 0x15a   : > { %v1790_v10 = vpop.f32.mrf.mxu1 }
 0x15b   : > { %1947 = vmatmul.bf16.gmra.mxu3 %v9105_v60  ;;  %v1791_v12 = vadd.f32 %v1790_v10, %v1702_v8  ;;  %2036 = vmatmul.bf16.gmra.mxu0 %v9109_v35 }
 0x15c   : > { %9545 = vmatmul.msk.bf16.gmra.mxu2 %vm1588_vm0, %v9117_v61 }
 0x15d   : > { %2125 = vmatmul.bf16.gmra.mxu1 %v9113_v5 }
 0x15e   : > { %v1899_v4 = vpop.f32.mrf.mxu3 }
 0x15f   : > { %v1879_v15 = vpop.f32.mrf.mxu2  ;;  %v11928_v49 = vadd.f32 %v1899_v4, %v11837_v19  ;;  %v9136_v19 = vld [vmem:[%s11503_s24 + $0x1d0] sm:$0xf]  ;;  %v9158_v4 = vld [vmem:[%s11503_s24 + $0x21c] sm:$0xf0] }
 0x160   : > { %v11930_v41 = vadd.f32 %v1879_v15, %v1791_v12  ;;  %v1703_v16 = vpop.f32.mrf.mxu0  ;;  %v9137_v55 = vor.u32 %v10201_v56, %v9136_v19  ;;  %v10204_v12 = vld [vmem:[%s11503_s24 + $0x204] sm:$0xf]  ;;  %v9172_v15 = vld [vmem:[%s11503_s24 + $0x210] sm:$0xf] }
 0x161   : > { %v1704_v18 = vadd.f32 %v11633_v11, %v1703_v16  ;;  %v9145_v11 = vor.u32 %v10202_v37, %v9144_v36  ;;  %v10209_v16 = vld [vmem:[%s11503_s24 + $0x228] sm:$0xf0]  ;;  %v9166_v36 = vld [vmem:[%s11503_s24 + $0x224] sm:$0xf0]  ;;  %v9161_v19 = vor.u32 %v10204_v12, %v9158_v4  ;;  %v10216_v12 = vld [vmem:[%s11503_s24 + $0x260] sm:$0xf0] }
 0x162   : > { %v1792_v25 = vpop.f32.mrf.mxu1  ;;  %v9173_v56 = vor.u32 %v10209_v16, %v9172_v15  ;;  %v9169_v50 = vor.u32 %v10205_v31, %v9166_v36  ;;  %v9192_v15 = vld [vmem:[%s11503_s24 + $0x240] sm:$0xf]  ;;  %v10215_v16 = vld [vmem:[%s11503_s24 + $0x258] sm:$0xf0] }
 0x163   : > { %v1793_v26 = vadd.f32 %v1792_v25, %v1704_v18  ;;  %v9164_v18 = vld [vmem:[%s11503_s24 + $0x208] sm:$0xf]  ;;  %v10208_v25 = vld [vmem:[%s11503_s24 + $0x220] sm:$0xf0]  ;;  %v9193_v36 = vor.u32 %v10215_v16, %v9192_v15  ;;  %v10219_v16 = vld [vmem:[%s11503_s24 + $0x27c] sm:$0xf] }
 0x166   : > { %v1901_v3 = vpop.f32.mrf.mxu3 }
 0x167   : > { %v1881_v21 = vpop.f32.mrf.mxu2  ;;  %v11945_v39 = vadd.f32 %v1901_v3, %v11852_v47  ;;  %v10303_v47 = vld [vmem:[%s16971_s3 + $0x10] sm:$0xff] }
 0x168   : > { %v11947_v54 = vadd.f32 %v1881_v21, %v1793_v26  ;;  %v2002_v24 = vpop.f32.mrf.mxu0  ;;  %2381 = vmatpush.bf16.msra.mxu3 %v10303_v47 }
 0x16a   : > { %v2091_v59 = vpop.f32.mrf.mxu1 }
 0x16b   : > { %1952 = vmatmul.bf16.gmra.mxu3 %v9133_v48  ;;  %2041 = vmatmul.bf16.gmra.mxu0 %v9137_v55 }
 0x16c   : > { %9546 = vmatmul.msk.bf16.gmra.mxu2 %vm1588_vm0, %v9145_v11 }
 0x16d   : > { %2130 = vmatmul.bf16.gmra.mxu1 %v9141_v57 }
 0x16e   : > { %v1913_v60 = vpop.f32.mrf.mxu3 }
 0x16f   : > { %v2180_v61 = vpop.f32.mrf.mxu2  ;;  %v1914_v35 = vadd.f32 %v1913_v60, %v11647_v23  ;;  %v9165_v23 = vor.u32 %v10208_v25, %v9164_v18  ;;  %v10212_v25 = vld [vmem:[%s11503_s24 + $0x244] sm:$0xf] }
 0x170   : > { %v2004_v5 = vpop.f32.mrf.mxu0 }
 0x171   : > { %v2003_v62 = vadd.f32 %v2002_v24, %v1914_v35 }
 0x172   : > { %v2093_v8 = vpop.f32.mrf.mxu1 }
 0x173   : > { %v2092_v10 = vadd.f32 %v2091_v59, %v2003_v62 }
 0x175   : > { %v2181_v17 = vadd.f32 %v2180_v61, %v2092_v10  ;;  %v9200_v10 = vld [vmem:[%s11503_s24 + $0x248] sm:$0xf] }
 0x176   : > { %v1915_v22 = vpop.f32.mrf.mxu3  ;;  %v9201_v31 = vor.u32 %v10216_v12, %v9200_v10  ;;  %v9220_v10 = vld [vmem:[%s11503_s24 + $0x278] sm:$0xf]  ;;  %v10222_v12 = vld [vmem:[%s11503_s24 + $0x290] sm:$0xf0] }
 0x177   : > { %v2182_v26 = vpop.f32.mrf.mxu2  ;;  %v1916_v37 = vadd.f32 %v1915_v22, %v11663_v40  ;;  %v2260_v24 = vmax.f32 %v2181_v17, 0.0  ;;  %v9194_v22 = vld [vmem:[%s11503_s24 + $0x25c] sm:$0xf0] }
 0x178   : > { %v2007_v21 = vpop.f32.mrf.mxu0 }
 0x179   : > { %v2005_v3 = vadd.f32 %v2004_v5, %v1916_v37  ;;  %v10211_v5 = vld [vmem:[%s11503_s24 + $0x23c] sm:$0xf] }
 0x17a   : > { %v2096_v38 = vpop.f32.mrf.mxu1 }
 0x17b   : > { %v2094_v48 = vadd.f32 %v2093_v8, %v2005_v3  ;;  %1957 = vmatmul.bf16.gmra.mxu3 %v9161_v19  ;;  %2046 = vmatmul.bf16.gmra.mxu0 %v9165_v23  ;;  %v9186_v8 = vld [vmem:[%s11503_s24 + $0x254] sm:$0xf0] }
 0x17c   : > { %9547 = vmatmul.msk.bf16.gmra.mxu2 %vm1588_vm0, %v9173_v56  ;;  %v9197_v56 = vor.u32 %v10212_v25, %v9194_v22  ;;  %v9221_v22 = vor.u32 %v10222_v12, %v9220_v10  ;;  %v9250_v10 = vld [vmem:[%s11503_s24 + $0x2cc] sm:$0xf0] }
 0x17d   : > { %v2183_v11 = vadd.f32 %v2182_v26, %v2094_v48  ;;  %2135 = vmatmul.bf16.gmra.mxu1 %v9169_v50  ;;  %v9189_v26 = vor.u32 %v10211_v5, %v9186_v8  ;;  %v10223_v5 = vld [vmem:[%s11503_s24 + $0x298] sm:$0xf0] }
 0x17e   : > { %v1918_v40 = vpop.f32.mrf.mxu3 }
 0x17f   : > { %v2185_v55 = vpop.f32.mrf.mxu2  ;;  %v2261_v57 = vmax.f32 %v2183_v11, 0.0  ;;  %v1919_v59 = vadd.f32 %v1918_v40, %v11674_v52 }
 0x180   : > { %v2009_v61 = vpop.f32.mrf.mxu0 }
 0x181   : > { %v11965_v47 = vpack.c.bf16 %v2261_v57, %v2260_v24  ;;  %v2008_v60 = vadd.f32 %v2007_v21, %v1919_v59  ;;  %v10302_v21 = vld [vmem:[%s16971_s3 + $0x8] sm:$0xff] }
 0x182   : > { %v2098_v35 = vpop.f32.mrf.mxu1  ;;  %2382 = vmatpush.bf16.msra.mxu3 %v10302_v21 }
 0x183   : > { %v2097_v62 = vadd.f32 %v2096_v38, %v2008_v60 }
 0x185   : > { %v2186_v4 = vadd.f32 %v2185_v55, %v2097_v62  ;;  %v9228_v62 = vld [vmem:[%s11503_s24 + $0x280] sm:$0xf] }
 0x186   : > { %v1920_v18 = vpop.f32.mrf.mxu3  ;;  %v9229_v25 = vor.u32 %v10223_v5, %v9228_v62 }
 0x187   : > { %v2187_v17 = vpop.f32.mrf.mxu2  ;;  %v1921_v52 = vadd.f32 %v1920_v18, %v11702_v9  ;;  %v2262_v48 = vmax.f32 %v2186_v4, 0.0  ;;  %v9222_v18 = vld [vmem:[%s11503_s24 + $0x294] sm:$0xf0] }
 0x188   : > { %v2012_v19 = vpop.f32.mrf.mxu0 }
 0x189   : > { %v2010_v37 = vadd.f32 %v2009_v61, %v1921_v52  ;;  %v10218_v61 = vld [vmem:[%s11503_s24 + $0x274] sm:$0xf] }
 0x18a   : > { %v2101_v23 = vpop.f32.mrf.mxu1 }
 0x18b   : > { %v2099_v3 = vadd.f32 %v2098_v35, %v2010_v37  ;;  %1962 = vmatmul.bf16.gmra.mxu3 %v9189_v26  ;;  %2051 = vmatmul.bf16.gmra.mxu0 %v9193_v36  ;;  %v9214_v35 = vld [vmem:[%s11503_s24 + $0x28c] sm:$0xf0] }
 0x18c   : > { %9548 = vmatmul.msk.bf16.gmra.mxu2 %vm1588_vm0, %v9201_v31  ;;  %v9225_v31 = vor.u32 %v10219_v16, %v9222_v18 }
 0x18d   : > { %v2188_v9 = vadd.f32 %v2187_v17, %v2099_v3  ;;  %2140 = vmatmul.bf16.gmra.mxu1 %v9197_v56  ;;  %v9217_v17 = vor.u32 %v10218_v61, %v9214_v35  ;;  %v9248_v35 = vld [vmem:[%s11503_s24 + $0x2b0] sm:$0xf] }
 0x18e   : > { %v1923_v50 = vpop.f32.mrf.mxu3 }
 0x18f   : > { %v2190_v38 = vpop.f32.mrf.mxu2  ;;  %v2263_v11 = vmax.f32 %v2188_v9, 0.0  ;;  %v1924_v40 = vadd.f32 %v1923_v50, %v11722_v27  ;;  %v10311_v9 = vld [vmem:[%s16973_s5 + $0x10] sm:$0xff] }
 0x190   : > { %v2014_v24 = vpop.f32.mrf.mxu0  ;;  %2603 = vmatpush.bf16.msra.mxu0 %v10311_v9  ;;  %v9270_v9 = vld [vmem:[%s11503_s24 + $0x2fc] sm:$0xf0] }
 0x191   : > { %v2013_v55 = vadd.f32 %v2012_v19, %v1924_v40  ;;  %v11981_v57 = vpack.c.bf16 %v2263_v11, %v2262_v48 }
 0x192   : > { %v2103_v59 = vpop.f32.mrf.mxu1 }
 0x193   : > { %v2102_v60 = vadd.f32 %v2101_v23, %v2013_v55  ;;  %v10225_v55 = vld [vmem:[%s11503_s24 + $0x2ac] sm:$0xf] }
 0x195   : > { %v2191_v8 = vadd.f32 %v2190_v38, %v2102_v60  ;;  %v10230_v60 = vld [vmem:[%s11503_s24 + $0x2d0] sm:$0xf0] }
 0x196   : > { %v1925_v15 = vpop.f32.mrf.mxu3 }
 0x197   : > { %v2192_v4 = vpop.f32.mrf.mxu2  ;;  %v1926_v27 = vadd.f32 %v1925_v15, %v11738_v46  ;;  %v2264_v23 = vmax.f32 %v2191_v8, 0.0  ;;  %v10226_v8 = vld [vmem:[%s11503_s24 + $0x2b4] sm:$0xf] }
 0x198   : > { %v2017_v26 = vpop.f32.mrf.mxu0 }
 0x199   : > { %v2015_v52 = vadd.f32 %v2014_v24, %v1926_v27  ;;  %v9242_v24 = vld [vmem:[%s11503_s24 + $0x2c4] sm:$0xf0] }
 0x19a   : > { %v2106_v36 = vpop.f32.mrf.mxu1  ;;  %v9245_v15 = vor.u32 %v10225_v55, %v9242_v24 }
 0x19b   : > { %v2104_v37 = vadd.f32 %v2103_v59, %v2015_v52  ;;  %1967 = vmatmul.bf16.gmra.mxu3 %v9217_v17  ;;  %2056 = vmatmul.bf16.gmra.mxu0 %v9221_v22  ;;  %v9256_v59 = vld [vmem:[%s11503_s24 + $0x2b8] sm:$0xf]  ;;  %v9253_v17 = vor.u32 %v10226_v8, %v9250_v10  ;;  %v10301_v52 = vld [vmem:[%s16971_s3] sm:$0xff] }
 0x19c   : > { %9549 = vmatmul.msk.bf16.gmra.mxu2 %vm1588_vm0, %v9229_v25  ;;  %2383 = vmatpush.bf16.msra.mxu3 %v10301_v52 }
 0x19d   : > { %v2193_v19 = vadd.f32 %v2192_v4, %v2104_v37  ;;  %2145 = vmatmul.bf16.gmra.mxu1 %v9225_v31  ;;  %v9257_v4 = vor.u32 %v10230_v60, %v9256_v59  ;;  %v10233_v59 = vld [vmem:[%s11503_s24 + $0x2ec] sm:$0xf]  ;;  %v9278_v60 = vld [vmem:[%s11503_s24 + $0x304] sm:$0xf0] }
 0x19e   : > { %v1928_v56 = vpop.f32.mrf.mxu3  ;;  %v9281_v10 = vor.u32 %v10233_v59, %v9278_v60 }
 0x19f   : > { %v2195_v46 = vpop.f32.mrf.mxu2  ;;  %v2265_v3 = vmax.f32 %v2193_v19, 0.0  ;;  %v1929_v21 = vadd.f32 %v1928_v56, %v11743_v58  ;;  %v10229_v58 = vld [vmem:[%s11503_s24 + $0x2c8] sm:$0xf0] }
 0x1a0   : > { %v2019_v38 = vpop.f32.mrf.mxu0  ;;  %v9249_v16 = vor.u32 %v10229_v58, %v9248_v35 }
 0x1a1   : > { %v2018_v50 = vadd.f32 %v2017_v26, %v1929_v21  ;;  %v11997_v48 = vpack.c.bf16 %v2265_v3, %v2264_v23  ;;  %v10232_v21 = vld [vmem:[%s11503_s24 + $0x2e4] sm:$0xf] }
 0x1a2   : > { %v2108_v11 = vpop.f32.mrf.mxu1  ;;  %v9273_v58 = vor.u32 %v10232_v21, %v9270_v9  ;;  %v10240_v9 = vld [vmem:[%s11503_s24 + $0x324] sm:$0xf] }
 0x1a3   : > { %v2107_v40 = vadd.f32 %v2106_v36, %v2018_v50  ;;  %v9284_v50 = vld [vmem:[%s11503_s24 + $0x2f0] sm:$0xf] }
 0x1a5   : > { %v2196_v61 = vadd.f32 %v2195_v46, %v2107_v40  ;;  %v10236_v40 = vld [vmem:[%s11503_s24 + $0x300] sm:$0xf0] }
 0x1a6   : > { %v1930_v62 = vpop.f32.mrf.mxu3 }
 0x1a7   : > { %v2197_v5 = vpop.f32.mrf.mxu2  ;;  %v1931_v12 = vadd.f32 %v1930_v62, %v11756_v13  ;;  %v2266_v36 = vmax.f32 %v2196_v61, 0.0 }
 0x1a8   : > { %v2022_v27 = vpop.f32.mrf.mxu0 }
 0x1a9   : > { %v2020_v18 = vadd.f32 %v2019_v38, %v1931_v12  ;;  %v10237_v38 = vld [vmem:[%s11503_s24 + $0x308] sm:$0xf0] }
 0x1aa   : > { %v2111_v25 = vpop.f32.mrf.mxu1 }
 0x1ab   : > { %v2109_v22 = vadd.f32 %v2108_v11, %v2020_v18  ;;  %1972 = vmatmul.bf16.gmra.mxu3 %v9245_v15  ;;  %2061 = vmatmul.bf16.gmra.mxu0 %v9249_v16  ;;  %v9276_v11 = vld [vmem:[%s11503_s24 + $0x2e8] sm:$0xf] }
 0x1ac   : > { %9550 = vmatmul.msk.bf16.gmra.mxu2 %vm1588_vm0, %v9257_v4  ;;  %v9277_v62 = vor.u32 %v10236_v40, %v9276_v11 }
 0x1ad   : > { %v2198_v13 = vadd.f32 %v2197_v5, %v2109_v22  ;;  %2150 = vmatmul.bf16.gmra.mxu1 %v9253_v17 }
 0x1ae   : > { %v1933_v26 = vpop.f32.mrf.mxu3 }
 0x1af   : > { %v2200_v31 = vpop.f32.mrf.mxu2  ;;  %v2267_v37 = vmax.f32 %v2198_v13, 0.0  ;;  %v1934_v19 = vadd.f32 %v1933_v26, %v11767_v30  ;;  %v9285_v30 = vor.u32 %v10237_v38, %v9284_v50  ;;  %v9306_v50 = vld [vmem:[%s11503_s24 + $0x33c] sm:$0xf0] }
 0x1b0   : > { %v2024_v56 = vpop.f32.mrf.mxu0  ;;  %v9309_v60 = vor.u32 %v10240_v9, %v9306_v50 }
 0x1b1   : > { %v12013_v46 = vpack.c.bf16 %v2267_v37, %v2266_v36  ;;  %v2023_v3 = vadd.f32 %v2022_v27, %v1934_v19  ;;  %v9298_v36 = vld [vmem:[%s11503_s24 + $0x334] sm:$0xf0]  ;;  %v9312_v37 = vld [vmem:[%s11503_s24 + $0x328] sm:$0xf]  ;;  %v10244_v19 = vld [vmem:[%s11503_s24 + $0x340] sm:$0xf0] }
 0x1b2   : > { %v2113_v23 = vpop.f32.mrf.mxu1 }
 0x1b3   : > { %v2112_v61 = vadd.f32 %v2111_v25, %v2023_v3 }
 0x1b5   : > { %v2201_v15 = vadd.f32 %v2200_v31, %v2112_v61  ;;  %v10239_v31 = vld [vmem:[%s11503_s24 + $0x31c] sm:$0xf] }
 0x1b6   : > { %v1935_v55 = vpop.f32.mrf.mxu3  ;;  %v9301_v40 = vor.u32 %v10239_v31, %v9298_v36  ;;  %v10247_v31 = vld [vmem:[%s11503_s24 + $0x35c] sm:$0xf]  ;;  %v9334_v36 = vld [vmem:[%s11503_s24 + $0x374] sm:$0xf0] }
 0x1b7   : > { %v2202_v24 = vpop.f32.mrf.mxu2  ;;  %v1936_v35 = vadd.f32 %v1935_v55, %v11782_v53  ;;  %v2268_v27 = vmax.f32 %v2201_v15, 0.0  ;;  %v9337_v9 = vor.u32 %v10247_v31, %v9334_v36 }
 0x1b8   : > { %v2027_v8 = vpop.f32.mrf.mxu0 }
 0x1b9   : > { %v2025_v5 = vadd.f32 %v2024_v56, %v1936_v35  ;;  %v9304_v56 = vld [vmem:[%s11503_s24 + $0x320] sm:$0xf] }
 0x1ba   : > { %v2116_v12 = vpop.f32.mrf.mxu1 }
 0x1bb   : > { %v2114_v4 = vadd.f32 %v2113_v23, %v2025_v5  ;;  %1977 = vmatmul.bf16.gmra.mxu3 %v9273_v58  ;;  %2066 = vmatmul.bf16.gmra.mxu0 %v9277_v62  ;;  %v10243_v23 = vld [vmem:[%s11503_s24 + $0x338] sm:$0xf0] }
 0x1bc   : > { %9551 = vmatmul.msk.bf16.gmra.mxu2 %vm1588_vm0, %v9285_v30  ;;  %v9305_v55 = vor.u32 %v10243_v23, %v9304_v56 }
 0x1bd   : > { %v2203_v16 = vadd.f32 %v2202_v24, %v2114_v4  ;;  %2155 = vmatmul.bf16.gmra.mxu1 %v9281_v10 }
 0x1be   : > { %v1938_v53 = vpop.f32.mrf.mxu3 }
 0x1bf   : > { %v2205_v18 = vpop.f32.mrf.mxu2  ;;  %v2269_v17 = vmax.f32 %v2203_v16, 0.0  ;;  %v1939_v25 = vadd.f32 %v1938_v53, %v11790_v2  ;;  %v9313_v2 = vor.u32 %v10244_v19, %v9312_v37  ;;  %v10246_v53 = vld [vmem:[%s11503_s24 + $0x354] sm:$0xf] }
 0x1c0   : > { %v2029_v22 = vpop.f32.mrf.mxu0 }
 0x1c1   : > { %v12026_v52 = vpack.c.bf16 %v2269_v17, %v2268_v27  ;;  %v2028_v26 = vadd.f32 %v2027_v8, %v1939_v25  ;;  %v9340_v27 = vld [vmem:[%s11503_s24 + $0x360] sm:$0xf]  ;;  %v10251_v17 = vld [vmem:[%s11503_s24 + $0x378] sm:$0xf0]  ;;  %v9332_v25 = vld [vmem:[%s11503_s24 + $0x358] sm:$0xf] }
 0x1c2   : > { %v2118_v13 = vpop.f32.mrf.mxu1 }
 0x1c3   : > { %v2117_v38 = vadd.f32 %v2116_v12, %v2028_v26 }
 0x1c5   : > { %v2206_v35 = vadd.f32 %v2205_v18, %v2117_v38  ;;  %v9326_v18 = vld [vmem:[%s11503_s24 + $0x36c] sm:$0xf0] }
 0x1c6   : > { %v1940_v3 = vpop.f32.mrf.mxu3  ;;  %v9329_v56 = vor.u32 %v10246_v53, %v9326_v18 }
 0x1c7   : > { %v2207_v21 = vpop.f32.mrf.mxu2  ;;  %v1941_v11 = vadd.f32 %v1940_v3, %v11805_v28  ;;  %v2270_v5 = vmax.f32 %v2206_v35, 0.0 }
 0x1c8   : > { %v2032_v59 = vpop.f32.mrf.mxu0 }
 0x1c9   : > { %v2030_v24 = vadd.f32 %v2029_v22, %v1941_v11  ;;  %v10250_v22 = vld [vmem:[%s11503_s24 + $0x370] sm:$0xf0] }
 0x1ca   : > { %v2121_v61 = vpop.f32.mrf.mxu1  ;;  %v9333_v23 = vor.u32 %v10250_v22, %v9332_v25 }
 0x1cb   : > { %v2119_v58 = vadd.f32 %v2118_v13, %v2030_v24  ;;  %1982 = vmatmul.bf16.gmra.mxu3 %v9301_v40  ;;  %2071 = vmatmul.bf16.gmra.mxu0 %v9305_v55 }
 0x1cc   : > { %9552 = vmatmul.msk.bf16.gmra.mxu2 %vm1588_vm0, %v9313_v2 }
 0x1cd   : > { %v2208_v30 = vadd.f32 %v2207_v21, %v2119_v58  ;;  %2160 = vmatmul.bf16.gmra.mxu1 %v9309_v60  ;;  %v10310_v60 = vld [vmem:[%s16973_s5 + $0x8] sm:$0xff] }
 0x1ce   : > { %v1943_v28 = vpop.f32.mrf.mxu3  ;;  %2604 = vmatpush.bf16.msra.mxu0 %v10310_v60 }
 0x1cf   : > { %v2210_v62 = vpop.f32.mrf.mxu2  ;;  %v2271_v8 = vmax.f32 %v2208_v30, 0.0  ;;  %v1944_v10 = vadd.f32 %v1943_v28, %v11816_v44  ;;  %v9341_v44 = vor.u32 %v10251_v17, %v9340_v27 }
 0x1d0   : > { %v2034_v12 = vpop.f32.mrf.mxu0 }
 0x1d1   : > { %v12039_v15 = vpack.c.bf16 %v2271_v8, %v2270_v5  ;;  %v2033_v16 = vadd.f32 %v2032_v59, %v1944_v10 }
 0x1d2   : > { %v2123_v4 = vpop.f32.mrf.mxu1 }
 0x1d3   : > { %v2122_v37 = vadd.f32 %v2121_v61, %v2033_v16 }
 0x1d5   : > { %v2211_v38 = vadd.f32 %v2210_v62, %v2122_v37 }
 0x1d6   : > { %v1945_v13 = vpop.f32.mrf.mxu3 }
 0x1d7   : > { %v2212_v26 = vpop.f32.mrf.mxu2  ;;  %v1946_v19 = vadd.f32 %v1945_v13, %v11831_v7  ;;  %v2272_v24 = vmax.f32 %v2211_v38, 0.0 }
 0x1d8   : > { %v2037_v21 = vpop.f32.mrf.mxu0 }
 0x1d9   : > { %v2035_v3 = vadd.f32 %v2034_v12, %v1946_v19 }
 0x1da   : > { %v2126_v50 = vpop.f32.mrf.mxu1 }
 0x1db   : > { %v2124_v11 = vadd.f32 %v2123_v4, %v2035_v3  ;;  %1987 = vmatmul.bf16.gmra.mxu3 %v9329_v56  ;;  %2076 = vmatmul.bf16.gmra.mxu0 %v9333_v23  ;;  %v10313_v4 = vld [vmem:[%s16975_s7] sm:$0x30] }
 0x1dc   : > { %9553 = vmatmul.msk.bf16.gmra.mxu2 %vm1588_vm0, %v9341_v44 }
 0x1dd   : > { %v2213_v40 = vadd.f32 %v2212_v26, %v2124_v11  ;;  %2165 = vmatmul.bf16.gmra.mxu1 %v9337_v9 }
 0x1de   : > { %v1948_v2 = vpop.f32.mrf.mxu3 }
 0x1df   : > { %v2215_v55 = vpop.f32.mrf.mxu2  ;;  %v2273_v59 = vmax.f32 %v2213_v40, 0.0  ;;  %v1949_v7 = vadd.f32 %v1948_v2, %v11839_v20  ;;  %v9620_v20 = vld [vmem:[%s16975_s7] sm:$0xf] }
 0x1e0   : > { %v2039_v61 = vpop.f32.mrf.mxu0  ;;  %v9621_v53 = vor.u32 %v10313_v4, %v9620_v20 }
 0x1e1   : > { %v12055_v35 = vpack.c.bf16 %v2273_v59, %v2272_v24  ;;  %v2038_v30 = vadd.f32 %v2037_v21, %v1949_v7 }
 0x1e2   : > { %v2128_v58 = vpop.f32.mrf.mxu1  ;;  %v2797_v17 = vsel %vm2795_vm1, %v9621_v53, 0 }
 0x1e3   : > { %v2127_v5 = vadd.f32 %v2126_v50, %v2038_v30  ;;  %2806 = vmatpush.bf16.msra.mxu1 %v2797_v17 }
 0x1e5   : > { %v2216_v18 = vadd.f32 %v2215_v55, %v2127_v5 }
 0x1e6   : > { %v1950_v28 = vpop.f32.mrf.mxu3 }
 0x1e7   : > { %v2217_v62 = vpop.f32.mrf.mxu2  ;;  %v1951_v8 = vadd.f32 %v1950_v28, %v11854_v51  ;;  %v2274_v13 = vmax.f32 %v2216_v18, 0.0 }
 0x1e8   : > { %v2042_v12 = vpop.f32.mrf.mxu0 }
 0x1e9   : > { %v2040_v10 = vadd.f32 %v2039_v61, %v1951_v8 }
 0x1ea   : > { %v2131_v16 = vpop.f32.mrf.mxu1 }
 0x1eb   : > { %v2129_v27 = vadd.f32 %v2128_v58, %v2040_v10  ;;  %2384 = vmatmul.bf16.vlgmr.msra.gmra.mxu3 %v11965_v47 }
 0x1ed   : > { %v2218_v51 = vadd.f32 %v2217_v62, %v2129_v27 }
 0x1ee   : > { %v1953_v25 = vpop.f32.mrf.mxu3 }
 0x1ef   : > { %v2220_v22 = vpop.f32.mrf.mxu2  ;;  %v2275_v26 = vmax.f32 %v2218_v51, 0.0  ;;  %v1954_v31 = vadd.f32 %v1953_v25, %v11864_v0 }
 0x1f0   : > { %v2044_v36 = vpop.f32.mrf.mxu0 }
 0x1f1   : > { %v12067_v37 = vpack.c.bf16 %v2275_v26, %v2274_v13  ;;  %v2043_v56 = vadd.f32 %v2042_v12, %v1954_v31 }
 0x1f2   : > { %v2133_v19 = vpop.f32.mrf.mxu1 }
 0x1f3   : > { %v2132_v3 = vadd.f32 %v2131_v16, %v2043_v56 }
 0x1f5   : > { %v2221_v38 = vadd.f32 %v2220_v22, %v2132_v3 }
 0x1f6   : > { %v1955_v44 = vpop.f32.mrf.mxu3 }
 0x1f7   : > { %v2222_v23 = vpop.f32.mrf.mxu2  ;;  %v1956_v47 = vadd.f32 %v1955_v44, %v11878_v33  ;;  %v2276_v55 = vmax.f32 %v2221_v38, 0.0 }
 0x1f8   : > { %v2047_v9 = vpop.f32.mrf.mxu0 }
 0x1f9   : > { %v2045_v21 = vadd.f32 %v2044_v36, %v1956_v47 }
 0x1fa   : > { %v2136_v50 = vpop.f32.mrf.mxu1 }
 0x1fb   : > { %v2134_v11 = vadd.f32 %v2133_v19, %v2045_v21  ;;  %2389 = vmatmul.bf16.gmra.mxu3 %v11981_v57 }
 0x1fd   : > { %v2223_v40 = vadd.f32 %v2222_v23, %v2134_v11 }
 0x1fe   : > { %v1958_v2 = vpop.f32.mrf.mxu3 }
 0x1ff   : > { %v2225_v0 = vpop.f32.mrf.mxu2  ;;  %v2277_v24 = vmax.f32 %v2223_v40, 0.0  ;;  %v1959_v59 = vadd.f32 %v1958_v2, %v11885_v45 }
 0x200   : > { %v2049_v7 = vpop.f32.mrf.mxu0 }
 0x201   : > { %v12072_v60 = vpack.c.bf16 %v2277_v24, %v2276_v55  ;;  %v2048_v58 = vadd.f32 %v2047_v9, %v1959_v59  ;;  %v10309_v9 = vld [vmem:[%s16973_s5] sm:$0xff] }
 0x202   : > { %v2138_v61 = vpop.f32.mrf.mxu1  ;;  %2605 = vmatpush.bf16.msra.mxu0 %v10309_v9 }
 0x203   : > { %v2137_v28 = vadd.f32 %v2136_v50, %v2048_v58 }
 0x205   : > { %v2226_v10 = vadd.f32 %v2225_v0, %v2137_v28 }
 0x206   : > { %v1960_v33 = vpop.f32.mrf.mxu3 }
 0x207   : > { %v2227_v30 = vpop.f32.mrf.mxu2  ;;  %v1961_v62 = vadd.f32 %v1960_v33, %v11899_v14  ;;  %v2278_v16 = vmax.f32 %v2226_v10, 0.0 }
 0x208   : > { %v2052_v8 = vpop.f32.mrf.mxu0 }
 0x209   : > { %v2050_v5 = vadd.f32 %v2049_v7, %v1961_v62 }
 0x20a   : > { %v2141_v57 = vpop.f32.mrf.mxu1 }
 0x20b   : > { %v2139_v12 = vadd.f32 %v2138_v61, %v2050_v5  ;;  %2394 = vmatmul.bf16.gmra.mxu3 %v11997_v48 }
 0x20d   : > { %v2228_v20 = vadd.f32 %v2227_v30, %v2139_v12 }
 0x20e   : > { %v1963_v4 = vpop.f32.mrf.mxu3 }
 0x20f   : > { %v2230_v45 = vpop.f32.mrf.mxu2  ;;  %v2279_v53 = vmax.f32 %v2228_v20, 0.0  ;;  %v1964_v18 = vadd.f32 %v1963_v4, %v11909_v34 }
 0x210   : > { %v2054_v27 = vpop.f32.mrf.mxu0 }
 0x211   : > { %v12077_v17 = vpack.c.bf16 %v2279_v53, %v2278_v16  ;;  %v2053_v25 = vadd.f32 %v2052_v8, %v1964_v18 }
 0x212   : > { %v2143_v51 = vpop.f32.mrf.mxu1 }
 0x213   : > { %v2142_v13 = vadd.f32 %v2141_v57, %v2053_v25 }
 0x215   : > { %v2231_v19 = vadd.f32 %v2230_v45, %v2142_v13 }
 0x216   : > { %v1965_v14 = vpop.f32.mrf.mxu3 }
 0x217   : > { %v2232_v22 = vpop.f32.mrf.mxu2  ;;  %v1966_v26 = vadd.f32 %v1965_v14, %v11923_v6  ;;  %v2280_v3 = vmax.f32 %v2231_v19, 0.0 }
 0x218   : > { %v2057_v36 = vpop.f32.mrf.mxu0 }
 0x219   : > { %v2055_v31 = vadd.f32 %v2054_v27, %v1966_v26 }
 0x21a   : > { %v2146_v48 = vpop.f32.mrf.mxu1 }
 0x21b   : > { %v2144_v56 = vadd.f32 %v2143_v51, %v2055_v31  ;;  %2399 = vmatmul.bf16.gmra.mxu3 %v12013_v46 }
 0x21d   : > { %v2233_v44 = vadd.f32 %v2232_v22, %v2144_v56 }
 0x21e   : > { %v1968_v23 = vpop.f32.mrf.mxu3 }
 0x21f   : > { %v2235_v34 = vpop.f32.mrf.mxu2  ;;  %v2281_v47 = vmax.f32 %v2233_v44, 0.0  ;;  %v1969_v21 = vadd.f32 %v1968_v23, %v11930_v41 }
 0x220   : > { %v2059_v50 = vpop.f32.mrf.mxu0 }
 0x221   : > { %v12085_v6 = vpack.c.bf16 %v2281_v47, %v2280_v3  ;;  %v2058_v11 = vadd.f32 %v2057_v36, %v1969_v21 }
 0x222   : > { %v2148_v38 = vpop.f32.mrf.mxu1 }
 0x223   : > { %v2147_v46 = vadd.f32 %v2146_v48, %v2058_v11 }
 0x225   : > { %v2236_v7 = vadd.f32 %v2235_v34, %v2147_v46 }
 0x226   : > { %v1970_v40 = vpop.f32.mrf.mxu3 }
 0x227   : > { %v2237_v2 = vpop.f32.mrf.mxu2  ;;  %v1971_v0 = vadd.f32 %v1970_v40, %v11947_v54  ;;  %v2282_v30 = vmax.f32 %v2236_v7, 0.0 }
 0x228   : > { %v2062_v24 = vpop.f32.mrf.mxu0 }
 0x229   : > { %v2060_v55 = vadd.f32 %v2059_v50, %v1971_v0 }
 0x22a   : > { %v2151_v59 = vpop.f32.mrf.mxu1 }
 0x22b   : > { %v2149_v41 = vadd.f32 %v2148_v38, %v2060_v55  ;;  %2404 = vmatmul.bf16.gmra.mxu3 %v12026_v52 }
 0x22d   : > { %v2238_v61 = vadd.f32 %v2237_v2, %v2149_v41 }
 0x22e   : > { %v1973_v58 = vpop.f32.mrf.mxu3 }
 0x22f   : > { %v2240_v33 = vpop.f32.mrf.mxu2  ;;  %v2283_v28 = vmax.f32 %v2238_v61, 0.0  ;;  %v1974_v62 = vadd.f32 %v1973_v58, %v11862_v63 }
 0x230   : > { %v2064_v5 = vpop.f32.mrf.mxu0 }
 0x231   : > { %v12090_v8 = vpack.c.bf16 %v2283_v28, %v2282_v30  ;;  %v2063_v10 = vadd.f32 %v2062_v24, %v1974_v62 }
 0x232   : > { %v2153_v57 = vpop.f32.mrf.mxu1 }
 0x233   : > { %v2152_v20 = vadd.f32 %v2151_v59, %v2063_v10 }
 0x235   : > { %v2241_v53 = vadd.f32 %v2240_v33, %v2152_v20 }
 0x236   : > { %v1975_v54 = vpop.f32.mrf.mxu3 }
 0x237   : > { %v2242_v12 = vpop.f32.mrf.mxu2  ;;  %v1976_v4 = vadd.f32 %v1975_v54, %v11876_v29  ;;  %v2284_v25 = vmax.f32 %v2241_v53, 0.0 }
 0x238   : > { %v2067_v16 = vpop.f32.mrf.mxu0 }
 0x239   : > { %v2065_v45 = vadd.f32 %v2064_v5, %v1976_v4 }
 0x23a   : > { %v2156_v52 = vpop.f32.mrf.mxu1 }
 0x23b   : > { %v2154_v18 = vadd.f32 %v2153_v57, %v2065_v45  ;;  %2409 = vmatmul.bf16.gmra.mxu3 %v12039_v15 }
 0x23d   : > { %v2243_v27 = vadd.f32 %v2242_v12, %v2154_v18 }
 0x23e   : > { %v1978_v51 = vpop.f32.mrf.mxu3 }
 0x23f   : > { %v2245_v63 = vpop.f32.mrf.mxu2  ;;  %v2285_v14 = vmax.f32 %v2243_v27, 0.0  ;;  %v1979_v22 = vadd.f32 %v1978_v51, %v11883_v42  ;;  %v12112_v27 = vld [vmem:[%s16972_s4] ss:$0 sm:$0xff]  ;;  %v10314_v51 = vld [vmem:[%s16977_s9] sm:$0x30] }
 0x240   : > { %v2069_v13 = vpop.f32.mrf.mxu0 }
 0x241   : > { %v12095_v26 = vpack.c.bf16 %v2285_v14, %v2284_v25  ;;  %v2068_v36 = vadd.f32 %v2067_v16, %v1979_v22 }
 0x242   : > { %v2158_v31 = vpop.f32.mrf.mxu1 }
 0x243   : > { %v2157_v19 = vadd.f32 %v2156_v52, %v2068_v36 }
 0x245   : > { %v2246_v34 = vadd.f32 %v2245_v63, %v2157_v19 }
 0x246   : > { %v1980_v29 = vpop.f32.mrf.mxu3 }
 0x247   : > { %v2247_v48 = vpop.f32.mrf.mxu2  ;;  %v1981_v56 = vadd.f32 %v1980_v29, %v11897_v1  ;;  %v2286_v9 = vmax.f32 %v2246_v34, 0.0 }
 0x248   : > { %v2072_v23 = vpop.f32.mrf.mxu0 }
 0x249   : > { %v2070_v44 = vadd.f32 %v2069_v13, %v1981_v56 }
 0x24a   : > { %v2161_v15 = vpop.f32.mrf.mxu1 }
 0x24b   : > { %v2159_v3 = vadd.f32 %v2158_v31, %v2070_v44  ;;  %2414 = vmatmul.bf16.gmra.mxu3 %v12055_v35 }
 0x24d   : > { %v2248_v47 = vadd.f32 %v2247_v48, %v2159_v3 }
 0x24e   : > { %v1983_v21 = vpop.f32.mrf.mxu3 }
 0x24f   : > { %v2250_v42 = vpop.f32.mrf.mxu2  ;;  %v2287_v50 = vmax.f32 %v2248_v47, 0.0  ;;  %v1984_v38 = vadd.f32 %v1983_v21, %v11907_v32 }
 0x250   : > { %v2074_v40 = vpop.f32.mrf.mxu0 }
 0x251   : > { %v12100_v11 = vpack.c.bf16 %v2287_v50, %v2286_v9  ;;  %v2073_v2 = vadd.f32 %v2072_v23, %v1984_v38 }
 0x252   : > { %v2163_v46 = vpop.f32.mrf.mxu1 }
 0x253   : > { %v2162_v55 = vadd.f32 %v2161_v15, %v2073_v2 }
 0x255   : > { %v2251_v7 = vadd.f32 %v2250_v42, %v2162_v55 }
 0x256   : > { %v1985_v1 = vpop.f32.mrf.mxu3 }
 0x257   : > { %v2252_v0 = vpop.f32.mrf.mxu2  ;;  %v1986_v24 = vadd.f32 %v1985_v1, %v11921_v43  ;;  %v2288_v32 = vmax.f32 %v2251_v7, 0.0 }
 0x258   : > { %v2077_v41 = vpop.f32.mrf.mxu0 }
 0x259   : > { %v2075_v59 = vadd.f32 %v2074_v40, %v1986_v24 }
 0x25a   : > { %v2166_v33 = vpop.f32.mrf.mxu1 }
 0x25b   : > { %v2164_v35 = vadd.f32 %v2163_v46, %v2075_v59  ;;  %2419 = vmatmul.bf16.gmra.mxu3 %v12067_v37 }
 0x25d   : > { %v2253_v61 = vadd.f32 %v2252_v0, %v2164_v35 }
 0x25e   : > { %v1988_v58 = vpop.f32.mrf.mxu3 }
 0x25f   : > { %v2289_v30 = vmax.f32 %v2253_v61, 0.0  ;;  %v1989_v28 = vadd.f32 %v1988_v58, %v11928_v49  ;;  %v2255_v62 = vpop.f32.mrf.mxu2 }
 0x260   : > { %v2079_v54 = vpop.f32.mrf.mxu0 }
 0x261   : > { %v12105_v5 = vpack.c.bf16 %v2289_v30, %v2288_v32  ;;  %v2078_v57 = vadd.f32 %v2077_v41, %v1989_v28 }
 0x262   : > { %v2168_v20 = vpop.f32.mrf.mxu1 }
 0x263   : > { %v2167_v43 = vadd.f32 %v2166_v33, %v2078_v57 }
 0x265   : > { %v2256_v45 = vadd.f32 %v2255_v62, %v2167_v43 }
 0x266   : > { %v1990_v10 = vpop.f32.mrf.mxu3 }
 0x267   : > { %v1991_v12 = vadd.f32 %v1990_v10, %v11945_v39  ;;  %v2257_v37 = vpop.f32.mrf.mxu2  ;;  %v2290_v18 = vmax.f32 %v2256_v45, 0.0  ;;  %v9640_v39 = vld [vmem:[%s16977_s9] sm:$0xf] }
 0x269   : > { %v2080_v4 = vadd.f32 %v2079_v54, %v1991_v12 }
 0x26b   : > { %v2169_v16 = vadd.f32 %v2168_v20, %v2080_v4  ;;  %2424 = vmatmul.bf16.gmra.mxu3 %v12072_v60  ;;  %v9641_v60 = vor.u32 %v10314_v51, %v9640_v39 }
 0x26d   : > { %v2258_v52 = vadd.f32 %v2257_v37, %v2169_v16  ;;  %v2996_v25 = vsel %vm2795_vm1, %v9641_v60, 0 }
 0x26e   : > { %v2385_v53 = vpop.f32.mrf.mxu3  ;;  %3005 = vmatpush.bf16.msra.mxu2 %v2996_v25 }
 0x26f   : > { %v2291_v49 = vmax.f32 %v2258_v52, 0.0  ;;  %v2386_v14 = vadd.f32 %v12112_v27, %v2385_v53 }
 0x271   : > { %v12120_v63 = vpack.c.bf16 %v2291_v49, %v2290_v18  ;;  %v2465_v31 = vmax.f32 %v2386_v14, 0.0  ;;  %v12159_v14 = vld [vmem:[%s16974_s6] ss:$0 sm:$0xff] }
 0x276   : > { %v2387_v22 = vpop.f32.mrf.mxu3 }
 0x277   : > { %v2388_v13 = vadd.f32 %v12112_v27, %v2387_v22 }
 0x279   : > { %v2466_v36 = vmax.f32 %v2388_v13, 0.0 }
 0x27b   : > { %v2506_v29 = vpack.c.bf16 %v2466_v36, %v2465_v31  ;;  %2429 = vmatmul.bf16.gmra.mxu3 %v12077_v17 }
 0x27d   : > { %9602 = vmatmul.msk.bf16.vlgmr.msra.gmra.mxu0 %vm2549_vm2, %v2506_v29 }
 0x27e   : > { %v2390_v48 = vpop.f32.mrf.mxu3 }
 0x27f   : > { %v2391_v19 = vadd.f32 %v12112_v27, %v2390_v48 }
 0x281   : > { %v2467_v23 = vmax.f32 %v2391_v19, 0.0 }
 0x286   : > { %v2392_v56 = vpop.f32.mrf.mxu3 }
 0x287   : > { %v2393_v44 = vadd.f32 %v12112_v27, %v2392_v56 }
 0x289   : > { %v2468_v15 = vmax.f32 %v2393_v44, 0.0 }
 0x28b   : > { %v2507_v34 = vpack.c.bf16 %v2468_v15, %v2467_v23  ;;  %2434 = vmatmul.bf16.gmra.mxu3 %v12085_v6 }
 0x28d   : > { %9603 = vmatmul.msk.bf16.gmra.mxu0 %vm2549_vm2, %v2507_v34 }
 0x28e   : > { %v2395_v3 = vpop.f32.mrf.mxu3 }
 0x28f   : > { %v2396_v47 = vadd.f32 %v12112_v27, %v2395_v3 }
 0x291   : > { %v2469_v42 = vmax.f32 %v2396_v47, 0.0 }
 0x296   : > { %v2397_v21 = vpop.f32.mrf.mxu3 }
 0x297   : > { %v2398_v17 = vadd.f32 %v12112_v27, %v2397_v21  ;;  %v10318_v21 = vld [vmem:[%s16979_s11 + $0x18] sm:$0xff] }
 0x298   : > { %3223 = vmatpush.bf16.msrb.mxu3 %v10318_v21 }
 0x299   : > { %v2470_v9 = vmax.f32 %v2398_v17, 0.0 }
 0x29b   : > { %v2508_v50 = vpack.c.bf16 %v2470_v9, %v2469_v42  ;;  %2439 = vmatmul.bf16.gmra.mxu3 %v12090_v8 }
 0x29d   : > { %9604 = vmatmul.msk.bf16.gmra.mxu0 %vm2549_vm2, %v2508_v50 }
 0x29e   : > { %v2400_v38 = vpop.f32.mrf.mxu3 }
 0x29f   : > { %v2401_v40 = vadd.f32 %v12112_v27, %v2400_v38 }
 0x2a1   : > { %v2471_v46 = vmax.f32 %v2401_v40, 0.0 }
 0x2a6   : > { %v2402_v2 = vpop.f32.mrf.mxu3 }
 0x2a7   : > { %v2403_v6 = vadd.f32 %v12112_v27, %v2402_v2 }
 0x2a9   : > { %v2472_v1 = vmax.f32 %v2403_v6, 0.0 }
 0x2ab   : > { %v2509_v0 = vpack.c.bf16 %v2472_v1, %v2471_v46  ;;  %2444 = vmatmul.bf16.gmra.mxu3 %v12095_v26 }
 0x2ad   : > { %9605 = vmatmul.msk.bf16.gmra.mxu0 %vm2549_vm2, %v2509_v0 }
 0x2ae   : > { %v2405_v55 = vpop.f32.mrf.mxu3 }
 0x2af   : > { %v2406_v24 = vadd.f32 %v12112_v27, %v2405_v55 }
 0x2b1   : > { %v2473_v7 = vmax.f32 %v2406_v24, 0.0 }
 0x2b6   : > { %v2407_v59 = vpop.f32.mrf.mxu3 }
 0x2b7   : > { %v2408_v8 = vadd.f32 %v12112_v27, %v2407_v59 }
 0x2b9   : > { %v2474_v35 = vmax.f32 %v2408_v8, 0.0 }
 0x2bb   : > { %v2510_v41 = vpack.c.bf16 %v2474_v35, %v2473_v7  ;;  %2449 = vmatmul.bf16.gmra.mxu3 %v12100_v11 }
 0x2bd   : > { %9606 = vmatmul.msk.bf16.gmra.mxu0 %vm2549_vm2, %v2510_v41 }
 0x2be   : > { %v2410_v61 = vpop.f32.mrf.mxu3 }
 0x2bf   : > { %v2411_v58 = vadd.f32 %v12112_v27, %v2410_v61 }
 0x2c1   : > { %v2475_v32 = vmax.f32 %v2411_v58, 0.0 }
 0x2c6   : > { %v2412_v33 = vpop.f32.mrf.mxu3 }
 0x2c7   : > { %v2413_v26 = vadd.f32 %v12112_v27, %v2412_v33 }
 0x2c9   : > { %v2476_v30 = vmax.f32 %v2413_v26, 0.0 }
 0x2cb   : > { %v2511_v28 = vpack.c.bf16 %v2476_v30, %v2475_v32  ;;  %2454 = vmatmul.bf16.gmra.mxu3 %v12105_v5 }
 0x2cd   : > { %9607 = vmatmul.msk.bf16.gmra.mxu0 %vm2549_vm2, %v2511_v28 }
 0x2ce   : > { %v2415_v62 = vpop.f32.mrf.mxu3 }
 0x2cf   : > { %v2416_v57 = vadd.f32 %v12112_v27, %v2415_v62 }
 0x2d1   : > { %v2477_v54 = vmax.f32 %v2416_v57, 0.0 }
 0x2d6   : > { %v2417_v10 = vpop.f32.mrf.mxu3 }
 0x2d7   : > { %v2418_v11 = vadd.f32 %v12112_v27, %v2417_v10 }
 0x2d9   : > { %v2478_v43 = vmax.f32 %v2418_v11, 0.0 }
 0x2db   : > { %v2512_v12 = vpack.c.bf16 %v2478_v43, %v2477_v54  ;;  %2459 = vmatmul.bf16.gmra.mxu3 %v12120_v63 }
 0x2dd   : > { %9608 = vmatmul.msk.bf16.gmra.mxu0 %vm2549_vm2, %v2512_v12 }
 0x2de   : > { %v2420_v20 = vpop.f32.mrf.mxu3 }
 0x2df   : > { %v2421_v4 = vadd.f32 %v12112_v27, %v2420_v20 }
 0x2e1   : > { %v2479_v45 = vmax.f32 %v2421_v4, 0.0 }
 0x2e6   : > { %v2422_v37 = vpop.f32.mrf.mxu3 }
 0x2e7   : > { %v2423_v5 = vadd.f32 %v12112_v27, %v2422_v37 }
 0x2e9   : > { %v2480_v16 = vmax.f32 %v2423_v5, 0.0 }
 0x2eb   : > { %v2513_v52 = vpack.c.bf16 %v2480_v16, %v2479_v45 }
 0x2ed   : > { %9609 = vmatmul.msk.bf16.gmra.mxu0 %vm2549_vm2, %v2513_v52 }
 0x2ee   : > { %v2425_v53 = vpop.f32.mrf.mxu3 }
 0x2ef   : > { %v2426_v18 = vadd.f32 %v12112_v27, %v2425_v53 }
 0x2f1   : > { %v2481_v51 = vmax.f32 %v2426_v18, 0.0 }
 0x2f6   : > { %v2427_v49 = vpop.f32.mrf.mxu3 }
 0x2f7   : > { %v2428_v39 = vadd.f32 %v12112_v27, %v2427_v49 }
 0x2f9   : > { %v2482_v63 = vmax.f32 %v2428_v39, 0.0 }
 0x2fa   : > { %v2607_v60 = vpop.f32.mrf.mxu0 }
 0x2fb   : > { %v2514_v25 = vpack.c.bf16 %v2482_v63, %v2481_v51  ;;  %v2608_v13 = vadd.f32 %v12159_v14, %v2607_v60 }
 0x2fd   : > { %9610 = vmatmul.msk.bf16.gmra.mxu0 %vm2549_vm2, %v2514_v25  ;;  %v2687_v29 = vmax.f32 %v2608_v13, 0.0 }
 0x2fe   : > { %v2430_v22 = vpop.f32.mrf.mxu3 }
 0x2ff   : > { %v2431_v48 = vadd.f32 %v12112_v27, %v2430_v22 }
 0x301   : > { %v2483_v15 = vmax.f32 %v2431_v48, 0.0 }
 0x302   : > { %v2609_v31 = vpop.f32.mrf.mxu0 }
 0x303   : > { %v2610_v36 = vadd.f32 %v12159_v14, %v2609_v31 }
 0x305   : > { %v2688_v19 = vmax.f32 %v2610_v36, 0.0 }
 0x306   : > { %v2432_v56 = vpop.f32.mrf.mxu3 }
 0x307   : > { %v2722_v44 = vpack.c.bf16 %v2688_v19, %v2687_v29  ;;  %v2433_v23 = vadd.f32 %v12112_v27, %v2432_v56 }
 0x309   : > { %v2484_v34 = vmax.f32 %v2433_v23, 0.0  ;;  %9622 = vmatmul.msk.bf16.vlgmr.msra.gmra.mxu1 %vm2746_vm3, %v2722_v44  ;;  %v10317_v23 = vld [vmem:[%s16979_s11 + $0x10] sm:$0xff] }
 0x30a   : > { %v2612_v3 = vpop.f32.mrf.mxu0  ;;  %3224 = vmatpush.bf16.msrb.mxu3 %v10317_v23 }
 0x30b   : > { %v2515_v47 = vpack.c.bf16 %v2484_v34, %v2483_v15  ;;  %v2613_v42 = vadd.f32 %v12159_v14, %v2612_v3 }
 0x30d   : > { %9611 = vmatmul.msk.bf16.gmra.mxu0 %vm2549_vm2, %v2515_v47  ;;  %v2689_v38 = vmax.f32 %v2613_v42, 0.0 }
 0x30e   : > { %v2435_v17 = vpop.f32.mrf.mxu3 }
 0x30f   : > { %v2436_v40 = vadd.f32 %v12112_v27, %v2435_v17 }
 0x311   : > { %v2485_v0 = vmax.f32 %v2436_v40, 0.0 }
 0x312   : > { %v2614_v9 = vpop.f32.mrf.mxu0 }
 0x313   : > { %v2615_v50 = vadd.f32 %v12159_v14, %v2614_v9 }
 0x315   : > { %v2690_v2 = vmax.f32 %v2615_v50, 0.0 }
 0x316   : > { %v2437_v6 = vpop.f32.mrf.mxu3 }
 0x317   : > { %v2723_v46 = vpack.c.bf16 %v2690_v2, %v2689_v38  ;;  %v2438_v1 = vadd.f32 %v12112_v27, %v2437_v6 }
 0x319   : > { %v2486_v55 = vmax.f32 %v2438_v1, 0.0  ;;  %9623 = vmatmul.msk.bf16.gmra.mxu1 %vm2746_vm3, %v2723_v46 }
 0x31a   : > { %v2617_v24 = vpop.f32.mrf.mxu0 }
 0x31b   : > { %v2516_v59 = vpack.c.bf16 %v2486_v55, %v2485_v0  ;;  %v2618_v7 = vadd.f32 %v12159_v14, %v2617_v24 }
 0x31d   : > { %9612 = vmatmul.msk.bf16.gmra.mxu0 %vm2549_vm2, %v2516_v59  ;;  %v2691_v61 = vmax.f32 %v2618_v7, 0.0 }
 0x31e   : > { %v2440_v8 = vpop.f32.mrf.mxu3 }
 0x31f   : > { %v2441_v58 = vadd.f32 %v12112_v27, %v2440_v8 }
 0x321   : > { %v2487_v28 = vmax.f32 %v2441_v58, 0.0 }
 0x322   : > { %v2619_v35 = vpop.f32.mrf.mxu0 }
 0x323   : > { %v2620_v41 = vadd.f32 %v12159_v14, %v2619_v35 }
 0x325   : > { %v2692_v33 = vmax.f32 %v2620_v41, 0.0 }
 0x326   : > { %v2442_v26 = vpop.f32.mrf.mxu3 }
 0x327   : > { %v2724_v32 = vpack.c.bf16 %v2692_v33, %v2691_v61  ;;  %v2443_v30 = vadd.f32 %v12112_v27, %v2442_v26 }
 0x329   : > { %v2488_v62 = vmax.f32 %v2443_v30, 0.0  ;;  %9624 = vmatmul.msk.bf16.gmra.mxu1 %vm2746_vm3, %v2724_v32 }
 0x32a   : > { %v2622_v57 = vpop.f32.mrf.mxu0 }
 0x32b   : > { %v2517_v10 = vpack.c.bf16 %v2488_v62, %v2487_v28  ;;  %v2623_v54 = vadd.f32 %v12159_v14, %v2622_v57 }
 0x32d   : > { %9613 = vmatmul.msk.bf16.gmra.mxu0 %vm2549_vm2, %v2517_v10  ;;  %v2693_v20 = vmax.f32 %v2623_v54, 0.0 }
 0x32e   : > { %v2445_v11 = vpop.f32.mrf.mxu3 }
 0x32f   : > { %v2446_v4 = vadd.f32 %v12112_v27, %v2445_v11 }
 0x331   : > { %v2489_v52 = vmax.f32 %v2446_v4, 0.0 }
 0x332   : > { %v2624_v43 = vpop.f32.mrf.mxu0 }
 0x333   : > { %v2625_v12 = vadd.f32 %v12159_v14, %v2624_v43 }
 0x335   : > { %v2694_v37 = vmax.f32 %v2625_v12, 0.0 }
 0x336   : > { %v2447_v5 = vpop.f32.mrf.mxu3 }
 0x337   : > { %v2725_v45 = vpack.c.bf16 %v2694_v37, %v2693_v20  ;;  %v2448_v16 = vadd.f32 %v12112_v27, %v2447_v5 }
 0x339   : > { %v2490_v53 = vmax.f32 %v2448_v16, 0.0  ;;  %9625 = vmatmul.msk.bf16.gmra.mxu1 %vm2746_vm3, %v2725_v45  ;;  %v12218_v45 = vld [vmem:[%s16976_s8] ss:$0 sm:$0xff]  ;;  %v10316_v16 = vld [vmem:[%s16979_s11 + $0x8] sm:$0xff] }
 0x33a   : > { %v2627_v18 = vpop.f32.mrf.mxu0  ;;  %3225 = vmatpush.bf16.msrb.mxu3 %v10316_v16 }
 0x33b   : > { %v2518_v49 = vpack.c.bf16 %v2490_v53, %v2489_v52  ;;  %v2628_v51 = vadd.f32 %v12159_v14, %v2627_v18 }
 0x33d   : > { %9614 = vmatmul.msk.bf16.gmra.mxu0 %vm2549_vm2, %v2518_v49  ;;  %v2695_v25 = vmax.f32 %v2628_v51, 0.0 }
 0x33e   : > { %v2450_v39 = vpop.f32.mrf.mxu3 }
 0x33f   : > { %v2451_v22 = vadd.f32 %v12112_v27, %v2450_v39 }
 0x341   : > { %v2491_v48 = vmax.f32 %v2451_v22, 0.0 }
 0x342   : > { %v2629_v63 = vpop.f32.mrf.mxu0 }
 0x343   : > { %v2630_v60 = vadd.f32 %v12159_v14, %v2629_v63 }
 0x345   : > { %v2696_v13 = vmax.f32 %v2630_v60, 0.0 }
 0x346   : > { %v2452_v31 = vpop.f32.mrf.mxu3 }
 0x347   : > { %v2726_v36 = vpack.c.bf16 %v2696_v13, %v2695_v25  ;;  %v2453_v29 = vadd.f32 %v12112_v27, %v2452_v31 }
 0x349   : > { %v2492_v19 = vmax.f32 %v2453_v29, 0.0  ;;  %9626 = vmatmul.msk.bf16.gmra.mxu1 %vm2746_vm3, %v2726_v36 }
 0x34a   : > { %v2632_v56 = vpop.f32.mrf.mxu0 }
 0x34b   : > { %v2519_v44 = vpack.c.bf16 %v2492_v19, %v2491_v48  ;;  %v2633_v34 = vadd.f32 %v12159_v14, %v2632_v56  ;;  %v9896_v48 = vld [vmem:[%s16981_s13 + $0x190] sm:$0xf]  ;;  %v10372_v19 = vld [vmem:[%s16981_s13 + $0x1a8] sm:$0xf0] }
 0x34d   : > { %9615 = vmatmul.msk.bf16.gmra.mxu0 %vm2549_vm2, %v2519_v44  ;;  %v2697_v21 = vmax.f32 %v2633_v34, 0.0  ;;  %v9897_v44 = vor.u32 %v10372_v19, %v9896_v48 }
 0x34e   : > { %v2455_v15 = vpop.f32.mrf.mxu3 }
 0x34f   : > { %v2456_v17 = vadd.f32 %v12112_v27, %v2455_v15  ;;  %3902 = vmatpush.bf16.msrb.mxu2 %v9897_v44 }
 0x351   : > { %v2493_v40 = vmax.f32 %v2456_v17, 0.0 }
 0x352   : > { %v2634_v3 = vpop.f32.mrf.mxu0 }
 0x353   : > { %v2635_v47 = vadd.f32 %v12159_v14, %v2634_v3 }
 0x355   : > { %v2698_v42 = vmax.f32 %v2635_v47, 0.0 }
 0x356   : > { %v2457_v9 = vpop.f32.mrf.mxu3 }
 0x357   : > { %v2727_v50 = vpack.c.bf16 %v2698_v42, %v2697_v21  ;;  %v2458_v38 = vadd.f32 %v12112_v27, %v2457_v9 }
 0x359   : > { %v2494_v2 = vmax.f32 %v2458_v38, 0.0  ;;  %9627 = vmatmul.msk.bf16.gmra.mxu1 %vm2746_vm3, %v2727_v50  ;;  %v9888_v50 = vld [vmem:[%s16981_s13 + $0x188] sm:$0xf]  ;;  %v10371_v38 = vld [vmem:[%s16981_s13 + $0x1a0] sm:$0xf0] }
 0x35a   : > { %v2637_v6 = vpop.f32.mrf.mxu0 }
 0x35b   : > { %v2520_v46 = vpack.c.bf16 %v2494_v2, %v2493_v40  ;;  %v2638_v0 = vadd.f32 %v12159_v14, %v2637_v6  ;;  %v10368_v40 = vld [vmem:[%s16981_s13 + $0x18c] sm:$0xf]  ;;  %v9889_v2 = vor.u32 %v10371_v38, %v9888_v50  ;;  %v9890_v6 = vld [vmem:[%s16981_s13 + $0x1a4] sm:$0xf0]  ;;  %v9840_v50 = vld [vmem:[%s16981_s13 + $0x120] sm:$0xf] }
 0x35c   : > { %v10358_v38 = vld [vmem:[%s16981_s13 + $0x138] sm:$0xf0] }
 0x35d   : > { %9616 = vmatmul.msk.bf16.gmra.mxu0 %vm2549_vm2, %v2520_v46  ;;  %v2699_v59 = vmax.f32 %v2638_v0, 0.0  ;;  %v9893_v0 = vor.u32 %v10368_v40, %v9890_v6 }
 0x35e   : > { %v2460_v1 = vpop.f32.mrf.mxu3  ;;  %3724 = vmatpush.bf16.msrb.mxu0 %v9889_v2  ;;  %v9841_v2 = vor.u32 %v10358_v38, %v9840_v50  ;;  %v10344_v50 = vld [vmem:[%s16981_s13 + $0xc8] sm:$0xf0] }
 0x35f   : > { %v2461_v8 = vadd.f32 %v12112_v27, %v2460_v1  ;;  %3813 = vmatpush.bf16.msrb.mxu1 %v9893_v0 }
 0x361   : > { %v2495_v58 = vmax.f32 %v2461_v8, 0.0 }
 0x362   : > { %v2639_v55 = vpop.f32.mrf.mxu0 }
 0x363   : > { %v2640_v24 = vadd.f32 %v12159_v14, %v2639_v55 }
 0x365   : > { %v2700_v7 = vmax.f32 %v2640_v24, 0.0 }
 0x366   : > { %v2462_v35 = vpop.f32.mrf.mxu3 }
 0x367   : > { %v2728_v41 = vpack.c.bf16 %v2700_v7, %v2699_v59  ;;  %v2463_v61 = vadd.f32 %v12112_v27, %v2462_v35 }
 0x369   : > { %v2496_v33 = vmax.f32 %v2463_v61, 0.0  ;;  %9628 = vmatmul.msk.bf16.gmra.mxu1 %vm2746_vm3, %v2728_v41 }
 0x36a   : > { %v2642_v26 = vpop.f32.mrf.mxu0 }
 0x36b   : > { %v2521_v32 = vpack.c.bf16 %v2496_v33, %v2495_v58  ;;  %v2643_v30 = vadd.f32 %v12159_v14, %v2642_v26 }
 0x36d   : > { %9617 = vmatmul.msk.bf16.gmra.mxu0 %vm2549_vm2, %v2521_v32  ;;  %v2701_v57 = vmax.f32 %v2643_v30, 0.0 }
 0x372   : > { %v2644_v28 = vpop.f32.mrf.mxu0 }
 0x373   : > { %v2645_v62 = vadd.f32 %v12159_v14, %v2644_v28 }
 0x375   : > { %v2702_v10 = vmax.f32 %v2645_v62, 0.0 }
 0x377   : > { %v2729_v11 = vpack.c.bf16 %v2702_v10, %v2701_v57  ;;  %v9868_v10 = vld [vmem:[%s16981_s13 + $0x158] sm:$0xf] }
 0x379   : > { %9629 = vmatmul.msk.bf16.gmra.mxu1 %vm2746_vm3, %v2729_v11  ;;  %v10365_v11 = vld [vmem:[%s16981_s13 + $0x170] sm:$0xf0] }
 0x37a   : > { %v2647_v54 = vpop.f32.mrf.mxu0 }
 0x37b   : > { %v2648_v27 = vadd.f32 %v12159_v14, %v2647_v54 }
 0x37d   : > { %v2703_v20 = vmax.f32 %v2648_v27, 0.0  ;;  %v9869_v27 = vor.u32 %v10365_v11, %v9868_v10 }
 0x37f   : > { %3903 = vmatpush.bf16.msrb.mxu2 %v9869_v27 }
 0x382   : > { %v2649_v43 = vpop.f32.mrf.mxu0 }
 0x383   : > { %v2650_v12 = vadd.f32 %v12159_v14, %v2649_v43  ;;  %3904 = vmatpush.bf16.msrb.mxu2 %v9841_v2 }
 0x385   : > { %v2704_v4 = vmax.f32 %v2650_v12, 0.0 }
 0x386   : > { %v2808_v37 = vpop.f32.mrf.mxu1 }
 0x387   : > { %v2730_v5 = vpack.c.bf16 %v2704_v4, %v2703_v20  ;;  %v2809_v53 = vadd.f32 %v12218_v45, %v2808_v37 }
 0x389   : > { %9630 = vmatmul.msk.bf16.gmra.mxu1 %vm2746_vm3, %v2730_v5  ;;  %v2888_v39 = vmax.f32 %v2809_v53, 0.0 }
 0x38a   : > { %v2652_v52 = vpop.f32.mrf.mxu0 }
 0x38b   : > { %v2653_v51 = vadd.f32 %v12159_v14, %v2652_v52 }
 0x38d   : > { %v2705_v13 = vmax.f32 %v2653_v51, 0.0 }
 0x38e   : > { %v2810_v18 = vpop.f32.mrf.mxu1 }
 0x38f   : > { %v2811_v49 = vadd.f32 %v12218_v45, %v2810_v18  ;;  %v9860_v18 = vld [vmem:[%s16981_s13 + $0x150] sm:$0xf] }
 0x391   : > { %v2889_v63 = vmax.f32 %v2811_v49, 0.0  ;;  %v10364_v49 = vld [vmem:[%s16981_s13 + $0x168] sm:$0xf0] }
 0x392   : > { %v2654_v60 = vpop.f32.mrf.mxu0  ;;  %v9861_v51 = vor.u32 %v10364_v49, %v9860_v18  ;;  %v9812_v18 = vld [vmem:[%s16981_s13 + $0xe8] sm:$0xf]  ;;  %v10351_v49 = vld [vmem:[%s16981_s13 + $0x100] sm:$0xf0] }
 0x393   : > { %v2923_v25 = vpack.c.bf16 %v2889_v63, %v2888_v39  ;;  %v2655_v22 = vadd.f32 %v12159_v14, %v2654_v60  ;;  %v10361_v39 = vld [vmem:[%s16981_s13 + $0x154] sm:$0xf]  ;;  %v9862_v63 = vld [vmem:[%s16981_s13 + $0x16c] sm:$0xf0] }
 0x394   : > { %3725 = vmatpush.bf16.msrb.mxu0 %v9861_v51 }
 0x395   : > { %v2706_v31 = vmax.f32 %v2655_v22, 0.0  ;;  %9642 = vmatmul.msk.bf16.vlgmr.msra.gmra.mxu2 %vm2746_vm3, %v2923_v25  ;;  %v9865_v22 = vor.u32 %v10361_v39, %v9862_v63  ;;  %v9813_v39 = vor.u32 %v10351_v49, %v9812_v18  ;;  %v10337_v18 = vld [vmem:[%s16981_s13 + $0x90] sm:$0xf0] }
 0x396   : > { %v2813_v36 = vpop.f32.mrf.mxu1 }
 0x397   : > { %v2731_v29 = vpack.c.bf16 %v2706_v31, %v2705_v13  ;;  %v2814_v23 = vadd.f32 %v12218_v45, %v2813_v36  ;;  %3814 = vmatpush.bf16.msrb.mxu1 %v9865_v22  ;;  %v10315_v36 = vld [vmem:[%s16979_s11] sm:$0xff]  ;;  %3905 = vmatpush.bf16.msrb.mxu2 %v9813_v39 }
 0x398   : > { %3226 = vmatpush.bf16.msrb.mxu3 %v10315_v36  ;;  %v10347_v36 = vld [vmem:[%s16981_s13 + $0xe4] sm:$0xf] }
 0x399   : > { %9631 = vmatmul.msk.bf16.gmra.mxu1 %vm2746_vm3, %v2731_v29  ;;  %v2890_v3 = vmax.f32 %v2814_v23, 0.0 }
 0x39a   : > { %v2657_v56 = vpop.f32.mrf.mxu0 }
 0x39b   : > { %v2658_v47 = vadd.f32 %v12159_v14, %v2657_v56 }
 0x39d   : > { %v2707_v46 = vmax.f32 %v2658_v47, 0.0 }
 0x39e   : > { %v2815_v15 = vpop.f32.mrf.mxu1 }
 0x39f   : > { %v2816_v34 = vadd.f32 %v12218_v45, %v2815_v15 }
 0x3a1   : > { %v2891_v21 = vmax.f32 %v2816_v34, 0.0 }
 0x3a2   : > { %v2659_v17 = vpop.f32.mrf.mxu0 }
 0x3a3   : > { %v2924_v42 = vpack.c.bf16 %v2891_v21, %v2890_v3  ;;  %v2660_v9 = vadd.f32 %v12159_v14, %v2659_v17 }
 0x3a5   : > { %v2708_v1 = vmax.f32 %v2660_v9, 0.0  ;;  %9643 = vmatmul.msk.bf16.gmra.mxu2 %vm2746_vm3, %v2924_v42 }
 0x3a6   : > { %v2818_v55 = vpop.f32.mrf.mxu1 }
 0x3a7   : > { %v2732_v24 = vpack.c.bf16 %v2708_v1, %v2707_v46  ;;  %v2819_v8 = vadd.f32 %v12218_v45, %v2818_v55 }
 0x3a9   : > { %9632 = vmatmul.msk.bf16.gmra.mxu1 %vm2746_vm3, %v2732_v24  ;;  %v2892_v41 = vmax.f32 %v2819_v8, 0.0 }
 0x3aa   : > { %v2662_v59 = vpop.f32.mrf.mxu0 }
 0x3ab   : > { %v2663_v61 = vadd.f32 %v12159_v14, %v2662_v59 }
 0x3ad   : > { %v2709_v30 = vmax.f32 %v2663_v61, 0.0  ;;  %v10354_v61 = vld [vmem:[%s16981_s13 + $0x11c] sm:$0xf] }
 0x3ae   : > { %v2820_v7 = vpop.f32.mrf.mxu1 }
 0x3af   : > { %v2821_v35 = vadd.f32 %v12218_v45, %v2820_v7 }
 0x3b1   : > { %v2893_v58 = vmax.f32 %v2821_v35, 0.0  ;;  %v9832_v35 = vld [vmem:[%s16981_s13 + $0x118] sm:$0xf] }
 0x3b2   : > { %v2664_v33 = vpop.f32.mrf.mxu0 }
 0x3b3   : > { %v2925_v26 = vpack.c.bf16 %v2893_v58, %v2892_v41  ;;  %v2665_v32 = vadd.f32 %v12159_v14, %v2664_v33  ;;  %v10357_v41 = vld [vmem:[%s16981_s13 + $0x130] sm:$0xf0]  ;;  %v9834_v33 = vld [vmem:[%s16981_s13 + $0x134] sm:$0xf0] }
 0x3b4   : > { %v9833_v58 = vor.u32 %v10357_v41, %v9832_v35  ;;  %v9776_v35 = vld [vmem:[%s16981_s13 + $0xa8] sm:$0xf]  ;;  %v10343_v41 = vld [vmem:[%s16981_s13 + $0xc0] sm:$0xf0] }
 0x3b5   : > { %v2710_v28 = vmax.f32 %v2665_v32, 0.0  ;;  %9644 = vmatmul.msk.bf16.gmra.mxu2 %vm2746_vm3, %v2925_v26 }
 0x3b6   : > { %v2823_v62 = vpop.f32.mrf.mxu1  ;;  %3726 = vmatpush.bf16.msrb.mxu0 %v9833_v58  ;;  %v10340_v58 = vld [vmem:[%s16981_s13 + $0xac] sm:$0xf] }
 0x3b7   : > { %v2733_v57 = vpack.c.bf16 %v2710_v28, %v2709_v30  ;;  %v2824_v43 = vadd.f32 %v12218_v45, %v2823_v62  ;;  %v9837_v30 = vor.u32 %v10354_v61, %v9834_v33  ;;  %v9777_v61 = vor.u32 %v10343_v41, %v9776_v35  ;;  %v9778_v33 = vld [vmem:[%s16981_s13 + $0xc4] sm:$0xf0] }
 0x3b9   : > { %9633 = vmatmul.msk.bf16.gmra.mxu1 %vm2746_vm3, %v2733_v57  ;;  %v2894_v4 = vmax.f32 %v2824_v43, 0.0 }
 0x3ba   : > { %v2667_v54 = vpop.f32.mrf.mxu0  ;;  %3815 = vmatpush.bf16.msrb.mxu1 %v9837_v30 }
 0x3bb   : > { %v2668_v37 = vadd.f32 %v12159_v14, %v2667_v54 }
 0x3bd   : > { %v2711_v60 = vmax.f32 %v2668_v37, 0.0 }
 0x3be   : > { %v2825_v12 = vpop.f32.mrf.mxu1 }
 0x3bf   : > { %v2826_v20 = vadd.f32 %v12218_v45, %v2825_v12 }
 0x3c1   : > { %v2895_v5 = vmax.f32 %v2826_v20, 0.0 }
 0x3c2   : > { %v2669_v16 = vpop.f32.mrf.mxu0 }
 0x3c3   : > { %v2926_v52 = vpack.c.bf16 %v2895_v5, %v2894_v4  ;;  %v2670_v53 = vadd.f32 %v12159_v14, %v2669_v16 }
 0x3c5   : > { %v2712_v25 = vmax.f32 %v2670_v53, 0.0  ;;  %9645 = vmatmul.msk.bf16.gmra.mxu2 %vm2746_vm3, %v2926_v52 }
 0x3c6   : > { %v2828_v13 = vpop.f32.mrf.mxu1 }
 0x3c7   : > { %v2734_v31 = vpack.c.bf16 %v2712_v25, %v2711_v60  ;;  %v2829_v48 = vadd.f32 %v12218_v45, %v2828_v13  ;;  %v9804_v13 = vld [vmem:[%s16981_s13 + $0xe0] sm:$0xf] }
 0x3c9   : > { %9634 = vmatmul.msk.bf16.gmra.mxu1 %vm2746_vm3, %v2734_v31  ;;  %v2896_v44 = vmax.f32 %v2829_v48, 0.0  ;;  %v10350_v31 = vld [vmem:[%s16981_s13 + $0xf8] sm:$0xf0]  ;;  %v9806_v48 = vld [vmem:[%s16981_s13 + $0xfc] sm:$0xf0] }
 0x3ca   : > { %v2672_v29 = vpop.f32.mrf.mxu0 }
 0x3cb   : > { %v2673_v23 = vadd.f32 %v12159_v14, %v2672_v29  ;;  %v9805_v29 = vor.u32 %v10350_v31, %v9804_v13 }
 0x3cd   : > { %v2713_v21 = vmax.f32 %v2673_v23, 0.0  ;;  %3727 = vmatpush.bf16.msrb.mxu0 %v9805_v29 }
 0x3ce   : > { %v2830_v19 = vpop.f32.mrf.mxu1 }
 0x3cf   : > { %v2831_v56 = vadd.f32 %v12218_v45, %v2830_v19  ;;  %v9809_v19 = vor.u32 %v10347_v36, %v9806_v48  ;;  %v9748_v48 = vld [vmem:[%s16981_s13 + $0x70] sm:$0xf] }
 0x3d1   : > { %v2897_v15 = vmax.f32 %v2831_v56, 0.0  ;;  %3816 = vmatpush.bf16.msrb.mxu1 %v9809_v19  ;;  %3728 = vmatpush.bf16.msrb.mxu0 %v9777_v61  ;;  %v10336_v19 = vld [vmem:[%s16981_s13 + $0x88] sm:$0xf0] }
 0x3d2   : > { %v2674_v34 = vpop.f32.mrf.mxu0 }
 0x3d3   : > { %v2927_v3 = vpack.c.bf16 %v2897_v15, %v2896_v44  ;;  %v2675_v47 = vadd.f32 %v12159_v14, %v2674_v34 }
 0x3d5   : > { %v2714_v17 = vmax.f32 %v2675_v47, 0.0  ;;  %9646 = vmatmul.msk.bf16.gmra.mxu2 %vm2746_vm3, %v2927_v3 }
 0x3d6   : > { %v2833_v42 = vpop.f32.mrf.mxu1 }
 0x3d7   : > { %v2735_v9 = vpack.c.bf16 %v2714_v17, %v2713_v21  ;;  %v2834_v6 = vadd.f32 %v12218_v45, %v2833_v42  ;;  %v12350_v42 = vld [vmem:[%s16978_s10] ss:$0 sm:$0xff] }
 0x3d9   : > { %9635 = vmatmul.msk.bf16.gmra.mxu1 %vm2746_vm3, %v2735_v9  ;;  %v2898_v0 = vmax.f32 %v2834_v6, 0.0  ;;  %v9784_v9 = vld [vmem:[%s16981_s13 + $0xb0] sm:$0xf] }
 0x3da   : > { %v2677_v40 = vpop.f32.mrf.mxu0  ;;  %v9785_v38 = vor.u32 %v10344_v50, %v9784_v9 }
 0x3db   : > { %v2678_v55 = vadd.f32 %v12159_v14, %v2677_v40 }
 0x3dc   : > { %3906 = vmatpush.bf16.msrb.mxu2 %v9785_v38 }
 0x3dd   : > { %v2715_v26 = vmax.f32 %v2678_v55, 0.0 }
 0x3de   : > { %v2835_v46 = vpop.f32.mrf.mxu1 }
 0x3df   : > { %v2836_v1 = vadd.f32 %v12218_v45, %v2835_v46 }
 0x3e1   : > { %v2899_v24 = vmax.f32 %v2836_v1, 0.0 }
 0x3e2   : > { %v2679_v59 = vpop.f32.mrf.mxu0 }
 0x3e3   : > { %v2928_v8 = vpack.c.bf16 %v2899_v24, %v2898_v0  ;;  %v2680_v7 = vadd.f32 %v12159_v14, %v2679_v59 }
 0x3e5   : > { %v2716_v32 = vmax.f32 %v2680_v7, 0.0  ;;  %9647 = vmatmul.msk.bf16.gmra.mxu2 %vm2746_vm3, %v2928_v8 }
 0x3e6   : > { %v2838_v28 = vpop.f32.mrf.mxu1 }
 0x3e7   : > { %v2736_v62 = vpack.c.bf16 %v2716_v32, %v2715_v26  ;;  %v2839_v10 = vadd.f32 %v12218_v45, %v2838_v28  ;;  %v9781_v32 = vor.u32 %v10340_v58, %v9778_v33 }
 0x3e9   : > { %9636 = vmatmul.msk.bf16.gmra.mxu1 %vm2746_vm3, %v2736_v62  ;;  %v2900_v27 = vmax.f32 %v2839_v10, 0.0 }
 0x3ea   : > { %v2682_v57 = vpop.f32.mrf.mxu0  ;;  %3817 = vmatpush.bf16.msrb.mxu1 %v9781_v32 }
 0x3eb   : > { %v2683_v43 = vadd.f32 %v12159_v14, %v2682_v57 }
 0x3ed   : > { %v2717_v5 = vmax.f32 %v2683_v43, 0.0 }
 0x3ee   : > { %v2840_v11 = vpop.f32.mrf.mxu1 }
 0x3ef   : > { %v2841_v54 = vadd.f32 %v12218_v45, %v2840_v11 }
 0x3f1   : > { %v2901_v12 = vmax.f32 %v2841_v54, 0.0 }
 0x3f2   : > { %v2684_v20 = vpop.f32.mrf.mxu0 }
 0x3f3   : > { %v2929_v4 = vpack.c.bf16 %v2901_v12, %v2900_v27  ;;  %v2685_v37 = vadd.f32 %v12159_v14, %v2684_v20 }
 0x3f5   : > { %v2718_v16 = vmax.f32 %v2685_v37, 0.0  ;;  %9648 = vmatmul.msk.bf16.gmra.mxu2 %vm2746_vm3, %v2929_v4 }
 0x3f6   : > { %v2843_v52 = vpop.f32.mrf.mxu1 }
 0x3f7   : > { %v2737_v53 = vpack.c.bf16 %v2718_v16, %v2717_v5  ;;  %v2844_v51 = vadd.f32 %v12218_v45, %v2843_v52 }
 0x3f9   : > { %9637 = vmatmul.msk.bf16.gmra.mxu1 %vm2746_vm3, %v2737_v53  ;;  %v2902_v60 = vmax.f32 %v2844_v51, 0.0  ;;  %v9756_v53 = vld [vmem:[%s16981_s13 + $0x78] sm:$0xf] }
 0x3fa   : > { %v9757_v49 = vor.u32 %v10337_v18, %v9756_v53 }
 0x3fc   : > { %3907 = vmatpush.bf16.msrb.mxu2 %v9757_v49 }
 0x3fe   : > { %v2845_v14 = vpop.f32.mrf.mxu1 }
 0x3ff   : > { %v2846_v63 = vadd.f32 %v12218_v45, %v2845_v14 }
 0x401   : > { %v2903_v25 = vmax.f32 %v2846_v63, 0.0 }
 0x403   : > { %v2930_v22 = vpack.c.bf16 %v2903_v25, %v2902_v60 }
 0x405   : > { %9649 = vmatmul.msk.bf16.gmra.mxu2 %vm2746_vm3, %v2930_v22 }
 0x406   : > { %v2848_v56 = vpop.f32.mrf.mxu1 }
 0x407   : > { %v2849_v44 = vadd.f32 %v12218_v45, %v2848_v56  ;;  %v9749_v56 = vor.u32 %v10336_v19, %v9748_v48  ;;  %v9692_v19 = vld [vmem:[%s16981_s13] sm:$0xf] }
 0x409   : > { %v2904_v34 = vmax.f32 %v2849_v44, 0.0  ;;  %v10333_v44 = vld [vmem:[%s16981_s13 + $0x74] sm:$0xf]  ;;  %3729 = vmatpush.bf16.msrb.mxu0 %v9749_v56  ;;  %v10322_v56 = vld [vmem:[%s16981_s13 + $0x18] sm:$0xf0] }
 0x40e   : > { %v2850_v23 = vpop.f32.mrf.mxu1 }
 0x40f   : > { %v2851_v15 = vadd.f32 %v12218_v45, %v2850_v23  ;;  %v9750_v23 = vld [vmem:[%s16981_s13 + $0x8c] sm:$0xf0] }
 0x411   : > { %v2905_v3 = vmax.f32 %v2851_v15, 0.0 }
 0x413   : > { %v2931_v47 = vpack.c.bf16 %v2905_v3, %v2904_v34  ;;  %v9753_v34 = vor.u32 %v10333_v44, %v9750_v23  ;;  %v10319_v44 = vld [vmem:[%s16981_s13 + $0x4] sm:$0xf] }
 0x415   : > { %9650 = vmatmul.msk.bf16.gmra.mxu2 %vm2746_vm3, %v2931_v47  ;;  %3818 = vmatpush.bf16.msrb.mxu1 %v9753_v34  ;;  %v9694_v34 = vld [vmem:[%s16981_s13 + $0x1c] sm:$0xf0] }
 0x416   : > { %v2853_v21 = vpop.f32.mrf.mxu1 }
 0x417   : > { %v2854_v40 = vadd.f32 %v12218_v45, %v2853_v21 }
 0x418   : > { %v3007_v17 = vpop.f32.mrf.mxu2 }
 0x419   : > { %v3008_v6 = vadd.f32 %v12350_v42, %v3007_v17  ;;  %v2906_v0 = vmax.f32 %v2854_v40, 0.0 }
 0x41b   : > { %v3087_v59 = vmax.f32 %v3008_v6, 0.0 }
 0x41e   : > { %v2855_v2 = vpop.f32.mrf.mxu1 }
 0x41f   : > { %v2856_v46 = vadd.f32 %v12218_v45, %v2855_v2 }
 0x420   : > { %v3009_v1 = vpop.f32.mrf.mxu2 }
 0x421   : > { %v2907_v55 = vmax.f32 %v2856_v46, 0.0  ;;  %v3010_v24 = vadd.f32 %v12350_v42, %v3009_v1 }
 0x423   : > { %v2932_v8 = vpack.c.bf16 %v2907_v55, %v2906_v0  ;;  %v3088_v7 = vmax.f32 %v3010_v24, 0.0 }
 0x425   : > { %v3128_v26 = vpack.c.bf16 %v3088_v7, %v3087_v59  ;;  %9651 = vmatmul.msk.bf16.gmra.mxu2 %vm2746_vm3, %v2932_v8  ;;  %v9728_v8 = vld [vmem:[%s16981_s13 + $0x40] sm:$0xf]  ;;  %v10330_v7 = vld [vmem:[%s16981_s13 + $0x58] sm:$0xf0] }
 0x426   : > { %v2858_v30 = vpop.f32.mrf.mxu1  ;;  %v9729_v35 = vor.u32 %v10330_v7, %v9728_v8 }
 0x427   : > { %9674 = vmatmul.msk.bf16.vlgmr.msrb.gmra.mxu3 %vm2549_vm2, %v3128_v26  ;;  %v2859_v62 = vadd.f32 %v12218_v45, %v2858_v30 }
 0x428   : > { %v3012_v28 = vpop.f32.mrf.mxu2  ;;  %3908 = vmatpush.bf16.msrb.mxu2 %v9729_v35 }
 0x429   : > { %v3013_v10 = vadd.f32 %v12350_v42, %v3012_v28  ;;  %v2908_v27 = vmax.f32 %v2859_v62, 0.0 }
 0x42b   : > { %v3089_v20 = vmax.f32 %v3013_v10, 0.0 }
 0x42e   : > { %v2860_v57 = vpop.f32.mrf.mxu1 }
 0x42f   : > { %v2861_v11 = vadd.f32 %v12218_v45, %v2860_v57 }
 0x430   : > { %v3014_v54 = vpop.f32.mrf.mxu2 }
 0x431   : > { %v2909_v43 = vmax.f32 %v2861_v11, 0.0  ;;  %v3015_v12 = vadd.f32 %v12350_v42, %v3014_v54  ;;  %v9720_v11 = vld [vmem:[%s16981_s13 + $0x38] sm:$0xf]  ;;  %v10329_v54 = vld [vmem:[%s16981_s13 + $0x50] sm:$0xf0] }
 0x433   : > { %v2933_v4 = vpack.c.bf16 %v2909_v43, %v2908_v27  ;;  %v3090_v37 = vmax.f32 %v3015_v12, 0.0  ;;  %v9721_v27 = vor.u32 %v10329_v54, %v9720_v11  ;;  %v10326_v43 = vld [vmem:[%s16981_s13 + $0x3c] sm:$0xf]  ;;  %v9722_v12 = vld [vmem:[%s16981_s13 + $0x54] sm:$0xf0] }
 0x435   : > { %v3129_v5 = vpack.c.bf16 %v3090_v37, %v3089_v20  ;;  %9652 = vmatmul.msk.bf16.gmra.mxu2 %vm2746_vm3, %v2933_v4  ;;  %v9725_v4 = vor.u32 %v10326_v43, %v9722_v12  ;;  %3730 = vmatpush.bf16.msrb.mxu0 %v9721_v27 }
 0x436   : > { %v2863_v16 = vpop.f32.mrf.mxu1 }
 0x437   : > { %9675 = vmatmul.msk.bf16.gmra.mxu3 %vm2549_vm2, %v3129_v5  ;;  %v2864_v39 = vadd.f32 %v12218_v45, %v2863_v16  ;;  %3819 = vmatpush.bf16.msrb.mxu1 %v9725_v4 }
 0x438   : > { %v3017_v52 = vpop.f32.mrf.mxu2 }
 0x439   : > { %v3018_v14 = vadd.f32 %v12350_v42, %v3017_v52  ;;  %v2910_v25 = vmax.f32 %v2864_v39, 0.0 }
 0x43b   : > { %v3091_v31 = vmax.f32 %v3018_v14, 0.0 }
 0x43e   : > { %v2865_v51 = vpop.f32.mrf.mxu1 }
 0x43f   : > { %v2866_v63 = vadd.f32 %v12218_v45, %v2865_v51 }
 0x440   : > { %v3019_v60 = vpop.f32.mrf.mxu2 }
 0x441   : > { %v2911_v22 = vmax.f32 %v2866_v63, 0.0  ;;  %v3020_v13 = vadd.f32 %v12350_v42, %v3019_v60 }
 0x443   : > { %v2934_v36 = vpack.c.bf16 %v2911_v22, %v2910_v25  ;;  %v3092_v29 = vmax.f32 %v3020_v13, 0.0 }
 0x445   : > { %v3130_v15 = vpack.c.bf16 %v3092_v29, %v3091_v31  ;;  %9653 = vmatmul.msk.bf16.gmra.mxu2 %vm2746_vm3, %v2934_v36  ;;  %v9700_v36 = vld [vmem:[%s16981_s13 + $0x8] sm:$0xf]  ;;  %v10323_v29 = vld [vmem:[%s16981_s13 + $0x20] sm:$0xf0] }
 0x446   : > { %v2868_v3 = vpop.f32.mrf.mxu1  ;;  %v9701_v48 = vor.u32 %v10323_v29, %v9700_v36  ;;  %v10362_v29 = vld [vmem:[%s16981_s13 + $0x15c] sm:$0xf] }
 0x447   : > { %9676 = vmatmul.msk.bf16.gmra.mxu3 %vm2549_vm2, %v3130_v15  ;;  %v2869_v21 = vadd.f32 %v12218_v45, %v2868_v3  ;;  %v9693_v15 = vor.u32 %v10322_v56, %v9692_v19  ;;  %v9884_v56 = vld [vmem:[%s16981_s13 + $0x168] sm:$0xf] }
 0x448   : > { %v3022_v47 = vpop.f32.mrf.mxu2  ;;  %3909 = vmatpush.bf16.msrb.mxu2 %v9701_v48  ;;  %v9870_v48 = vld [vmem:[%s16981_s13 + $0x174] sm:$0xf0] }
 0x449   : > { %v3023_v9 = vadd.f32 %v12350_v42, %v3022_v47  ;;  %v2912_v40 = vmax.f32 %v2869_v21, 0.0  ;;  %v9697_v47 = vor.u32 %v10319_v44, %v9694_v34  ;;  %3731 = vmatpush.bf16.msrb.mxu0 %v9693_v15  ;;  %v9873_v19 = vor.u32 %v10362_v29, %v9870_v48  ;;  %v10367_v44 = vld [vmem:[%s16981_s13 + $0x180] sm:$0xf0]  ;;  %v9876_v15 = vld [vmem:[%s16981_s13 + $0x160] sm:$0xf] }
 0x44a   : > { %v10366_v34 = vld [vmem:[%s16981_s13 + $0x178] sm:$0xf0] }
 0x44b   : > { %v3093_v46 = vmax.f32 %v3023_v9, 0.0  ;;  %3820 = vmatpush.bf16.msrb.mxu1 %v9697_v47  ;;  %v10363_v47 = vld [vmem:[%s16981_s13 + $0x164] sm:$0xf] }
 0x44e   : > { %v2870_v17 = vpop.f32.mrf.mxu1 }
 0x44f   : > { %v2871_v50 = vadd.f32 %v12218_v45, %v2870_v17 }
 0x450   : > { %v3024_v38 = vpop.f32.mrf.mxu2 }
 0x451   : > { %v2913_v2 = vmax.f32 %v2871_v50, 0.0  ;;  %v3025_v6 = vadd.f32 %v12350_v42, %v3024_v38 }
 0x453   : > { %v2935_v1 = vpack.c.bf16 %v2913_v2, %v2912_v40  ;;  %v3094_v0 = vmax.f32 %v3025_v6, 0.0 }
 0x455   : > { %v3131_v55 = vpack.c.bf16 %v3094_v0, %v3093_v46  ;;  %9654 = vmatmul.msk.bf16.gmra.mxu2 %vm2746_vm3, %v2935_v1 }
 0x456   : > { %v2873_v24 = vpop.f32.mrf.mxu1 }
 0x457   : > { %9677 = vmatmul.msk.bf16.gmra.mxu3 %vm2549_vm2, %v3131_v55  ;;  %v2874_v41 = vadd.f32 %v12218_v45, %v2873_v24 }
 0x458   : > { %v3027_v59 = vpop.f32.mrf.mxu2 }
 0x459   : > { %v3028_v58 = vadd.f32 %v12350_v42, %v3027_v59  ;;  %v2914_v32 = vmax.f32 %v2874_v41, 0.0  ;;  %v10369_v41 = vld [vmem:[%s16981_s13 + $0x194] sm:$0xf] }
 0x45b   : > { %v3095_v62 = vmax.f32 %v3028_v58, 0.0 }
 0x45e   : > { %v2875_v61 = vpop.f32.mrf.mxu1 }
 0x45f   : > { %v2876_v33 = vadd.f32 %v12218_v45, %v2875_v61  ;;  %v9898_v61 = vld [vmem:[%s16981_s13 + $0x1ac] sm:$0xf0] }
 0x460   : > { %v3029_v26 = vpop.f32.mrf.mxu2  ;;  %v9901_v58 = vor.u32 %v10369_v41, %v9898_v61 }
 0x461   : > { %v2915_v30 = vmax.f32 %v2876_v33, 0.0  ;;  %v3030_v28 = vadd.f32 %v12350_v42, %v3029_v26  ;;  %v9912_v33 = vld [vmem:[%s16981_s13 + $0x1a0] sm:$0xf]  ;;  %v10374_v26 = vld [vmem:[%s16981_s13 + $0x1b8] sm:$0xf0] }
 0x462   : > { %3991 = vmatpush.bf16.msra.mxu3 %v9901_v58 }
 0x463   : > { %v2936_v57 = vpack.c.bf16 %v2915_v30, %v2914_v32  ;;  %v3096_v10 = vmax.f32 %v3030_v28, 0.0  ;;  %v9913_v32 = vor.u32 %v10374_v26, %v9912_v33  ;;  %v9904_v30 = vld [vmem:[%s16981_s13 + $0x198] sm:$0xf]  ;;  %v10373_v28 = vld [vmem:[%s16981_s13 + $0x1b0] sm:$0xf0] }
 0x465   : > { %v3132_v20 = vpack.c.bf16 %v3096_v10, %v3095_v62  ;;  %9655 = vmatmul.msk.bf16.gmra.mxu2 %vm2746_vm3, %v2936_v57  ;;  %v10370_v62 = vld [vmem:[%s16981_s13 + $0x19c] sm:$0xf]  ;;  %v9905_v57 = vor.u32 %v10373_v28, %v9904_v30  ;;  %v9906_v10 = vld [vmem:[%s16981_s13 + $0x1b4] sm:$0xf0] }
 0x466   : > { %v2878_v37 = vpop.f32.mrf.mxu1  ;;  %4258 = vmatpush.bf16.msra.mxu2 %v9913_v32  ;;  %v9909_v54 = vor.u32 %v10370_v62, %v9906_v10  ;;  %3992 = vmatpush.bf16.msra.mxu3 %v9873_v19 }
 0x467   : > { %9678 = vmatmul.msk.bf16.gmra.mxu3 %vm2549_vm2, %v3132_v20  ;;  %v2879_v16 = vadd.f32 %v12218_v45, %v2878_v37  ;;  %4080 = vmatpush.bf16.msra.mxu0 %v9905_v57 }
 0x468   : > { %v3032_v5 = vpop.f32.mrf.mxu2  ;;  %4169 = vmatpush.bf16.msra.mxu1 %v9909_v54  ;;  %v10355_v54 = vld [vmem:[%s16981_s13 + $0x124] sm:$0xf] }
 0x469   : > { %v3033_v53 = vadd.f32 %v12350_v42, %v3032_v5  ;;  %v2916_v39 = vmax.f32 %v2879_v16, 0.0  ;;  %v12499_v16 = vld [vmem:[%s16980_s12] ss:$0 sm:$0xff] }
 0x46b   : > { %v3097_v63 = vmax.f32 %v3033_v53, 0.0 }
 0x46e   : > { %v2880_v52 = vpop.f32.mrf.mxu1 }
 0x46f   : > { %v2881_v18 = vadd.f32 %v12218_v45, %v2880_v52 }
 0x470   : > { %v3034_v49 = vpop.f32.mrf.mxu2 }
 0x471   : > { %v2917_v51 = vmax.f32 %v2881_v18, 0.0  ;;  %v3035_v14 = vadd.f32 %v12350_v42, %v3034_v49 }
 0x473   : > { %v2937_v60 = vpack.c.bf16 %v2917_v51, %v2916_v39  ;;  %v3098_v25 = vmax.f32 %v3035_v14, 0.0 }
 0x475   : > { %v3133_v22 = vpack.c.bf16 %v3098_v25, %v3097_v63  ;;  %9656 = vmatmul.msk.bf16.gmra.mxu2 %vm2746_vm3, %v2937_v60 }
 0x476   : > { %v2883_v13 = vpop.f32.mrf.mxu1 }
 0x477   : > { %9679 = vmatmul.msk.bf16.gmra.mxu3 %vm2549_vm2, %v3133_v22  ;;  %v2884_v23 = vadd.f32 %v12218_v45, %v2883_v13 }
 0x478   : > { %v3037_v31 = vpop.f32.mrf.mxu2 }
 0x479   : > { %v3038_v21 = vadd.f32 %v12350_v42, %v3037_v31  ;;  %v2918_v50 = vmax.f32 %v2884_v23, 0.0  ;;  %v9885_v23 = vor.u32 %v10367_v44, %v9884_v56 }
 0x47b   : > { %v3099_v2 = vmax.f32 %v3038_v21, 0.0  ;;  %v9878_v21 = vld [vmem:[%s16981_s13 + $0x17c] sm:$0xf0]  ;;  %4259 = vmatpush.bf16.msra.mxu2 %v9885_v23 }
 0x47e   : > { %v2885_v3 = vpop.f32.mrf.mxu1 }
 0x47f   : > { %v2886_v17 = vadd.f32 %v12218_v45, %v2885_v3  ;;  %v9877_v3 = vor.u32 %v10366_v34, %v9876_v15 }
 0x480   : > { %v3039_v9 = vpop.f32.mrf.mxu2 }
 0x481   : > { %v2919_v38 = vmax.f32 %v2886_v17, 0.0  ;;  %v3040_v40 = vadd.f32 %v12350_v42, %v3039_v9  ;;  %v9881_v9 = vor.u32 %v10363_v47, %v9878_v21  ;;  %4081 = vmatpush.bf16.msra.mxu0 %v9877_v3  ;;  %v10348_v21 = vld [vmem:[%s16981_s13 + $0xec] sm:$0xf] }
 0x483   : > { %v2938_v6 = vpack.c.bf16 %v2919_v38, %v2918_v50  ;;  %v3100_v46 = vmax.f32 %v3040_v40, 0.0  ;;  %4170 = vmatpush.bf16.msra.mxu1 %v9881_v9 }
 0x485   : > { %v3134_v1 = vpack.c.bf16 %v3100_v46, %v3099_v2  ;;  %9657 = vmatmul.msk.bf16.gmra.mxu2 %vm2746_vm3, %v2938_v6 }
 0x487   : > { %9680 = vmatmul.msk.bf16.gmra.mxu3 %vm2549_vm2, %v3134_v1 }
 0x488   : > { %v3042_v0 = vpop.f32.mrf.mxu2 }
 0x489   : > { %v3043_v55 = vadd.f32 %v12350_v42, %v3042_v0 }
 0x48b   : > { %v3101_v59 = vmax.f32 %v3043_v55, 0.0 }
 0x490   : > { %v3044_v24 = vpop.f32.mrf.mxu2 }
 0x491   : > { %v3045_v45 = vadd.f32 %v12350_v42, %v3044_v24 }
 0x493   : > { %v3102_v8 = vmax.f32 %v3045_v45, 0.0 }
 0x495   : > { %v3135_v7 = vpack.c.bf16 %v3102_v8, %v3101_v59 }
 0x497   : > { %9681 = vmatmul.msk.bf16.gmra.mxu3 %vm2549_vm2, %v3135_v7 }
 0x498   : > { %v3047_v35 = vpop.f32.mrf.mxu2 }
 0x499   : > { %v3048_v11 = vadd.f32 %v12350_v42, %v3047_v35 }
 0x49b   : > { %v3103_v12 = vmax.f32 %v3048_v11, 0.0 }
 0x4a0   : > { %v3049_v27 = vpop.f32.mrf.mxu2 }
 0x4a1   : > { %v3050_v43 = vadd.f32 %v12350_v42, %v3049_v27  ;;  %v9842_v27 = vld [vmem:[%s16981_s13 + $0x13c] sm:$0xf0] }
 0x4a3   : > { %v3104_v20 = vmax.f32 %v3050_v43, 0.0  ;;  %v9845_v43 = vor.u32 %v10355_v54, %v9842_v27  ;;  %v9730_v27 = vld [vmem:[%s16981_s13 + $0x5c] sm:$0xf0] }
 0x4a5   : > { %v3136_v4 = vpack.c.bf16 %v3104_v20, %v3103_v12  ;;  %v9856_v12 = vld [vmem:[%s16981_s13 + $0x130] sm:$0xf]  ;;  %v10360_v20 = vld [vmem:[%s16981_s13 + $0x148] sm:$0xf0]  ;;  %3993 = vmatpush.bf16.msra.mxu3 %v9845_v43 }
 0x4a7   : > { %9682 = vmatmul.msk.bf16.gmra.mxu3 %vm2549_vm2, %v3136_v4  ;;  %v9857_v4 = vor.u32 %v10360_v20, %v9856_v12 }
 0x4a8   : > { %v3052_v37 = vpop.f32.mrf.mxu2 }
 0x4a9   : > { %v3053_v52 = vadd.f32 %v12350_v42, %v3052_v37  ;;  %v9848_v37 = vld [vmem:[%s16981_s13 + $0x128] sm:$0xf]  ;;  %4260 = vmatpush.bf16.msra.mxu2 %v9857_v4 }
 0x4aa   : > { %v3228_v5 = vpop.f32.mrf.mxu3 }
 0x4ab   : > { %v3229_v18 = vadd.f32 %v12499_v16, %v3228_v5  ;;  %v3105_v51 = vmax.f32 %v3053_v52, 0.0  ;;  %v10359_v5 = vld [vmem:[%s16981_s13 + $0x140] sm:$0xf0] }
 0x4ac   : > { %v9849_v52 = vor.u32 %v10359_v5, %v9848_v37  ;;  %v10320_v5 = vld [vmem:[%s16981_s13 + $0xc] sm:$0xf] }
 0x4ad   : > { %v3308_v60 = vmax.f32 %v3229_v18, 0.0  ;;  %v9850_v18 = vld [vmem:[%s16981_s13 + $0x144] sm:$0xf0] }
 0x4ae   : > { %4082 = vmatpush.bf16.msra.mxu0 %v9849_v52  ;;  %v9702_v52 = vld [vmem:[%s16981_s13 + $0x24] sm:$0xf0] }
 0x4b0   : > { %v3054_v53 = vpop.f32.mrf.mxu2 }
 0x4b1   : > { %v3055_v49 = vadd.f32 %v12350_v42, %v3054_v53  ;;  %v10356_v53 = vld [vmem:[%s16981_s13 + $0x12c] sm:$0xf] }
 0x4b2   : > { %v3230_v39 = vpop.f32.mrf.mxu3 }
 0x4b3   : > { %v3106_v14 = vmax.f32 %v3055_v49, 0.0  ;;  %v3231_v63 = vadd.f32 %v12499_v16, %v3230_v39  ;;  %v9853_v39 = vor.u32 %v10356_v53, %v9850_v18 }
 0x4b5   : > { %v3137_v25 = vpack.c.bf16 %v3106_v14, %v3105_v51  ;;  %v3309_v22 = vmax.f32 %v3231_v63, 0.0  ;;  %4171 = vmatpush.bf16.msra.mxu1 %v9853_v39  ;;  %v9705_v39 = vor.u32 %v10320_v5, %v9702_v52 }
 0x4b7   : > { %v12505_v13 = vpack.c.bf16 %v3309_v22, %v3308_v60  ;;  %9683 = vmatmul.msk.bf16.gmra.mxu3 %vm2549_vm2, %v3137_v25 }
 0x4b8   : > { %v3057_v31 = vpop.f32.mrf.mxu2 }
 0x4b9   : > { %3732 = vmatmul.bf16.vlgmr.msrb.gmra.mxu0 %v12505_v13  ;;  %3821 = vmatmul.bf16.vlgmr.msrb.gmra.mxu1 %v12505_v13  ;;  %v3058_v17 = vadd.f32 %v12350_v42, %v3057_v31 }
 0x4ba   : > { %3910 = vmatmul.bf16.vlgmr.msrb.gmra.mxu2 %v12505_v13  ;;  %v3233_v36 = vpop.f32.mrf.mxu3 }
 0x4bb   : > { %v3234_v38 = vadd.f32 %v12499_v16, %v3233_v36  ;;  %v3107_v6 = vmax.f32 %v3058_v17, 0.0  ;;  %v9814_v17 = vld [vmem:[%s16981_s13 + $0x104] sm:$0xf0] }
 0x4bd   : > { %v3310_v0 = vmax.f32 %v3234_v38, 0.0 }
 0x4c0   : > { %v3059_v50 = vpop.f32.mrf.mxu2 }
 0x4c1   : > { %v3060_v40 = vadd.f32 %v12350_v42, %v3059_v50 }
 0x4c2   : > { %v3235_v2 = vpop.f32.mrf.mxu3 }
 0x4c3   : > { %v3108_v46 = vmax.f32 %v3060_v40, 0.0  ;;  %v3236_v1 = vadd.f32 %v12499_v16, %v3235_v2  ;;  %v9817_v40 = vor.u32 %v10348_v21, %v9814_v17 }
 0x4c5   : > { %v3138_v55 = vpack.c.bf16 %v3108_v46, %v3107_v6  ;;  %v3311_v24 = vmax.f32 %v3236_v1, 0.0  ;;  %3994 = vmatpush.bf16.msra.mxu3 %v9817_v40  ;;  %v10341_v1 = vld [vmem:[%s16981_s13 + $0xb4] sm:$0xf] }
 0x4c7   : > { %v12539_v45 = vpack.c.bf16 %v3311_v24, %v3310_v0  ;;  %9684 = vmatmul.msk.bf16.gmra.mxu3 %vm2549_vm2, %v3138_v55  ;;  %v9786_v0 = vld [vmem:[%s16981_s13 + $0xcc] sm:$0xf0] }
 0x4c8   : > { %v3062_v59 = vpop.f32.mrf.mxu2  ;;  %v9789_v24 = vor.u32 %v10341_v1, %v9786_v0 }
 0x4c9   : > { %3737 = vmatmul.bf16.gmra.mxu0 %v12539_v45  ;;  %3826 = vmatmul.bf16.gmra.mxu1 %v12539_v45  ;;  %v3063_v7 = vadd.f32 %v12350_v42, %v3062_v59 }
 0x4ca   : > { %3915 = vmatmul.bf16.gmra.mxu2 %v12539_v45  ;;  %v3238_v8 = vpop.f32.mrf.mxu3  ;;  %3995 = vmatpush.bf16.msra.mxu3 %v9789_v24 }
 0x4cb   : > { %v3239_v41 = vadd.f32 %v12499_v16, %v3238_v8  ;;  %v3109_v33 = vmax.f32 %v3063_v7, 0.0  ;;  %v9828_v7 = vld [vmem:[%s16981_s13 + $0xf8] sm:$0xf] }
 0x4cd   : > { %v3312_v30 = vmax.f32 %v3239_v41, 0.0  ;;  %v10334_v41 = vld [vmem:[%s16981_s13 + $0x7c] sm:$0xf] }
 0x4d0   : > { %v3064_v35 = vpop.f32.mrf.mxu2 }
 0x4d1   : > { %v3065_v61 = vadd.f32 %v12350_v42, %v3064_v35  ;;  %v10353_v35 = vld [vmem:[%s16981_s13 + $0x110] sm:$0xf0] }
 0x4d2   : > { %v3240_v58 = vpop.f32.mrf.mxu3 }
 0x4d3   : > { %v3110_v26 = vmax.f32 %v3065_v61, 0.0  ;;  %v3241_v32 = vadd.f32 %v12499_v16, %v3240_v58  ;;  %v9829_v61 = vor.u32 %v10353_v35, %v9828_v7  ;;  %v9758_v58 = vld [vmem:[%s16981_s13 + $0x94] sm:$0xf0] }
 0x4d5   : > { %v3139_v28 = vpack.c.bf16 %v3110_v26, %v3109_v33  ;;  %v3313_v62 = vmax.f32 %v3241_v32, 0.0  ;;  %v9761_v33 = vor.u32 %v10334_v41, %v9758_v58  ;;  %4261 = vmatpush.bf16.msra.mxu2 %v9829_v61  ;;  %v9820_v26 = vld [vmem:[%s16981_s13 + $0xf0] sm:$0xf]  ;;  %v10352_v32 = vld [vmem:[%s16981_s13 + $0x108] sm:$0xf0] }
 0x4d6   : > { %v9800_v58 = vld [vmem:[%s16981_s13 + $0xc0] sm:$0xf] }
 0x4d7   : > { %v12549_v57 = vpack.c.bf16 %v3313_v62, %v3312_v30  ;;  %9685 = vmatmul.msk.bf16.gmra.mxu3 %vm2549_vm2, %v3139_v28  ;;  %v9821_v30 = vor.u32 %v10352_v32, %v9820_v26  ;;  %v10349_v28 = vld [vmem:[%s16981_s13 + $0xf4] sm:$0xf]  ;;  %v9822_v62 = vld [vmem:[%s16981_s13 + $0x10c] sm:$0xf0] }
 0x4d8   : > { %v3067_v10 = vpop.f32.mrf.mxu2  ;;  %3996 = vmatpush.bf16.msra.mxu3 %v9761_v33  ;;  %v9825_v54 = vor.u32 %v10349_v28, %v9822_v62  ;;  %v10346_v33 = vld [vmem:[%s16981_s13 + $0xd8] sm:$0xf0] }
 0x4d9   : > { %3742 = vmatmul.bf16.gmra.mxu0 %v12549_v57  ;;  %3831 = vmatmul.bf16.gmra.mxu1 %v12549_v57  ;;  %v3068_v49 = vadd.f32 %v12350_v42, %v3067_v10  ;;  %v10327_v10 = vld [vmem:[%s16981_s13 + $0x44] sm:$0xf]  ;;  %v9801_v28 = vor.u32 %v10346_v33, %v9800_v58 }
 0x4da   : > { %3920 = vmatmul.bf16.gmra.mxu2 %v12549_v57  ;;  %v3243_v11 = vpop.f32.mrf.mxu3  ;;  %4083 = vmatpush.bf16.msra.mxu0 %v9821_v30  ;;  %v9733_v12 = vor.u32 %v10327_v10, %v9730_v27 }
 0x4db   : > { %v3244_v14 = vadd.f32 %v12499_v16, %v3243_v11  ;;  %v3111_v25 = vmax.f32 %v3068_v49, 0.0  ;;  %4172 = vmatpush.bf16.msra.mxu1 %v9825_v54  ;;  %4262 = vmatpush.bf16.msra.mxu2 %v9801_v28 }
 0x4dc   : > { %3997 = vmatpush.bf16.msra.mxu3 %v9733_v12 }
 0x4dd   : > { %v3314_v36 = vmax.f32 %v3244_v14, 0.0 }
 0x4e0   : > { %v3069_v51 = vpop.f32.mrf.mxu2  ;;  %3998 = vmatpush.bf16.msra.mxu3 %v9705_v39 }
 0x4e1   : > { %v3070_v63 = vadd.f32 %v12350_v42, %v3069_v51 }
 0x4e2   : > { %v3245_v60 = vpop.f32.mrf.mxu3 }
 0x4e3   : > { %v3112_v22 = vmax.f32 %v3070_v63, 0.0  ;;  %v3246_v31 = vadd.f32 %v12499_v16, %v3245_v60 }
 0x4e5   : > { %v3140_v29 = vpack.c.bf16 %v3112_v22, %v3111_v25  ;;  %v3315_v48 = vmax.f32 %v3246_v31, 0.0 }
 0x4e7   : > { %v12583_v19 = vpack.c.bf16 %v3315_v48, %v3314_v36  ;;  %9686 = vmatmul.msk.bf16.gmra.mxu3 %vm2549_vm2, %v3140_v29 }
 0x4e8   : > { %v3072_v56 = vpop.f32.mrf.mxu2 }
 0x4e9   : > { %3747 = vmatmul.bf16.gmra.mxu0 %v12583_v19  ;;  %3836 = vmatmul.bf16.gmra.mxu1 %v12583_v19  ;;  %v3073_v23 = vadd.f32 %v12350_v42, %v3072_v56 }
 0x4ea   : > { %3925 = vmatmul.bf16.gmra.mxu2 %v12583_v19  ;;  %v3248_v44 = vpop.f32.mrf.mxu3 }
 0x4eb   : > { %v3249_v34 = vadd.f32 %v12499_v16, %v3248_v44  ;;  %v3113_v9 = vmax.f32 %v3073_v23, 0.0 }
 0x4ed   : > { %v3316_v2 = vmax.f32 %v3249_v34, 0.0 }
 0x4f0   : > { %v3074_v15 = vpop.f32.mrf.mxu2 }
 0x4f1   : > { %v3075_v3 = vadd.f32 %v12350_v42, %v3074_v15 }
 0x4f2   : > { %v3250_v47 = vpop.f32.mrf.mxu3 }
 0x4f3   : > { %v3114_v50 = vmax.f32 %v3075_v3, 0.0  ;;  %v3251_v38 = vadd.f32 %v12499_v16, %v3250_v47 }
 0x4f5   : > { %v3141_v6 = vpack.c.bf16 %v3114_v50, %v3113_v9  ;;  %v3317_v46 = vmax.f32 %v3251_v38, 0.0 }
 0x4f7   : > { %v12605_v55 = vpack.c.bf16 %v3317_v46, %v3316_v2  ;;  %9687 = vmatmul.msk.bf16.gmra.mxu3 %vm2549_vm2, %v3141_v6  ;;  %v3404_v46 = vld [vmem:[%s16982_s14] sm:$0x7f] }
 0x4f8   : > { %v3077_v59 = vpop.f32.mrf.mxu2  ;;  %v12698_v54 = vperm.slane %v3404_v46, 2 }
 0x4f9   : > { %3752 = vmatmul.bf16.gmra.mxu0 %v12605_v55  ;;  %3841 = vmatmul.bf16.gmra.mxu1 %v12605_v55  ;;  %v3078_v11 = vadd.f32 %v12350_v42, %v3077_v59  ;;  %v12680_v59 = vperm.slane %v3404_v46, 0 }
 0x4fa   : > { %3930 = vmatmul.bf16.gmra.mxu2 %v12605_v55  ;;  %v3253_v8 = vpop.f32.mrf.mxu3 }
 0x4fb   : > { %v3254_v20 = vadd.f32 %v12499_v16, %v3253_v8  ;;  %v3115_v53 = vmax.f32 %v3078_v11, 0.0  ;;  %v12682_v8 = vperm.slane %v3404_v46, 1 }
 0x4fd   : > { %v3318_v51 = vmax.f32 %v3254_v20, 0.0 }
 0x500   : > { %v3079_v43 = vpop.f32.mrf.mxu2 }
 0x501   : > { %v3080_v4 = vadd.f32 %v12350_v42, %v3079_v43 }
 0x502   : > { %v3255_v37 = vpop.f32.mrf.mxu3 }
 0x503   : > { %v3116_v18 = vmax.f32 %v3080_v4, 0.0  ;;  %v3256_v49 = vadd.f32 %v12499_v16, %v3255_v37 }
 0x505   : > { %v3142_v14 = vpack.c.bf16 %v3116_v18, %v3115_v53  ;;  %v3319_v63 = vmax.f32 %v3256_v49, 0.0 }
 0x507   : > { %v12651_v60 = vpack.c.bf16 %v3319_v63, %v3318_v51  ;;  %9688 = vmatmul.msk.bf16.gmra.mxu3 %vm2549_vm2, %v3142_v14  ;;  %v9792_v14 = vld [vmem:[%s16981_s13 + $0xb8] sm:$0xf]  ;;  %v10345_v63 = vld [vmem:[%s16981_s13 + $0xd0] sm:$0xf0] }
 0x508   : > { %v3082_v25 = vpop.f32.mrf.mxu2 }
 0x509   : > { %3757 = vmatmul.bf16.gmra.mxu0 %v12651_v60  ;;  %3846 = vmatmul.bf16.gmra.mxu1 %v12651_v60  ;;  %v3083_v31 = vadd.f32 %v12350_v42, %v3082_v25 }
 0x50a   : > { %3935 = vmatmul.bf16.gmra.mxu2 %v12651_v60  ;;  %v3258_v22 = vpop.f32.mrf.mxu3 }
 0x50b   : > { %v3259_v29 = vadd.f32 %v12499_v16, %v3258_v22  ;;  %v3117_v44 = vmax.f32 %v3083_v31, 0.0  ;;  %v9793_v31 = vor.u32 %v10345_v63, %v9792_v14 }
 0x50d   : > { %v3320_v34 = vmax.f32 %v3259_v29, 0.0  ;;  %v9794_v29 = vld [vmem:[%s16981_s13 + $0xd4] sm:$0xf0]  ;;  %4084 = vmatpush.bf16.msra.mxu0 %v9793_v31 }
 0x510   : > { %v3084_v36 = vpop.f32.mrf.mxu2 }
 0x511   : > { %v3085_v48 = vadd.f32 %v12350_v42, %v3084_v36  ;;  %v10342_v36 = vld [vmem:[%s16981_s13 + $0xbc] sm:$0xf] }
 0x512   : > { %v3260_v56 = vpop.f32.mrf.mxu3 }
 0x513   : > { %v3118_v23 = vmax.f32 %v3085_v48, 0.0  ;;  %v3261_v15 = vadd.f32 %v12499_v16, %v3260_v56 }
 0x515   : > { %v3143_v3 = vpack.c.bf16 %v3118_v23, %v3117_v44  ;;  %v3321_v47 = vmax.f32 %v3261_v15, 0.0  ;;  %v9797_v44 = vor.u32 %v10342_v36, %v9794_v29 }
 0x517   : > { %v12661_v21 = vpack.c.bf16 %v3321_v47, %v3320_v34  ;;  %9689 = vmatmul.msk.bf16.gmra.mxu3 %vm2549_vm2, %v3143_v3  ;;  %4173 = vmatpush.bf16.msra.mxu1 %v9797_v44 }
 0x519   : > { %3762 = vmatmul.bf16.gmra.mxu0 %v12661_v21  ;;  %3851 = vmatmul.bf16.gmra.mxu1 %v12661_v21 }
 0x51a   : > { %3940 = vmatmul.bf16.gmra.mxu2 %v12661_v21  ;;  %v3263_v17 = vpop.f32.mrf.mxu3 }
 0x51b   : > { %v3264_v42 = vadd.f32 %v12499_v16, %v3263_v17 }
 0x51d   : > { %v3322_v38 = vmax.f32 %v3264_v42, 0.0 }
 0x522   : > { %v3265_v9 = vpop.f32.mrf.mxu3 }
 0x523   : > { %v3266_v50 = vadd.f32 %v12499_v16, %v3265_v9 }
 0x525   : > { %v3323_v40 = vmax.f32 %v3266_v50, 0.0 }
 0x527   : > { %v12669_v2 = vpack.c.bf16 %v3323_v40, %v3322_v38  ;;  %3999 = vmatmul.bf16.vlgmr.msra.gmra.mxu3 %v12505_v13 }
 0x529   : > { %3767 = vmatmul.bf16.gmra.mxu0 %v12669_v2  ;;  %3856 = vmatmul.bf16.gmra.mxu1 %v12669_v2 }
 0x52a   : > { %3945 = vmatmul.bf16.gmra.mxu2 %v12669_v2  ;;  %v3268_v6 = vpop.f32.mrf.mxu3 }
 0x52b   : > { %v3269_v1 = vadd.f32 %v12499_v16, %v3268_v6 }
 0x52d   : > { %v3324_v7 = vmax.f32 %v3269_v1, 0.0 }
 0x532   : > { %v3270_v0 = vpop.f32.mrf.mxu3 }
 0x533   : > { %v3271_v24 = vadd.f32 %v12499_v16, %v3270_v0 }
 0x535   : > { %v3325_v35 = vmax.f32 %v3271_v24, 0.0 }
 0x536   : > { %v3733_v41 = vpop.f32.mrf.mxu0  ;;  %v3822_v61 = vpop.f32.mrf.mxu1 }
 0x537   : > { %v12690_v26 = vpack.c.bf16 %v3325_v35, %v3324_v7  ;;  %v3734_v32 = vadd.f32 %v3733_v41, %v12680_v59  ;;  %v3823_v30 = vadd.f32 %v3822_v61, %v12682_v8  ;;  %4004 = vmatmul.bf16.gmra.mxu3 %v12539_v45 }
 0x539   : > { %v9914_v62 = vmul.f32 -1.442695, %v3734_v32  ;;  %v9915_v10 = vmul.f32 -1.442695, %v3823_v30  ;;  %3772 = vmatmul.bf16.gmra.mxu0 %v12690_v26  ;;  %3861 = vmatmul.bf16.gmra.mxu1 %v12690_v26 }
 0x53a   : > { %3950 = vmatmul.bf16.gmra.mxu2 %v12690_v26  ;;  %v3273_v11 = vpop.f32.mrf.mxu3 }
 0x53b   : > { %10415 = vpow2.f32 %v9914_v62  ;;  %v3274_v51 = vadd.f32 %v12499_v16, %v3273_v11 }
 0x53c   : > { %10417 = vpow2.f32 %v9915_v10 }
 0x53d   : > { %v3911_v27 = vpop.f32.mrf.mxu2  ;;  %v3326_v15 = vmax.f32 %v3274_v51, 0.0 }
 0x53e   : > { %v3912_v43 = vadd.f32 %v3911_v27, %v12698_v54  ;;  %v3735_v12 = vpop.f32.mrf.mxu0  ;;  %v3824_v20 = vpop.f32.mrf.mxu1 }
 0x53f   : > { %v3736_v4 = vadd.f32 %v3735_v12, %v12680_v59  ;;  %v3825_v37 = vadd.f32 %v3824_v20, %v12682_v8 }
 0x540   : > { %v9916_v5 = vmul.f32 -1.442695, %v3912_v43 }
 0x541   : > { %v10416_v52 = vpop.eup %10415  ;;  %v9921_v53 = vmul.f32 -1.442695, %v3736_v4  ;;  %v9922_v18 = vmul.f32 -1.442695, %v3825_v37 }
 0x542   : > { %v10418_v49 = vpop.eup %10417  ;;  %v12703_v39 = vadd.f32 1.0, %v10416_v52  ;;  %10419 = vpow2.f32 %v9916_v5  ;;  %v3275_v25 = vpop.f32.mrf.mxu3 }
 0x543   : > { %v12712_v22 = vadd.f32 1.0, %v10418_v49  ;;  %10421 = vpow2.f32 %v9921_v53  ;;  %v3276_v48 = vadd.f32 %v12499_v16, %v3275_v25 }
 0x544   : > { %10423 = vrcp.f32 %v12703_v39  ;;  %v5252_v50 = vand.u32 2147483647, %v12703_v39  ;;  %v5254_v38 = vand.u32 2147483648, %v12703_v39  ;;  %vm5248_vm4 = vweird.f32 %v12703_v39 }
 0x545   : > { %10425 = vrcp.f32 %v12712_v22  ;;  %v3913_v56 = vpop.f32.mrf.mxu2  ;;  %v3327_v34 = vmax.f32 %v3276_v48, 0.0  ;;  %v5267_v1 = vand.u32 2147483647, %v12712_v22  ;;  %vm5263_vm5 = vweird.f32 %v12712_v22 }
 0x546   : > { %10427 = vpow2.f32 %v9922_v18  ;;  %v3738_v23 = vpop.f32.mrf.mxu0  ;;  %v3914_v3 = vadd.f32 %v3913_v56, %v12698_v54  ;;  %v3827_v47 = vpop.f32.mrf.mxu1  ;;  %v5269_v33 = vand.u32 2147483648, %v12712_v22  ;;  %vm12745_vm6 = vcmp.eq.f32.partialorder %v5252_v50, 8.507059e+37 }
 0x547   : > { %4009 = vmatmul.bf16.gmra.mxu3 %v12549_v57  ;;  %v3739_v42 = vadd.f32 %v3738_v23, %v12680_v59  ;;  %v12730_v6 = vpack.c.bf16 %v3327_v34, %v3326_v15  ;;  %v3828_v24 = vadd.f32 %v3827_v47, %v12682_v8  ;;  %v5255_v62 = vor.u32 1.1754944e-38, %v5254_v38 }
 0x548   : > { %v10420_v17 = vpop.eup %10419  ;;  %v9923_v41 = vmul.f32 -1.442695, %v3914_v3  ;;  %vm12751_vm8 = vcmp.eq.f32.partialorder %v5267_v1, 8.507059e+37  ;;  %v5270_v37 = vor.u32 1.1754944e-38, %v5269_v33 }
 0x549   : > { %v10422_v9 = vpop.eup %10421  ;;  %v12728_v40 = vadd.f32 1.0, %v10420_v17  ;;  %3777 = vmatmul.bf16.gmra.mxu0 %v12730_v6  ;;  %3866 = vmatmul.bf16.gmra.mxu1 %v12730_v6  ;;  %v9928_v32 = vmul.f32 -1.442695, %v3739_v42  ;;  %v9929_v27 = vmul.f32 -1.442695, %v3828_v24 }
 0x54a   : > { %v10424_v46 = vpop.eup %10423  ;;  %v12733_v0 = vadd.f32 1.0, %v10422_v9  ;;  %3955 = vmatmul.bf16.gmra.mxu2 %v12730_v6  ;;  %v3278_v49 = vpop.f32.mrf.mxu3 }
 0x54b   : > { %v10426_v7 = vpop.eup %10425  ;;  %v5244_v35 = vmul.f32 %v10424_v46, %v12703_v39  ;;  %10429 = vrcp.f32 %v12728_v40  ;;  %vm5249_vm7 = vweird.f32 %v10424_v46  ;;  %v5282_v12 = vand.u32 2147483647, %v12728_v40 }
 0x54c   : > { %v10428_v61 = vpop.eup %10427  ;;  %v5259_v58 = vmul.f32 %v10426_v7, %v12712_v22  ;;  %10431 = vrcp.f32 %v12733_v0  ;;  %vm5264_vm9 = vweird.f32 %v10426_v7  ;;  %v5284_v53 = vand.u32 2147483648, %v12728_v40  ;;  %vm5250_vm10 = vmor %vm5248_vm4, %vm5249_vm7 }
 0x54d   : > { %v5245_v30 = vsub.f32 1.0, %v5244_v35  ;;  %v12756_v20 = vadd.f32 1.0, %v10428_v61  ;;  %10433 = vpow2.f32 %v9923_v41  ;;  %v5357_v18 = vand.u32 2147483647, %v12733_v0  ;;  %v3916_v63 = vpop.f32.mrf.mxu2  ;;  %vm5265_vm13 = vmor %vm5263_vm5, %vm5264_vm9 }
 0x54e   : > { %v5260_v10 = vsub.f32 1.0, %v5259_v58  ;;  %10435 = vpow2.f32 %v9928_v32  ;;  %vm5278_vm11 = vweird.f32 %v12728_v40  ;;  %vm5353_vm12 = vweird.f32 %v12733_v0  ;;  %v3740_v50 = vpop.f32.mrf.mxu0  ;;  %v3829_v38 = vpop.f32.mrf.mxu1 }
 0x54f   : > { %v5246_v43 = vmul.f32 %v10424_v46, %v5245_v30  ;;  %10437 = vrcp.f32 %v12756_v20  ;;  %vm12775_vm14 = vcmp.eq.f32.partialorder %v5282_v12, 8.507059e+37  ;;  %v5359_v39 = vand.u32 2147483648, %v12733_v0 }
 0x550   : > { %v5261_v4 = vmul.f32 %v10426_v7, %v5260_v10  ;;  %10439 = vpow2.f32 %v9929_v27  ;;  %v5285_v15 = vor.u32 1.1754944e-38, %v5284_v53  ;;  %vm12786_vm15 = vcmp.eq.f32.partialorder %v5357_v18, 8.507059e+37 }
 0x551   : > { %v10430_v5 = vpop.eup %10429  ;;  %v5247_v52 = vadd.f32 %v10424_v46, %v5246_v43  ;;  %v3917_v3 = vadd.f32 %v3916_v63, %v12698_v54  ;;  %v5360_v1 = vor.u32 1.1754944e-38, %v5359_v39  ;;  %v5372_v24 = vand.u32 2147483647, %v12756_v20 }
 0x552   : > { %v5262_v51 = vadd.f32 %v10426_v7, %v5261_v4  ;;  %v5274_v14 = vmul.f32 %v10430_v5, %v12728_v40  ;;  %v10432_v25 = vpop.eup %10431  ;;  %vm5279_vm1 = vweird.f32 %v10430_v5  ;;  %v12798_v35 = vadd.f32 %v12499_v16, %v3278_v49  ;;  %v3280_v43 = vpop.f32.mrf.mxu3  ;;  %v9772_v49 = vld [vmem:[%s16981_s13 + $0x88] sm:$0xf] }
 0x553   : > { %v5251_v31 = vsel %vm5250_vm10, %v10424_v46, %v5247_v52  ;;  %v5349_v44 = vmul.f32 %v10432_v25, %v12733_v0  ;;  %v10434_v23 = vpop.eup %10433  ;;  %vm5354_vm2 = vweird.f32 %v10432_v25  ;;  %vm5280_vm3 = vmor %vm5278_vm11, %vm5279_vm1  ;;  %v9930_v32 = vmul.f32 -1.442695, %v3917_v3 }
 0x554   : > { %v5256_v29 = vsel %vm12745_vm6, %v5255_v62, %v5251_v31  ;;  %v5266_v48 = vsel %vm5265_vm13, %v10426_v7, %v5262_v51  ;;  %v5275_v56 = vsub.f32 1.0, %v5274_v14  ;;  %v10436_v47 = vpop.eup %10435  ;;  %v12792_v9 = vadd.f32 1.0, %v10434_v23  ;;  %vm5355_vm4 = vmor %vm5353_vm12, %vm5354_vm2 }
 0x555   : > { %8603 = vst [vmem:[%s12764_s20] sm:$0xff] %v5256_v29  ;;  %v5271_v22 = vsel %vm12751_vm8, %v5270_v37, %v5266_v48  ;;  %v5350_v42 = vsub.f32 1.0, %v5349_v44  ;;  %v10438_v46 = vpop.eup %10437  ;;  %v12795_v7 = vadd.f32 1.0, %v10436_v47  ;;  %v3741_v30 = vadd.f32 %v3740_v50, %v12680_v59  ;;  %v3918_v36 = vpop.f32.mrf.mxu2 }
 0x556   : > { %8604 = vst [vmem:[%s12764_s20 + $0x8] sm:$0xff] %v5271_v22  ;;  %v5276_v17 = vmul.f32 %v10430_v5, %v5275_v56  ;;  %v5364_v58 = vmul.f32 %v10438_v46, %v12756_v20  ;;  %v10440_v33 = vpop.eup %10439  ;;  %10441 = vrcp.f32 %v12792_v9  ;;  %v3830_v28 = vadd.f32 %v3829_v38, %v12682_v8  ;;  %v3832_v23 = vpop.f32.mrf.mxu1 }
 0x557   : > { %4014 = vmatmul.bf16.gmra.mxu3 %v12583_v19  ;;  %v5351_v61 = vmul.f32 %v10432_v25, %v5350_v42  ;;  %10443 = vrcp.f32 %v12795_v7  ;;  %vm5368_vm5 = vweird.f32 %v12756_v20  ;;  %vm5369_vm6 = vweird.f32 %v10438_v46 }
 0x558   : > { %v5277_v41 = vadd.f32 %v10430_v5, %v5276_v17  ;;  %v5365_v11 = vsub.f32 1.0, %v5364_v58  ;;  %v5374_v40 = vand.u32 2147483648, %v12756_v20  ;;  %v5387_v37 = vand.u32 2147483647, %v12792_v9  ;;  %vm5370_vm8 = vmor %vm5368_vm5, %vm5369_vm6  ;;  %v3743_v20 = vpop.f32.mrf.mxu0 }
 0x559   : > { %v5352_v10 = vadd.f32 %v10432_v25, %v5351_v61  ;;  %v12820_v53 = vadd.f32 1.0, %v10440_v33  ;;  %10445 = vpow2.f32 %v9930_v32  ;;  %v9935_v0 = vmul.f32 -1.442695, %v3741_v30 }
 0x55a   : > { %v5281_v62 = vsel %vm5280_vm3, %v10430_v5, %v5277_v41  ;;  %v5366_v4 = vmul.f32 %v10438_v46, %v5365_v11  ;;  %v5389_v5 = vand.u32 2147483648, %v12792_v9  ;;  %vm12823_vm7 = vcmp.eq.f32.partialorder %v5372_v24, 8.507059e+37 }
 0x55b   : > { %v5286_v27 = vsel %vm12775_vm14, %v5285_v15, %v5281_v62  ;;  %v5356_v12 = vsel %vm5355_vm4, %v10432_v25, %v5352_v10  ;;  %v9936_v51 = vmul.f32 -1.442695, %v3830_v28  ;;  %v3281_v14 = vadd.f32 %v12499_v16, %v3280_v43 }
 0x55c   : > { %8605 = vst [vmem:[%s12764_s20 + $0x10] sm:$0xff] %v5286_v27  ;;  %v5361_v52 = vsel %vm12786_vm15, %v5360_v1, %v5356_v12  ;;  %v5367_v18 = vadd.f32 %v10438_v46, %v5366_v4  ;;  %v10442_v63 = vpop.eup %10441  ;;  %v5375_v25 = vor.u32 1.1754944e-38, %v5374_v40  ;;  %vm5383_vm9 = vweird.f32 %v12792_v9 }
 0x55d   : > { %8610 = vst [vmem:[%s12764_s20 + $0x38] sm:$0xff] %v5361_v52  ;;  %10447 = vrcp.f32 %v12820_v53  ;;  %v3328_v31 = vmax.f32 %v12798_v35, 0.0  ;;  %v10444_v39 = vpop.eup %10443  ;;  %v5379_v48 = vmul.f32 %v10442_v63, %v12792_v9  ;;  %vm12835_vm10 = vcmp.eq.f32.partialorder %v5387_v37, 8.507059e+37 }
 0x55e   : > { %v5371_v29 = vsel %vm5370_vm8, %v10438_v46, %v5367_v18  ;;  %v5390_v44 = vor.u32 1.1754944e-38, %v5389_v5  ;;  %10449 = vpow2.f32 %v9935_v0  ;;  %v5454_v15 = vmul.f32 %v10444_v39, %v12795_v7  ;;  %v3283_v5 = vpop.f32.mrf.mxu3 }
 0x55f   : > { %v5376_v22 = vsel %vm12823_vm7, %v5375_v25, %v5371_v29  ;;  %vm5458_vm11 = vweird.f32 %v12795_v7  ;;  %v5462_v34 = vand.u32 2147483647, %v12795_v7  ;;  %v5380_v3 = vsub.f32 1.0, %v5379_v48  ;;  %v10446_v42 = vpop.eup %10445 }
 0x560   : > { %8611 = vst [vmem:[%s12764_s20 + $0x40] sm:$0xff] %v5376_v22  ;;  %v5464_v47 = vand.u32 2147483648, %v12795_v7  ;;  %10451 = vpow2.f32 %v9936_v51  ;;  %v3329_v17 = vmax.f32 %v3281_v14, 0.0  ;;  %v5455_v50 = vsub.f32 1.0, %v5454_v15  ;;  %v10339_v7 = vld [vmem:[%s16981_s13 + $0xa0] sm:$0xf0] }
 0x561   : > { %v3919_v38 = vadd.f32 %v3918_v36, %v12698_v54  ;;  %v3744_v46 = vadd.f32 %v3743_v20, %v12680_v59  ;;  %v3833_v1 = vadd.f32 %v3832_v23, %v12682_v8  ;;  %v5381_v24 = vmul.f32 %v10442_v63, %v5380_v3 }
 0x562   : > { %vm5384_vm12 = vweird.f32 %v10442_v63  ;;  %v12849_v35 = vadd.f32 1.0, %v10446_v42  ;;  %v12851_v41 = vpack.c.bf16 %v3329_v17, %v3328_v31  ;;  %v5456_v58 = vmul.f32 %v10444_v39, %v5455_v50 }
 0x563   : > { %v10448_v61 = vpop.eup %10447  ;;  %vm5459_vm13 = vweird.f32 %v10444_v39  ;;  %vm12853_vm14 = vcmp.eq.f32.partialorder %v5462_v34, 8.507059e+37  ;;  %v9937_v32 = vmul.f32 -1.442695, %v3919_v38  ;;  %v5382_v28 = vadd.f32 %v10442_v63, %v5381_v24  ;;  %vm5385_vm15 = vmor %vm5383_vm9, %vm5384_vm12 }
 0x564   : > { %v10450_v30 = vpop.eup %10449  ;;  %v5465_v62 = vor.u32 1.1754944e-38, %v5464_v47  ;;  %v5469_v10 = vmul.f32 %v10448_v61, %v12820_v53  ;;  %10453 = vrcp.f32 %v12849_v35  ;;  %3782 = vmatmul.bf16.gmra.mxu0 %v12851_v41  ;;  %3871 = vmatmul.bf16.gmra.mxu1 %v12851_v41  ;;  %v5457_v11 = vadd.f32 %v10444_v39, %v5456_v58  ;;  %vm5460_vm1 = vmor %vm5458_vm11, %vm5459_vm13  ;;  %v3921_v47 = vpop.f32.mrf.mxu2 }
 0x565   : > { %v5477_v27 = vand.u32 2147483647, %v12820_v53  ;;  %v9942_v40 = vmul.f32 -1.442695, %v3744_v46  ;;  %v9943_v43 = vmul.f32 -1.442695, %v3833_v1  ;;  %3960 = vmatmul.bf16.gmra.mxu2 %v12851_v41  ;;  %v5386_v4 = vsel %vm5385_vm15, %v10442_v63, %v5382_v28  ;;  %v3745_v58 = vpop.f32.mrf.mxu0 }
 0x566   : > { %v10452_v12 = vpop.eup %10451  ;;  %v5470_v37 = vsub.f32 1.0, %v5469_v10  ;;  %v12870_v9 = vadd.f32 1.0, %v10450_v30  ;;  %10455 = vpow2.f32 %v9937_v32  ;;  %v5391_v52 = vsel %vm12835_vm10, %v5390_v44, %v5386_v4 }
 0x567   : > { %4019 = vmatmul.bf16.gmra.mxu3 %v12605_v55  ;;  %v5461_v0 = vsel %vm5460_vm1, %v10444_v39, %v5457_v11  ;;  %vm5473_vm2 = vweird.f32 %v12820_v53  ;;  %v5479_v18 = vand.u32 2147483648, %v12820_v53  ;;  %8612 = vst [vmem:[%s12764_s20 + $0x48] sm:$0xff] %v5391_v52  ;;  %vm5474_vm3 = vweird.f32 %v10448_v61 }
 0x568   : > { %v5466_v51 = vsel %vm12853_vm14, %v5465_v62, %v5461_v0  ;;  %v5471_v14 = vmul.f32 %v10448_v61, %v5470_v37  ;;  %10457 = vrcp.f32 %v12870_v9  ;;  %v5492_v63 = vand.u32 2147483647, %v12849_v35  ;;  %vm5475_vm4 = vmor %vm5473_vm2, %vm5474_vm3 }
 0x569   : > { %8617 = vst [vmem:[%s12764_s20 + $0x70] sm:$0xff] %v5466_v51  ;;  %v12888_v25 = vadd.f32 1.0, %v10452_v12  ;;  %10459 = vpow2.f32 %v9942_v40  ;;  %v12891_v31 = vadd.f32 %v12499_v16, %v3283_v5  ;;  %v5494_v29 = vand.u32 2147483648, %v12849_v35  ;;  %v3834_v40 = vpop.f32.mrf.mxu1 }
 0x56a   : > { %v10454_v36 = vpop.eup %10453  ;;  %v5472_v39 = vadd.f32 %v10448_v61, %v5471_v14  ;;  %10461 = vpow2.f32 %v9943_v43  ;;  %v9773_v48 = vor.u32 %v10339_v7, %v9772_v49  ;;  %vm5478_vm5 = vcmp.eq.f32.partialorder %v5477_v27, 8.507059e+37 }
 0x56b   : > { %v5480_v56 = vor.u32 1.1754944e-38, %v5479_v18  ;;  %v5484_v44 = vmul.f32 %v10454_v36, %v12849_v35  ;;  %v5567_v20 = vand.u32 2147483647, %v12870_v9  ;;  %vm5488_vm6 = vweird.f32 %v12849_v35 }
 0x56c   : > { %v10456_v23 = vpop.eup %10455  ;;  %v5476_v22 = vsel %vm5475_vm4, %v10448_v61, %v5472_v39  ;;  %v5569_v16 = vand.u32 2147483648, %v12870_v9  ;;  %10463 = vrcp.f32 %v12888_v25  ;;  %4263 = vmatpush.bf16.msra.mxu2 %v9773_v48  ;;  %vm12901_vm7 = vcmp.eq.f32.partialorder %v5492_v63, 8.507059e+37 }
 0x56d   : > { %v5481_v15 = vsel %vm5478_vm5, %v5480_v56, %v5476_v22  ;;  %v5485_v34 = vsub.f32 1.0, %v5484_v44  ;;  %v12905_v3 = vadd.f32 1.0, %v10456_v23  ;;  %vm5489_vm8 = vweird.f32 %v10454_v36  ;;  %v3285_v22 = vpop.f32.mrf.mxu3 }
 0x56e   : > { %v10458_v17 = vpop.eup %10457  ;;  %8618 = vst [vmem:[%s12764_s20 + $0x78] sm:$0xff] %v5481_v15  ;;  %v5495_v42 = vor.u32 1.1754944e-38, %v5494_v29  ;;  %vm5563_vm9 = vweird.f32 %v12870_v9  ;;  %v3330_v50 = vmax.f32 %v12891_v31, 0.0  ;;  %vm12911_vm10 = vcmp.eq.f32.partialorder %v5567_v20, 8.507059e+37  ;;  %vm5490_vm11 = vmor %vm5488_vm6, %vm5489_vm8 }
 0x56f   : > { %v10460_v38 = vpop.eup %10459  ;;  %v5486_v46 = vmul.f32 %v10454_v36, %v5485_v34  ;;  %v5559_v1 = vmul.f32 %v10458_v17, %v12870_v9  ;;  %v5582_v61 = vand.u32 2147483647, %v12888_v25  ;;  %v5570_v32 = vor.u32 1.1754944e-38, %v5569_v16  ;;  %v3923_v9 = vpop.f32.mrf.mxu2 }
 0x570   : > { %v10462_v33 = vpop.eup %10461  ;;  %v5584_v30 = vand.u32 2147483648, %v12888_v25  ;;  %10465 = vrcp.f32 %v12905_v3  ;;  %v3922_v28 = vadd.f32 %v3921_v47, %v12698_v54  ;;  %v12919_v11 = vadd.f32 1.0, %v10460_v38  ;;  %v9764_v47 = vld [vmem:[%s16981_s13 + $0x80] sm:$0xf] }
 0x571   : > { %v5487_v62 = vadd.f32 %v10454_v36, %v5486_v46  ;;  %v5560_v10 = vsub.f32 1.0, %v5559_v1  ;;  %v12921_v27 = vadd.f32 1.0, %v10462_v33  ;;  %vm5564_vm12 = vweird.f32 %v10458_v17  ;;  %v10338_v46 = vld [vmem:[%s16981_s13 + $0x98] sm:$0xf0]  ;;  %v12981_v33 = vld [vmem:[%s16980_s12] ss:$0 sm:$0xff] }
 0x572   : > { %v10464_v43 = vpop.eup %10463  ;;  %vm5578_vm13 = vweird.f32 %v12888_v25  ;;  %v5599_v12 = vand.u32 2147483648, %v12905_v3  ;;  %v3746_v4 = vadd.f32 %v3745_v58, %v12680_v59  ;;  %vm12930_vm14 = vcmp.eq.f32.partialorder %v5582_v61, 8.507059e+37  ;;  %vm5565_vm15 = vmor %vm5563_vm9, %vm5564_vm12  ;;  %v10335_v61 = vld [vmem:[%s16981_s13 + $0x84] sm:$0xf]  ;;  %v9766_v58 = vld [vmem:[%s16981_s13 + $0x9c] sm:$0xf0] }
 0x573   : > { %v5491_v37 = vsel %vm5490_vm11, %v10454_v36, %v5487_v62  ;;  %v5561_v5 = vmul.f32 %v10458_v17, %v5560_v10  ;;  %v5574_v52 = vmul.f32 %v10464_v43, %v12888_v25  ;;  %v5597_v18 = vand.u32 2147483647, %v12905_v3 }
 0x574   : > { %v5496_v35 = vsel %vm12901_vm7, %v5495_v42, %v5491_v37  ;;  %v5585_v49 = vor.u32 1.1754944e-38, %v5584_v30  ;;  %10467 = vrcp.f32 %v12919_v11  ;;  %v3835_v7 = vadd.f32 %v3834_v40, %v12682_v8  ;;  %v3748_v40 = vpop.f32.mrf.mxu0  ;;  %v3837_v37 = vpop.f32.mrf.mxu1 }
 0x575   : > { %8619 = vst [vmem:[%s12764_s20 + $0x80] sm:$0xff] %v5496_v35  ;;  %v5562_v51 = vadd.f32 %v10458_v17, %v5561_v5  ;;  %v5575_v14 = vsub.f32 1.0, %v5574_v52  ;;  %10469 = vrcp.f32 %v12921_v27  ;;  %v9944_v63 = vmul.f32 -1.442695, %v3922_v28 }
 0x576   : > { %v12942_v36 = vpop.eup %10465  ;;  %vm5579_vm1 = vweird.f32 %v10464_v43  ;;  %vm5593_vm2 = vweird.f32 %v12905_v3  ;;  %v5600_v39 = vor.u32 1.1754944e-38, %v5599_v12  ;;  %v9949_v29 = vmul.f32 -1.442695, %v3746_v4 }
 0x577   : > { %4024 = vmatmul.bf16.gmra.mxu3 %v12651_v60  ;;  %v5566_v48 = vsel %vm5565_vm15, %v10458_v17, %v5562_v51  ;;  %v5576_v56 = vmul.f32 %v10464_v43, %v5575_v14  ;;  %v5589_v44 = vmul.f32 %v12942_v36, %v12905_v3  ;;  %vm12950_vm3 = vcmp.eq.f32.partialorder %v5597_v18, 8.507059e+37  ;;  %vm5580_vm4 = vmor %vm5578_vm13, %vm5579_vm1 }
 0x578   : > { %v5672_v23 = vand.u32 2147483647, %v12919_v11  ;;  %v5571_v16 = vsel %vm12911_vm10, %v5570_v32, %v5566_v48  ;;  %v5674_v15 = vand.u32 2147483648, %v12919_v11  ;;  %v5687_v34 = vand.u32 2147483647, %v12921_v27 }
 0x579   : > { %v5689_v53 = vand.u32 2147483648, %v12921_v27  ;;  %8624 = vst [vmem:[%s12764_s20 + $0xa8] sm:$0xff] %v5571_v16  ;;  %v5577_v17 = vadd.f32 %v10464_v43, %v5576_v56  ;;  %v5590_v42 = vsub.f32 1.0, %v5589_v44  ;;  %10471 = vpow2.f32 %v9944_v63 }
 0x57a   : > { %v9950_v38 = vmul.f32 -1.442695, %v3835_v7  ;;  %v12967_v1 = vpop.eup %10467  ;;  %10473 = vpow2.f32 %v9949_v29  ;;  %v9765_v24 = vor.u32 %v10338_v46, %v9764_v47  ;;  %v3286_v32 = vadd.f32 %v12981_v33, %v3285_v22  ;;  %v3926_v47 = vpop.f32.mrf.mxu2 }
 0x57b   : > { %v3924_v25 = vadd.f32 %v3923_v9, %v12698_v54  ;;  %v10470_v30 = vpop.eup %10469  ;;  %v5581_v28 = vsel %vm5580_vm4, %v10464_v43, %v5577_v17  ;;  %v5591_v62 = vmul.f32 %v12942_v36, %v5590_v42  ;;  %vm5594_vm5 = vweird.f32 %v12942_v36 }
 0x57c   : > { %v5664_v10 = vmul.f32 %v12967_v1, %v12919_v11  ;;  %v5586_v12 = vsel %vm12930_vm14, %v5585_v49, %v5581_v28  ;;  %vm5669_vm6 = vweird.f32 %v12967_v1  ;;  %v5679_v4 = vmul.f32 %v10470_v30, %v12921_v27  ;;  %4085 = vmatpush.bf16.msra.mxu0 %v9765_v24  ;;  %vm5595_vm7 = vmor %vm5593_vm2, %vm5594_vm5 }
 0x57d   : > { %10475 = vpow2.f32 %v9950_v38  ;;  %8625 = vst [vmem:[%s12764_s20 + $0xb0] sm:$0xff] %v5586_v12  ;;  %v5592_v43 = vadd.f32 %v12942_v36, %v5591_v62  ;;  %v9769_v52 = vor.u32 %v10335_v61, %v9766_v58  ;;  %v3331_v18 = vmax.f32 %v3286_v32, 0.0 }
 0x57e   : > { %v5665_v5 = vsub.f32 1.0, %v5664_v10  ;;  %v5680_v35 = vsub.f32 1.0, %v5679_v4  ;;  %vm5684_vm8 = vweird.f32 %v10470_v30  ;;  %v9951_v0 = vmul.f32 -1.442695, %v3924_v25 }
 0x57f   : > { %v3749_v49 = vadd.f32 %v3748_v40, %v12680_v59  ;;  %v10472_v7 = vpop.eup %10471  ;;  %v5596_v51 = vsel %vm5595_vm7, %v12942_v36, %v5592_v43  ;;  %4174 = vmatpush.bf16.msra.mxu1 %v9769_v52  ;;  %v13002_v63 = vpack.c.bf16 %v3331_v18, %v3330_v50  ;;  %v3838_v29 = vadd.f32 %v3837_v37, %v12682_v8 }
 0x580   : > { %v5666_v14 = vmul.f32 %v12967_v1, %v5665_v5  ;;  %v10474_v3 = vpop.eup %10473  ;;  %v5601_v48 = vsel %vm12950_vm3, %v5600_v39, %v5596_v51  ;;  %v5681_v56 = vmul.f32 %v10470_v30, %v5680_v35  ;;  %v13007_v44 = vadd.f32 1.0, %v10472_v7 }
 0x581   : > { %10477 = vpow2.f32 %v9951_v0  ;;  %8626 = vst [vmem:[%s12764_s20 + $0xb8] sm:$0xff] %v5601_v48  ;;  %vm5668_vm9 = vweird.f32 %v12919_v11  ;;  %vm5683_vm10 = vweird.f32 %v12921_v27  ;;  %v13013_v31 = vadd.f32 1.0, %v10474_v3  ;;  %3787 = vmatmul.bf16.gmra.mxu0 %v13002_v63  ;;  %3876 = vmatmul.bf16.gmra.mxu1 %v13002_v63 }
 0x582   : > { %v5667_v36 = vadd.f32 %v12967_v1, %v5666_v14  ;;  %vm5670_vm11 = vmor %vm5668_vm9, %vm5669_vm6  ;;  %v5675_v39 = vor.u32 1.1754944e-38, %v5674_v15  ;;  %v5682_v20 = vadd.f32 %v10470_v30, %v5681_v56  ;;  %10479 = vrcp.f32 %v13007_v44  ;;  %3965 = vmatmul.bf16.gmra.mxu2 %v13002_v63  ;;  %v3288_v15 = vpop.f32.mrf.mxu3 }
 0x583   : > { %v10476_v50 = vpop.eup %10475  ;;  %v9956_v22 = vmul.f32 -1.442695, %v3749_v49  ;;  %vm5673_vm12 = vcmp.eq.f32.partialorder %v5672_v23, 8.507059e+37  ;;  %vm5685_vm13 = vmor %vm5683_vm10, %vm5684_vm8  ;;  %v5690_v16 = vor.u32 1.1754944e-38, %v5689_v53  ;;  %10481 = vrcp.f32 %v13013_v31 }
 0x584   : > { %v5671_v9 = vsel %vm5670_vm11, %v12967_v1, %v5667_v36  ;;  %v5686_v42 = vsel %vm5685_vm13, %v10470_v30, %v5682_v20  ;;  %vm5688_vm14 = vcmp.eq.f32.partialorder %v5687_v34, 8.507059e+37  ;;  %v9957_v38 = vmul.f32 -1.442695, %v3838_v29  ;;  %v3750_v34 = vpop.f32.mrf.mxu0 }
 0x585   : > { %v5676_v17 = vsel %vm5673_vm12, %v5675_v39, %v5671_v9  ;;  %v5691_v46 = vsel %vm5688_vm14, %v5690_v16, %v5686_v42  ;;  %v5702_v11 = vand.u32 2147483647, %v13007_v44  ;;  %v5704_v23 = vand.u32 2147483648, %v13007_v44  ;;  %v3839_v39 = vpop.f32.mrf.mxu1 }
 0x586   : > { %8631 = vst [vmem:[%s12764_s20 + $0xe0] sm:$0xff] %v5676_v17  ;;  %v13033_v1 = vadd.f32 1.0, %v10476_v50  ;;  %10483 = vpow2.f32 %v9956_v22  ;;  %v13038_v24 = vadd.f32 %v12981_v33, %v3288_v15  ;;  %v3927_v27 = vadd.f32 %v3926_v47, %v12698_v54 }
 0x587   : > { %4029 = vmatmul.bf16.gmra.mxu3 %v12661_v21  ;;  %v10478_v53 = vpop.eup %10477  ;;  %8632 = vst [vmem:[%s12764_s20 + $0xe8] sm:$0xff] %v5691_v46  ;;  %vm5698_vm15 = vweird.f32 %v13007_v44  ;;  %v5777_v61 = vand.u32 2147483647, %v13013_v31  ;;  %v5779_v58 = vand.u32 2147483648, %v13013_v31  ;;  %vm5773_vm1 = vweird.f32 %v13013_v31 }
 0x588   : > { %10485 = vrcp.f32 %v13033_v1  ;;  %v10480_v32 = vpop.eup %10479  ;;  %v13046_v25 = vadd.f32 1.0, %v10478_v53  ;;  %v9958_v30 = vmul.f32 -1.442695, %v3927_v27  ;;  %vm13049_vm2 = vcmp.eq.f32.partialorder %v5702_v11, 8.507059e+37 }
 0x589   : > { %10487 = vpow2.f32 %v9957_v38  ;;  %v10482_v28 = vpop.eup %10481  ;;  %v5694_v62 = vmul.f32 %v10480_v32, %v13007_v44  ;;  %v5705_v40 = vor.u32 1.1754944e-38, %v5704_v23  ;;  %v3751_v12 = vadd.f32 %v3750_v34, %v12680_v59 }
 0x58a   : > { %v5769_v4 = vmul.f32 %v10482_v28, %v13013_v31  ;;  %v5792_v37 = vand.u32 2147483647, %v13033_v1  ;;  %v5794_v43 = vand.u32 2147483648, %v13033_v1  ;;  %10489 = vrcp.f32 %v13046_v25 }
 0x58b   : > { %v5695_v5 = vsub.f32 1.0, %v5694_v62  ;;  %vm13058_vm3 = vcmp.eq.f32.partialorder %v5777_v61, 8.507059e+37  ;;  %v5780_v18 = vor.u32 1.1754944e-38, %v5779_v58  ;;  %v3332_v35 = vmax.f32 %v13038_v24, 0.0  ;;  %v3290_v58 = vpop.f32.mrf.mxu3  ;;  %v10332_v24 = vld [vmem:[%s16981_s13 + $0x68] sm:$0xf0] }
 0x58c   : > { %v10484_v0 = vpop.eup %10483  ;;  %v5770_v49 = vsub.f32 1.0, %v5769_v4  ;;  %vm5788_vm4 = vweird.f32 %v13033_v1  ;;  %10491 = vpow2.f32 %v9958_v30  ;;  %v9963_v7 = vmul.f32 -1.442695, %v3751_v12 }
 0x58d   : > { %v5696_v14 = vmul.f32 %v10480_v32, %v5695_v5  ;;  %vm5699_vm5 = vweird.f32 %v10480_v32  ;;  %vm5774_vm6 = vweird.f32 %v10482_v28  ;;  %v13064_v29 = vadd.f32 1.0, %v10484_v0 }
 0x58e   : > { %v10486_v51 = vpop.eup %10485  ;;  %v5771_v48 = vmul.f32 %v10482_v28, %v5770_v49  ;;  %vm13067_vm7 = vcmp.eq.f32.partialorder %v5792_v37, 8.507059e+37  ;;  %v5795_v50 = vor.u32 1.1754944e-38, %v5794_v43  ;;  %10493 = vpow2.f32 %v9963_v7  ;;  %vm5700_vm9 = vmor %vm5698_vm15, %vm5699_vm5  ;;  %v3928_v49 = vpop.f32.mrf.mxu2 }
 0x58f   : > { %v10488_v3 = vpop.eup %10487  ;;  %v5784_v56 = vmul.f32 %v10486_v51, %v13033_v1  ;;  %v5697_v20 = vadd.f32 %v10480_v32, %v5696_v14  ;;  %vm5803_vm8 = vweird.f32 %v13046_v25  ;;  %v5807_v22 = vand.u32 2147483647, %v13046_v25  ;;  %vm5775_vm10 = vmor %vm5773_vm1, %vm5774_vm6  ;;  %v3753_v7 = vpop.f32.mrf.mxu0 }
 0x590   : > { %10495 = vrcp.f32 %v13064_v29  ;;  %v10490_v9 = vpop.eup %10489  ;;  %v5772_v16 = vadd.f32 %v10482_v28, %v5771_v48  ;;  %v5809_v47 = vand.u32 2147483648, %v13046_v25  ;;  %v13078_v17 = vadd.f32 1.0, %v10488_v3 }
 0x591   : > { %v5785_v15 = vsub.f32 1.0, %v5784_v56  ;;  %v5701_v42 = vsel %vm5700_vm9, %v10480_v32, %v5697_v20  ;;  %vm5789_vm11 = vweird.f32 %v10486_v51  ;;  %v5799_v38 = vmul.f32 %v10490_v9, %v13046_v25 }
 0x592   : > { %v3840_v46 = vadd.f32 %v3839_v39, %v12682_v8  ;;  %v10492_v44 = vpop.eup %10491  ;;  %v5706_v11 = vsel %vm13049_vm2, %v5705_v40, %v5701_v42  ;;  %v5776_v23 = vsel %vm5775_vm10, %v10482_v28, %v5772_v16  ;;  %v5882_v27 = vand.u32 2147483647, %v13064_v29  ;;  %vm5790_vm13 = vmor %vm5788_vm4, %vm5789_vm11 }
 0x593   : > { %v5786_v53 = vmul.f32 %v10486_v51, %v5785_v15  ;;  %8633 = vst [vmem:[%s12764_s20 + $0xf0] sm:$0xff] %v5706_v11  ;;  %v5781_v34 = vsel %vm13058_vm3, %v5780_v18, %v5776_v23  ;;  %v5800_v31 = vsub.f32 1.0, %v5799_v38  ;;  %vm13091_vm12 = vcmp.eq.f32.partialorder %v5807_v22, 8.507059e+37  ;;  %v3842_v22 = vpop.f32.mrf.mxu1 }
 0x594   : > { %10497 = vrcp.f32 %v13078_v17  ;;  %v10494_v32 = vpop.eup %10493  ;;  %8638 = vst [vmem:[%s12764_s20 + $0x118] sm:$0xff] %v5781_v34  ;;  %v5810_v62 = vor.u32 1.1754944e-38, %v5809_v47  ;;  %v5884_v28 = vand.u32 2147483648, %v13064_v29  ;;  %v13098_v10 = vadd.f32 1.0, %v10492_v44 }
 0x595   : > { %v5787_v30 = vadd.f32 %v10486_v51, %v5786_v53  ;;  %v5801_v12 = vmul.f32 %v10490_v9, %v5800_v31  ;;  %vm5804_vm14 = vweird.f32 %v10490_v9  ;;  %vm5878_vm15 = vweird.f32 %v13064_v29 }
 0x596   : > { %v10496_v40 = vpop.eup %10495  ;;  %v13104_v4 = vadd.f32 1.0, %v10494_v32  ;;  %vm13108_vm1 = vcmp.eq.f32.partialorder %v5882_v27, 8.507059e+37  ;;  %v5897_v52 = vand.u32 2147483647, %v13078_v17  ;;  %v5899_v0 = vand.u32 2147483648, %v13078_v17  ;;  %vm5805_vm2 = vmor %vm5803_vm8, %vm5804_vm14  ;;  %v3293_v27 = vpop.f32.mrf.mxu3 }
 0x597   : > { %4034 = vmatmul.bf16.gmra.mxu3 %v12669_v2  ;;  %v5791_v37 = vsel %vm5790_vm13, %v10486_v51, %v5787_v30  ;;  %v5874_v43 = vmul.f32 %v10496_v40, %v13064_v29  ;;  %v5802_v18 = vadd.f32 %v10490_v9, %v5801_v12  ;;  %10499 = vrcp.f32 %v13098_v10 }
 0x598   : > { %v5796_v1 = vsel %vm13067_vm7, %v5795_v50, %v5791_v37  ;;  %v5885_v14 = vor.u32 1.1754944e-38, %v5884_v28  ;;  %v9964_v3 = vmul.f32 -1.442695, %v3840_v46  ;;  %v3291_v48 = vadd.f32 %v12981_v33, %v3290_v58 }
 0x599   : > { %8639 = vst [vmem:[%s12764_s20 + $0x120] sm:$0xff] %v5796_v1  ;;  %v5875_v51 = vsub.f32 1.0, %v5874_v43  ;;  %v5806_v36 = vsel %vm5805_vm2, %v10490_v9, %v5802_v18  ;;  %vm5879_vm3 = vweird.f32 %v10496_v40  ;;  %vm5893_vm4 = vweird.f32 %v13078_v17  ;;  %v3931_v18 = vpop.f32.mrf.mxu2 }
 0x59a   : > { %v10498_v56 = vpop.eup %10497  ;;  %10501 = vrcp.f32 %v13104_v4  ;;  %v5811_v50 = vsel %vm13091_vm12, %v5810_v62, %v5806_v36  ;;  %v5912_v20 = vand.u32 2147483647, %v13098_v10  ;;  %vm13129_vm5 = vcmp.eq.f32.partialorder %v5897_v52, 8.507059e+37  ;;  %vm5880_vm7 = vmor %vm5878_vm15, %vm5879_vm3  ;;  %v9744_v52 = vld [vmem:[%s16981_s13 + $0x50] sm:$0xf] }
 0x59b   : > { %v5876_v39 = vmul.f32 %v10496_v40, %v5875_v51  ;;  %v5889_v25 = vmul.f32 %v10498_v56, %v13078_v17  ;;  %8640 = vst [vmem:[%s12764_s20 + $0x128] sm:$0xff] %v5811_v50  ;;  %v5900_v9 = vor.u32 1.1754944e-38, %v5899_v0  ;;  %v5914_v15 = vand.u32 2147483648, %v13098_v10  ;;  %v3755_v0 = vpop.f32.mrf.mxu0 }
 0x59c   : > { %v5987_v47 = vand.u32 2147483647, %v13104_v4  ;;  %vm5908_vm6 = vweird.f32 %v13098_v10  ;;  %10503 = vpow2.f32 %v9964_v3  ;;  %v3333_v46 = vmax.f32 %v3291_v48, 0.0 }
 0x59d   : > { %v5877_v42 = vadd.f32 %v10496_v40, %v5876_v39  ;;  %v5890_v38 = vsub.f32 1.0, %v5889_v25  ;;  %v13136_v44 = vpop.eup %10499  ;;  %vm5894_vm8 = vweird.f32 %v10498_v56  ;;  %v3929_v11 = vadd.f32 %v3928_v49, %v12698_v54  ;;  %v3844_v39 = vpop.f32.mrf.mxu1 }
 0x59e   : > { %v3754_v23 = vadd.f32 %v3753_v7, %v12680_v59  ;;  %v3843_v53 = vadd.f32 %v3842_v22, %v12682_v8  ;;  %v5904_v61 = vmul.f32 %v13136_v44, %v13098_v10  ;;  %vm13146_vm9 = vcmp.eq.f32.partialorder %v5912_v20, 8.507059e+37  ;;  %vm13172_vm11 = vmor %vm5893_vm4, %vm5894_vm8 }
 0x59f   : > { %v5881_v34 = vsel %vm5880_vm7, %v10496_v40, %v5877_v42  ;;  %v5891_v31 = vmul.f32 %v10498_v56, %v5890_v38  ;;  %v5989_v29 = vand.u32 2147483648, %v13104_v4  ;;  %v13157_v62 = vpack.c.bf16 %v3333_v46, %v3332_v35 }
 0x5a0   : > { %v13151_v32 = vpop.eup %10501  ;;  %v5886_v30 = vsel %vm13108_vm1, %v5885_v14, %v5881_v34  ;;  %v9965_v28 = vmul.f32 -1.442695, %v3929_v11  ;;  %v9970_v40 = vmul.f32 -1.442695, %v3754_v23  ;;  %v5905_v37 = vsub.f32 1.0, %v5904_v61  ;;  %v3295_v11 = vpop.f32.mrf.mxu3 }
 0x5a1   : > { %8645 = vst [vmem:[%s12764_s20 + $0x150] sm:$0xff] %v5886_v30  ;;  %v5892_v12 = vadd.f32 %v10498_v56, %v5891_v31  ;;  %v5979_v43 = vmul.f32 %v13151_v32, %v13104_v4  ;;  %vm5983_vm10 = vweird.f32 %v13104_v4  ;;  %vm5909_vm12 = vweird.f32 %v13136_v44  ;;  %3792 = vmatmul.bf16.gmra.mxu0 %v13157_v62  ;;  %3881 = vmatmul.bf16.gmra.mxu1 %v13157_v62 }
 0x5a2   : > { %10505 = vpow2.f32 %v9965_v28  ;;  %v9971_v5 = vmul.f32 -1.442695, %v3843_v53  ;;  %v9745_v1 = vor.u32 %v10332_v24, %v9744_v52  ;;  %v10504_v49 = vpop.eup %10503  ;;  %v5906_v7 = vmul.f32 %v13136_v44, %v5905_v37  ;;  %3970 = vmatmul.bf16.gmra.mxu2 %v13157_v62  ;;  %vm5910_vm14 = vmor %vm5908_vm6, %vm5909_vm12  ;;  %v9736_v28 = vld [vmem:[%s16981_s13 + $0x48] sm:$0xf]  ;;  %v10328_v52 = vld [vmem:[%s16981_s13 + $0x4c] sm:$0xf] }
 0x5a3   : > { %v5896_v17 = vsel %vm13172_vm11, %v10498_v56, %v5892_v12  ;;  %v5980_v51 = vsub.f32 1.0, %v5979_v43  ;;  %10507 = vpow2.f32 %v9970_v40  ;;  %vm5984_vm13 = vweird.f32 %v13151_v32  ;;  %v10331_v43 = vld [vmem:[%s16981_s13 + $0x60] sm:$0xf0] }
 0x5a4   : > { %v5901_v14 = vsel %vm13129_vm5, %v5900_v9, %v5896_v17  ;;  %v13186_v3 = vadd.f32 1.0, %v10504_v49  ;;  %10509 = vpow2.f32 %v9971_v5  ;;  %4264 = vmatpush.bf16.msra.mxu2 %v9745_v1  ;;  %v5907_v48 = vadd.f32 %v13136_v44, %v5906_v7  ;;  %vm5985_vm1 = vmor %vm5983_vm10, %vm5984_vm13  ;;  %v9738_v1 = vld [vmem:[%s16981_s13 + $0x64] sm:$0xf0] }
 0x5a5   : > { %8646 = vst [vmem:[%s12764_s20 + $0x158] sm:$0xff] %v5901_v14  ;;  %v5981_v56 = vmul.f32 %v13151_v32, %v5980_v51  ;;  %v3932_v36 = vadd.f32 %v3931_v18, %v12698_v54  ;;  %v3756_v50 = vadd.f32 %v3755_v0, %v12680_v59  ;;  %v5915_v25 = vor.u32 1.1754944e-38, %v5914_v15 }
 0x5a6   : > { %vm13197_vm15 = vcmp.eq.f32.partialorder %v5987_v47, 8.507059e+37  ;;  %v5990_v22 = vor.u32 1.1754944e-38, %v5989_v29  ;;  %10511 = vrcp.f32 %v13186_v3  ;;  %v5911_v16 = vsel %vm5910_vm14, %v13136_v44, %v5907_v48 }
 0x5a7   : > { %4039 = vmatmul.bf16.gmra.mxu3 %v12690_v26  ;;  %v5982_v9 = vadd.f32 %v13151_v32, %v5981_v56  ;;  %v9972_v42 = vmul.f32 -1.442695, %v3932_v36  ;;  %v9977_v38 = vmul.f32 -1.442695, %v3756_v50  ;;  %v5916_v10 = vsel %vm13146_vm9, %v5915_v25, %v5911_v16 }
 0x5a8   : > { %v10506_v46 = vpop.eup %10505  ;;  %v6002_v15 = vand.u32 2147483647, %v13186_v3  ;;  %v3294_v47 = vadd.f32 %v12981_v33, %v3293_v27  ;;  %v3845_v44 = vadd.f32 %v3844_v39, %v12682_v8  ;;  %8647 = vst [vmem:[%s12764_s20 + $0x160] sm:$0xff] %v5916_v10  ;;  %v6004_v34 = vand.u32 2147483648, %v13186_v3 }
 0x5a9   : > { %v10508_v23 = vpop.eup %10507  ;;  %v5986_v53 = vsel %vm5985_vm1, %v13151_v32, %v5982_v9  ;;  %v13217_v31 = vadd.f32 1.0, %v10506_v46  ;;  %10513 = vpow2.f32 %v9972_v42  ;;  %v3296_v29 = vadd.f32 %v12981_v33, %v3295_v11  ;;  %v3933_v9 = vpop.f32.mrf.mxu2 }
 0x5aa   : > { %v10510_v61 = vpop.eup %10509  ;;  %v5991_v4 = vsel %vm13197_vm15, %v5990_v22, %v5986_v53  ;;  %v13221_v58 = vadd.f32 1.0, %v10508_v23  ;;  %10515 = vpow2.f32 %v9977_v38  ;;  %v9978_v27 = vmul.f32 -1.442695, %v3845_v44  ;;  %v3758_v23 = vpop.f32.mrf.mxu0 }
 0x5ab   : > { %8652 = vst [vmem:[%s12764_s20 + $0x188] sm:$0xff] %v5991_v4  ;;  %10517 = vrcp.f32 %v13217_v31  ;;  %v3334_v32 = vmax.f32 %v3294_v47, 0.0  ;;  %vm5998_vm2 = vweird.f32 %v13186_v3  ;;  %vm13232_vm3 = vcmp.eq.f32.partialorder %v6002_v15, 8.507059e+37 }
 0x5ac   : > { %v10512_v30 = vpop.eup %10511  ;;  %10519 = vrcp.f32 %v13221_v58  ;;  %v6005_v37 = vor.u32 1.1754944e-38, %v6004_v34  ;;  %v6017_v24 = vand.u32 2147483647, %v13217_v31  ;;  %v6019_v35 = vand.u32 2147483648, %v13217_v31 }
 0x5ad   : > { %v5994_v40 = vmul.f32 %v10512_v30, %v13186_v3  ;;  %v13244_v5 = vadd.f32 1.0, %v10510_v61  ;;  %10521 = vpow2.f32 %v9978_v27  ;;  %v9737_v49 = vor.u32 %v10331_v43, %v9736_v28 }
 0x5ae   : > { %v9741_v17 = vor.u32 %v10328_v52, %v9738_v1  ;;  %v3335_v7 = vmax.f32 %v3296_v29, 0.0  ;;  %vm5999_vm4 = vweird.f32 %v10512_v30  ;;  %v6092_v14 = vand.u32 2147483647, %v13221_v58  ;;  %v13300_v52 = vpop.f32.mrf.mxu3 }
 0x5af   : > { %v10514_v18 = vpop.eup %10513  ;;  %v5995_v0 = vsub.f32 1.0, %v5994_v40  ;;  %v6094_v48 = vand.u32 2147483648, %v13221_v58  ;;  %10523 = vrcp.f32 %v13244_v5  ;;  %4086 = vmatpush.bf16.msra.mxu0 %v9737_v49  ;;  %vm6013_vm5 = vweird.f32 %v13217_v31  ;;  %vm6000_vm7 = vmor %vm5998_vm2, %vm5999_vm4  ;;  %v3847_v40 = vpop.f32.mrf.mxu1 }
 0x5b0   : > { %v10516_v51 = vpop.eup %10515  ;;  %v13254_v50 = vadd.f32 1.0, %v10514_v18  ;;  %4175 = vmatpush.bf16.msra.mxu1 %v9741_v17  ;;  %v13258_v25 = vpack.c.bf16 %v3335_v7, %v3334_v32  ;;  %vm6088_vm6 = vweird.f32 %v13221_v58  ;;  %v6107_v16 = vand.u32 2147483647, %v13244_v5 }
 0x5b1   : > { %v13252_v56 = vpop.eup %10517  ;;  %v5996_v36 = vmul.f32 %v10512_v30, %v5995_v0  ;;  %v13256_v39 = vadd.f32 1.0, %v10516_v51  ;;  %v6109_v46 = vand.u32 2147483648, %v13244_v5  ;;  %vm13273_vm8 = vcmp.eq.f32.partialorder %v6017_v24, 8.507059e+37 }
 0x5b2   : > { %v10520_v20 = vpop.eup %10519  ;;  %v6009_v22 = vmul.f32 %v13252_v56, %v13217_v31  ;;  %10525 = vrcp.f32 %v13254_v50  ;;  %3797 = vmatmul.bf16.gmra.mxu0 %v13258_v25  ;;  %3886 = vmatmul.bf16.gmra.mxu1 %v13258_v25  ;;  %v6020_v44 = vor.u32 1.1754944e-38, %v6019_v35  ;;  %vm13277_vm9 = vcmp.eq.f32.partialorder %v6092_v14, 8.507059e+37  ;;  %v3760_v47 = vpop.f32.mrf.mxu0 }
 0x5b3   : > { %v5997_v42 = vadd.f32 %v10512_v30, %v5996_v36  ;;  %v6084_v38 = vmul.f32 %v10520_v20, %v13221_v58  ;;  %v10522_v10 = vpop.eup %10521  ;;  %3975 = vmatmul.bf16.gmra.mxu2 %v13258_v25  ;;  %v6095_v61 = vor.u32 1.1754944e-38, %v6094_v48  ;;  %10527 = vrcp.f32 %v13256_v39 }
 0x5b4   : > { %v6010_v15 = vsub.f32 1.0, %v6009_v22  ;;  %vm6014_vm10 = vweird.f32 %v13252_v56  ;;  %vm6103_vm11 = vweird.f32 %v13244_v5  ;;  %vm6089_vm12 = vweird.f32 %v10520_v20 }
 0x5b5   : > { %v6001_v53 = vsel %vm6000_vm7, %v10512_v30, %v5997_v42  ;;  %v6085_v34 = vsub.f32 1.0, %v6084_v38  ;;  %v10524_v3 = vpop.eup %10523  ;;  %vm13291_vm13 = vcmp.eq.f32.partialorder %v6107_v16, 8.507059e+37  ;;  %v6110_v28 = vor.u32 1.1754944e-38, %v6109_v46  ;;  %vm6015_vm15 = vmor %vm6013_vm5, %vm6014_vm10  ;;  %v3936_v16 = vpop.f32.mrf.mxu2 }
 0x5b6   : > { %v6006_v4 = vsel %vm13232_vm3, %v6005_v37, %v6001_v53  ;;  %v6011_v27 = vmul.f32 %v13252_v56, %v6010_v15  ;;  %v6099_v30 = vmul.f32 %v10524_v3, %v13244_v5  ;;  %vm6118_vm14 = vweird.f32 %v13254_v50  ;;  %vm6090_vm2 = vmor %vm6088_vm6, %vm6089_vm12 }
 0x5b7   : > { %4044 = vmatmul.bf16.gmra.mxu3 %v12730_v6  ;;  %8653 = vst [vmem:[%s12764_s20 + $0x190] sm:$0xff] %v6006_v4  ;;  %v6086_v29 = vmul.f32 %v10520_v20, %v6085_v34  ;;  %v6122_v37 = vand.u32 2147483647, %v13254_v50  ;;  %v13298_v43 = vadd.f32 1.0, %v10522_v10  ;;  %vm6104_vm1 = vweird.f32 %v10524_v3 }
 0x5b8   : > { %v6012_v12 = vadd.f32 %v13252_v56, %v6011_v27  ;;  %v10526_v24 = vpop.eup %10525  ;;  %v6100_v1 = vsub.f32 1.0, %v6099_v30  ;;  %v6124_v18 = vand.u32 2147483648, %v13254_v50  ;;  %vm6193_vm3 = vweird.f32 %v13256_v39  ;;  %vm6105_vm6 = vmor %vm6103_vm11, %vm6104_vm1 }
 0x5b9   : > { %v6087_v35 = vadd.f32 %v10520_v20, %v6086_v29  ;;  %v6114_v49 = vmul.f32 %v10526_v24, %v13254_v50  ;;  %v3934_v31 = vadd.f32 %v3933_v9, %v12698_v54  ;;  %v3759_v17 = vadd.f32 %v3758_v23, %v12680_v59  ;;  %v10528_v7 = vpop.eup %10527  ;;  %v3849_v29 = vpop.f32.mrf.mxu1 }
 0x5ba   : > { %v6016_v0 = vsel %vm6015_vm15, %v13252_v56, %v6012_v12  ;;  %v6101_v48 = vmul.f32 %v10524_v3, %v6100_v1  ;;  %10529 = vrcp.f32 %v13298_v43  ;;  %vm13321_vm4 = vcmp.eq.f32.partialorder %v6122_v37, 8.507059e+37  ;;  %v3300_v12 = vpop.f32.mrf.mxu3 }
 0x5bb   : > { %v6021_v51 = vsel %vm13273_vm8, %v6020_v44, %v6016_v0  ;;  %v6091_v14 = vsel %vm6090_vm2, %v10520_v20, %v6087_v35  ;;  %v6115_v56 = vsub.f32 1.0, %v6114_v49  ;;  %v6189_v22 = vmul.f32 %v10528_v7, %v13256_v39 }
 0x5bc   : > { %8654 = vst [vmem:[%s12764_s20 + $0x198] sm:$0xff] %v6021_v51  ;;  %v6096_v58 = vsel %vm13277_vm9, %v6095_v61, %v6091_v14  ;;  %v6102_v9 = vadd.f32 %v10524_v3, %v6101_v48  ;;  %vm6119_vm5 = vweird.f32 %v10526_v24  ;;  %v6197_v20 = vand.u32 2147483647, %v13256_v39 }
 0x5bd   : > { %8659 = vst [vmem:[%s12764_s20 + $0x1c0] sm:$0xff] %v6096_v58  ;;  %v6199_v42 = vand.u32 2147483648, %v13256_v39  ;;  %v6116_v38 = vmul.f32 %v10526_v24, %v6115_v56  ;;  %v6190_v46 = vsub.f32 1.0, %v6189_v22  ;;  %v9979_v10 = vmul.f32 -1.442695, %v3934_v31  ;;  %vm6120_vm8 = vmor %vm6118_vm14, %vm6119_vm5  ;;  %v3938_v48 = vpop.f32.mrf.mxu2 }
 0x5be   : > { %v9984_v15 = vmul.f32 -1.442695, %v3759_v17  ;;  %v6106_v44 = vsel %vm6105_vm6, %v10524_v3, %v6102_v9  ;;  %v6125_v11 = vor.u32 1.1754944e-38, %v6124_v18  ;;  %vm6194_vm7 = vweird.f32 %v10528_v7  ;;  %v3763_v9 = vpop.f32.mrf.mxu0 }
 0x5bf   : > { %v3848_v23 = vadd.f32 %v3847_v40, %v12682_v8  ;;  %v6111_v53 = vsel %vm13291_vm13, %v6110_v28, %v6106_v44  ;;  %v6117_v34 = vadd.f32 %v10526_v24, %v6116_v38  ;;  %v6191_v61 = vmul.f32 %v10528_v7, %v6190_v46  ;;  %vm6195_vm10 = vmor %vm6193_vm3, %vm6194_vm7 }
 0x5c0   : > { %10531 = vpow2.f32 %v9979_v10  ;;  %v10530_v4 = vpop.eup %10529  ;;  %8660 = vst [vmem:[%s12764_s20 + $0x1c8] sm:$0xff] %v6111_v53  ;;  %vm13339_vm9 = vcmp.eq.f32.partialorder %v6197_v20, 8.507059e+37  ;;  %v3937_v27 = vadd.f32 %v3936_v16, %v12698_v54  ;;  %v6200_v28 = vor.u32 1.1754944e-38, %v6199_v42 }
 0x5c1   : > { %10533 = vpow2.f32 %v9984_v15  ;;  %v9985_v3 = vmul.f32 -1.442695, %v3848_v23  ;;  %v6121_v30 = vsel %vm6120_vm8, %v10526_v24, %v6117_v34  ;;  %v6192_v32 = vadd.f32 %v10528_v7, %v6191_v61  ;;  %v3852_v23 = vpop.f32.mrf.mxu1 }
 0x5c2   : > { %v6204_v40 = vmul.f32 %v10530_v4, %v13298_v43  ;;  %v6126_v50 = vsel %vm13321_vm4, %v6125_v11, %v6121_v30  ;;  %v6212_v37 = vand.u32 2147483647, %v13298_v43  ;;  %v9986_v35 = vmul.f32 -1.442695, %v3937_v27 }
 0x5c3   : > { %10535 = vpow2.f32 %v9985_v3  ;;  %8661 = vst [vmem:[%s12764_s20 + $0x1d0] sm:$0xff] %v6126_v50  ;;  %v6196_v1 = vsel %vm6195_vm10, %v10528_v7, %v6192_v32  ;;  %v3761_v18 = vadd.f32 %v3760_v47, %v12680_v59  ;;  %v3850_v0 = vadd.f32 %v3849_v29, %v12682_v8 }
 0x5c4   : > { %v6205_v24 = vsub.f32 1.0, %v6204_v40  ;;  %v6201_v49 = vsel %vm13339_vm9, %v6200_v28, %v6196_v1  ;;  %v6214_v31 = vand.u32 2147483648, %v13298_v43  ;;  %10537 = vpow2.f32 %v9986_v35 }
 0x5c5   : > { %v3301_v39 = vadd.f32 %v12981_v33, %v3300_v12  ;;  %8666 = vst [vmem:[%s12764_s20 + $0x1f8] sm:$0xff] %v6201_v49  ;;  %vm6209_vm11 = vweird.f32 %v10530_v4  ;;  %v3299_v7 = vadd.f32 %v12981_v33, %v13300_v52  ;;  %v9991_v14 = vmul.f32 -1.442695, %v3761_v18 }
 0x5c6   : > { %v10532_v17 = vpop.eup %10531  ;;  %v6206_v51 = vmul.f32 %v10530_v4, %v6205_v24  ;;  %vm6208_vm12 = vweird.f32 %v13298_v43  ;;  %v9992_v16 = vmul.f32 -1.442695, %v3850_v0  ;;  %v6215_v42 = vor.u32 1.1754944e-38, %v6214_v31 }
 0x5c7   : > { %4049 = vmatmul.bf16.gmra.mxu3 %v12851_v41  ;;  %v10534_v58 = vpop.eup %10533  ;;  %v13363_v56 = vadd.f32 1.0, %v10532_v17  ;;  %10539 = vpow2.f32 %v9991_v14  ;;  %vm6210_vm13 = vmor %vm6208_vm12, %vm6209_vm11  ;;  %v3337_v52 = vmax.f32 %v3301_v39, 0.0  ;;  %v3939_v38 = vadd.f32 %v3938_v48, %v12698_v54 }
 0x5c8   : > { %v6207_v36 = vadd.f32 %v10530_v4, %v6206_v51  ;;  %v13365_v22 = vadd.f32 1.0, %v10534_v58  ;;  %vm6213_vm14 = vcmp.eq.f32.partialorder %v6212_v37, 8.507059e+37  ;;  %v3336_v43 = vmax.f32 %v3299_v7, 0.0 }
 0x5c9   : > { %v10536_v20 = vpop.eup %10535  ;;  %10541 = vrcp.f32 %v13363_v56  ;;  %v6227_v47 = vand.u32 2147483647, %v13363_v56  ;;  %v6229_v44 = vand.u32 2147483648, %v13363_v56  ;;  %v3764_v11 = vadd.f32 %v3763_v9, %v12680_v59 }
 0x5ca   : > { %v6211_v46 = vsel %vm6210_vm13, %v10530_v4, %v6207_v36  ;;  %10543 = vrcp.f32 %v13365_v22  ;;  %v10538_v10 = vpop.eup %10537  ;;  %v6304_v53 = vand.u32 2147483648, %v13365_v22  ;;  %v13375_v34 = vadd.f32 1.0, %v10536_v20  ;;  %v3303_v4 = vpop.f32.mrf.mxu3 }
 0x5cb   : > { %v6216_v15 = vsel %vm6213_vm14, %v6215_v42, %v6211_v46  ;;  %v13377_v61 = vadd.f32 1.0, %v10538_v10  ;;  %10545 = vpow2.f32 %v9992_v16  ;;  %v6302_v5 = vand.u32 2147483647, %v13365_v22  ;;  %v3941_v46 = vpop.f32.mrf.mxu2 }
 0x5cc   : > { %8667 = vst [vmem:[%s12764_s20 + $0x200] sm:$0xff] %v6216_v15  ;;  %v13380_v3 = vpack.c.bf16 %v3337_v52, %v3336_v43  ;;  %v9993_v27 = vmul.f32 -1.442695, %v3939_v38  ;;  %10547 = vrcp.f32 %v13375_v34  ;;  %v3853_v30 = vadd.f32 %v3852_v23, %v12682_v8 }
 0x5cd   : > { %v10540_v29 = vpop.eup %10539  ;;  %vm6223_vm15 = vweird.f32 %v13363_v56  ;;  %vm6298_vm1 = vweird.f32 %v13365_v22  ;;  %10549 = vrcp.f32 %v13377_v61  ;;  %v9998_v28 = vmul.f32 -1.442695, %v3764_v11 }
 0x5ce   : > { %3802 = vmatmul.bf16.gmra.mxu0 %v13380_v3  ;;  %3891 = vmatmul.bf16.gmra.mxu1 %v13380_v3  ;;  %vm13390_vm2 = vcmp.eq.f32.partialorder %v6227_v47, 8.507059e+37  ;;  %v6230_v37 = vor.u32 1.1754944e-38, %v6229_v44  ;;  %v6305_v35 = vor.u32 1.1754944e-38, %v6304_v53  ;;  %v6319_v1 = vand.u32 2147483648, %v13375_v34 }
 0x5cf   : > { %v10542_v32 = vpop.eup %10541  ;;  %3980 = vmatmul.bf16.gmra.mxu2 %v13380_v3  ;;  %vm13397_vm3 = vcmp.eq.f32.partialorder %v6302_v5, 8.507059e+37  ;;  %v6317_v0 = vand.u32 2147483647, %v13375_v34  ;;  %v6334_v49 = vand.u32 2147483648, %v13377_v61  ;;  %10551 = vpow2.f32 %v9993_v27 }
 0x5d0   : > { %v10544_v40 = vpop.eup %10543  ;;  %v6219_v12 = vmul.f32 %v10542_v32, %v13363_v56  ;;  %v6332_v17 = vand.u32 2147483647, %v13377_v61  ;;  %v13404_v51 = vadd.f32 1.0, %v10540_v29  ;;  %v9999_v7 = vmul.f32 -1.442695, %v3853_v30 }
 0x5d1   : > { %v6294_v24 = vmul.f32 %v10544_v40, %v13365_v22  ;;  %v10546_v31 = vpop.eup %10545  ;;  %vm6313_vm4 = vweird.f32 %v13375_v34  ;;  %10553 = vpow2.f32 %v9998_v28  ;;  %vm6224_vm5 = vweird.f32 %v10542_v32 }
 0x5d2   : > { %v6220_v39 = vsub.f32 1.0, %v6219_v12  ;;  %v13407_v48 = vadd.f32 1.0, %v10546_v31  ;;  %v10548_v58 = vpop.eup %10547  ;;  %v6320_v16 = vor.u32 1.1754944e-38, %v6319_v1  ;;  %vm6328_vm6 = vweird.f32 %v13377_v61  ;;  %v13427_v44 = vpop.f32.mrf.mxu3  ;;  %vm6225_vm10 = vmor %vm6223_vm15, %vm6224_vm5 }
 0x5d3   : > { %v6295_v14 = vsub.f32 1.0, %v6294_v24  ;;  %10555 = vrcp.f32 %v13404_v51  ;;  %v13411_v9 = vpop.eup %10549  ;;  %vm6299_vm7 = vweird.f32 %v10544_v40  ;;  %v6309_v42 = vmul.f32 %v10548_v58, %v13375_v34 }
 0x5d4   : > { %v6221_v36 = vmul.f32 %v10542_v32, %v6220_v39  ;;  %vm13414_vm8 = vcmp.eq.f32.partialorder %v6317_v0, 8.507059e+37  ;;  %v6335_v38 = vor.u32 1.1754944e-38, %v6334_v49  ;;  %v6324_v10 = vmul.f32 %v13411_v9, %v13377_v61  ;;  %vm6300_vm11 = vmor %vm6298_vm1, %vm6299_vm7  ;;  %v9716_v61 = vld [vmem:[%s16981_s13 + $0x18] sm:$0xf] }
 0x5d5   : > { %v6296_v20 = vmul.f32 %v10544_v40, %v6295_v14  ;;  %vm13420_vm9 = vcmp.eq.f32.partialorder %v6332_v17, 8.507059e+37  ;;  %10557 = vpow2.f32 %v9999_v7  ;;  %v13425_v47 = vadd.f32 %v12981_v33, %v3303_v4  ;;  %v10552_v11 = vpop.eup %10551  ;;  %v3765_v14 = vpop.f32.mrf.mxu0 }
 0x5d6   : > { %v6222_v43 = vadd.f32 %v10542_v32, %v6221_v36  ;;  %v6310_v53 = vsub.f32 1.0, %v6309_v42  ;;  %v6407_v5 = vand.u32 2147483647, %v13404_v51  ;;  %10559 = vrcp.f32 %v13407_v48 }
 0x5d7   : > { %4054 = vmatmul.bf16.gmra.mxu3 %v13002_v63  ;;  %v6297_v23 = vadd.f32 %v10544_v40, %v6296_v20  ;;  %vm6314_vm12 = vweird.f32 %v10548_v58  ;;  %v6325_v33 = vsub.f32 1.0, %v6324_v10  ;;  %v3942_v4 = vadd.f32 %v3941_v46, %v12698_v54  ;;  %v10554_v29 = vpop.eup %10553  ;;  %v3854_v46 = vpop.f32.mrf.mxu1  ;;  %v11312_v10 = vld [vmem:[%s16980_s12] ss:$0 sm:$0xff] }
 0x5d8   : > { %v6226_v27 = vsel %vm6225_vm10, %v10542_v32, %v6222_v43  ;;  %v6311_v28 = vmul.f32 %v10548_v58, %v6310_v53  ;;  %v6409_v12 = vand.u32 2147483648, %v13404_v51  ;;  %vm6329_vm13 = vweird.f32 %v13411_v9  ;;  %vm6315_vm1 = vmor %vm6313_vm4, %vm6314_vm12 }
 0x5d9   : > { %v6231_v56 = vsel %vm13390_vm2, %v6230_v37, %v6226_v27  ;;  %v6301_v30 = vsel %vm6300_vm11, %v10544_v40, %v6297_v23  ;;  %v10556_v1 = vpop.eup %10555  ;;  %v6326_v22 = vmul.f32 %v13411_v9, %v6325_v33  ;;  %v13447_v24 = vadd.f32 1.0, %v10552_v11  ;;  %vm6330_vm2 = vmor %vm6328_vm6, %vm6329_vm13  ;;  %v3943_v27 = vpop.f32.mrf.mxu2  ;;  %v9710_v40 = vld [vmem:[%s16981_s13 + $0x2c] sm:$0xf0] }
 0x5da   : > { %8668 = vst [vmem:[%s12764_s20 + $0x208] sm:$0xff] %v6231_v56  ;;  %v6306_v32 = vsel %vm13397_vm3, %v6305_v35, %v6301_v30  ;;  %v6312_v0 = vadd.f32 %v10548_v58, %v6311_v28  ;;  %v6399_v50 = vmul.f32 %v10556_v1, %v13404_v51  ;;  %vm6403_vm14 = vweird.f32 %v13404_v51  ;;  %v13490_v23 = vpop.f32.mrf.mxu3  ;;  %v9708_v30 = vld [vmem:[%s16981_s13 + $0x10] sm:$0xf] }
 0x5db   : > { %8673 = vst [vmem:[%s12764_s20 + $0x230] sm:$0xff] %v6306_v32  ;;  %vm13452_vm15 = vcmp.eq.f32.partialorder %v6407_v5, 8.507059e+37  ;;  %v10558_v37 = vpop.eup %10557  ;;  %v6327_v35 = vadd.f32 %v13411_v9, %v6326_v22  ;;  %v6422_v18 = vand.u32 2147483647, %v13407_v48  ;;  %v6424_v49 = vand.u32 2147483648, %v13407_v48 }
 0x5dc   : > { %10561 = vrcp.f32 %v13447_v24  ;;  %v10560_v31 = vpop.eup %10559  ;;  %v6316_v39 = vsel %vm6315_vm1, %v10548_v58, %v6312_v0  ;;  %v6400_v17 = vsub.f32 1.0, %v6399_v50  ;;  %v6410_v34 = vor.u32 1.1754944e-38, %v6409_v12  ;;  %v10325_v58 = vld [vmem:[%s16981_s13 + $0x30] sm:$0xf0]  ;;  %v10324_v22 = vld [vmem:[%s16981_s13 + $0x28] sm:$0xf0] }
 0x5dd   : > { %v13467_v7 = vadd.f32 1.0, %v10554_v29  ;;  %v6321_v36 = vsel %vm13414_vm8, %v6320_v16, %v6316_v39  ;;  %v6331_v20 = vsel %vm6330_vm2, %v13411_v9, %v6327_v35  ;;  %v6414_v42 = vmul.f32 %v10560_v31, %v13407_v48  ;;  %v10321_v50 = vld [vmem:[%s16981_s13 + $0x14] sm:$0xf] }
 0x5de   : > { %vm6418_vm3 = vweird.f32 %v13407_v48  ;;  %8674 = vst [vmem:[%s12764_s20 + $0x238] sm:$0xff] %v6321_v36  ;;  %v6336_v52 = vsel %vm13420_vm9, %v6335_v38, %v6331_v20  ;;  %v6401_v16 = vmul.f32 %v10556_v1, %v6400_v17  ;;  %vm6404_vm4 = vweird.f32 %v10556_v1 }
 0x5df   : > { %v6437_v9 = vand.u32 2147483647, %v13447_v24  ;;  %8675 = vst [vmem:[%s12764_s20 + $0x240] sm:$0xff] %v6336_v52  ;;  %v6415_v43 = vsub.f32 1.0, %v6414_v42  ;;  %vm13485_vm5 = vcmp.eq.f32.partialorder %v6422_v18, 8.507059e+37  ;;  %v6425_v11 = vor.u32 1.1754944e-38, %v6424_v49  ;;  %vm6405_vm6 = vmor %vm6403_vm14, %vm6404_vm4  ;;  %v3857_v52 = vpop.f32.mrf.mxu1 }
 0x5e0   : > { %10563 = vrcp.f32 %v13467_v7  ;;  %v6402_v53 = vadd.f32 %v10556_v1, %v6401_v16  ;;  %v6439_v5 = vand.u32 2147483648, %v13447_v24  ;;  %v13493_v15 = vadd.f32 1.0, %v10558_v37 }
 0x5e1   : > { %v9717_v38 = vor.u32 %v10325_v58, %v9716_v61  ;;  %v6416_v29 = vmul.f32 %v10560_v31, %v6415_v43  ;;  %vm6419_vm7 = vweird.f32 %v10560_v31  ;;  %vm6433_vm8 = vweird.f32 %v13447_v24  ;;  %v3768_v61 = vpop.f32.mrf.mxu0 }
 0x5e2   : > { %v13495_v33 = vpop.eup %10561  ;;  %v10000_v56 = vmul.f32 -1.442695, %v3942_v4  ;;  %v6406_v28 = vsel %vm6405_vm6, %v10556_v1, %v6402_v53  ;;  %vm13505_vm9 = vcmp.eq.f32.partialorder %v6437_v9, 8.507059e+37  ;;  %v6512_v51 = vand.u32 2147483647, %v13467_v7  ;;  %vm6420_vm10 = vmor %vm6418_vm3, %vm6419_vm7 }
 0x5e3   : > { %v6429_v12 = vmul.f32 %v13495_v33, %v13447_v24  ;;  %4265 = vmatpush.bf16.msra.mxu2 %v9717_v38  ;;  %v6411_v4 = vsel %vm13452_vm15, %v6410_v34, %v6406_v28  ;;  %v6417_v0 = vadd.f32 %v10560_v31, %v6416_v29  ;;  %v6514_v1 = vand.u32 2147483648, %v13467_v7  ;;  %v13552_v38 = vpop.f32.mrf.mxu3  ;;  %v3946_v28 = vpop.f32.mrf.mxu2 }
 0x5e4   : > { %10565 = vrcp.f32 %v13493_v15  ;;  %8680 = vst [vmem:[%s12764_s20 + $0x268] sm:$0xff] %v6411_v4  ;;  %v6440_v35 = vor.u32 1.1754944e-38, %v6439_v5  ;;  %vm6508_vm11 = vweird.f32 %v13467_v7  ;;  %v3766_v39 = vadd.f32 %v3765_v14, %v12680_v59 }
 0x5e5   : > { %v6430_v37 = vsub.f32 1.0, %v6429_v12  ;;  %10567 = vpow2.f32 %v10000_v56  ;;  %v6421_v49 = vsel %vm6420_vm10, %v10560_v31, %v6417_v0  ;;  %v3855_v17 = vadd.f32 %v3854_v46, %v12682_v8 }
 0x5e6   : > { %v10564_v18 = vpop.eup %10563  ;;  %v9709_v34 = vor.u32 %v10324_v22, %v9708_v30  ;;  %v6426_v48 = vsel %vm13485_vm5, %v6425_v11, %v6421_v49  ;;  %vm6434_vm12 = vweird.f32 %v13495_v33  ;;  %vm13535_vm13 = vcmp.eq.f32.partialorder %v6512_v51, 8.507059e+37 }
 0x5e7   : > { %v6431_v36 = vmul.f32 %v13495_v33, %v6430_v37  ;;  %v6504_v20 = vmul.f32 %v10564_v18, %v13467_v7  ;;  %8681 = vst [vmem:[%s12764_s20 + $0x270] sm:$0xff] %v6426_v48  ;;  %v6515_v31 = vor.u32 1.1754944e-38, %v6514_v1  ;;  %v3338_v14 = vmax.f32 %v13425_v47, 0.0  ;;  %vm6435_vm14 = vmor %vm6433_vm8, %vm6434_vm12  ;;  %4059 = vmatmul.bf16.gmra.mxu3 %v13157_v62 }
 0x5e8   : > { %v10005_v58 = vmul.f32 -1.442695, %v3766_v39  ;;  %4087 = vmatpush.bf16.msra.mxu0 %v9709_v34  ;;  %v9713_v46 = vor.u32 %v10321_v50, %v9710_v40  ;;  %v10006_v43 = vmul.f32 -1.442695, %v3855_v17  ;;  %v3306_v11 = vadd.f32 %v11312_v10, %v13427_v44 }
 0x5e9   : > { %v6432_v16 = vadd.f32 %v13495_v33, %v6431_v36  ;;  %v6505_v9 = vsub.f32 1.0, %v6504_v20  ;;  %vm6509_vm15 = vweird.f32 %v10564_v18  ;;  %v3944_v47 = vadd.f32 %v3943_v27, %v12698_v54  ;;  %v11313_v20 = vld [vmem:[%s16982_s14] sm:$0x7f] }
 0x5ea   : > { %v10566_v53 = vpop.eup %10565  ;;  %10569 = vpow2.f32 %v10005_v58  ;;  %4176 = vmatpush.bf16.msra.mxu1 %v9713_v46  ;;  %v3769_v5 = vadd.f32 %v3768_v61, %v12680_v59  ;;  %v3858_v24 = vadd.f32 %v3857_v52, %v12682_v8  ;;  %v3339_v27 = vmax.f32 %v3306_v11, 0.0  ;;  %vm6510_vm1 = vmor %vm6508_vm11, %vm6509_vm15  ;;  %v3770_v58 = vpop.f32.mrf.mxu0 }
 0x5eb   : > { %v10568_v29 = vpop.eup %10567  ;;  %v6436_v44 = vsel %vm6435_vm14, %v13495_v33, %v6432_v16  ;;  %v6506_v56 = vmul.f32 %v10564_v18, %v6505_v9  ;;  %v6519_v30 = vmul.f32 %v10566_v53, %v13493_v15  ;;  %10571 = vpow2.f32 %v10006_v43  ;;  %v3859_v9 = vpop.f32.mrf.mxu1 }
 0x5ec   : > { %v6441_v12 = vsel %vm13505_vm9, %v6440_v35, %v6436_v44  ;;  %v13560_v51 = vadd.f32 1.0, %v10568_v29  ;;  %v10007_v0 = vmul.f32 -1.442695, %v3944_v47  ;;  %v10012_v1 = vmul.f32 -1.442695, %v3769_v5  ;;  %v3948_v43 = vpop.f32.mrf.mxu2 }
 0x5ed   : > { %8682 = vst [vmem:[%s12764_s20 + $0x278] sm:$0xff] %v6441_v12  ;;  %v6507_v22 = vadd.f32 %v10564_v18, %v6506_v56  ;;  %v6520_v4 = vsub.f32 1.0, %v6519_v30  ;;  %vm6524_vm2 = vweird.f32 %v10566_v53  ;;  %v6527_v33 = vand.u32 2147483647, %v13493_v15 }
 0x5ee   : > { %v6529_v32 = vand.u32 2147483648, %v13493_v15  ;;  %10573 = vrcp.f32 %v13560_v51  ;;  %v13569_v35 = vpack.c.bf16 %v3339_v27, %v3338_v14  ;;  %vm6523_vm3 = vweird.f32 %v13493_v15 }
 0x5ef   : > { %v6511_v50 = vsel %vm6510_vm1, %v10564_v18, %v6507_v22  ;;  %v6521_v37 = vmul.f32 %v10566_v53, %v6520_v4  ;;  %10575 = vpow2.f32 %v10007_v0  ;;  %v6542_v39 = vand.u32 2147483647, %v13560_v51  ;;  %vm6525_vm4 = vmor %vm6523_vm3, %vm6524_vm2 }
 0x5f0   : > { %v10570_v40 = vpop.eup %10569  ;;  %v6516_v49 = vsel %vm13535_vm13, %v6515_v31, %v6511_v50  ;;  %10577 = vpow2.f32 %v10012_v1  ;;  %v10013_v34 = vmul.f32 -1.442695, %v3858_v24  ;;  %3807 = vmatmul.bf16.gmra.mxu0 %v13569_v35  ;;  %3896 = vmatmul.bf16.gmra.mxu1 %v13569_v35  ;;  %v6530_v48 = vor.u32 1.1754944e-38, %v6529_v32 }
 0x5f1   : > { %8687 = vst [vmem:[%s12764_s20 + $0x2a0] sm:$0xff] %v6516_v49  ;;  %v6522_v7 = vadd.f32 %v10566_v53, %v6521_v37  ;;  %v13576_v17 = vadd.f32 1.0, %v10570_v40  ;;  %v10572_v18 = vpop.eup %10571  ;;  %v6544_v36 = vand.u32 2147483648, %v13560_v51  ;;  %3985 = vmatmul.bf16.gmra.mxu2 %v13569_v35  ;;  %vm6528_vm5 = vcmp.eq.f32.partialorder %v6527_v33, 8.507059e+37 }
 0x5f2   : > { %v13587_v42 = vperm.slane %v11313_v20, 3  ;;  %v13589_v14 = vadd.f32 1.0, %v10572_v18  ;;  %vm6538_vm6 = vweird.f32 %v13560_v51  ;;  %vm13594_vm7 = vcmp.eq.f32.partialorder %v6542_v39, 8.507059e+37 }
 0x5f3   : > { %v6526_v15 = vsel %vm6525_vm4, %v10566_v53, %v6522_v7  ;;  %10579 = vrcp.f32 %v13576_v17  ;;  %v6545_v11 = vor.u32 1.1754944e-38, %v6544_v36  ;;  %v6617_v53 = vand.u32 2147483647, %v13576_v17 }
 0x5f4   : > { %v10574_v61 = vpop.eup %10573  ;;  %v6531_v31 = vsel %vm6528_vm5, %v6530_v48, %v6526_v15  ;;  %10581 = vpow2.f32 %v10013_v34  ;;  %v6619_v47 = vand.u32 2147483648, %v13576_v17  ;;  %v4001_v56 = vadd.f32 %v13490_v23, %v13587_v42 }
 0x5f5   : > { %v10576_v46 = vpop.eup %10575  ;;  %8688 = vst [vmem:[%s12764_s20 + $0x2a8] sm:$0xff] %v6531_v31  ;;  %v6534_v52 = vmul.f32 %v10574_v61, %v13560_v51  ;;  %10583 = vrcp.f32 %v13589_v14  ;;  %v3947_v30 = vadd.f32 %v3946_v28, %v12698_v54  ;;  %v3771_v24 = vadd.f32 %v3770_v58, %v12680_v59 }
 0x5f6   : > { %v10578_v10 = vpop.eup %10577  ;;  %v13601_v29 = vadd.f32 1.0, %v10576_v46  ;;  %v3860_v12 = vadd.f32 %v3859_v9, %v12682_v8  ;;  %v13611_v27 = vadd.f32 %v3948_v43, %v12698_v54  ;;  %vm6539_vm8 = vweird.f32 %v10574_v61  ;;  %v13645_v9 = vpop.f32.mrf.mxu3 }
 0x5f7   : > { %v6535_v5 = vsub.f32 1.0, %v6534_v52  ;;  %v13603_v44 = vadd.f32 1.0, %v10578_v10  ;;  %v6632_v0 = vand.u32 2147483647, %v13589_v14  ;;  %vm6613_vm9 = vweird.f32 %v13576_v17  ;;  %vm6540_vm11 = vmor %vm6538_vm6, %vm6539_vm8 }
 0x5f8   : > { %10585 = vrcp.f32 %v13601_v29  ;;  %vm13617_vm10 = vcmp.eq.f32.partialorder %v6617_v53, 8.507059e+37  ;;  %v6620_v28 = vor.u32 1.1754944e-38, %v6619_v47  ;;  %v6634_v50 = vand.u32 2147483648, %v13589_v14 }
 0x5f9   : > { %v10580_v22 = vpop.eup %10579  ;;  %v6536_v4 = vmul.f32 %v10574_v61, %v6535_v5  ;;  %10587 = vrcp.f32 %v13603_v44  ;;  %v9917_v37 = vmul.f32 -1.442695, %v4001_v56  ;;  %vm6628_vm12 = vweird.f32 %v13589_v14 }
 0x5fa   : > { %v6609_v1 = vmul.f32 %v10580_v22, %v13576_v17  ;;  %v10582_v33 = vpop.eup %10581  ;;  %v10014_v7 = vmul.f32 -1.442695, %v3947_v30  ;;  %v4003_v39 = vadd.f32 %v13552_v38, %v13587_v42  ;;  %vm6614_vm13 = vweird.f32 %v10580_v22 }
 0x5fb   : > { %v6537_v32 = vadd.f32 %v10574_v61, %v6536_v4  ;;  %v10584_v40 = vpop.eup %10583  ;;  %vm13629_vm14 = vcmp.eq.f32.partialorder %v6632_v0, 8.507059e+37  ;;  %v6647_v36 = vand.u32 2147483647, %v13601_v29  ;;  %v6649_v20 = vand.u32 2147483648, %v13601_v29  ;;  %vm6615_vm2 = vmor %vm6613_vm9, %vm6614_vm13 }
 0x5fc   : > { %v6610_v49 = vsub.f32 1.0, %v6609_v1  ;;  %v6624_v18 = vmul.f32 %v10584_v40, %v13589_v14  ;;  %v13637_v31 = vadd.f32 1.0, %v10582_v33  ;;  %vm6643_vm15 = vweird.f32 %v13601_v29  ;;  %v3773_v33 = vpop.f32.mrf.mxu0 }
 0x5fd   : > { %v6541_v34 = vsel %vm6540_vm11, %v10574_v61, %v6537_v32  ;;  %v6635_v61 = vor.u32 1.1754944e-38, %v6634_v50  ;;  %10589 = vpow2.f32 %v9917_v37  ;;  %vm6718_vm1 = vweird.f32 %v13603_v44 }
 0x5fe   : > { %v6546_v51 = vsel %vm13594_vm7, %v6545_v11, %v6541_v34  ;;  %v6611_v15 = vmul.f32 %v10580_v22, %v6610_v49  ;;  %v10586_v58 = vpop.eup %10585  ;;  %v6625_v38 = vsub.f32 1.0, %v6624_v18  ;;  %v6722_v16 = vand.u32 2147483647, %v13603_v44 }
 0x5ff   : > { %8689 = vst [vmem:[%s12764_s20 + $0x2b0] sm:$0xff] %v6546_v51  ;;  %v6639_v52 = vmul.f32 %v10586_v58, %v13601_v29  ;;  %10591 = vrcp.f32 %v13637_v31  ;;  %v10588_v43 = vpop.eup %10587  ;;  %vm6629_vm3 = vweird.f32 %v10584_v40  ;;  %vm13650_vm4 = vcmp.eq.f32.partialorder %v6647_v36, 8.507059e+37 }
 0x600   : > { %v6612_v46 = vadd.f32 %v10580_v22, %v6611_v15  ;;  %v6626_v10 = vmul.f32 %v10584_v40, %v6625_v38  ;;  %v10019_v53 = vmul.f32 -1.442695, %v3771_v24  ;;  %4088 = vmatmul.bf16.vlgmr.msra.gmra.mxu0 %v12505_v13  ;;  %4177 = vmatmul.bf16.vlgmr.msra.gmra.mxu1 %v12505_v13  ;;  %v6650_v56 = vor.u32 1.1754944e-38, %v6649_v20  ;;  %vm6630_vm5 = vmor %vm6628_vm12, %vm6629_vm3 }
 0x601   : > { %v6640_v5 = vsub.f32 1.0, %v6639_v52  ;;  %v6714_v30 = vmul.f32 %v10588_v43, %v13603_v44  ;;  %4266 = vmatmul.bf16.vlgmr.msra.gmra.mxu2 %v12505_v13  ;;  %v6724_v0 = vand.u32 2147483648, %v13603_v44  ;;  %v10020_v1 = vmul.f32 -1.442695, %v3860_v12 }
 0x602   : > { %v6616_v47 = vsel %vm6615_vm2, %v10580_v22, %v6612_v46  ;;  %v6627_v4 = vadd.f32 %v10584_v40, %v6626_v10  ;;  %vm6644_vm6 = vweird.f32 %v10586_v58  ;;  %10593 = vpow2.f32 %v10014_v7 }
 0x603   : > { %v6621_v17 = vsel %vm13617_vm10, %v6620_v28, %v6616_v47  ;;  %v6641_v24 = vmul.f32 %v10586_v58, %v6640_v5  ;;  %v6715_v22 = vsub.f32 1.0, %v6714_v30  ;;  %v10590_v32 = vpop.eup %10589  ;;  %vm6719_vm7 = vweird.f32 %v10588_v43  ;;  %vm6645_vm8 = vmor %vm6643_vm15, %vm6644_vm6  ;;  %v3951_v30 = vpop.f32.mrf.mxu2 }
 0x604   : > { %8694 = vst [vmem:[%s12764_s20 + $0x2d8] sm:$0xff] %v6621_v17  ;;  %v6631_v13 = vsel %vm6630_vm5, %v10584_v40, %v6627_v4  ;;  %10595 = vpow2.f32 %v10019_v53  ;;  %v9924_v23 = vmul.f32 -1.442695, %v4003_v39  ;;  %v13667_v49 = vadd.f32 1.0, %v10590_v32  ;;  %v3862_v39 = vpop.f32.mrf.mxu1  ;;  %vm6720_vm9 = vmor %vm6718_vm1, %vm6719_vm7 }
 0x605   : > { %v10592_v28 = vpop.eup %10591  ;;  %v6636_v12 = vsel %vm13629_vm14, %v6635_v61, %v6631_v13  ;;  %v6642_v50 = vadd.f32 %v10586_v58, %v6641_v24  ;;  %v6716_v37 = vmul.f32 %v10588_v43, %v6715_v22  ;;  %v6725_v14 = vor.u32 1.1754944e-38, %v6724_v0  ;;  %v13686_v61 = vpop.f32.mrf.mxu3  ;;  %4064 = vmatmul.bf16.gmra.mxu3 %v13258_v25 }
 0x606   : > { %8695 = vst [vmem:[%s12764_s20 + $0x2e0] sm:$0xff] %v6636_v12  ;;  %v6729_v40 = vmul.f32 %v10592_v28, %v13637_v31  ;;  %10597 = vpow2.f32 %v10020_v1  ;;  %v3774_v7 = vadd.f32 %v3773_v33, %v12680_v59  ;;  %v6737_v48 = vand.u32 2147483647, %v13637_v31 }
 0x607   : > { %v6646_v34 = vsel %vm6645_vm8, %v10586_v58, %v6642_v50  ;;  %v6717_v18 = vadd.f32 %v10588_v43, %v6716_v37  ;;  %10599 = vrcp.f32 %v13667_v49  ;;  %v6739_v51 = vand.u32 2147483648, %v13637_v31 }
 0x608   : > { %v6651_v36 = vsel %vm13650_vm4, %v6650_v56, %v6646_v34  ;;  %v6730_v29 = vsub.f32 1.0, %v6729_v40  ;;  %v10021_v15 = vmul.f32 -1.442695, %v13611_v27  ;;  %v10594_v20 = vpop.eup %10593  ;;  %vm6723_vm10 = vcmp.eq.f32.partialorder %v6722_v16, 8.507059e+37 }
 0x609   : > { %8696 = vst [vmem:[%s12764_s20 + $0x2e8] sm:$0xff] %v6651_v36  ;;  %v6721_v58 = vsel %vm6720_vm9, %v10588_v43, %v6717_v18  ;;  %10601 = vpow2.f32 %v9924_v23  ;;  %v3863_v38 = vadd.f32 %v3862_v39, %v12682_v8  ;;  %vm6734_vm11 = vweird.f32 %v10592_v28 }
 0x60a   : > { %v10596_v46 = vpop.eup %10595  ;;  %v6726_v44 = vsel %vm6723_vm10, %v6725_v14, %v6721_v58  ;;  %v6731_v52 = vmul.f32 %v10592_v28, %v6730_v29  ;;  %v10026_v10 = vmul.f32 -1.442695, %v3774_v7  ;;  %vm6733_vm12 = vweird.f32 %v13637_v31  ;;  %v3775_v7 = vpop.f32.mrf.mxu0 }
 0x60b   : > { %8701 = vst [vmem:[%s12764_s20 + $0x310] sm:$0xff] %v6726_v44  ;;  %v5297_v27 = vand.u32 2147483647, %v13667_v49  ;;  %v13692_v11 = vadd.f32 1.0, %v10594_v20  ;;  %v13694_v16 = vadd.f32 1.0, %v10596_v46  ;;  %vm6738_vm13 = vcmp.eq.f32.partialorder %v6737_v48, 8.507059e+37  ;;  %vm6735_vm14 = vmor %vm6733_vm12, %vm6734_vm11 }
 0x60c   : > { %v10598_v43 = vpop.eup %10597  ;;  %v6732_v53 = vadd.f32 %v10592_v28, %v6731_v52  ;;  %v6740_v47 = vor.u32 1.1754944e-38, %v6739_v51  ;;  %10603 = vpow2.f32 %v10021_v15  ;;  %vm5293_vm15 = vweird.f32 %v13667_v49 }
 0x60d   : > { %v10600_v5 = vpop.eup %10599  ;;  %v5299_v56 = vand.u32 2147483648, %v13667_v49  ;;  %10605 = vrcp.f32 %v13692_v11  ;;  %v10027_v31 = vmul.f32 -1.442695, %v3863_v38  ;;  %v4006_v0 = vadd.f32 %v13645_v9, %v13587_v42 }
 0x60e   : > { %v6736_v17 = vsel %vm6735_vm14, %v10592_v28, %v6732_v53  ;;  %v5289_v4 = vmul.f32 %v10600_v5, %v13667_v49  ;;  %10607 = vrcp.f32 %v13694_v16  ;;  %vm13703_vm1 = vcmp.eq.f32.partialorder %v5297_v27, 8.507059e+37 }
 0x60f   : > { %v10602_v1 = vpop.eup %10601  ;;  %v6741_v24 = vsel %vm6738_vm13, %v6740_v47, %v6736_v17  ;;  %v6754_v33 = vand.u32 2147483648, %v13692_v11  ;;  %10609 = vpow2.f32 %v10026_v10  ;;  %v6752_v13 = vand.u32 2147483647, %v13692_v11 }
 0x610   : > { %8702 = vst [vmem:[%s12764_s20 + $0x318] sm:$0xff] %v6741_v24  ;;  %v5290_v32 = vsub.f32 1.0, %v5289_v4  ;;  %v13710_v23 = vadd.f32 1.0, %v10598_v43  ;;  %v3952_v28 = vadd.f32 %v3951_v30, %v12698_v54  ;;  %4093 = vmatmul.bf16.gmra.mxu0 %v12539_v45  ;;  %4182 = vmatmul.bf16.gmra.mxu1 %v12539_v45  ;;  %v5300_v9 = vor.u32 1.1754944e-38, %v5299_v56 }
 0x611   : > { %v6827_v12 = vand.u32 2147483647, %v13694_v16  ;;  %v13716_v50 = vadd.f32 1.0, %v10602_v1  ;;  %10611 = vpow2.f32 %v10027_v31  ;;  %4271 = vmatmul.bf16.gmra.mxu2 %v12539_v45  ;;  %vm5294_vm2 = vweird.f32 %v10600_v5 }
 0x612   : > { %v10604_v37 = vpop.eup %10603  ;;  %v5291_v14 = vmul.f32 %v10600_v5, %v5290_v32  ;;  %v6829_v40 = vand.u32 2147483648, %v13694_v16  ;;  %10613 = vrcp.f32 %v13710_v23  ;;  %vm6748_vm3 = vweird.f32 %v13692_v11  ;;  %vm5295_vm6 = vmor %vm5293_vm15, %vm5294_vm2 }
 0x613   : > { %v10606_v39 = vpop.eup %10605  ;;  %v6755_v34 = vor.u32 1.1754944e-38, %v6754_v33  ;;  %10615 = vrcp.f32 %v13716_v50  ;;  %v13723_v18 = vmul.f32 -1.442695, %v4006_v0  ;;  %vm13726_vm4 = vcmp.eq.f32.partialorder %v6752_v13, 8.507059e+37 }
 0x614   : > { %v10608_v48 = vpop.eup %10607  ;;  %v5292_v36 = vadd.f32 %v10600_v5, %v5291_v14  ;;  %v6744_v45 = vmul.f32 %v10606_v39, %v13692_v11  ;;  %vm6823_vm5 = vweird.f32 %v13694_v16  ;;  %v13731_v51 = vmul.f32 -1.442695, %v3952_v28 }
 0x615   : > { %v10610_v15 = vpop.eup %10609  ;;  %v6819_v20 = vmul.f32 %v10608_v48, %v13694_v16  ;;  %vm13737_vm7 = vcmp.eq.f32.partialorder %v6827_v12, 8.507059e+37  ;;  %v6842_v38 = vand.u32 2147483647, %v13710_v23  ;;  %v13743_v46 = vadd.f32 %v3775_v7, %v12680_v59 }
 0x616   : > { %v5296_v44 = vsel %vm5295_vm6, %v10600_v5, %v5292_v36  ;;  %v6745_v52 = vsub.f32 1.0, %v6744_v45  ;;  %v6830_v10 = vor.u32 1.1754944e-38, %v6829_v40  ;;  %v6844_v27 = vand.u32 2147483648, %v13710_v23 }
 0x617   : > { %v10612_v43 = vpop.eup %10611  ;;  %v5301_v49 = vsel %vm13703_vm1, %v5300_v9, %v5296_v44  ;;  %vm6749_vm8 = vweird.f32 %v10606_v39  ;;  %v6820_v53 = vsub.f32 1.0, %v6819_v20  ;;  %vm6838_vm9 = vweird.f32 %v13710_v23 }
 0x618   : > { %v13749_v47 = vadd.f32 1.0, %v10604_v37  ;;  %v10614_v56 = vpop.eup %10613  ;;  %8606 = vst [vmem:[%s12764_s20 + $0x18] sm:$0xff] %v5301_v49  ;;  %v6746_v31 = vmul.f32 %v10606_v39, %v6745_v52  ;;  %vm6824_vm10 = vweird.f32 %v10608_v48  ;;  %vm5398_vm11 = vweird.f32 %v13716_v50  ;;  %vm6750_vm13 = vmor %vm6748_vm3, %vm6749_vm8 }
 0x619   : > { %v13753_v5 = vadd.f32 1.0, %v10610_v15  ;;  %v10616_v30 = vpop.eup %10615  ;;  %v6821_v17 = vmul.f32 %v10608_v48, %v6820_v53  ;;  %v6834_v4 = vmul.f32 %v10614_v56, %v13710_v23  ;;  %vm13756_vm12 = vcmp.eq.f32.partialorder %v6842_v38, 8.507059e+37  ;;  %vm6825_vm15 = vmor %vm6823_vm5, %vm6824_vm10  ;;  %v13806_v53 = vpop.f32.mrf.mxu3 }
 0x61a   : > { %10617 = vrcp.f32 %v13749_v47  ;;  %v6747_v1 = vadd.f32 %v10606_v39, %v6746_v31  ;;  %v5394_v24 = vmul.f32 %v10616_v30, %v13716_v50  ;;  %v5402_v22 = vand.u32 2147483647, %v13716_v50 }
 0x61b   : > { %v5404_v33 = vand.u32 2147483648, %v13716_v50  ;;  %v6822_v32 = vadd.f32 %v10608_v48, %v6821_v17  ;;  %v6835_v13 = vsub.f32 1.0, %v6834_v4  ;;  %vm6839_vm14 = vweird.f32 %v10614_v56  ;;  %v3953_v50 = vpop.f32.mrf.mxu2 }
 0x61c   : > { %v13767_v28 = vadd.f32 1.0, %v10612_v43  ;;  %v6751_v9 = vsel %vm6750_vm13, %v10606_v39, %v6747_v1  ;;  %v5395_v12 = vsub.f32 1.0, %v5394_v24  ;;  %v6857_v37 = vand.u32 2147483647, %v13749_v47  ;;  %vm6840_vm3 = vmor %vm6838_vm9, %vm6839_vm14 }
 0x61d   : > { %10619 = vrcp.f32 %v13753_v5  ;;  %v6756_v11 = vsel %vm13726_vm4, %v6755_v34, %v6751_v9  ;;  %v6826_v14 = vsel %vm6825_vm15, %v10608_v48, %v6822_v32  ;;  %v6836_v40 = vmul.f32 %v10614_v56, %v6835_v13  ;;  %v3864_v34 = vpop.f32.mrf.mxu1 }
 0x61e   : > { %v6859_v7 = vand.u32 2147483648, %v13749_v47  ;;  %8703 = vst [vmem:[%s12764_s20 + $0x320] sm:$0xff] %v6756_v11  ;;  %v6831_v39 = vsel %vm13737_vm7, %v6830_v10, %v6826_v14  ;;  %v6845_v36 = vor.u32 1.1754944e-38, %v6844_v27  ;;  %v5396_v45 = vmul.f32 %v10616_v30, %v5395_v12 }
 0x61f   : > { %vm5399_vm1 = vweird.f32 %v10616_v30  ;;  %8708 = vst [vmem:[%s12764_s20 + $0x348] sm:$0xff] %v6831_v39  ;;  %v6837_v15 = vadd.f32 %v10614_v56, %v6836_v40  ;;  %vm13781_vm2 = vcmp.eq.f32.partialorder %v5402_v22, 8.507059e+37  ;;  %v5405_v29 = vor.u32 1.1754944e-38, %v5404_v33  ;;  %v3778_v33 = vpop.f32.mrf.mxu0 }
 0x620   : > { %v10618_v16 = vpop.eup %10617  ;;  %10621 = vrcp.f32 %v13767_v28  ;;  %v5397_v48 = vadd.f32 %v10616_v30, %v5396_v45  ;;  %vm6853_vm4 = vweird.f32 %v13749_v47  ;;  %v6934_v38 = vand.u32 2147483648, %v13753_v5  ;;  %4098 = vmatmul.bf16.gmra.mxu0 %v12549_v57  ;;  %4187 = vmatmul.bf16.gmra.mxu1 %v12549_v57  ;;  %vm5400_vm5 = vmor %vm5398_vm11, %vm5399_vm1 }
 0x621   : > { %v6849_v58 = vmul.f32 %v10618_v16, %v13749_v47  ;;  %v6841_v44 = vsel %vm6840_vm3, %v10614_v56, %v6837_v15  ;;  %vm13797_vm6 = vcmp.eq.f32.partialorder %v6857_v37, 8.507059e+37  ;;  %v6860_v52 = vor.u32 1.1754944e-38, %v6859_v7  ;;  %4276 = vmatmul.bf16.gmra.mxu2 %v12549_v57 }
 0x622   : > { %vm6928_vm7 = vweird.f32 %v13753_v5  ;;  %v6846_v27 = vsel %vm13756_vm12, %v6845_v36, %v6841_v44  ;;  %v5401_v43 = vsel %vm5400_vm5, %v10616_v30, %v5397_v48  ;;  %10623 = vpow2.f32 %v13723_v18 }
 0x623   : > { %v10620_v10 = vpop.eup %10619  ;;  %v6850_v49 = vsub.f32 1.0, %v6849_v58  ;;  %8709 = vst [vmem:[%s12764_s20 + $0x350] sm:$0xff] %v6846_v27  ;;  %v5406_v56 = vsel %vm13781_vm2, %v5405_v29, %v5401_v43  ;;  %vm6854_vm8 = vweird.f32 %v10618_v16  ;;  %v6932_v57 = vand.u32 2147483647, %v13753_v5 }
 0x624   : > { %v6924_v31 = vmul.f32 %v10620_v10, %v13753_v5  ;;  %8613 = vst [vmem:[%s12764_s20 + $0x50] sm:$0xff] %v5406_v56  ;;  %v6935_v4 = vor.u32 1.1754944e-38, %v6934_v38  ;;  %10625 = vpow2.f32 %v13731_v51  ;;  %v10033_v30 = vmul.f32 -1.442695, %v13743_v46  ;;  %vm6855_vm9 = vmor %vm6853_vm4, %vm6854_vm8  ;;  %v13840_v38 = vpop.f32.mrf.mxu3  ;;  %4069 = vmatmul.bf16.gmra.mxu3 %v13380_v3 }
 0x625   : > { %v6851_v17 = vmul.f32 %v10618_v16, %v6850_v49  ;;  %v3865_v1 = vadd.f32 %v3864_v34, %v12682_v8  ;;  %v4008_v24 = vadd.f32 %v13686_v61, %v13587_v42  ;;  %v3954_v22 = vadd.f32 %v3953_v50, %v12698_v54  ;;  %v3867_v47 = vpop.f32.mrf.mxu1 }
 0x626   : > { %v10622_v18 = vpop.eup %10621  ;;  %v6925_v0 = vsub.f32 1.0, %v6924_v31  ;;  %v6949_v9 = vand.u32 2147483648, %v13767_v28  ;;  %10627 = vpow2.f32 %v10033_v30  ;;  %vm6929_vm10 = vweird.f32 %v10620_v10 }
 0x627   : > { %v6852_v32 = vadd.f32 %v10618_v16, %v6851_v17  ;;  %v6939_v13 = vmul.f32 %v10622_v18, %v13767_v28  ;;  %v10034_v46 = vmul.f32 -1.442695, %v3865_v1  ;;  %v9938_v12 = vmul.f32 -1.442695, %v4008_v24  ;;  %vm6930_vm11 = vmor %vm6928_vm7, %vm6929_vm10 }
 0x628   : > { %v6926_v51 = vmul.f32 %v10620_v10, %v6925_v0  ;;  %v10624_v37 = vpop.eup %10623  ;;  %v10035_v14 = vmul.f32 -1.442695, %v3954_v22  ;;  %v3779_v40 = vadd.f32 %v3778_v33, %v12680_v59  ;;  %vm6944_vm12 = vweird.f32 %v10622_v18  ;;  %v3780_v22 = vpop.f32.mrf.mxu0 }
 0x629   : > { %v6856_v61 = vsel %vm6855_vm9, %v10618_v16, %v6852_v32  ;;  %v6940_v11 = vsub.f32 1.0, %v6939_v13  ;;  %v13828_v36 = vadd.f32 1.0, %v10624_v37  ;;  %10629 = vpow2.f32 %v10034_v46 }
 0x62a   : > { %v6861_v7 = vsel %vm13797_vm6, %v6860_v52, %v6856_v61  ;;  %v6927_v39 = vadd.f32 %v10620_v10, %v6926_v51  ;;  %v10626_v45 = vpop.eup %10625  ;;  %v6947_v15 = vand.u32 2147483647, %v13767_v28  ;;  %10631 = vpow2.f32 %v9938_v12 }
 0x62b   : > { %8710 = vst [vmem:[%s12764_s20 + $0x358] sm:$0xff] %v6861_v7  ;;  %v6941_v16 = vmul.f32 %v10622_v18, %v6940_v11  ;;  %vm6933_vm13 = vcmp.eq.f32.partialorder %v6932_v57, 8.507059e+37  ;;  %vm6943_vm14 = vweird.f32 %v13767_v28  ;;  %10633 = vrcp.f32 %v13828_v36 }
 0x62c   : > { %v6931_v20 = vsel %vm6930_vm11, %v10620_v10, %v6927_v39  ;;  %v10628_v29 = vpop.eup %10627  ;;  %v13837_v58 = vadd.f32 1.0, %v10626_v45  ;;  %v3868_v5 = vadd.f32 %v3867_v47, %v12682_v8  ;;  %vm6945_vm15 = vmor %vm6943_vm14, %vm6944_vm12  ;;  %v6950_v44 = vor.u32 1.1754944e-38, %v6949_v9 }
 0x62d   : > { %v6936_v34 = vsel %vm6933_vm13, %v6935_v4, %v6931_v20  ;;  %v6942_v48 = vadd.f32 %v10622_v18, %v6941_v16  ;;  %v13845_v23 = vadd.f32 1.0, %v10628_v29  ;;  %10635 = vpow2.f32 %v10035_v14 }
 0x62e   : > { %8715 = vst [vmem:[%s12764_s20 + $0x380] sm:$0xff] %v6936_v34  ;;  %v10040_v28 = vmul.f32 -1.442695, %v3779_v40  ;;  %vm6948_vm1 = vcmp.eq.f32.partialorder %v6947_v15, 8.507059e+37  ;;  %10637 = vrcp.f32 %v13837_v58  ;;  %v5507_v43 = vand.u32 2147483647, %v13828_v36 }
 0x62f   : > { %v6946_v52 = vsel %vm6945_vm15, %v10622_v18, %v6942_v48  ;;  %v10630_v10 = vpop.eup %10629  ;;  %v5509_v49 = vand.u32 2147483648, %v13828_v36  ;;  %10639 = vrcp.f32 %v13845_v23  ;;  %v10041_v31 = vmul.f32 -1.442695, %v3868_v5 }
 0x630   : > { %v6951_v27 = vsel %vm6948_vm1, %v6950_v44, %v6946_v52  ;;  %v10632_v50 = vpop.eup %10631  ;;  %v13852_v56 = vadd.f32 1.0, %v10630_v10  ;;  %4103 = vmatmul.bf16.gmra.mxu0 %v12583_v19  ;;  %4192 = vmatmul.bf16.gmra.mxu1 %v12583_v19  ;;  %v6962_v17 = vand.u32 2147483647, %v13837_v58  ;;  %v6964_v4 = vand.u32 2147483648, %v13837_v58 }
 0x631   : > { %8716 = vst [vmem:[%s12764_s20 + $0x388] sm:$0xff] %v6951_v27  ;;  %v10634_v57 = vpop.eup %10633  ;;  %v13858_v30 = vadd.f32 1.0, %v10632_v50  ;;  %10641 = vpow2.f32 %v10040_v28  ;;  %4281 = vmatmul.bf16.gmra.mxu2 %v12583_v19  ;;  %vm5503_vm2 = vweird.f32 %v13828_v36  ;;  %v7037_v0 = vand.u32 2147483647, %v13845_v23 }
 0x632   : > { %v5499_v18 = vmul.f32 %v10634_v57, %v13828_v36  ;;  %v7039_v1 = vand.u32 2147483648, %v13845_v23  ;;  %vm13865_vm3 = vcmp.eq.f32.partialorder %v5507_v43, 8.507059e+37  ;;  %v5510_v33 = vor.u32 1.1754944e-38, %v5509_v49 }
 0x633   : > { %v10636_v24 = vpop.eup %10635  ;;  %10643 = vrcp.f32 %v13852_v56  ;;  %v4011_v32 = vadd.f32 %v13806_v53, %v13587_v42  ;;  %vm6958_vm4 = vweird.f32 %v13837_v58  ;;  %vm7033_vm5 = vweird.f32 %v13845_v23 }
 0x634   : > { %v10638_v19 = vpop.eup %10637  ;;  %v5500_v13 = vsub.f32 1.0, %v5499_v18  ;;  %10645 = vrcp.f32 %v13858_v30  ;;  %vm5504_vm6 = vweird.f32 %v10634_v57  ;;  %vm13876_vm7 = vcmp.eq.f32.partialorder %v6962_v17, 8.507059e+37 }
 0x635   : > { %v10640_v9 = vpop.eup %10639  ;;  %v6954_v51 = vmul.f32 %v10638_v19, %v13837_v58  ;;  %v6965_v12 = vor.u32 1.1754944e-38, %v6964_v4  ;;  %vm13881_vm8 = vcmp.eq.f32.partialorder %v7037_v0, 8.507059e+37  ;;  %v7040_v11 = vor.u32 1.1754944e-38, %v7039_v1  ;;  %vm5505_vm10 = vmor %vm5503_vm2, %vm5504_vm6 }
 0x636   : > { %v5501_v37 = vmul.f32 %v10634_v57, %v5500_v13  ;;  %v7029_v53 = vmul.f32 %v10640_v9, %v13845_v23  ;;  %v7052_v7 = vand.u32 2147483647, %v13852_v56  ;;  %v7054_v39 = vand.u32 2147483648, %v13852_v56 }
 0x637   : > { %v10642_v14 = vpop.eup %10641  ;;  %v6955_v40 = vsub.f32 1.0, %v6954_v51  ;;  %v13887_v47 = vadd.f32 1.0, %v10636_v24  ;;  %vm7048_vm9 = vweird.f32 %v13852_v56  ;;  %v5612_v15 = vand.u32 2147483647, %v13858_v30 }
 0x638   : > { %v5502_v45 = vadd.f32 %v10634_v57, %v5501_v37  ;;  %v7030_v16 = vsub.f32 1.0, %v7029_v53  ;;  %10647 = vpow2.f32 %v10041_v31  ;;  %vm6959_vm11 = vweird.f32 %v10638_v19 }
 0x639   : > { %v10644_v20 = vpop.eup %10643  ;;  %v6956_v29 = vmul.f32 %v10638_v19, %v6955_v40  ;;  %vm5608_vm12 = vweird.f32 %v13858_v30  ;;  %10649 = vrcp.f32 %v13887_v47  ;;  %v13896_v34 = vadd.f32 1.0, %v10642_v14  ;;  %vm6960_vm15 = vmor %vm6958_vm4, %vm6959_vm11 }
 0x63a   : > { %v10646_v48 = vpop.eup %10645  ;;  %v5506_v5 = vsel %vm5505_vm10, %v10634_v57, %v5502_v45  ;;  %v7031_v44 = vmul.f32 %v10640_v9, %v7030_v16  ;;  %vm7034_vm13 = vweird.f32 %v10640_v9  ;;  %v7044_v28 = vmul.f32 %v10644_v20, %v13852_v56  ;;  %v3956_v57 = vpop.f32.mrf.mxu2 }
 0x63b   : > { %v5511_v52 = vsel %vm13865_vm3, %v5510_v33, %v5506_v5  ;;  %v6957_v36 = vadd.f32 %v10638_v19, %v6956_v29  ;;  %vm13901_vm14 = vcmp.eq.f32.partialorder %v7052_v7, 8.507059e+37  ;;  %v5604_v27 = vmul.f32 %v10646_v48, %v13858_v30  ;;  %vm7035_vm1 = vmor %vm7033_vm5, %vm7034_vm13 }
 0x63c   : > { %8620 = vst [vmem:[%s12764_s20 + $0x88] sm:$0xff] %v5511_v52  ;;  %v7032_v43 = vadd.f32 %v10640_v9, %v7031_v44  ;;  %v7045_v49 = vsub.f32 1.0, %v7044_v28  ;;  %v7055_v50 = vor.u32 1.1754944e-38, %v7054_v39  ;;  %v5614_v31 = vand.u32 2147483648, %v13858_v30 }
 0x63d   : > { %v6961_v17 = vsel %vm6960_vm15, %v10638_v19, %v6957_v36  ;;  %v5605_v4 = vsub.f32 1.0, %v5604_v27  ;;  %10651 = vrcp.f32 %v13896_v34  ;;  %v9945_v18 = vmul.f32 -1.442695, %v4011_v32 }
 0x63e   : > { %v10648_v0 = vpop.eup %10647  ;;  %v6966_v58 = vsel %vm13876_vm7, %v6965_v12, %v6961_v17  ;;  %v7036_v1 = vsel %vm7035_vm1, %v10640_v9, %v7032_v43  ;;  %v7046_v24 = vmul.f32 %v10644_v20, %v7045_v49  ;;  %vm7049_vm2 = vweird.f32 %v10644_v20 }
 0x63f   : > { %v10650_v33 = vpop.eup %10649  ;;  %8717 = vst [vmem:[%s12764_s20 + $0x390] sm:$0xff] %v6966_v58  ;;  %v7041_v19 = vsel %vm13881_vm8, %v7040_v11, %v7036_v1  ;;  %v5606_v23 = vmul.f32 %v10646_v48, %v5605_v4  ;;  %vm5609_vm3 = vweird.f32 %v10646_v48  ;;  %v7067_v13 = vand.u32 2147483647, %v13887_v47  ;;  %vm7050_vm5 = vmor %vm7048_vm9, %vm7049_vm2  ;;  %v3783_v4 = vpop.f32.mrf.mxu0 }
 0x640   : > { %8722 = vst [vmem:[%s12764_s20 + $0x3b8] sm:$0xff] %v7041_v19  ;;  %v7047_v51 = vadd.f32 %v10644_v20, %v7046_v24  ;;  %vm13920_vm4 = vcmp.eq.f32.partialorder %v5612_v15, 8.507059e+37  ;;  %v5615_v46 = vor.u32 1.1754944e-38, %v5614_v31  ;;  %v7059_v9 = vmul.f32 %v10650_v33, %v13887_v47  ;;  %4108 = vmatmul.bf16.gmra.mxu0 %v12605_v55  ;;  %4197 = vmatmul.bf16.gmra.mxu1 %v12605_v55  ;;  %vm5610_vm6 = vmor %vm5608_vm12, %vm5609_vm3  ;;  %v13950_v15 = vpop.f32.mrf.mxu3 }
 0x641   : > { %v5607_v12 = vadd.f32 %v10646_v48, %v5606_v23  ;;  %v7069_v37 = vand.u32 2147483648, %v13887_v47  ;;  %v13931_v53 = vadd.f32 1.0, %v10648_v0  ;;  %10653 = vpow2.f32 %v9945_v18  ;;  %4286 = vmatmul.bf16.gmra.mxu2 %v12605_v55  ;;  %v3869_v55 = vpop.f32.mrf.mxu1 }
 0x642   : > { %v7051_v61 = vsel %vm7050_vm5, %v10644_v20, %v7047_v51  ;;  %v7060_v11 = vsub.f32 1.0, %v7059_v9  ;;  %vm7063_vm7 = vweird.f32 %v13887_v47  ;;  %v3957_v56 = vadd.f32 %v3956_v57, %v12698_v54  ;;  %v3958_v10 = vpop.f32.mrf.mxu2 }
 0x643   : > { %v10652_v14 = vpop.eup %10651  ;;  %v7056_v40 = vsel %vm13901_vm14, %v7055_v50, %v7051_v61  ;;  %v5611_v7 = vsel %vm5610_vm6, %v10646_v48, %v5607_v12  ;;  %vm13941_vm8 = vcmp.eq.f32.partialorder %v7067_v13, 8.507059e+37  ;;  %10655 = vrcp.f32 %v13931_v53 }
 0x644   : > { %8723 = vst [vmem:[%s12764_s20 + $0x3c0] sm:$0xff] %v7056_v40  ;;  %v5616_v30 = vsel %vm13920_vm4, %v5615_v46, %v5611_v7  ;;  %v7061_v45 = vmul.f32 %v10650_v33, %v7060_v11  ;;  %vm7064_vm9 = vweird.f32 %v10650_v33  ;;  %v7134_v16 = vmul.f32 %v10652_v14, %v13896_v34 }
 0x645   : > { %8627 = vst [vmem:[%s12764_s20 + $0xc0] sm:$0xff] %v5616_v30  ;;  %v7070_v20 = vor.u32 1.1754944e-38, %v7069_v37  ;;  %v7142_v29 = vand.u32 2147483647, %v13896_v34  ;;  %v10042_v48 = vmul.f32 -1.442695, %v3957_v56  ;;  %v3781_v5 = vadd.f32 %v3780_v22, %v12680_v59  ;;  %vm7065_vm10 = vmor %vm7063_vm7, %vm7064_vm9 }
 0x646   : > { %v7062_v44 = vadd.f32 %v10650_v33, %v7061_v45  ;;  %v7135_v28 = vsub.f32 1.0, %v7134_v16  ;;  %v3870_v52 = vadd.f32 %v3869_v55, %v12682_v8  ;;  %v4013_v36 = vadd.f32 %v13840_v38, %v13587_v42 }
 0x647   : > { %v10654_v27 = vpop.eup %10653  ;;  %vm7139_vm11 = vweird.f32 %v10652_v14  ;;  %v7144_v43 = vand.u32 2147483648, %v13896_v34  ;;  %10657 = vpow2.f32 %v10042_v48  ;;  %v10047_v49 = vmul.f32 -1.442695, %v3781_v5 }
 0x648   : > { %v7066_v50 = vsel %vm7065_vm10, %v10650_v33, %v7062_v44  ;;  %v7136_v31 = vmul.f32 %v10652_v14, %v7135_v28  ;;  %v13961_v57 = vadd.f32 1.0, %v10654_v27  ;;  %v10048_v17 = vmul.f32 -1.442695, %v3870_v52  ;;  %v13978_v37 = vpop.f32.mrf.mxu3  ;;  %4074 = vmatmul.bf16.gmra.mxu3 %v13569_v35  ;;  %v3785_v44 = vpop.f32.mrf.mxu0 }
 0x649   : > { %v10656_v18 = vpop.eup %10655  ;;  %v7071_v38 = vsel %vm13941_vm8, %v7070_v20, %v7066_v50  ;;  %10659 = vpow2.f32 %v10047_v49  ;;  %v9952_v0 = vmul.f32 -1.442695, %v4013_v36  ;;  %v3959_v47 = vadd.f32 %v3958_v10, %v12698_v54  ;;  %v3872_v16 = vpop.f32.mrf.mxu1 }
 0x64a   : > { %8724 = vst [vmem:[%s12764_s20 + $0x3c8] sm:$0xff] %v7071_v38  ;;  %v7137_v58 = vadd.f32 %v10652_v14, %v7136_v31  ;;  %vm7138_vm12 = vweird.f32 %v13896_v34  ;;  %v7149_v1 = vmul.f32 %v10656_v18, %v13931_v53  ;;  %10661 = vrcp.f32 %v13961_v57  ;;  %v3961_v5 = vpop.f32.mrf.mxu2 }
 0x64b   : > { %vm7140_vm13 = vmor %vm7138_vm12, %vm7139_vm11  ;;  %vm7143_vm14 = vcmp.eq.f32.partialorder %v7142_v29, 8.507059e+37  ;;  %v7145_v24 = vor.u32 1.1754944e-38, %v7144_v43  ;;  %v7157_v22 = vand.u32 2147483647, %v13931_v53  ;;  %10663 = vpow2.f32 %v10048_v17 }
 0x64c   : > { %v7141_v33 = vsel %vm7140_vm13, %v10652_v14, %v7137_v58  ;;  %v7150_v19 = vsub.f32 1.0, %v7149_v1  ;;  %v7159_v23 = vand.u32 2147483648, %v13931_v53  ;;  %v10049_v13 = vmul.f32 -1.442695, %v3959_v47 }
 0x64d   : > { %v10658_v51 = vpop.eup %10657  ;;  %v7146_v32 = vsel %vm7143_vm14, %v7145_v24, %v7141_v33  ;;  %v5717_v34 = vand.u32 2147483647, %v13961_v57  ;;  %10665 = vpow2.f32 %v9952_v0  ;;  %v3784_v46 = vadd.f32 %v3783_v4, %v12680_v59 }
 0x64e   : > { %8729 = vst [vmem:[%s12764_s20 + $0x3f0] sm:$0xff] %v7146_v32  ;;  %v7151_v9 = vmul.f32 %v10656_v18, %v7150_v19  ;;  %vm7154_vm15 = vweird.f32 %v10656_v18  ;;  %v13976_v12 = vadd.f32 1.0, %v10658_v51  ;;  %10667 = vpow2.f32 %v10049_v13 }
 0x64f   : > { %v10660_v61 = vpop.eup %10659  ;;  %vm7153_vm1 = vweird.f32 %v13931_v53  ;;  %vm13982_vm2 = vcmp.eq.f32.partialorder %v7157_v22, 8.507059e+37  ;;  %v10054_v56 = vmul.f32 -1.442695, %v3784_v46  ;;  %v7160_v7 = vor.u32 1.1754944e-38, %v7159_v23 }
 0x650   : > { %v10662_v14 = vpop.eup %10661  ;;  %v7152_v40 = vadd.f32 %v10656_v18, %v7151_v9  ;;  %v5719_v39 = vand.u32 2147483648, %v13961_v57  ;;  %10669 = vrcp.f32 %v13976_v12  ;;  %4113 = vmatmul.bf16.gmra.mxu0 %v12651_v60  ;;  %4202 = vmatmul.bf16.gmra.mxu1 %v12651_v60  ;;  %vm7155_vm3 = vmor %vm7153_vm1, %vm7154_vm15  ;;  %vm5713_vm4 = vweird.f32 %v13961_v57 }
 0x651   : > { %v10664_v55 = vpop.eup %10663  ;;  %v5709_v53 = vmul.f32 %v10662_v14, %v13961_v57  ;;  %vm13993_vm5 = vcmp.eq.f32.partialorder %v5717_v34, 8.507059e+37  ;;  %v13997_v45 = vadd.f32 1.0, %v10660_v61  ;;  %4291 = vmatmul.bf16.gmra.mxu2 %v12651_v60  ;;  %v7172_v29 = vand.u32 2147483647, %v13976_v12 }
 0x652   : > { %v7156_v20 = vsel %vm7155_vm3, %v10656_v18, %v7152_v40  ;;  %v14001_v48 = vadd.f32 1.0, %v10664_v55  ;;  %10671 = vpow2.f32 %v10054_v56  ;;  %v7174_v10 = vand.u32 2147483648, %v13976_v12 }
 0x653   : > { %v10666_v28 = vpop.eup %10665  ;;  %v7161_v52 = vsel %vm13982_vm2, %v7160_v7, %v7156_v20  ;;  %v5710_v36 = vsub.f32 1.0, %v5709_v53  ;;  %10673 = vrcp.f32 %v13997_v45  ;;  %v5720_v60 = vor.u32 1.1754944e-38, %v5719_v39  ;;  %v3874_v39 = vpop.f32.mrf.mxu1 }
 0x654   : > { %v10668_v27 = vpop.eup %10667  ;;  %8730 = vst [vmem:[%s12764_s20 + $0x3f8] sm:$0xff] %v7161_v52  ;;  %10675 = vrcp.f32 %v14001_v48  ;;  %v3873_v43 = vadd.f32 %v3872_v16, %v12682_v8  ;;  %v14012_v49 = vadd.f32 %v13950_v15, %v13587_v42  ;;  %vm5714_vm6 = vweird.f32 %v10662_v14  ;;  %v14057_v16 = vpop.f32.mrf.mxu2 }
 0x655   : > { %v5711_v50 = vmul.f32 %v10662_v14, %v5710_v36  ;;  %v14015_v31 = vadd.f32 %v3961_v5, %v12698_v54  ;;  %v14018_v17 = vadd.f32 %v3785_v44, %v12680_v59  ;;  %vm7168_vm7 = vweird.f32 %v13976_v12  ;;  %vm5715_vm9 = vmor %vm5713_vm4, %vm5714_vm6 }
 0x656   : > { %v10670_v4 = vpop.eup %10669  ;;  %v7247_v18 = vand.u32 2147483647, %v13997_v45  ;;  %v14022_v38 = vadd.f32 1.0, %v10666_v28  ;;  %v14024_v0 = vadd.f32 1.0, %v10668_v27  ;;  %vm14027_vm8 = vcmp.eq.f32.partialorder %v7172_v29, 8.507059e+37 }
 0x657   : > { %v5712_v47 = vadd.f32 %v10662_v14, %v5711_v50  ;;  %v7164_v15 = vmul.f32 %v10670_v4, %v13976_v12  ;;  %v7175_v1 = vor.u32 1.1754944e-38, %v7174_v10  ;;  %v7249_v22 = vand.u32 2147483648, %v13997_v45 }
 0x658   : > { %v10672_v24 = vpop.eup %10671  ;;  %v7262_v33 = vand.u32 2147483647, %v14001_v48  ;;  %v7264_v19 = vand.u32 2147483648, %v14001_v48  ;;  %10677 = vrcp.f32 %v14022_v38  ;;  %vm7243_vm10 = vweird.f32 %v13997_v45 }
 0x659   : > { %v10674_v23 = vpop.eup %10673  ;;  %v5716_v13 = vsel %vm5715_vm9, %v10662_v14, %v5712_v47  ;;  %v7165_v51 = vsub.f32 1.0, %v7164_v15  ;;  %10679 = vrcp.f32 %v14024_v0  ;;  %vm14042_vm11 = vcmp.eq.f32.partialorder %v7247_v18, 8.507059e+37 }
 0x65a   : > { %v10676_v32 = vpop.eup %10675  ;;  %v5721_v57 = vsel %vm13993_vm5, %v5720_v60, %v5716_v13  ;;  %v7239_v34 = vmul.f32 %v10674_v23, %v13997_v45  ;;  %vm7258_vm12 = vweird.f32 %v14001_v48  ;;  %vm7169_vm13 = vweird.f32 %v10670_v4 }
 0x65b   : > { %8634 = vst [vmem:[%s12764_s20 + $0xf8] sm:$0xff] %v5721_v57  ;;  %v7166_v9 = vmul.f32 %v10670_v4, %v7165_v51  ;;  %v7254_v61 = vmul.f32 %v10676_v32, %v14001_v48  ;;  %v5822_v11 = vand.u32 2147483647, %v14022_v38  ;;  %v7250_v14 = vor.u32 1.1754944e-38, %v7249_v22  ;;  %vm7170_vm1 = vmor %vm7168_vm7, %vm7169_vm13  ;;  %v3788_v57 = vpop.f32.mrf.mxu0 }
 0x65c   : > { %v7240_v56 = vsub.f32 1.0, %v7239_v34  ;;  %vm14050_vm14 = vcmp.eq.f32.partialorder %v7262_v33, 8.507059e+37  ;;  %v7265_v7 = vor.u32 1.1754944e-38, %v7264_v19  ;;  %vm5818_vm15 = vweird.f32 %v14022_v38  ;;  %v3877_v34 = vpop.f32.mrf.mxu1 }
 0x65d   : > { %v7167_v55 = vadd.f32 %v10670_v4, %v7166_v9  ;;  %v7255_v53 = vsub.f32 1.0, %v7254_v61  ;;  %v14055_v30 = vadd.f32 1.0, %v10672_v24  ;;  %vm7244_vm2 = vweird.f32 %v10674_v23 }
 0x65e   : > { %v10678_v20 = vpop.eup %10677  ;;  %v7241_v29 = vmul.f32 %v10674_v23, %v7240_v56  ;;  %vm7259_vm3 = vweird.f32 %v10676_v32  ;;  %v5824_v5 = vand.u32 2147483648, %v14022_v38  ;;  %vm14063_vm4 = vcmp.eq.f32.partialorder %v5822_v11, 8.507059e+37  ;;  %vm7245_vm5 = vmor %vm7243_vm10, %vm7244_vm2 }
 0x65f   : > { %v10680_v44 = vpop.eup %10679  ;;  %v7171_v28 = vsel %vm7170_vm1, %v10670_v4, %v7167_v55  ;;  %v7256_v52 = vmul.f32 %v10676_v32, %v7255_v53  ;;  %v5814_v36 = vmul.f32 %v10678_v20, %v14022_v38  ;;  %v10055_v27 = vmul.f32 -1.442695, %v3873_v43  ;;  %vm7260_vm6 = vmor %vm7258_vm12, %vm7259_vm3 }
 0x660   : > { %v7176_v12 = vsel %vm14027_vm8, %v7175_v1, %v7171_v28  ;;  %v7242_v60 = vadd.f32 %v10674_v23, %v7241_v29  ;;  %v7269_v50 = vmul.f32 %v10680_v44, %v14024_v0  ;;  %v7277_v18 = vand.u32 2147483647, %v14024_v0  ;;  %4118 = vmatmul.bf16.gmra.mxu0 %v12661_v21  ;;  %4207 = vmatmul.bf16.gmra.mxu1 %v12661_v21  ;;  %v4020_v28 = vpop.f32.mrf.mxu3 }
 0x661   : > { %8731 = vst [vmem:[%s12764_s20 + $0x400] sm:$0xff] %v7176_v12  ;;  %v7257_v4 = vadd.f32 %v10676_v32, %v7256_v52  ;;  %v5815_v43 = vsub.f32 1.0, %v5814_v36  ;;  %10681 = vrcp.f32 %v14055_v30  ;;  %v9959_v47 = vmul.f32 -1.442695, %v14012_v49  ;;  %4296 = vmatmul.bf16.gmra.mxu2 %v12661_v21 }
 0x662   : > { %v7246_v15 = vsel %vm7245_vm5, %v10674_v23, %v7242_v60  ;;  %vm5819_vm7 = vweird.f32 %v10678_v20  ;;  %v7270_v58 = vsub.f32 1.0, %v7269_v50  ;;  %v7279_v45 = vand.u32 2147483648, %v14024_v0 }
 0x663   : > { %v7251_v1 = vsel %vm14042_vm11, %v7250_v14, %v7246_v15  ;;  %v7261_v24 = vsel %vm7260_vm6, %v10676_v32, %v7257_v4  ;;  %v5816_v22 = vmul.f32 %v10678_v20, %v5815_v43  ;;  %10683 = vpow2.f32 %v10055_v27  ;;  %vm5820_vm9 = vmor %vm5818_vm15, %vm5819_vm7 }
 0x664   : > { %8736 = vst [vmem:[%s12764_s20 + $0x428] sm:$0xff] %v7251_v1  ;;  %v7266_v49 = vsel %vm14050_vm14, %v7265_v7, %v7261_v24  ;;  %v5825_v21 = vor.u32 1.1754944e-38, %v5824_v5  ;;  %v7271_v33 = vmul.f32 %v10680_v44, %v7270_v58  ;;  %vm7274_vm8 = vweird.f32 %v10680_v44  ;;  %v14130_v58 = vpop.f32.mrf.mxu0 }
 0x665   : > { %8737 = vst [vmem:[%s12764_s20 + $0x430] sm:$0xff] %v7266_v49  ;;  %v5817_v48 = vadd.f32 %v10678_v20, %v5816_v22  ;;  %10685 = vpow2.f32 %v9959_v47  ;;  %v10056_v19 = vmul.f32 -1.442695, %v14015_v31  ;;  %v10061_v23 = vmul.f32 -1.442695, %v14018_v17  ;;  %v3966_v17 = vpop.f32.mrf.mxu2 }
 0x666   : > { %v7272_v13 = vadd.f32 %v10680_v44, %v7271_v33  ;;  %vm7273_vm10 = vweird.f32 %v14024_v0  ;;  %v3875_v51 = vadd.f32 %v3874_v39, %v12682_v8  ;;  %v4018_v32 = vadd.f32 %v13978_v37, %v13587_v42 }
 0x667   : > { %v10682_v46 = vpop.eup %10681  ;;  %v5821_v9 = vsel %vm5820_vm9, %v10678_v20, %v5817_v48  ;;  %vm7275_vm11 = vmor %vm7273_vm10, %vm7274_vm8  ;;  %vm7278_vm12 = vcmp.eq.f32.partialorder %v7277_v18, 8.507059e+37  ;;  %v7280_v31 = vor.u32 1.1754944e-38, %v7279_v45  ;;  %10687 = vpow2.f32 %v10056_v19  ;;  %v14132_v45 = vpop.f32.mrf.mxu1 }
 0x668   : > { %v5826_v38 = vsel %vm14063_vm4, %v5825_v21, %v5821_v9  ;;  %v7276_v0 = vsel %vm7275_vm11, %v10680_v44, %v7272_v13  ;;  %v7344_v61 = vmul.f32 %v10682_v46, %v14055_v30  ;;  %v7352_v11 = vand.u32 2147483647, %v14055_v30 }
 0x669   : > { %v10684_v37 = vpop.eup %10683  ;;  %8641 = vst [vmem:[%s12764_s20 + $0x130] sm:$0xff] %v5826_v38  ;;  %v7281_v56 = vsel %vm7278_vm12, %v7280_v31, %v7276_v0  ;;  %10689 = vpow2.f32 %v10061_v23  ;;  %v10062_v14 = vmul.f32 -1.442695, %v3875_v51  ;;  %v3964_v40 = vadd.f32 %v14057_v16, %v12698_v54 }
 0x66a   : > { %8738 = vst [vmem:[%s12764_s20 + $0x438] sm:$0xff] %v7281_v56  ;;  %v7345_v7 = vsub.f32 1.0, %v7344_v61  ;;  %v7354_v39 = vand.u32 2147483648, %v14055_v30  ;;  %v14109_v55 = vadd.f32 1.0, %v10684_v37  ;;  %v9966_v53 = vmul.f32 -1.442695, %v4018_v32 }
 0x66b   : > { %v10686_v20 = vpop.eup %10685  ;;  %10691 = vpow2.f32 %v10062_v14  ;;  %v3789_v29 = vadd.f32 %v3788_v57, %v12680_v59  ;;  %v3878_v5 = vadd.f32 %v3877_v34, %v12682_v8  ;;  %vm7349_vm13 = vweird.f32 %v10682_v46 }
 0x66c   : > { %v7346_v44 = vmul.f32 %v10682_v46, %v7345_v7  ;;  %10693 = vrcp.f32 %v14109_v55  ;;  %vm7348_vm14 = vweird.f32 %v14055_v30  ;;  %vm14115_vm15 = vcmp.eq.f32.partialorder %v7352_v11, 8.507059e+37 }
 0x66d   : > { %v10688_v52 = vpop.eup %10687  ;;  %v14119_v36 = vadd.f32 1.0, %v10686_v20  ;;  %v10063_v10 = vmul.f32 -1.442695, %v3964_v40  ;;  %v7355_v12 = vor.u32 1.1754944e-38, %v7354_v39  ;;  %10695 = vpow2.f32 %v9966_v53  ;;  %vm7350_vm1 = vmor %vm7348_vm14, %vm7349_vm13  ;;  %v14142_v49 = vpop.f32.mrf.mxu2 }
 0x66e   : > { %v7347_v27 = vadd.f32 %v10682_v46, %v7346_v44  ;;  %v14121_v60 = vadd.f32 1.0, %v10688_v52  ;;  %v10068_v18 = vmul.f32 -1.442695, %v3789_v29  ;;  %v14124_v4 = vmul.f32 -1.442695, %v3878_v5 }
 0x66f   : > { %v10690_v50 = vpop.eup %10689  ;;  %10697 = vrcp.f32 %v14119_v36  ;;  %v4021_v30 = vadd.f32 %v4020_v28, %v13587_v42  ;;  %v7367_v47 = vand.u32 2147483647, %v14109_v55  ;;  %v7369_v15 = vand.u32 2147483648, %v14109_v55 }
 0x670   : > { %v7351_v43 = vsel %vm7350_vm1, %v10682_v46, %v7347_v27  ;;  %10699 = vrcp.f32 %v14121_v60  ;;  %4123 = vmatmul.bf16.gmra.mxu0 %v12669_v2  ;;  %4212 = vmatmul.bf16.gmra.mxu1 %v12669_v2  ;;  %vm7363_vm2 = vweird.f32 %v14109_v55  ;;  %v14140_v22 = vadd.f32 %v3966_v17, %v12698_v54 }
 0x671   : > { %v10692_v1 = vpop.eup %10691  ;;  %v7356_v24 = vsel %vm14115_vm15, %v7355_v12, %v7351_v43  ;;  %10701 = vpow2.f32 %v10063_v10  ;;  %4301 = vmatmul.bf16.gmra.mxu2 %v12669_v2  ;;  %v5927_v33 = vand.u32 2147483647, %v14119_v36  ;;  %v5929_v48 = vand.u32 2147483648, %v14119_v36 }
 0x672   : > { %v10694_v21 = vpop.eup %10693  ;;  %8743 = vst [vmem:[%s12764_s20 + $0x460] sm:$0xff] %v7356_v24  ;;  %v14148_v19 = vadd.f32 1.0, %v10690_v50  ;;  %v14150_v23 = vadd.f32 1.0, %v10692_v1  ;;  %v7382_v51 = vand.u32 2147483647, %v14121_v60  ;;  %v7384_v32 = vand.u32 2147483648, %v14121_v60 }
 0x673   : > { %v7359_v13 = vmul.f32 %v10694_v21, %v14109_v55  ;;  %10703 = vpow2.f32 %v10068_v18  ;;  %v10696_v57 = vpop.eup %10695  ;;  %vm14155_vm3 = vcmp.eq.f32.partialorder %v7367_v47, 8.507059e+37  ;;  %v7370_v34 = vor.u32 1.1754944e-38, %v7369_v15 }
 0x674   : > { %10705 = vrcp.f32 %v14148_v19  ;;  %v14160_v46 = vmul.f32 -1.442695, %v4021_v30  ;;  %vm5923_vm4 = vweird.f32 %v14119_v36  ;;  %vm7378_vm5 = vweird.f32 %v14121_v60 }
 0x675   : > { %v10698_v9 = vpop.eup %10697  ;;  %v7360_v31 = vsub.f32 1.0, %v7359_v13  ;;  %10707 = vrcp.f32 %v14150_v23  ;;  %vm7364_vm6 = vweird.f32 %v10694_v21  ;;  %vm14166_vm7 = vcmp.eq.f32.partialorder %v5927_v33, 8.507059e+37 }
 0x676   : > { %v10700_v17 = vpop.eup %10699  ;;  %v5919_v38 = vmul.f32 %v10698_v9, %v14119_v36  ;;  %v5930_v61 = vor.u32 1.1754944e-38, %v5929_v48  ;;  %vm14171_vm8 = vcmp.eq.f32.partialorder %v7382_v51, 8.507059e+37  ;;  %v7385_v40 = vor.u32 1.1754944e-38, %v7384_v32  ;;  %vm7365_vm11 = vmor %vm7363_vm2, %vm7364_vm6  ;;  %v14210_v32 = vpop.f32.mrf.mxu0 }
 0x677   : > { %v10702_v11 = vpop.eup %10701  ;;  %v7361_v37 = vmul.f32 %v10694_v21, %v7360_v31  ;;  %v7374_v56 = vmul.f32 %v10700_v17, %v14121_v60  ;;  %v7457_v39 = vand.u32 2147483647, %v14148_v19  ;;  %v7459_v53 = vand.u32 2147483648, %v14148_v19 }
 0x678   : > { %v5920_v7 = vsub.f32 1.0, %v5919_v38  ;;  %v14177_v20 = vadd.f32 1.0, %v10696_v57  ;;  %vm5924_vm9 = vweird.f32 %v10698_v9  ;;  %vm7453_vm10 = vweird.f32 %v14148_v19  ;;  %v14212_v57 = vpop.f32.mrf.mxu1 }
 0x679   : > { %v10704_v29 = vpop.eup %10703  ;;  %v7362_v5 = vadd.f32 %v10694_v21, %v7361_v37  ;;  %v7375_v44 = vsub.f32 1.0, %v7374_v56  ;;  %v7472_v28 = vand.u32 2147483647, %v14150_v23  ;;  %vm7379_vm12 = vweird.f32 %v10700_v17  ;;  %vm5925_vm15 = vmor %vm5923_vm4, %vm5924_vm9 }
 0x67a   : > { %v10706_v52 = vpop.eup %10705  ;;  %v5921_v16 = vmul.f32 %v10698_v9, %v5920_v7  ;;  %vm7468_vm13 = vweird.f32 %v14150_v23  ;;  %10709 = vrcp.f32 %v14177_v20  ;;  %v14186_v10 = vadd.f32 1.0, %v10702_v11  ;;  %vm7380_vm1 = vmor %vm7378_vm5, %vm7379_vm12 }
 0x67b   : > { %v10708_v27 = vpop.eup %10707  ;;  %v7366_v12 = vsel %vm7365_vm11, %v10694_v21, %v7362_v5  ;;  %v7376_v50 = vmul.f32 %v10700_v17, %v7375_v44  ;;  %v7449_v18 = vmul.f32 %v10706_v52, %v14148_v19  ;;  %10711 = vpow2.f32 %v14124_v4 }
 0x67c   : > { %v7371_v55 = vsel %vm14155_vm3, %v7370_v34, %v7366_v12  ;;  %v5922_v30 = vadd.f32 %v10698_v9, %v5921_v16  ;;  %vm14192_vm14 = vcmp.eq.f32.partialorder %v7457_v39, 8.507059e+37  ;;  %v7464_v47 = vmul.f32 %v10708_v27, %v14150_v23 }
 0x67d   : > { %8744 = vst [vmem:[%s12764_s20 + $0x468] sm:$0xff] %v7371_v55  ;;  %v7377_v15 = vadd.f32 %v10700_v17, %v7376_v50  ;;  %v7450_v1 = vsub.f32 1.0, %v7449_v18  ;;  %v7460_v24 = vor.u32 1.1754944e-38, %v7459_v53  ;;  %v7474_v4 = vand.u32 2147483648, %v14150_v23  ;;  %v4022_v18 = vpop.f32.mrf.mxu3 }
 0x67e   : > { %v5926_v21 = vsel %vm5925_vm15, %v10698_v9, %v5922_v30  ;;  %v7465_v33 = vsub.f32 1.0, %v7464_v47  ;;  %10713 = vrcp.f32 %v14186_v10  ;;  %v14206_v48 = vadd.f32 1.0, %v10704_v29 }
 0x67f   : > { %v5931_v36 = vsel %vm14166_vm7, %v5930_v61, %v5926_v21  ;;  %v7381_v13 = vsel %vm7380_vm1, %v10700_v17, %v7377_v15  ;;  %v7451_v51 = vmul.f32 %v10706_v52, %v7450_v1  ;;  %vm7454_vm2 = vweird.f32 %v10706_v52  ;;  %v14262_v15 = vpop.f32.mrf.mxu2 }
 0x680   : > { %v10710_v2 = vpop.eup %10709  ;;  %8648 = vst [vmem:[%s12764_s20 + $0x168] sm:$0xff] %v5931_v36  ;;  %v7386_v60 = vsel %vm14171_vm8, %v7385_v40, %v7381_v13  ;;  %v7466_v34 = vmul.f32 %v10708_v27, %v7465_v33  ;;  %vm7469_vm3 = vweird.f32 %v10708_v27  ;;  %vm14217_vm4 = vcmp.eq.f32.partialorder %v7472_v28, 8.507059e+37  ;;  %vm7455_vm5 = vmor %vm7453_vm10, %vm7454_vm2  ;;  %v14267_v21 = vpop.f32.mrf.mxu1  ;;  %4217 = vmatmul.bf16.gmra.mxu1 %v12690_v26 }
 0x681   : > { %v10712_v31 = vpop.eup %10711  ;;  %8745 = vst [vmem:[%s12764_s20 + $0x470] sm:$0xff] %v7386_v60  ;;  %v7452_v17 = vadd.f32 %v10706_v52, %v7451_v51  ;;  %v7475_v38 = vor.u32 1.1754944e-38, %v7474_v4  ;;  %v6024_v0 = vmul.f32 %v10710_v2, %v14177_v20  ;;  %v6032_v61 = vand.u32 2147483647, %v14177_v20  ;;  %vm7470_vm6 = vmor %vm7468_vm13, %vm7469_vm3 }
 0x682   : > { %v7467_v11 = vadd.f32 %v10708_v27, %v7466_v34  ;;  %v6034_v37 = vand.u32 2147483648, %v14177_v20  ;;  %v7487_v56 = vand.u32 2147483647, %v14186_v10  ;;  %10715 = vrcp.f32 %v14206_v48 }
 0x683   : > { %v7456_v14 = vsel %vm7455_vm5, %v10706_v52, %v7452_v17  ;;  %v6025_v40 = vsub.f32 1.0, %v6024_v0  ;;  %vm6028_vm7 = vweird.f32 %v14177_v20  ;;  %v7489_v7 = vand.u32 2147483648, %v14186_v10  ;;  %v14265_v20 = vpop.f32.mrf.mxu0  ;;  %4128 = vmatmul.bf16.gmra.mxu0 %v12690_v26 }
 0x684   : > { %v10714_v19 = vpop.eup %10713  ;;  %v7461_v39 = vsel %vm14192_vm14, %v7460_v24, %v7456_v14  ;;  %v7471_v53 = vsel %vm7470_vm6, %v10708_v27, %v7467_v11  ;;  %vm7483_vm8 = vweird.f32 %v14186_v10  ;;  %v14237_v29 = vadd.f32 1.0, %v10712_v31 }
 0x685   : > { %8750 = vst [vmem:[%s12764_s20 + $0x498] sm:$0xff] %v7461_v39  ;;  %v7476_v5 = vsel %vm14217_vm4, %v7475_v38, %v7471_v53  ;;  %v6026_v23 = vmul.f32 %v10710_v2, %v6025_v40  ;;  %vm6029_vm9 = vweird.f32 %v10710_v2  ;;  %v7479_v44 = vmul.f32 %v10714_v19, %v14186_v10  ;;  %v4025_v39 = vpop.f32.mrf.mxu3 }
 0x686   : > { %8751 = vst [vmem:[%s12764_s20 + $0x4a0] sm:$0xff] %v7476_v5  ;;  %vm14244_vm10 = vcmp.eq.f32.partialorder %v6032_v61, 8.507059e+37  ;;  %v6035_v52 = vor.u32 1.1754944e-38, %v6034_v37  ;;  %vm14248_vm11 = vcmp.eq.f32.partialorder %v7487_v56, 8.507059e+37  ;;  %10717 = vrcp.f32 %v14237_v29  ;;  %vm6030_vm13 = vmor %vm6028_vm7, %vm6029_vm9 }
 0x687   : > { %v6027_v27 = vadd.f32 %v10710_v2, %v6026_v23  ;;  %v7480_v12 = vsub.f32 1.0, %v7479_v44  ;;  %v7490_v50 = vor.u32 1.1754944e-38, %v7489_v7  ;;  %vm7558_vm12 = vweird.f32 %v14206_v48  ;;  %v14304_v28 = vpop.f32.mrf.mxu2  ;;  %4306 = vmatmul.bf16.gmra.mxu2 %v12690_v26 }
 0x688   : > { %v10716_v55 = vpop.eup %10715  ;;  %10719 = vpow2.f32 %v14160_v46  ;;  %v10070_v30 = vmul.f32 -1.442695, %v14140_v22  ;;  %v3791_v43 = vadd.f32 %v14130_v58, %v12680_v59  ;;  %v3880_v47 = vadd.f32 %v14132_v45, %v12682_v8 }
 0x689   : > { %v6031_v1 = vsel %vm6030_vm13, %v10710_v2, %v6027_v27  ;;  %v7481_v24 = vmul.f32 %v10714_v19, %v7480_v12  ;;  %vm7484_vm14 = vweird.f32 %v10714_v19  ;;  %v7554_v4 = vmul.f32 %v10716_v55, %v14206_v48 }
 0x68a   : > { %v6036_v58 = vsel %vm14244_vm10, %v6035_v52, %v6031_v1  ;;  %v7562_v45 = vand.u32 2147483647, %v14206_v48  ;;  %v7564_v22 = vand.u32 2147483648, %v14206_v48  ;;  %10721 = vpow2.f32 %v10070_v30  ;;  %vm7485_vm15 = vmor %vm7483_vm8, %vm7484_vm14 }
 0x68b   : > { %8655 = vst [vmem:[%s12764_s20 + $0x1a0] sm:$0xff] %v6036_v58  ;;  %v7482_v46 = vadd.f32 %v10714_v19, %v7481_v24  ;;  %v7555_v33 = vsub.f32 1.0, %v7554_v4  ;;  %v10075_v36 = vmul.f32 -1.442695, %v3791_v43  ;;  %v10076_v13 = vmul.f32 -1.442695, %v3880_v47 }
 0x68c   : > { %v10718_v51 = vpop.eup %10717  ;;  %vm7559_vm1 = vweird.f32 %v10716_v55  ;;  %v7577_v2 = vand.u32 2147483647, %v14237_v29  ;;  %v4023_v60 = vadd.f32 %v4022_v18, %v13587_v42  ;;  %v3969_v34 = vadd.f32 %v14142_v49, %v12698_v54 }
 0x68d   : > { %v7486_v9 = vsel %vm7485_vm15, %v10714_v19, %v7482_v46  ;;  %v7556_v31 = vmul.f32 %v10716_v55, %v7555_v33  ;;  %v7569_v17 = vmul.f32 %v10718_v51, %v14237_v29  ;;  %v3794_v38 = vadd.f32 %v14210_v32, %v12680_v59  ;;  %vm7560_vm2 = vmor %vm7558_vm12, %vm7559_vm1 }
 0x68e   : > { %v10720_v0 = vpop.eup %10719  ;;  %v7491_v10 = vsel %vm14248_vm11, %v7490_v50, %v7486_v9  ;;  %10723 = vpow2.f32 %v10075_v36  ;;  %v9980_v61 = vmul.f32 -1.442695, %v4023_v60  ;;  %v10077_v11 = vmul.f32 -1.442695, %v3969_v34 }
 0x68f   : > { %8752 = vst [vmem:[%s12764_s20 + $0x4a8] sm:$0xff] %v7491_v10  ;;  %v7557_v37 = vadd.f32 %v10716_v55, %v7556_v31  ;;  %v7570_v56 = vsub.f32 1.0, %v7569_v17  ;;  %v14289_v14 = vadd.f32 1.0, %v10720_v0  ;;  %10725 = vpow2.f32 %v10076_v13 }
 0x690   : > { %v10722_v49 = vpop.eup %10721  ;;  %vm7563_vm3 = vcmp.eq.f32.partialorder %v7562_v45, 8.507059e+37  ;;  %v7565_v32 = vor.u32 1.1754944e-38, %v7564_v22  ;;  %v7579_v40 = vand.u32 2147483648, %v14237_v29  ;;  %10727 = vpow2.f32 %v9980_v61 }
 0x691   : > { %v7561_v7 = vsel %vm7560_vm2, %v10716_v55, %v7557_v37  ;;  %v7571_v19 = vmul.f32 %v10718_v51, %v7570_v56  ;;  %vm7574_vm4 = vweird.f32 %v10718_v51  ;;  %10729 = vrcp.f32 %v14289_v14 }
 0x692   : > { %v7566_v53 = vsel %vm7563_vm3, %v7565_v32, %v7561_v7  ;;  %v14296_v5 = vadd.f32 1.0, %v10722_v49  ;;  %v10082_v23 = vmul.f32 -1.442695, %v3794_v38  ;;  %vm7573_vm5 = vweird.f32 %v14237_v29 }
 0x693   : > { %8757 = vst [vmem:[%s12764_s20 + $0x4d0] sm:$0xff] %v7566_v53  ;;  %v7572_v44 = vadd.f32 %v10718_v51, %v7571_v19  ;;  %vm14300_vm6 = vcmp.eq.f32.partialorder %v7577_v2, 8.507059e+37  ;;  %10731 = vpow2.f32 %v10077_v11  ;;  %vm7575_vm7 = vmor %vm7573_vm5, %vm7574_vm4  ;;  %v7580_v16 = vor.u32 1.1754944e-38, %v7579_v40 }
 0x694   : > { %v10724_v52 = vpop.eup %10723  ;;  %10733 = vrcp.f32 %v14296_v5  ;;  %v3883_v27 = vadd.f32 %v14212_v57, %v12682_v8  ;;  %v4026_v29 = vadd.f32 %v4025_v39, %v13587_v42  ;;  %v6137_v18 = vand.u32 2147483647, %v14289_v14 }
 0x695   : > { %v10726_v12 = vpop.eup %10725  ;;  %v7576_v50 = vsel %vm7575_vm7, %v10718_v51, %v7572_v44  ;;  %v6139_v55 = vand.u32 2147483648, %v14289_v14  ;;  %v14313_v30 = vadd.f32 1.0, %v10724_v52  ;;  %10735 = vpow2.f32 %v10082_v23 }
 0x696   : > { %v10728_v26 = vpop.eup %10727  ;;  %v7581_v43 = vsel %vm14300_vm6, %v7580_v16, %v7576_v50  ;;  %v14317_v47 = vadd.f32 1.0, %v10726_v12  ;;  %v7592_v57 = vand.u32 2147483647, %v14296_v5  ;;  %v7594_v24 = vand.u32 2147483648, %v14296_v5 }
 0x697   : > { %v10730_v1 = vpop.eup %10729  ;;  %8758 = vst [vmem:[%s12764_s20 + $0x4d8] sm:$0xff] %v7581_v43  ;;  %10737 = vrcp.f32 %v14313_v30  ;;  %v3972_v4 = vadd.f32 %v14262_v15, %v12698_v54  ;;  %vm6133_vm8 = vweird.f32 %v14289_v14  ;;  %v14327_v45 = vmul.f32 -1.442695, %v3883_v27  ;;  %v14383_v43 = vpop.f32.mrf.mxu1 }
 0x698   : > { %v6129_v58 = vmul.f32 %v10730_v1, %v14289_v14  ;;  %v14329_v22 = vmul.f32 -1.442695, %v4026_v29  ;;  %vm14331_vm9 = vcmp.eq.f32.partialorder %v6137_v18, 8.507059e+37  ;;  %v6140_v36 = vor.u32 1.1754944e-38, %v6139_v55  ;;  %v14373_v29 = vpop.f32.mrf.mxu0 }
 0x699   : > { %v10732_v46 = vpop.eup %10731  ;;  %v7669_v13 = vand.u32 2147483648, %v14313_v30  ;;  %10739 = vrcp.f32 %v14317_v47  ;;  %vm7588_vm10 = vweird.f32 %v14296_v5  ;;  %v7667_v2 = vand.u32 2147483647, %v14313_v30 }
 0x69a   : > { %v10734_v51 = vpop.eup %10733  ;;  %v6130_v15 = vsub.f32 1.0, %v6129_v58  ;;  %v14339_v60 = vadd.f32 1.0, %v10728_v26  ;;  %vm14342_vm11 = vcmp.eq.f32.partialorder %v7592_v57, 8.507059e+37  ;;  %v7595_v31 = vor.u32 1.1754944e-38, %v7594_v24 }
 0x69b   : > { %v7584_v34 = vmul.f32 %v10734_v51, %v14296_v5  ;;  %v14346_v17 = vmul.f32 -1.442695, %v3972_v4  ;;  %v10736_v38 = vpop.eup %10735  ;;  %vm6134_vm12 = vweird.f32 %v10730_v1  ;;  %vm7663_vm13 = vweird.f32 %v14313_v30 }
 0x69c   : > { %v6131_v0 = vmul.f32 %v10730_v1, %v6130_v15  ;;  %v7682_v10 = vand.u32 2147483647, %v14317_v47  ;;  %10741 = vrcp.f32 %v14339_v60  ;;  %v7670_v37 = vor.u32 1.1754944e-38, %v7669_v13  ;;  %vm6135_vm2 = vmor %vm6133_vm8, %vm6134_vm12 }
 0x69d   : > { %v10738_v61 = vpop.eup %10737  ;;  %v7585_v11 = vsub.f32 1.0, %v7584_v34  ;;  %v7684_v56 = vand.u32 2147483648, %v14317_v47  ;;  %v14352_v49 = vadd.f32 1.0, %v10732_v46  ;;  %vm7589_vm14 = vweird.f32 %v10734_v51 }
 0x69e   : > { %v6132_v32 = vadd.f32 %v10730_v1, %v6131_v0  ;;  %v7659_v40 = vmul.f32 %v10738_v61, %v14313_v30  ;;  %vm14355_vm15 = vcmp.eq.f32.partialorder %v7667_v2, 8.507059e+37  ;;  %vm7678_vm1 = vweird.f32 %v14317_v47  ;;  %vm7590_vm5 = vmor %vm7588_vm10, %vm7589_vm14 }
 0x69f   : > { %v14360_v19 = vadd.f32 1.0, %v10736_v38  ;;  %v10740_v39 = vpop.eup %10739  ;;  %v7586_v53 = vmul.f32 %v10734_v51, %v7585_v11  ;;  %v6242_v23 = vand.u32 2147483647, %v14339_v60  ;;  %v6244_v44 = vand.u32 2147483648, %v14339_v60 }
 0x6a0   : > { %10743 = vrcp.f32 %v14352_v49  ;;  %v6136_v48 = vsel %vm6135_vm2, %v10730_v1, %v6132_v32  ;;  %v7660_v52 = vsub.f32 1.0, %v7659_v40  ;;  %v7674_v16 = vmul.f32 %v10740_v39, %v14317_v47 }
 0x6a1   : > { %vm14369_vm3 = vcmp.eq.f32.partialorder %v7682_v10, 8.507059e+37  ;;  %v6141_v14 = vsel %vm14331_vm9, %v6140_v36, %v6136_v48  ;;  %v7587_v12 = vadd.f32 %v10734_v51, %v7586_v53  ;;  %v7685_v50 = vor.u32 1.1754944e-38, %v7684_v56 }
 0x6a2   : > { %vm6238_vm4 = vweird.f32 %v14339_v60  ;;  %v10742_v18 = vpop.eup %10741  ;;  %8662 = vst [vmem:[%s12764_s20 + $0x1d8] sm:$0xff] %v6141_v14  ;;  %v7661_v55 = vmul.f32 %v10738_v61, %v7660_v52  ;;  %vm7664_vm6 = vweird.f32 %v10738_v61  ;;  %v7675_v26 = vsub.f32 1.0, %v7674_v16 }
 0x6a3   : > { %10745 = vrcp.f32 %v14360_v19  ;;  %v7591_v1 = vsel %vm7590_vm5, %v10734_v51, %v7587_v12  ;;  %v6234_v57 = vmul.f32 %v10742_v18, %v14339_v60  ;;  %vm14386_vm7 = vcmp.eq.f32.partialorder %v6242_v23, 8.507059e+37  ;;  %vm7665_vm9 = vmor %vm7663_vm13, %vm7664_vm6  ;;  %v14423_v23 = vpop.f32.mrf.mxu2 }
 0x6a4   : > { %v6245_v4 = vor.u32 1.1754944e-38, %v6244_v44  ;;  %v7596_v5 = vsel %vm14342_vm11, %v7595_v31, %v7591_v1  ;;  %v7662_v58 = vadd.f32 %v10738_v61, %v7661_v55  ;;  %v7676_v46 = vmul.f32 %v10740_v39, %v7675_v26 }
 0x6a5   : > { %vm7679_vm8 = vweird.f32 %v10740_v39  ;;  %8759 = vst [vmem:[%s12764_s20 + $0x4e0] sm:$0xff] %v7596_v5  ;;  %v6235_v36 = vsub.f32 1.0, %v6234_v57  ;;  %vm7693_vm10 = vweird.f32 %v14352_v49  ;;  %v7697_v13 = vand.u32 2147483647, %v14352_v49 }
 0x6a6   : > { %v10744_v33 = vpop.eup %10743  ;;  %10747 = vpow2.f32 %v14327_v45  ;;  %v7666_v51 = vsel %vm7665_vm9, %v10738_v61, %v7662_v58  ;;  %v7677_v15 = vadd.f32 %v10740_v39, %v7676_v46  ;;  %v7699_v34 = vand.u32 2147483648, %v14352_v49  ;;  %vm7680_vm11 = vmor %vm7678_vm1, %vm7679_vm8  ;;  %v4027_v61 = vpop.f32.mrf.mxu3 }
 0x6a7   : > { %v7689_v2 = vmul.f32 %v10744_v33, %v14352_v49  ;;  %v7671_v9 = vsel %vm14355_vm15, %v7670_v37, %v7666_v51  ;;  %v6236_v30 = vmul.f32 %v10742_v18, %v6235_v36  ;;  %vm6239_vm12 = vweird.f32 %v10742_v18 }
 0x6a8   : > { %v7772_v31 = vand.u32 2147483647, %v14360_v19  ;;  %8764 = vst [vmem:[%s12764_s20 + $0x508] sm:$0xff] %v7671_v9  ;;  %v7681_v45 = vsel %vm7680_vm11, %v10740_v39, %v7677_v15  ;;  %10749 = vpow2.f32 %v14329_v22  ;;  %v3796_v10 = vadd.f32 %v14265_v20, %v12680_v59  ;;  %vm6240_vm14 = vmor %vm6238_vm4, %vm6239_vm12  ;;  %v14418_v22 = vpop.f32.mrf.mxu0  ;;  %4133 = vmatmul.bf16.gmra.mxu0 %v12730_v6 }
 0x6a9   : > { %v10746_v38 = vpop.eup %10745  ;;  %v7690_v0 = vsub.f32 1.0, %v7689_v2  ;;  %v7686_v11 = vsel %vm14369_vm3, %v7685_v50, %v7681_v45  ;;  %v6237_v47 = vadd.f32 %v10742_v18, %v6236_v30  ;;  %vm7694_vm13 = vweird.f32 %v10744_v33 }
 0x6aa   : > { %v7764_v37 = vmul.f32 %v10746_v38, %v14360_v19  ;;  %8765 = vst [vmem:[%s12764_s20 + $0x510] sm:$0xff] %v7686_v11  ;;  %10751 = vpow2.f32 %v14346_v17  ;;  %v10089_v32 = vmul.f32 -1.442695, %v3796_v10  ;;  %v3885_v20 = vadd.f32 %v14267_v21, %v12682_v8  ;;  %v14429_v21 = vpop.f32.mrf.mxu1  ;;  %4222 = vmatmul.bf16.gmra.mxu1 %v12730_v6  ;;  %vm7695_vm15 = vmor %vm7693_vm10, %vm7694_vm13 }
 0x6ab   : > { %v7691_v56 = vmul.f32 %v10744_v33, %v7690_v0  ;;  %v6241_v7 = vsel %vm6240_vm14, %v10742_v18, %v6237_v47  ;;  %v7774_v53 = vand.u32 2147483648, %v14360_v19  ;;  %v4028_v60 = vadd.f32 %v4027_v61, %v13587_v42  ;;  %v14462_v30 = vpop.f32.mrf.mxu2  ;;  %4311 = vmatmul.bf16.gmra.mxu2 %v12730_v6 }
 0x6ac   : > { %v10748_v40 = vpop.eup %10747  ;;  %v7765_v39 = vsub.f32 1.0, %v7764_v37  ;;  %v6246_v17 = vsel %vm14386_vm7, %v6245_v4, %v6241_v7  ;;  %10753 = vpow2.f32 %v10089_v32  ;;  %v7700_v52 = vor.u32 1.1754944e-38, %v7699_v34 }
 0x6ad   : > { %v7692_v44 = vadd.f32 %v10744_v33, %v7691_v56  ;;  %v14427_v48 = vadd.f32 1.0, %v10748_v40  ;;  %8669 = vst [vmem:[%s12764_s20 + $0x210] sm:$0xff] %v6246_v17  ;;  %vm7769_vm1 = vweird.f32 %v10746_v38  ;;  %v10090_v27 = vmul.f32 -1.442695, %v3885_v20 }
 0x6ae   : > { %v7766_v16 = vmul.f32 %v10746_v38, %v7765_v39  ;;  %v10750_v14 = vpop.eup %10749  ;;  %vm7698_vm2 = vcmp.eq.f32.partialorder %v7697_v13, 8.507059e+37  ;;  %vm7768_vm3 = vweird.f32 %v14360_v19  ;;  %v9994_v26 = vmul.f32 -1.442695, %v4028_v60 }
 0x6af   : > { %v7696_v12 = vsel %vm7695_vm15, %v10744_v33, %v7692_v44  ;;  %10755 = vrcp.f32 %v14427_v48  ;;  %v14438_v55 = vadd.f32 1.0, %v10750_v14  ;;  %vm7770_vm4 = vmor %vm7768_vm3, %vm7769_vm1  ;;  %vm7773_vm5 = vcmp.eq.f32.partialorder %v7772_v31, 8.507059e+37 }
 0x6b0   : > { %v7701_v50 = vsel %vm7698_vm2, %v7700_v52, %v7696_v12  ;;  %v7767_v18 = vadd.f32 %v10746_v38, %v7766_v16  ;;  %v10752_v49 = vpop.eup %10751  ;;  %v7775_v1 = vor.u32 1.1754944e-38, %v7774_v53  ;;  %10757 = vpow2.f32 %v10090_v27 }
 0x6b1   : > { %8766 = vst [vmem:[%s12764_s20 + $0x518] sm:$0xff] %v7701_v50  ;;  %v3974_v57 = vadd.f32 %v14304_v28, %v12698_v54  ;;  %v7787_v19 = vand.u32 2147483647, %v14427_v48  ;;  %10759 = vrcp.f32 %v14438_v55  ;;  %v3799_v4 = vadd.f32 %v14373_v29, %v12680_v59  ;;  %v4030_v29 = vpop.f32.mrf.mxu3 }
 0x6b2   : > { %v7771_v24 = vsel %vm7770_vm4, %v10746_v38, %v7767_v18  ;;  %v10754_v5 = vpop.eup %10753  ;;  %v7789_v46 = vand.u32 2147483648, %v14427_v48  ;;  %v14448_v33 = vadd.f32 1.0, %v10752_v49  ;;  %10761 = vpow2.f32 %v9994_v26 }
 0x6b3   : > { %v7776_v58 = vsel %vm7773_vm5, %v7775_v1, %v7771_v24  ;;  %v14451_v36 = vadd.f32 1.0, %v10754_v5  ;;  %vm7783_vm6 = vweird.f32 %v14427_v48  ;;  %v6347_v28 = vand.u32 2147483647, %v14438_v55 }
 0x6b4   : > { %8771 = vst [vmem:[%s12764_s20 + $0x540] sm:$0xff] %v7776_v58  ;;  %v6349_v51 = vand.u32 2147483648, %v14438_v55  ;;  %10763 = vrcp.f32 %v14448_v33  ;;  %vm14458_vm7 = vcmp.eq.f32.partialorder %v7787_v19, 8.507059e+37  ;;  %v10091_v34 = vmul.f32 -1.442695, %v3974_v57 }
 0x6b5   : > { %v10756_v13 = vpop.eup %10755  ;;  %v10096_v9 = vmul.f32 -1.442695, %v3799_v4  ;;  %v7790_v38 = vor.u32 1.1754944e-38, %v7789_v46  ;;  %vm6343_vm8 = vweird.f32 %v14438_v55  ;;  %10765 = vrcp.f32 %v14451_v36 }
 0x6b6   : > { %v7779_v15 = vmul.f32 %v10756_v13, %v14427_v48  ;;  %v10758_v31 = vpop.eup %10757  ;;  %v3888_v45 = vadd.f32 %v14383_v43, %v12682_v8  ;;  %v7802_v61 = vand.u32 2147483647, %v14448_v33  ;;  %v4031_v47 = vadd.f32 %v4030_v29, %v13587_v42 }
 0x6b7   : > { %v10760_v0 = vpop.eup %10759  ;;  %v14470_v11 = vadd.f32 1.0, %v10758_v31  ;;  %vm14474_vm9 = vcmp.eq.f32.partialorder %v6347_v28, 8.507059e+37  ;;  %v6350_v56 = vor.u32 1.1754944e-38, %v6349_v51  ;;  %v7804_v32 = vand.u32 2147483648, %v14448_v33 }
 0x6b8   : > { %v7780_v10 = vsub.f32 1.0, %v7779_v15  ;;  %v6339_v37 = vmul.f32 %v10760_v0, %v14438_v55  ;;  %v10762_v20 = vpop.eup %10761  ;;  %vm7784_vm10 = vweird.f32 %v10756_v13  ;;  %vm7798_vm11 = vweird.f32 %v14448_v33 }
 0x6b9   : > { %v7877_v43 = vand.u32 2147483647, %v14451_v36  ;;  %10767 = vrcp.f32 %v14470_v11  ;;  %v7879_v53 = vand.u32 2147483648, %v14451_v36  ;;  %v14483_v60 = vadd.f32 1.0, %v10762_v20  ;;  %vm7785_vm14 = vmor %vm7783_vm6, %vm7784_vm10 }
 0x6ba   : > { %v7781_v40 = vmul.f32 %v10756_v13, %v7780_v10  ;;  %v10764_v7 = vpop.eup %10763  ;;  %v6340_v39 = vsub.f32 1.0, %v6339_v37  ;;  %10769 = vpow2.f32 %v10091_v34  ;;  %vm14486_vm12 = vcmp.eq.f32.partialorder %v7802_v61, 8.507059e+37  ;;  %v14524_v61 = vpop.f32.mrf.mxu1 }
 0x6bb   : > { %v7794_v44 = vmul.f32 %v10764_v7, %v14448_v33  ;;  %vm7873_vm13 = vweird.f32 %v14451_v36  ;;  %v10766_v16 = vpop.eup %10765  ;;  %vm6344_vm15 = vweird.f32 %v10760_v0  ;;  %v7805_v14 = vor.u32 1.1754944e-38, %v7804_v32 }
 0x6bc   : > { %v7782_v17 = vadd.f32 %v10756_v13, %v7781_v40  ;;  %v6341_v27 = vmul.f32 %v10760_v0, %v6340_v39  ;;  %10771 = vrcp.f32 %v14483_v60  ;;  %v7869_v18 = vmul.f32 %v10766_v16, %v14451_v36  ;;  %vm6345_vm3 = vmor %vm6343_vm8, %vm6344_vm15 }
 0x6bd   : > { %v7795_v50 = vsub.f32 1.0, %v7794_v44  ;;  %vm14495_vm1 = vcmp.eq.f32.partialorder %v7877_v43, 8.507059e+37  ;;  %vm7799_vm2 = vweird.f32 %v10764_v7  ;;  %v7880_v48 = vor.u32 1.1754944e-38, %v7879_v53 }
 0x6be   : > { %v7786_v12 = vsel %vm7785_vm14, %v10756_v13, %v7782_v17  ;;  %v6342_v1 = vadd.f32 %v10760_v0, %v6341_v27  ;;  %v7870_v19 = vsub.f32 1.0, %v7869_v18  ;;  %10773 = vpow2.f32 %v10096_v9  ;;  %vm7800_vm6 = vmor %vm7798_vm11, %vm7799_vm2  ;;  %v14515_v9 = vpop.f32.mrf.mxu0 }
 0x6bf   : > { %v7791_v49 = vsel %vm14458_vm7, %v7790_v38, %v7786_v12  ;;  %v10768_v57 = vpop.eup %10767  ;;  %v7796_v24 = vmul.f32 %v10764_v7, %v7795_v50  ;;  %v10097_v4 = vmul.f32 -1.442695, %v3888_v45  ;;  %vm7888_vm4 = vweird.f32 %v14470_v11 }
 0x6c0   : > { %8772 = vst [vmem:[%s12764_s20 + $0x548] sm:$0xff] %v7791_v49  ;;  %v10770_v5 = vpop.eup %10769  ;;  %v6346_v58 = vsel %vm6345_vm3, %v10760_v0, %v6342_v1  ;;  %v7884_v46 = vmul.f32 %v10768_v57, %v14470_v11  ;;  %v7894_v13 = vand.u32 2147483648, %v14470_v11  ;;  %v7871_v29 = vmul.f32 %v10766_v16, %v7870_v19  ;;  %v4032_v49 = vpop.f32.mrf.mxu3 }
 0x6c1   : > { %v6351_v28 = vsel %vm14474_vm9, %v6350_v56, %v6346_v58  ;;  %v7797_v51 = vadd.f32 %v10764_v7, %v7796_v24  ;;  %vm7874_vm5 = vweird.f32 %v10766_v16  ;;  %v14513_v2 = vadd.f32 1.0, %v10770_v5 }
 0x6c2   : > { %v10772_v55 = vpop.eup %10771  ;;  %8676 = vst [vmem:[%s12764_s20 + $0x248] sm:$0xff] %v6351_v28  ;;  %v7885_v15 = vsub.f32 1.0, %v7884_v46  ;;  %10775 = vpow2.f32 %v10097_v4  ;;  %v10001_v34 = vmul.f32 -1.442695, %v4031_v47  ;;  %v7872_v38 = vadd.f32 %v10766_v16, %v7871_v29  ;;  %vm7875_vm7 = vmor %vm7873_vm13, %vm7874_vm5  ;;  %v14566_v28 = vpop.f32.mrf.mxu1  ;;  %4227 = vmatmul.bf16.gmra.mxu1 %v12851_v41 }
 0x6c3   : > { %v7801_v31 = vsel %vm7800_vm6, %v10764_v7, %v7797_v51  ;;  %v7892_v45 = vand.u32 2147483647, %v14470_v11  ;;  %v6444_v0 = vmul.f32 %v10772_v55, %v14483_v60  ;;  %vm7889_vm8 = vweird.f32 %v10768_v57 }
 0x6c4   : > { %v7806_v10 = vsel %vm14486_vm12, %v7805_v14, %v7801_v31  ;;  %v7886_v33 = vmul.f32 %v10768_v57, %v7885_v15  ;;  %10777 = vrcp.f32 %v14513_v2  ;;  %v10774_v47 = vpop.eup %10773  ;;  %v7876_v37 = vsel %vm7875_vm7, %v10766_v16, %v7872_v38  ;;  %vm7890_vm9 = vmor %vm7888_vm4, %vm7889_vm8 }
 0x6c5   : > { %8773 = vst [vmem:[%s12764_s20 + $0x550] sm:$0xff] %v7806_v10  ;;  %v7895_v6 = vor.u32 1.1754944e-38, %v7894_v13  ;;  %v6445_v56 = vsub.f32 1.0, %v6444_v0  ;;  %v6454_v32 = vand.u32 2147483648, %v14483_v60  ;;  %v7881_v20 = vsel %vm14495_vm1, %v7880_v48, %v7876_v37  ;;  %v14564_v13 = vpop.f32.mrf.mxu2 }
 0x6c6   : > { %v7887_v40 = vadd.f32 %v10768_v57, %v7886_v33  ;;  %v14530_v36 = vadd.f32 1.0, %v10774_v47  ;;  %10779 = vpow2.f32 %v10001_v34  ;;  %8778 = vst [vmem:[%s12764_s20 + $0x578] sm:$0xff] %v7881_v20  ;;  %vm6449_vm10 = vweird.f32 %v10772_v55  ;;  %v14552_v24 = vpop.f32.mrf.mxu0  ;;  %4138 = vmatmul.bf16.gmra.mxu0 %v12851_v41 }
 0x6c7   : > { %v6446_v43 = vmul.f32 %v10772_v55, %v6445_v56  ;;  %v6452_v7 = vand.u32 2147483647, %v14483_v60  ;;  %v3977_v39 = vadd.f32 %v14423_v23, %v12698_v54  ;;  %vm7893_vm11 = vcmp.eq.f32.partialorder %v7892_v45, 8.507059e+37 }
 0x6c8   : > { %v10776_v53 = vpop.eup %10775  ;;  %v7891_v17 = vsel %vm7890_vm9, %v10768_v57, %v7887_v40  ;;  %vm6448_vm12 = vweird.f32 %v14483_v60  ;;  %10781 = vrcp.f32 %v14530_v36  ;;  %v6455_v16 = vor.u32 1.1754944e-38, %v6454_v32 }
 0x6c9   : > { %v7896_v44 = vsel %vm7893_vm11, %v7895_v6, %v7891_v17  ;;  %v6447_v52 = vadd.f32 %v10772_v55, %v6446_v43  ;;  %v14540_v11 = vadd.f32 1.0, %v10776_v53  ;;  %vm6450_vm13 = vmor %vm6448_vm12, %vm6449_vm10  ;;  %v7907_v14 = vand.u32 2147483647, %v14513_v2 }
 0x6ca   : > { %v10778_v27 = vpop.eup %10777  ;;  %8779 = vst [vmem:[%s12764_s20 + $0x580] sm:$0xff] %v7896_v44  ;;  %v10098_v12 = vmul.f32 -1.442695, %v3977_v39  ;;  %v3801_v23 = vadd.f32 %v14418_v22, %v12680_v59  ;;  %v3890_v60 = vadd.f32 %v14429_v21, %v12682_v8  ;;  %vm6453_vm14 = vcmp.eq.f32.partialorder %v6452_v7, 8.507059e+37 }
 0x6cb   : > { %v6451_v50 = vsel %vm6450_vm13, %v10772_v55, %v6447_v52  ;;  %v7899_v18 = vmul.f32 %v10778_v27, %v14513_v2  ;;  %v7909_v26 = vand.u32 2147483648, %v14513_v2  ;;  %v7982_v57 = vand.u32 2147483647, %v14530_v36 }
 0x6cc   : > { %v10780_v1 = vpop.eup %10779  ;;  %v6456_v48 = vsel %vm6453_vm14, %v6455_v16, %v6451_v50  ;;  %10783 = vrcp.f32 %v14540_v11  ;;  %vm7903_vm15 = vweird.f32 %v14513_v2  ;;  %vm14559_vm1 = vcmp.eq.f32.partialorder %v7907_v14, 8.507059e+37 }
 0x6cd   : > { %8683 = vst [vmem:[%s12764_s20 + $0x280] sm:$0xff] %v6456_v48  ;;  %v7900_v22 = vsub.f32 1.0, %v7899_v18  ;;  %v14557_v21 = vadd.f32 1.0, %v10780_v1  ;;  %10785 = vpow2.f32 %v10098_v12  ;;  %v10103_v5 = vmul.f32 -1.442695, %v3801_v23  ;;  %v14605_v50 = vpop.f32.mrf.mxu2  ;;  %4316 = vmatmul.bf16.gmra.mxu2 %v12851_v41 }
 0x6ce   : > { %v10782_v19 = vpop.eup %10781  ;;  %v10104_v58 = vmul.f32 -1.442695, %v3890_v60  ;;  %v4033_v46 = vadd.f32 %v4032_v49, %v13587_v42  ;;  %vm7904_vm2 = vweird.f32 %v10778_v27  ;;  %v7910_v29 = vor.u32 1.1754944e-38, %v7909_v26 }
 0x6cf   : > { %v7901_v51 = vmul.f32 %v10778_v27, %v7900_v22  ;;  %v7974_v55 = vmul.f32 %v10782_v19, %v14530_v36  ;;  %vm7978_vm3 = vweird.f32 %v14530_v36  ;;  %vm14571_vm4 = vcmp.eq.f32.partialorder %v7982_v57, 8.507059e+37  ;;  %vm7905_vm5 = vmor %vm7903_vm15, %vm7904_vm2 }
 0x6d0   : > { %v7984_v34 = vand.u32 2147483648, %v14530_v36  ;;  %10787 = vrcp.f32 %v14557_v21  ;;  %v10008_v45 = vmul.f32 -1.442695, %v4033_v46  ;;  %v7997_v10 = vand.u32 2147483647, %v14540_v11 }
 0x6d1   : > { %v7902_v31 = vadd.f32 %v10778_v27, %v7901_v51  ;;  %v7975_v38 = vsub.f32 1.0, %v7974_v55  ;;  %10789 = vpow2.f32 %v10103_v5  ;;  %v7999_v33 = vand.u32 2147483648, %v14540_v11 }
 0x6d2   : > { %v10784_v0 = vpop.eup %10783  ;;  %10791 = vpow2.f32 %v10104_v58  ;;  %v3979_v47 = vadd.f32 %v14462_v30, %v12698_v54  ;;  %vm7979_vm6 = vweird.f32 %v10782_v19  ;;  %v7985_v40 = vor.u32 1.1754944e-38, %v7984_v34 }
 0x6d3   : > { %v10786_v37 = vpop.eup %10785  ;;  %v7906_v6 = vsel %vm7905_vm5, %v10778_v27, %v7902_v31  ;;  %v7976_v56 = vmul.f32 %v10782_v19, %v7975_v38  ;;  %v7989_v32 = vmul.f32 %v10784_v0, %v14540_v11  ;;  %vm7993_vm7 = vweird.f32 %v14540_v11  ;;  %vm7980_vm8 = vmor %vm7978_vm3, %vm7979_vm6 }
 0x6d4   : > { %v7911_v20 = vsel %vm14559_vm1, %v7910_v29, %v7906_v6  ;;  %v14587_v2 = vadd.f32 1.0, %v10786_v37  ;;  %10793 = vpow2.f32 %v10008_v45  ;;  %v10105_v39 = vmul.f32 -1.442695, %v3979_v47 }
 0x6d5   : > { %8780 = vst [vmem:[%s12764_s20 + $0x588] sm:$0xff] %v7911_v20  ;;  %v7977_v43 = vadd.f32 %v10782_v19, %v7976_v56  ;;  %v7990_v7 = vsub.f32 1.0, %v7989_v32  ;;  %vm14592_vm9 = vcmp.eq.f32.partialorder %v7997_v10, 8.507059e+37  ;;  %v8000_v17 = vor.u32 1.1754944e-38, %v7999_v33 }
 0x6d6   : > { %v10788_v30 = vpop.eup %10787  ;;  %vm6553_vm10 = vweird.f32 %v14557_v21  ;;  %10795 = vrcp.f32 %v14587_v2  ;;  %vm7994_vm11 = vweird.f32 %v10784_v0  ;;  %v6557_v12 = vand.u32 2147483647, %v14557_v21 }
 0x6d7   : > { %v10790_v44 = vpop.eup %10789  ;;  %v7981_v52 = vsel %vm7980_vm8, %v10782_v19, %v7977_v43  ;;  %v7991_v16 = vmul.f32 %v10784_v0, %v7990_v7  ;;  %v6549_v27 = vmul.f32 %v10788_v30, %v14557_v21  ;;  %v6559_v23 = vand.u32 2147483648, %v14557_v21  ;;  %vm7995_vm12 = vmor %vm7993_vm7, %vm7994_vm11  ;;  %v4035_v21 = vpop.f32.mrf.mxu3 }
 0x6d8   : > { %v10792_v14 = vpop.eup %10791  ;;  %v7986_v36 = vsel %vm14571_vm4, %v7985_v40, %v7981_v52  ;;  %v14603_v60 = vadd.f32 1.0, %v10790_v44  ;;  %10797 = vpow2.f32 %v10105_v39  ;;  %v8012_v1 = vand.u32 2147483647, %v14587_v2 }
 0x6d9   : > { %8785 = vst [vmem:[%s12764_s20 + $0x5b0] sm:$0xff] %v7986_v36  ;;  %v7992_v18 = vadd.f32 %v10784_v0, %v7991_v16  ;;  %v6550_v26 = vsub.f32 1.0, %v6549_v27  ;;  %v14609_v49 = vadd.f32 1.0, %v10792_v14  ;;  %v8014_v48 = vand.u32 2147483648, %v14587_v2 }
 0x6da   : > { %10799 = vrcp.f32 %v14603_v60  ;;  %v3804_v57 = vadd.f32 %v14515_v9, %v12680_v59  ;;  %v10794_v41 = vpop.eup %10793  ;;  %vm6554_vm13 = vweird.f32 %v10788_v30  ;;  %vm14621_vm14 = vcmp.eq.f32.partialorder %v6557_v12, 8.507059e+37  ;;  %v14666_v12 = vpop.f32.mrf.mxu0 }
 0x6db   : > { %v7996_v22 = vsel %vm7995_vm12, %v10784_v0, %v7992_v18  ;;  %v6551_v19 = vmul.f32 %v10788_v30, %v6550_v26  ;;  %10801 = vrcp.f32 %v14609_v49  ;;  %v6560_v58 = vor.u32 1.1754944e-38, %v6559_v23  ;;  %vm6555_vm15 = vmor %vm6553_vm10, %vm6554_vm13  ;;  %v14668_v23 = vpop.f32.mrf.mxu1 }
 0x6dc   : > { %v10796_v4 = vpop.eup %10795  ;;  %v8001_v11 = vsel %vm14592_vm9, %v8000_v17, %v7996_v22  ;;  %v8089_v46 = vand.u32 2147483648, %v14603_v60  ;;  %v8087_v29 = vand.u32 2147483647, %v14603_v60  ;;  %v3893_v55 = vadd.f32 %v14524_v61, %v12682_v8 }
 0x6dd   : > { %8786 = vst [vmem:[%s12764_s20 + $0x5b8] sm:$0xff] %v8001_v11  ;;  %v6552_v51 = vadd.f32 %v10788_v30, %v6551_v19  ;;  %v8004_v9 = vmul.f32 %v10796_v4, %v14587_v2  ;;  %vm8008_vm1 = vweird.f32 %v14587_v2  ;;  %vm14634_vm2 = vcmp.eq.f32.partialorder %v8012_v1, 8.507059e+37 }
 0x6de   : > { %v8015_v34 = vor.u32 1.1754944e-38, %v8014_v48  ;;  %v14638_v31 = vadd.f32 1.0, %v10794_v41  ;;  %v10798_v38 = vpop.eup %10797  ;;  %vm8083_vm3 = vweird.f32 %v14603_v60  ;;  %v8102_v61 = vand.u32 2147483647, %v14609_v49 }
 0x6df   : > { %v6556_v45 = vsel %vm6555_vm15, %v10788_v30, %v6552_v51  ;;  %v8005_v0 = vsub.f32 1.0, %v8004_v9  ;;  %v10110_v10 = vmul.f32 -1.442695, %v3804_v57  ;;  %v8090_v37 = vor.u32 1.1754944e-38, %v8089_v46  ;;  %v4037_v51 = vpop.f32.mrf.mxu3 }
 0x6e0   : > { %v10800_v33 = vpop.eup %10799  ;;  %v6561_v47 = vsel %vm14621_vm14, %v6560_v58, %v6556_v45  ;;  %vm8098_vm4 = vweird.f32 %v14609_v49  ;;  %10803 = vrcp.f32 %v14638_v31  ;;  %vm8009_vm5 = vweird.f32 %v10796_v4 }
 0x6e1   : > { %v10802_v6 = vpop.eup %10801  ;;  %8690 = vst [vmem:[%s12764_s20 + $0x2b8] sm:$0xff] %v6561_v47  ;;  %v8006_v56 = vmul.f32 %v10796_v4, %v8005_v0  ;;  %v8079_v32 = vmul.f32 %v10800_v33, %v14603_v60  ;;  %vm14648_vm6 = vcmp.eq.f32.partialorder %v8087_v29, 8.507059e+37  ;;  %v10111_v40 = vmul.f32 -1.442695, %v3893_v55  ;;  %vm8010_vm8 = vmor %vm8008_vm1, %vm8009_vm5 }
 0x6e2   : > { %v8094_v43 = vmul.f32 %v10802_v6, %v14609_v49  ;;  %v8104_v7 = vand.u32 2147483648, %v14609_v49  ;;  %v14654_v39 = vadd.f32 1.0, %v10798_v38  ;;  %v4036_v30 = vadd.f32 %v4035_v21, %v13587_v42  ;;  %v14710_v20 = vpop.f32.mrf.mxu0  ;;  %4143 = vmatmul.bf16.gmra.mxu0 %v13002_v63 }
 0x6e3   : > { %v8007_v53 = vadd.f32 %v10796_v4, %v8006_v56  ;;  %v8080_v17 = vsub.f32 1.0, %v8079_v32  ;;  %vm14657_vm7 = vcmp.eq.f32.partialorder %v8102_v61, 8.507059e+37  ;;  %10805 = vpow2.f32 %v10110_v10 }
 0x6e4   : > { %vm8084_vm9 = vweird.f32 %v10800_v33  ;;  %v8095_v52 = vsub.f32 1.0, %v8094_v43  ;;  %v6662_v16 = vand.u32 2147483647, %v14638_v31  ;;  %10807 = vrcp.f32 %v14654_v39 }
 0x6e5   : > { %v8011_v27 = vsel %vm8010_vm8, %v10796_v4, %v8007_v53  ;;  %v8081_v14 = vmul.f32 %v10800_v33, %v8080_v17  ;;  %v6664_v36 = vand.u32 2147483648, %v14638_v31  ;;  %10809 = vpow2.f32 %v10111_v40  ;;  %vm8085_vm12 = vmor %vm8083_vm3, %vm8084_vm9  ;;  %v14712_v40 = vpop.f32.mrf.mxu1  ;;  %4232 = vmatmul.bf16.gmra.mxu1 %v13002_v63 }
 0x6e6   : > { %v10804_v18 = vpop.eup %10803  ;;  %v8016_v2 = vsel %vm14634_vm2, %v8015_v34, %v8011_v27  ;;  %v8096_v26 = vmul.f32 %v10802_v6, %v8095_v52  ;;  %vm8099_vm10 = vweird.f32 %v10802_v6  ;;  %v10015_v1 = vmul.f32 -1.442695, %v4036_v30  ;;  %v14727_v52 = vpop.f32.mrf.mxu2 }
 0x6e7   : > { %8787 = vst [vmem:[%s12764_s20 + $0x5c0] sm:$0xff] %v8016_v2  ;;  %v8082_v48 = vadd.f32 %v10800_v33, %v8081_v14  ;;  %v8105_v57 = vor.u32 1.1754944e-38, %v8104_v7  ;;  %v6654_v41 = vmul.f32 %v10804_v18, %v14638_v31  ;;  %vm6658_vm11 = vweird.f32 %v14638_v31  ;;  %vm8100_vm14 = vmor %vm8098_vm4, %vm8099_vm10 }
 0x6e8   : > { %v8097_v22 = vadd.f32 %v10802_v6, %v8096_v26  ;;  %vm14678_vm13 = vcmp.eq.f32.partialorder %v6662_v16, 8.507059e+37  ;;  %10811 = vpow2.f32 %v10015_v1  ;;  %v3982_v4 = vadd.f32 %v14564_v13, %v12698_v54 }
 0x6e9   : > { %v10806_v11 = vpop.eup %10805  ;;  %v8086_v5 = vsel %vm8085_vm12, %v10800_v33, %v8082_v48  ;;  %v6655_v58 = vsub.f32 1.0, %v6654_v41  ;;  %v6665_v46 = vor.u32 1.1754944e-38, %v6664_v36  ;;  %v3806_v60 = vadd.f32 %v14552_v24, %v12680_v59 }
 0x6ea   : > { %v10808_v9 = vpop.eup %10807  ;;  %v8091_v29 = vsel %vm14648_vm6, %v8090_v37, %v8086_v5  ;;  %v8101_v55 = vsel %vm8100_vm14, %v10802_v6, %v8097_v22  ;;  %v14690_v15 = vadd.f32 1.0, %v10806_v11  ;;  %v10112_v13 = vmul.f32 -1.442695, %v3982_v4 }
 0x6eb   : > { %v10810_v34 = vpop.eup %10809  ;;  %8792 = vst [vmem:[%s12764_s20 + $0x5e8] sm:$0xff] %v8091_v29  ;;  %v8106_v49 = vsel %vm14657_vm7, %v8105_v57, %v8101_v55  ;;  %v6656_v38 = vmul.f32 %v10804_v18, %v6655_v58  ;;  %vm6659_vm15 = vweird.f32 %v10804_v18  ;;  %v8109_v45 = vmul.f32 %v10808_v9, %v14654_v39 }
 0x6ec   : > { %8793 = vst [vmem:[%s12764_s20 + $0x5f0] sm:$0xff] %v8106_v49  ;;  %v8117_v24 = vand.u32 2147483647, %v14654_v39  ;;  %10813 = vrcp.f32 %v14690_v15  ;;  %v3895_v0 = vadd.f32 %v14566_v28, %v12682_v8  ;;  %v4038_v61 = vadd.f32 %v4037_v51, %v13587_v42  ;;  %vm6660_vm1 = vmor %vm6658_vm11, %vm6659_vm15 }
 0x6ed   : > { %v6657_v10 = vadd.f32 %v10804_v18, %v6656_v38  ;;  %v8110_v21 = vsub.f32 1.0, %v8109_v45  ;;  %v14702_v33 = vadd.f32 1.0, %v10810_v34  ;;  %10815 = vpow2.f32 %v10112_v13 }
 0x6ee   : > { %v10812_v47 = vpop.eup %10811  ;;  %vm8113_vm2 = vweird.f32 %v14654_v39  ;;  %vm8114_vm3 = vweird.f32 %v10808_v9  ;;  %v8119_v37 = vand.u32 2147483648, %v14654_v39  ;;  %v10117_v6 = vmul.f32 -1.442695, %v3806_v60 }
 0x6ef   : > { %v6661_v56 = vsel %vm6660_vm1, %v10804_v18, %v6657_v10  ;;  %v8111_v28 = vmul.f32 %v10808_v9, %v8110_v21  ;;  %v8192_v32 = vand.u32 2147483647, %v14690_v15  ;;  %10817 = vrcp.f32 %v14702_v33  ;;  %vm8115_vm5 = vmor %vm8113_vm2, %vm8114_vm3 }
 0x6f0   : > { %v6666_v31 = vsel %vm14678_vm13, %v6665_v46, %v6661_v56  ;;  %vm14718_vm4 = vcmp.eq.f32.partialorder %v8117_v24, 8.507059e+37  ;;  %v14722_v7 = vadd.f32 1.0, %v10812_v47  ;;  %v10118_v30 = vmul.f32 -1.442695, %v3895_v0 }
 0x6f1   : > { %8697 = vst [vmem:[%s12764_s20 + $0x2f0] sm:$0xff] %v6666_v31  ;;  %v8112_v53 = vadd.f32 %v10808_v9, %v8111_v28  ;;  %10819 = vpow2.f32 %v10117_v6  ;;  %v10022_v17 = vmul.f32 -1.442695, %v4038_v61  ;;  %v3984_v44 = vadd.f32 %v14605_v50, %v12698_v54 }
 0x6f2   : > { %v10814_v16 = vpop.eup %10813  ;;  %v8120_v27 = vor.u32 1.1754944e-38, %v8119_v37  ;;  %vm8188_vm6 = vweird.f32 %v14690_v15  ;;  %v8194_v14 = vand.u32 2147483648, %v14690_v15  ;;  %10821 = vrcp.f32 %v14722_v7  ;;  %v14769_v37 = vpop.f32.mrf.mxu2  ;;  %4321 = vmatmul.bf16.gmra.mxu2 %v13002_v63 }
 0x6f3   : > { %v10816_v36 = vpop.eup %10815  ;;  %v8116_v18 = vsel %vm8115_vm5, %v10808_v9, %v8112_v53  ;;  %v8184_v2 = vmul.f32 %v10814_v16, %v14690_v15  ;;  %vm14736_vm7 = vcmp.eq.f32.partialorder %v8192_v32, 8.507059e+37  ;;  %v8207_v26 = vand.u32 2147483647, %v14702_v33 }
 0x6f4   : > { %v8121_v39 = vsel %vm14718_vm4, %v8120_v27, %v8116_v18  ;;  %v8209_v1 = vand.u32 2147483648, %v14702_v33  ;;  %v14744_v48 = vadd.f32 1.0, %v10816_v36  ;;  %10823 = vpow2.f32 %v10118_v30 }
 0x6f5   : > { %v10818_v57 = vpop.eup %10817  ;;  %8794 = vst [vmem:[%s12764_s20 + $0x5f8] sm:$0xff] %v8121_v39  ;;  %v8185_v41 = vsub.f32 1.0, %v8184_v2  ;;  %v6767_v22 = vand.u32 2147483647, %v14722_v7  ;;  %10825 = vpow2.f32 %v10022_v17  ;;  %v10119_v19 = vmul.f32 -1.442695, %v3984_v44 }
 0x6f6   : > { %v8195_v4 = vor.u32 1.1754944e-38, %v8194_v14  ;;  %v8199_v11 = vmul.f32 %v10818_v57, %v14702_v33  ;;  %v6769_v5 = vand.u32 2147483648, %v14722_v7  ;;  %10827 = vrcp.f32 %v14744_v48 }
 0x6f7   : > { %v10820_v58 = vpop.eup %10819  ;;  %v8186_v46 = vmul.f32 %v10814_v16, %v8185_v41  ;;  %vm8189_vm8 = vweird.f32 %v10814_v16  ;;  %vm8203_vm9 = vweird.f32 %v14702_v33  ;;  %vm14752_vm10 = vcmp.eq.f32.partialorder %v8207_v26, 8.507059e+37  ;;  %v4040_v26 = vpop.f32.mrf.mxu3 }
 0x6f8   : > { %v10822_v51 = vpop.eup %10821  ;;  %v8200_v9 = vsub.f32 1.0, %v8199_v11  ;;  %v8210_v29 = vor.u32 1.1754944e-38, %v8209_v1  ;;  %vm6763_vm11 = vweird.f32 %v14722_v7  ;;  %v14757_v55 = vadd.f32 1.0, %v10820_v58  ;;  %vm8190_vm13 = vmor %vm8188_vm6, %vm8189_vm8 }
 0x6f9   : > { %v8187_v13 = vadd.f32 %v10814_v16, %v8186_v46  ;;  %v6759_v34 = vmul.f32 %v10822_v51, %v14722_v7  ;;  %vm14760_vm12 = vcmp.eq.f32.partialorder %v6767_v22, 8.507059e+37  ;;  %10829 = vpow2.f32 %v10119_v19 }
 0x6fa   : > { %v10824_v38 = vpop.eup %10823  ;;  %v8201_v45 = vmul.f32 %v10818_v57, %v8200_v9  ;;  %vm8204_vm14 = vweird.f32 %v10818_v57  ;;  %v6770_v24 = vor.u32 1.1754944e-38, %v6769_v5  ;;  %10831 = vrcp.f32 %v14757_v55 }
 0x6fb   : > { %v10826_v0 = vpop.eup %10825  ;;  %v8191_v61 = vsel %vm8190_vm13, %v10814_v16, %v8187_v13  ;;  %v6760_v10 = vsub.f32 1.0, %v6759_v34  ;;  %v8222_v21 = vand.u32 2147483647, %v14744_v48  ;;  %v8224_v47 = vand.u32 2147483648, %v14744_v48  ;;  %vm8205_vm15 = vmor %vm8203_vm9, %vm8204_vm14 }
 0x6fc   : > { %v10828_v6 = vpop.eup %10827  ;;  %v8196_v15 = vsel %vm14736_vm7, %v8195_v4, %v8191_v61  ;;  %v8202_v56 = vadd.f32 %v10818_v57, %v8201_v45  ;;  %v14774_v28 = vadd.f32 1.0, %v10824_v38  ;;  %v14776_v32 = vadd.f32 1.0, %v10826_v0 }
 0x6fd   : > { %8799 = vst [vmem:[%s12764_s20 + $0x620] sm:$0xff] %v8196_v15  ;;  %v6761_v31 = vmul.f32 %v10822_v51, %v6760_v10  ;;  %vm6764_vm1 = vweird.f32 %v10822_v51  ;;  %v8214_v43 = vmul.f32 %v10828_v6, %v14744_v48  ;;  %vm8218_vm2 = vweird.f32 %v14744_v48 }
 0x6fe   : > { %v8206_v63 = vsel %vm8205_vm15, %v10818_v57, %v8202_v56  ;;  %v8297_v30 = vand.u32 2147483647, %v14757_v55  ;;  %v8299_v53 = vand.u32 2147483648, %v14757_v55  ;;  %10833 = vrcp.f32 %v14774_v28  ;;  %vm6765_vm3 = vmor %vm6763_vm11, %vm6764_vm1 }
 0x6ff   : > { %v10830_v17 = vpop.eup %10829  ;;  %v8211_v44 = vsel %vm14752_vm10, %v8210_v29, %v8206_v63  ;;  %v6762_v33 = vadd.f32 %v10822_v51, %v6761_v31  ;;  %v8215_v16 = vsub.f32 1.0, %v8214_v43  ;;  %v3809_v27 = vadd.f32 %v14666_v12, %v12680_v59  ;;  %v4042_v43 = vpop.f32.mrf.mxu3 }
 0x700   : > { %v10832_v14 = vpop.eup %10831  ;;  %8800 = vst [vmem:[%s12764_s20 + $0x628] sm:$0xff] %v8211_v44  ;;  %vm14794_vm4 = vcmp.eq.f32.partialorder %v8222_v21, 8.507059e+37  ;;  %v8225_v18 = vor.u32 1.1754944e-38, %v8224_v47  ;;  %vm8293_vm5 = vweird.f32 %v14757_v55  ;;  %10835 = vrcp.f32 %v14776_v32 }
 0x701   : > { %v6766_v2 = vsel %vm6765_vm3, %v10822_v51, %v6762_v33  ;;  %v8216_v50 = vmul.f32 %v10828_v6, %v8215_v16  ;;  %vm8219_vm6 = vweird.f32 %v10828_v6  ;;  %v8289_v12 = vmul.f32 %v10832_v14, %v14757_v55  ;;  %v14852_v33 = vpop.f32.mrf.mxu1 }
 0x702   : > { %v6771_v39 = vsel %vm14760_vm12, %v6770_v24, %v6766_v2  ;;  %vm14803_vm7 = vcmp.eq.f32.partialorder %v8297_v30, 8.507059e+37  ;;  %v8300_v1 = vor.u32 1.1754944e-38, %v8299_v53  ;;  %v8312_v57 = vand.u32 2147483647, %v14774_v28  ;;  %vm8220_vm9 = vmor %vm8218_vm2, %vm8219_vm6 }
 0x703   : > { %8704 = vst [vmem:[%s12764_s20 + $0x328] sm:$0xff] %v6771_v39  ;;  %v8217_v41 = vadd.f32 %v10828_v6, %v8216_v50  ;;  %v8290_v22 = vsub.f32 1.0, %v8289_v12  ;;  %vm8308_vm8 = vweird.f32 %v14774_v28  ;;  %v14810_v19 = vadd.f32 1.0, %v10830_v17 }
 0x704   : > { %v10834_v4 = vpop.eup %10833  ;;  %vm8294_vm10 = vweird.f32 %v10832_v14  ;;  %v8314_v11 = vand.u32 2147483648, %v14774_v28  ;;  %v10124_v5 = vmul.f32 -1.442695, %v3809_v27  ;;  %v3898_v58 = vadd.f32 %v14668_v23, %v12682_v8 }
 0x705   : > { %v8221_v46 = vsel %vm8220_vm9, %v10828_v6, %v8217_v41  ;;  %v8291_v60 = vmul.f32 %v10832_v14, %v8290_v22  ;;  %v8304_v51 = vmul.f32 %v10834_v4, %v14774_v28  ;;  %vm6868_vm11 = vweird.f32 %v14776_v32  ;;  %vm8295_vm13 = vmor %vm8293_vm5, %vm8294_vm10 }
 0x706   : > { %v4041_v9 = vadd.f32 %v4040_v26, %v13587_v42  ;;  %v10836_v29 = vpop.eup %10835  ;;  %v8226_v48 = vsel %vm14794_vm4, %v8225_v18, %v8221_v46  ;;  %vm14822_vm12 = vcmp.eq.f32.partialorder %v8312_v57, 8.507059e+37  ;;  %v6872_v34 = vand.u32 2147483647, %v14776_v32 }
 0x707   : > { %10837 = vrcp.f32 %v14810_v19  ;;  %8801 = vst [vmem:[%s12764_s20 + $0x630] sm:$0xff] %v8226_v48  ;;  %v8292_v23 = vadd.f32 %v10832_v14, %v8291_v60  ;;  %v8305_v49 = vsub.f32 1.0, %v8304_v51  ;;  %v6864_v38 = vmul.f32 %v10836_v29, %v14776_v32  ;;  %v14902_v48 = vld [vmem:[%s16982_s14] sm:$0x7f] }
 0x708   : > { %v3987_v45 = vadd.f32 %v14727_v52, %v12698_v54  ;;  %vm8309_vm14 = vweird.f32 %v10834_v4  ;;  %v6874_v24 = vand.u32 2147483648, %v14776_v32  ;;  %10839 = vpow2.f32 %v10124_v5  ;;  %v14838_v52 = vpop.f32.mrf.mxu0 }
 0x709   : > { %v10125_v0 = vmul.f32 -1.442695, %v3898_v58  ;;  %v8296_v61 = vsel %vm8295_vm13, %v10832_v14, %v8292_v23  ;;  %v8306_v10 = vmul.f32 %v10834_v4, %v8305_v49  ;;  %v6865_v21 = vsub.f32 1.0, %v6864_v38  ;;  %vm8310_vm1 = vmor %vm8308_vm8, %vm8309_vm14  ;;  %v14891_v51 = vpop.f32.mrf.mxu1  ;;  %4237 = vmatmul.bf16.gmra.mxu1 %v13157_v62 }
 0x70a   : > { %v10029_v47 = vmul.f32 -1.442695, %v4041_v9  ;;  %v8301_v6 = vsel %vm14803_vm7, %v8300_v1, %v8296_v61  ;;  %v8315_v15 = vor.u32 1.1754944e-38, %v8314_v11  ;;  %vm6869_vm15 = vweird.f32 %v10836_v29 }
 0x70b   : > { %10841 = vpow2.f32 %v10125_v0  ;;  %8806 = vst [vmem:[%s12764_s20 + $0x658] sm:$0xff] %v8301_v6  ;;  %v8307_v55 = vadd.f32 %v10834_v4, %v8306_v10  ;;  %v6866_v56 = vmul.f32 %v10836_v29, %v6865_v21  ;;  %v10126_v31 = vmul.f32 -1.442695, %v3987_v45  ;;  %vm6870_vm3 = vmor %vm6868_vm11, %vm6869_vm15 }
 0x70c   : > { %10843 = vpow2.f32 %v10029_v47  ;;  %vm14844_vm2 = vcmp.eq.f32.partialorder %v6872_v34, 8.507059e+37  ;;  %v6875_v53 = vor.u32 1.1754944e-38, %v6874_v24  ;;  %v3811_v17 = vadd.f32 %v14710_v20, %v12680_v59 }
 0x70d   : > { %v10838_v63 = vpop.eup %10837  ;;  %v3900_v44 = vadd.f32 %v14712_v40, %v12682_v8  ;;  %v8311_v16 = vsel %vm8310_vm1, %v10834_v4, %v8307_v55  ;;  %v6867_v27 = vadd.f32 %v10836_v29, %v6866_v56  ;;  %v8327_v28 = vand.u32 2147483647, %v14810_v19 }
 0x70e   : > { %v8319_v14 = vmul.f32 %v10838_v63, %v14810_v19  ;;  %v10840_v36 = vpop.eup %10839  ;;  %v8316_v18 = vsel %vm14822_vm12, %v8315_v15, %v8311_v16  ;;  %10845 = vpow2.f32 %v10126_v31  ;;  %v10131_v59 = vmul.f32 -1.442695, %v3811_v17 }
 0x70f   : > { %v4043_v8 = vadd.f32 %v4042_v43, %v13587_v42  ;;  %8807 = vst [vmem:[%s12764_s20 + $0x660] sm:$0xff] %v8316_v18  ;;  %v6871_v20 = vsel %vm6870_vm3, %v10836_v29, %v6867_v27  ;;  %v14863_v2 = vadd.f32 1.0, %v10840_v36  ;;  %v10132_v50 = vmul.f32 -1.442695, %v3900_v44 }
 0x710   : > { %v8320_v40 = vsub.f32 1.0, %v8319_v14  ;;  %v6876_v26 = vsel %vm14844_vm2, %v6875_v53, %v6871_v20  ;;  %v8329_v39 = vand.u32 2147483648, %v14810_v19  ;;  %10847 = vpow2.f32 %v10131_v59 }
 0x711   : > { %v10842_v12 = vpop.eup %10841  ;;  %v3989_v32 = vadd.f32 %v14769_v37, %v12698_v54  ;;  %8711 = vst [vmem:[%s12764_s20 + $0x360] sm:$0xff] %v6876_v26  ;;  %vm8324_vm4 = vweird.f32 %v10838_v63  ;;  %10849 = vrcp.f32 %v14863_v2  ;;  %v10036_v22 = vmul.f32 -1.442695, %v4043_v8  ;;  %v14881_v54 = vpop.f32.mrf.mxu2 }
 0x712   : > { %v10844_v7 = vpop.eup %10843  ;;  %v8321_v1 = vmul.f32 %v10838_v63, %v8320_v40  ;;  %v14872_v57 = vadd.f32 1.0, %v10842_v12  ;;  %vm8323_vm5 = vweird.f32 %v14810_v19  ;;  %vm14877_vm6 = vcmp.eq.f32.partialorder %v8327_v28, 8.507059e+37  ;;  %v14889_v19 = vpop.f32.mrf.mxu0  ;;  %4148 = vmatmul.bf16.gmra.mxu0 %v13157_v62 }
 0x713   : > { %v14874_v41 = vadd.f32 1.0, %v10844_v7  ;;  %10851 = vpow2.f32 %v10132_v50  ;;  %vm14883_vm7 = vmor %vm8323_vm5, %vm8324_vm4  ;;  %v8330_v58 = vor.u32 1.1754944e-38, %v8329_v39  ;;  %v8402_v46 = vand.u32 2147483647, %v14863_v2 }
 0x714   : > { %v8322_v4 = vadd.f32 %v10838_v63, %v8321_v1  ;;  %v10846_v37 = vpop.eup %10845  ;;  %10853 = vrcp.f32 %v14872_v57  ;;  %v10133_v60 = vmul.f32 -1.442695, %v3989_v32  ;;  %v8404_v29 = vand.u32 2147483648, %v14863_v2 }
 0x715   : > { %10855 = vrcp.f32 %v14874_v41  ;;  %v14905_v13 = vperm.slane %v14902_v48, 4  ;;  %vm8398_vm8 = vweird.f32 %v14863_v2  ;;  %v8417_v38 = vand.u32 2147483647, %v14872_v57 }
 0x716   : > { %v8326_v9 = vsel %vm14883_vm7, %v10838_v63, %v8322_v4  ;;  %v10848_v34 = vpop.eup %10847  ;;  %10857 = vpow2.f32 %v10036_v22  ;;  %v8419_v45 = vand.u32 2147483648, %v14872_v57  ;;  %v14913_v24 = vadd.f32 1.0, %v10846_v37 }
 0x717   : > { %v8331_v23 = vsel %vm14877_vm6, %v8330_v58, %v8326_v9  ;;  %v10850_v49 = vpop.eup %10849  ;;  %v14915_v0 = vadd.f32 1.0, %v10848_v34  ;;  %vm14918_vm9 = vcmp.eq.f32.partialorder %v8402_v46, 8.507059e+37  ;;  %v6977_v21 = vand.u32 2147483647, %v14874_v41 }
 0x718   : > { %8808 = vst [vmem:[%s12764_s20 + $0x668] sm:$0xff] %v8331_v23  ;;  %v8394_v61 = vmul.f32 %v10850_v49, %v14863_v2  ;;  %10859 = vpow2.f32 %v10133_v60  ;;  %v8405_v6 = vor.u32 1.1754944e-38, %v8404_v29  ;;  %v6979_v15 = vand.u32 2147483648, %v14874_v41 }
 0x719   : > { %v10852_v47 = vpop.eup %10851  ;;  %10861 = vrcp.f32 %v14913_v24  ;;  %v14927_v55 = vadd.f32 %v14838_v52, %v14905_v13  ;;  %vm8413_vm10 = vweird.f32 %v14872_v57  ;;  %vm6973_vm11 = vweird.f32 %v14874_v41  ;;  %v14947_v8 = vpop.f32.mrf.mxu2  ;;  %4326 = vmatmul.bf16.gmra.mxu2 %v13157_v62 }
 0x71a   : > { %v10854_v56 = vpop.eup %10853  ;;  %v8395_v31 = vsub.f32 1.0, %v8394_v61  ;;  %10863 = vrcp.f32 %v14915_v0  ;;  %vm8399_vm12 = vweird.f32 %v10850_v49  ;;  %vm14933_vm13 = vcmp.eq.f32.partialorder %v8417_v38, 8.507059e+37  ;;  %v4045_v61 = vpop.f32.mrf.mxu3 }
 0x71b   : > { %v10856_v43 = vpop.eup %10855  ;;  %v8409_v63 = vmul.f32 %v10854_v56, %v14872_v57  ;;  %v8420_v53 = vor.u32 1.1754944e-38, %v8419_v45  ;;  %v8434_v52 = vand.u32 2147483648, %v14913_v24  ;;  %vm14939_vm14 = vcmp.eq.f32.partialorder %v6977_v21, 8.507059e+37  ;;  %vm8400_vm2 = vmor %vm8398_vm8, %vm8399_vm12 }
 0x71c   : > { %v10858_v17 = vpop.eup %10857  ;;  %v8396_v44 = vmul.f32 %v10850_v49, %v8395_v31  ;;  %v6969_v16 = vmul.f32 %v10856_v43, %v14874_v41  ;;  %v8432_v14 = vand.u32 2147483647, %v14913_v24  ;;  %v6980_v36 = vor.u32 1.1754944e-38, %v6979_v15 }
 0x71d   : > { %v8410_v28 = vsub.f32 1.0, %v8409_v63  ;;  %v8507_v18 = vand.u32 2147483647, %v14915_v0  ;;  %v14945_v59 = vadd.f32 1.0, %v10852_v47  ;;  %vm8414_vm15 = vweird.f32 %v10854_v56 }
 0x71e   : > { %v10860_v20 = vpop.eup %10859  ;;  %v8397_v40 = vadd.f32 %v10850_v49, %v8396_v44  ;;  %v6970_v50 = vsub.f32 1.0, %v6969_v16  ;;  %vm8428_vm1 = vweird.f32 %v14913_v24  ;;  %v8435_v39 = vor.u32 1.1754944e-38, %v8434_v52  ;;  %vm8415_vm7 = vmor %vm8413_vm10, %vm8414_vm15 }
 0x71f   : > { %v10862_v12 = vpop.eup %10861  ;;  %v8411_v26 = vmul.f32 %v10854_v56, %v8410_v28  ;;  %vm8503_vm3 = vweird.f32 %v14915_v0  ;;  %10865 = vrcp.f32 %v14945_v59  ;;  %v14956_v32 = vadd.f32 1.0, %v10858_v17 }
 0x720   : > { %v10864_v62 = vpop.eup %10863  ;;  %v8401_v7 = vsel %vm8400_vm2, %v10850_v49, %v8397_v40  ;;  %v6971_v1 = vmul.f32 %v10856_v43, %v6970_v50  ;;  %vm6974_vm4 = vweird.f32 %v10856_v43  ;;  %v8424_v22 = vmul.f32 %v10862_v12, %v14913_v24  ;;  %v4094_v40 = vpop.f32.mrf.mxu0 }
 0x721   : > { %vm14959_vm5 = vcmp.eq.f32.partialorder %v8432_v14, 8.507059e+37  ;;  %v8406_v2 = vsel %vm14918_vm9, %v8405_v6, %v8401_v7  ;;  %v8412_v11 = vadd.f32 %v10854_v56, %v8411_v26  ;;  %v8499_v37 = vmul.f32 %v10864_v62, %v14915_v0  ;;  %vm6975_vm9 = vmor %vm6973_vm11, %vm6974_vm4  ;;  %v4183_v50 = vpop.f32.mrf.mxu1 }
 0x722   : > { %vm14966_vm6 = vcmp.eq.f32.partialorder %v8507_v18, 8.507059e+37  ;;  %v8509_v58 = vand.u32 2147483648, %v14915_v0  ;;  %8813 = vst [vmem:[%s12764_s20 + $0x690] sm:$0xff] %v8406_v2  ;;  %v6972_v46 = vadd.f32 %v10856_v43, %v6971_v1  ;;  %v8425_v60 = vsub.f32 1.0, %v8424_v22 }
 0x723   : > { %vm8429_vm8 = vweird.f32 %v10862_v12  ;;  %v14975_v9 = vadd.f32 1.0, %v10860_v20  ;;  %v8416_v29 = vsel %vm8415_vm7, %v10854_v56, %v8412_v11  ;;  %v8500_v34 = vsub.f32 1.0, %v8499_v37  ;;  %v4047_v37 = vpop.f32.mrf.mxu3 }
 0x724   : > { %v8522_v23 = vand.u32 2147483647, %v14945_v59  ;;  %10867 = vrcp.f32 %v14956_v32  ;;  %v8421_v57 = vsel %vm14933_vm13, %v8420_v53, %v8416_v29  ;;  %v6976_v49 = vsel %vm6975_vm9, %v10856_v43, %v6972_v46  ;;  %vm8430_vm11 = vmor %vm8428_vm1, %vm8429_vm8 }
 0x725   : > { %v8426_v38 = vmul.f32 %v10862_v12, %v8425_v60  ;;  %v8524_v45 = vand.u32 2147483648, %v14945_v59  ;;  %v10866_v10 = vpop.eup %10865  ;;  %8814 = vst [vmem:[%s12764_s20 + $0x698] sm:$0xff] %v8421_v57  ;;  %v6981_v41 = vsel %vm14939_vm14, %v6980_v36, %v6976_v49  ;;  %v8501_v21 = vmul.f32 %v10864_v62, %v8500_v34 }
 0x726   : > { %vm8504_vm10 = vweird.f32 %v10864_v62  ;;  %v9918_v47 = vmul.f32 -1.442695, %v14927_v55  ;;  %8718 = vst [vmem:[%s12764_s20 + $0x398] sm:$0xff] %v6981_v41  ;;  %v8510_v15 = vor.u32 1.1754944e-38, %v8509_v58  ;;  %v8514_v56 = vmul.f32 %v10866_v10, %v14945_v59 }
 0x727   : > { %v8427_v6 = vadd.f32 %v10862_v12, %v8426_v38  ;;  %v7082_v31 = vand.u32 2147483647, %v14956_v32  ;;  %v8502_v43 = vadd.f32 %v10864_v62, %v8501_v21  ;;  %vm8518_vm12 = vweird.f32 %v14945_v59  ;;  %vm8505_vm13 = vmor %vm8503_vm3, %vm8504_vm10 }
 0x728   : > { %v7084_v63 = vand.u32 2147483648, %v14956_v32  ;;  %10869 = vrcp.f32 %v14975_v9  ;;  %v8515_v30 = vsub.f32 1.0, %v8514_v56  ;;  %vm15000_vm14 = vcmp.eq.f32.partialorder %v8522_v23, 8.507059e+37 }
 0x729   : > { %v8431_v55 = vsel %vm8430_vm11, %v10862_v12, %v8427_v6  ;;  %v8525_v24 = vor.u32 1.1754944e-38, %v8524_v45  ;;  %vm7078_vm15 = vweird.f32 %v14956_v32  ;;  %v8506_v44 = vsel %vm8505_vm13, %v10864_v62, %v8502_v43  ;;  %v15059_v6 = vpop.f32.mrf.mxu1  ;;  %4242 = vmatmul.bf16.gmra.mxu1 %v13258_v25 }
 0x72a   : > { %v10868_v52 = vpop.eup %10867  ;;  %v8436_v17 = vsel %vm14959_vm5, %v8435_v39, %v8431_v55  ;;  %vm8519_vm1 = vweird.f32 %v10866_v10  ;;  %10871 = vpow2.f32 %v9918_v47  ;;  %v8511_v0 = vsel %vm14966_vm6, %v8510_v15, %v8506_v44 }
 0x72b   : > { %8815 = vst [vmem:[%s12764_s20 + $0x6a0] sm:$0xff] %v8436_v17  ;;  %v8516_v16 = vmul.f32 %v10866_v10, %v8515_v30  ;;  %v7074_v27 = vmul.f32 %v10868_v52, %v14956_v32  ;;  %vm15011_vm2 = vcmp.eq.f32.partialorder %v7082_v31, 8.507059e+37  ;;  %v7085_v28 = vor.u32 1.1754944e-38, %v7084_v63  ;;  %vm8520_vm3 = vmor %vm8518_vm12, %vm8519_vm1  ;;  %v15070_v30 = vpop.f32.mrf.mxu2 }
 0x72c   : > { %8820 = vst [vmem:[%s12764_s20 + $0x6c8] sm:$0xff] %v8511_v0  ;;  %v8537_v36 = vand.u32 2147483647, %v14975_v9  ;;  %v15018_v18 = vperm.slane %v14902_v48, 5  ;;  %v4046_v20 = vadd.f32 %v4045_v61, %v13587_v42  ;;  %v15022_v39 = vperm.slane %v14902_v48, 6 }
 0x72d   : > { %v8517_v12 = vadd.f32 %v10866_v10, %v8516_v16  ;;  %v7075_v26 = vsub.f32 1.0, %v7074_v27  ;;  %v4092_v62 = vadd.f32 %v14889_v19, %v14905_v13  ;;  %v8539_v1 = vand.u32 2147483648, %v14975_v9 }
 0x72e   : > { %v10870_v7 = vpop.eup %10869  ;;  %v4179_v22 = vadd.f32 %v14852_v33, %v15018_v18  ;;  %v10043_v4 = vmul.f32 -1.442695, %v4046_v20  ;;  %v4181_v2 = vadd.f32 %v14891_v51, %v15018_v18  ;;  %vm7079_vm4 = vweird.f32 %v10868_v52 }
 0x72f   : > { %v8521_v48 = vsel %vm8520_vm3, %v10866_v10, %v8517_v12  ;;  %v7076_v11 = vmul.f32 %v10868_v52, %v7075_v26  ;;  %v8529_v19 = vmul.f32 %v10870_v7, %v14975_v9  ;;  %v4268_v46 = vadd.f32 %v14881_v54, %v15022_v39  ;;  %vm7080_vm5 = vmor %vm7078_vm15, %vm7079_vm4 }
 0x730   : > { %v10872_v5 = vpop.eup %10871  ;;  %v8526_v59 = vsel %vm15000_vm14, %v8525_v24, %v8521_v48  ;;  %v9919_v58 = vmul.f32 -1.442695, %v4179_v22  ;;  %10873 = vpow2.f32 %v10043_v4  ;;  %v9925_v29 = vmul.f32 -1.442695, %v4092_v62 }
 0x731   : > { %8821 = vst [vmem:[%s12764_s20 + $0x6d0] sm:$0xff] %v8526_v59  ;;  %v7077_v33 = vadd.f32 %v10868_v52, %v7076_v11  ;;  %v8530_v60 = vsub.f32 1.0, %v8529_v19  ;;  %v15040_v51 = vadd.f32 1.0, %v10872_v5  ;;  %v9920_v34 = vmul.f32 -1.442695, %v4268_v46 }
 0x732   : > { %10875 = vpow2.f32 %v9919_v58  ;;  %v9926_v23 = vmul.f32 -1.442695, %v4181_v2  ;;  %v4048_v57 = vadd.f32 %v4047_v37, %v13587_v42  ;;  %vm8534_vm6 = vweird.f32 %v10870_v7 }
 0x733   : > { %v7081_v49 = vsel %vm7080_vm5, %v10868_v52, %v7077_v33  ;;  %v8531_v38 = vmul.f32 %v10870_v7, %v8530_v60  ;;  %10877 = vrcp.f32 %v15040_v51  ;;  %vm8533_vm7 = vweird.f32 %v14975_v9  ;;  %v15057_v9 = vpop.f32.mrf.mxu0  ;;  %4153 = vmatmul.bf16.gmra.mxu0 %v13258_v25 }
 0x734   : > { %v7086_v54 = vsel %vm15011_vm2, %v7085_v28, %v7081_v49  ;;  %10879 = vpow2.f32 %v9920_v34  ;;  %vm15050_vm8 = vcmp.eq.f32.partialorder %v8537_v36, 8.507059e+37  ;;  %v4270_v61 = vadd.f32 %v14947_v8, %v15022_v39  ;;  %vm8535_vm9 = vmor %vm8533_vm7, %vm8534_vm6  ;;  %v4050_v28 = vpop.f32.mrf.mxu3 }
 0x735   : > { %8725 = vst [vmem:[%s12764_s20 + $0x3d0] sm:$0xff] %v7086_v54  ;;  %v8532_v45 = vadd.f32 %v10870_v7, %v8531_v38  ;;  %10881 = vpow2.f32 %v9925_v29  ;;  %v8540_v41 = vor.u32 1.1754944e-38, %v8539_v1  ;;  %v5312_v21 = vand.u32 2147483647, %v15040_v51 }
 0x736   : > { %v10874_v10 = vpop.eup %10873  ;;  %10883 = vpow2.f32 %v9926_v23  ;;  %v10050_v47 = vmul.f32 -1.442695, %v4048_v57  ;;  %v5314_v56 = vand.u32 2147483648, %v15040_v51  ;;  %v4095_v31 = vadd.f32 %v4094_v40, %v14905_v13  ;;  %v15116_v57 = vpop.f32.mrf.mxu2  ;;  %4331 = vmatmul.bf16.gmra.mxu2 %v13258_v25 }
 0x737   : > { %v8536_v15 = vsel %vm8535_vm9, %v10870_v7, %v8532_v45  ;;  %v15064_v8 = vadd.f32 1.0, %v10874_v10  ;;  %v4184_v55 = vadd.f32 %v4183_v50, %v15018_v18  ;;  %v9927_v52 = vmul.f32 -1.442695, %v4270_v61 }
 0x738   : > { %v10876_v43 = vpop.eup %10875  ;;  %v8541_v63 = vsel %vm15050_vm8, %v8540_v41, %v8536_v15  ;;  %vm5308_vm10 = vweird.f32 %v15040_v51  ;;  %vm15078_vm11 = vcmp.eq.f32.partialorder %v5312_v21, 8.507059e+37  ;;  %v5315_v27 = vor.u32 1.1754944e-38, %v5314_v56 }
 0x739   : > { %v10878_v53 = vpop.eup %10877  ;;  %8822 = vst [vmem:[%s12764_s20 + $0x6d8] sm:$0xff] %v8541_v63  ;;  %v15073_v24 = vadd.f32 1.0, %v10876_v43  ;;  %10885 = vrcp.f32 %v15064_v8  ;;  %v15083_v14 = vmul.f32 -1.442695, %v4095_v31  ;;  %v7187_v40 = vand.u32 2147483647, %v15064_v8 }
 0x73a   : > { %v10880_v17 = vpop.eup %10879  ;;  %v5304_v44 = vmul.f32 %v10878_v53, %v15040_v51  ;;  %10887 = vpow2.f32 %v10050_v47  ;;  %v15088_v12 = vmul.f32 -1.442695, %v4184_v55  ;;  %v7189_v26 = vand.u32 2147483648, %v15064_v8 }
 0x73b   : > { %v10882_v0 = vpop.eup %10881  ;;  %10889 = vrcp.f32 %v15073_v24  ;;  %v15086_v50 = vadd.f32 1.0, %v10880_v17  ;;  %vm5309_vm12 = vweird.f32 %v10878_v53  ;;  %v15097_v22 = vadd.f32 %v4050_v28, %v13587_v42 }
 0x73c   : > { %v10884_v36 = vpop.eup %10883  ;;  %v5305_v20 = vsub.f32 1.0, %v5304_v44  ;;  %v15091_v62 = vadd.f32 1.0, %v10882_v0  ;;  %10891 = vpow2.f32 %v9927_v52  ;;  %v5327_v2 = vand.u32 2147483647, %v15073_v24  ;;  %vm5310_vm1 = vmor %vm5308_vm10, %vm5309_vm12 }
 0x73d   : > { %v15093_v7 = vadd.f32 1.0, %v10884_v36  ;;  %10893 = vrcp.f32 %v15086_v50  ;;  %v5329_v48 = vand.u32 2147483648, %v15073_v24  ;;  %vm7183_vm13 = vweird.f32 %v15064_v8 }
 0x73e   : > { %v5306_v1 = vmul.f32 %v10878_v53, %v5305_v20  ;;  %10895 = vrcp.f32 %v15091_v62  ;;  %vm5323_vm14 = vweird.f32 %v15073_v24  ;;  %vm15105_vm15 = vcmp.eq.f32.partialorder %v7187_v40, 8.507059e+37 }
 0x73f   : > { %v10886_v4 = vpop.eup %10885  ;;  %v7190_v58 = vor.u32 1.1754944e-38, %v7189_v26  ;;  %v5342_v46 = vand.u32 2147483647, %v15086_v50  ;;  %v5344_v33 = vand.u32 2147483648, %v15086_v50  ;;  %10897 = vrcp.f32 %v15093_v7 }
 0x740   : > { %v10888_v11 = vpop.eup %10887  ;;  %v5307_v19 = vadd.f32 %v10878_v53, %v5306_v1  ;;  %v7179_v37 = vmul.f32 %v10886_v4, %v15064_v8  ;;  %v5417_v23 = vand.u32 2147483647, %v15091_v62  ;;  %vm15121_vm2 = vcmp.eq.f32.partialorder %v5327_v2, 8.507059e+37 }
 0x741   : > { %v10890_v59 = vpop.eup %10889  ;;  %v5330_v54 = vor.u32 1.1754944e-38, %v5329_v48  ;;  %vm5338_vm3 = vweird.f32 %v15086_v50  ;;  %vm7184_vm4 = vweird.f32 %v10886_v4  ;;  %v15127_v10 = vadd.f32 1.0, %v10888_v11 }
 0x742   : > { %v5311_v60 = vsel %vm5310_vm1, %v10878_v53, %v5307_v19  ;;  %v5319_v29 = vmul.f32 %v10890_v59, %v15073_v24  ;;  %v7180_v34 = vsub.f32 1.0, %v7179_v37  ;;  %v10892_v51 = vpop.eup %10891  ;;  %vm15130_vm5 = vcmp.eq.f32.partialorder %v5342_v46, 8.507059e+37  ;;  %vm7185_vm9 = vmor %vm7183_vm13, %vm7184_vm4  ;;  %v15162_v19 = vpop.f32.mrf.mxu1 }
 0x743   : > { %v5316_v49 = vsel %vm15078_vm11, %v5315_v27, %v5311_v60  ;;  %v10894_v45 = vpop.eup %10893  ;;  %v5345_v47 = vor.u32 1.1754944e-38, %v5344_v33  ;;  %vm5413_vm6 = vweird.f32 %v15091_v62  ;;  %vm5324_vm7 = vweird.f32 %v10890_v59 }
 0x744   : > { %8607 = vst [vmem:[%s12764_s20 + $0x20] sm:$0xff] %v5316_v49  ;;  %v5320_v32 = vsub.f32 1.0, %v5319_v29  ;;  %v7181_v61 = vmul.f32 %v10886_v4, %v7180_v34  ;;  %v10896_v41 = vpop.eup %10895  ;;  %v5334_v25 = vmul.f32 %v10894_v45, %v15086_v50  ;;  %vm15136_vm8 = vcmp.eq.f32.partialorder %v5417_v23, 8.507059e+37  ;;  %vm5325_vm10 = vmor %vm5323_vm14, %vm5324_vm7 }
 0x745   : > { %v5409_v31 = vmul.f32 %v10896_v41, %v15091_v62  ;;  %v10898_v63 = vpop.eup %10897  ;;  %v5419_v53 = vand.u32 2147483648, %v15091_v62  ;;  %10899 = vrcp.f32 %v15127_v10  ;;  %v15144_v52 = vadd.f32 1.0, %v10892_v51 }
 0x746   : > { %v5321_v15 = vmul.f32 %v10890_v59, %v5320_v32  ;;  %v7182_v56 = vadd.f32 %v10886_v4, %v7181_v61  ;;  %v5335_v55 = vsub.f32 1.0, %v5334_v25  ;;  %v5424_v16 = vmul.f32 %v10898_v63, %v15093_v7 }
 0x747   : > { %v5410_v0 = vsub.f32 1.0, %v5409_v31  ;;  %vm5339_vm11 = vweird.f32 %v10894_v45  ;;  %v5432_v28 = vand.u32 2147483647, %v15093_v7  ;;  %vm5414_vm12 = vweird.f32 %v10896_v41 }
 0x748   : > { %v5322_v17 = vadd.f32 %v10890_v59, %v5321_v15  ;;  %v7186_v44 = vsel %vm7185_vm9, %v10886_v4, %v7182_v56  ;;  %v5336_v27 = vmul.f32 %v10894_v45, %v5335_v55  ;;  %v5425_v40 = vsub.f32 1.0, %v5424_v16  ;;  %v15157_v4 = vpop.f32.mrf.mxu0  ;;  %vm5340_vm13 = vmor %vm5338_vm3, %vm5339_vm11 }
 0x749   : > { %v7191_v8 = vsel %vm15105_vm15, %v7190_v58, %v7186_v44  ;;  %v5411_v20 = vmul.f32 %v10896_v41, %v5410_v0  ;;  %v5434_v24 = vand.u32 2147483648, %v15093_v7  ;;  %10901 = vrcp.f32 %v15144_v52  ;;  %vm5415_vm15 = vmor %vm5413_vm6, %vm5414_vm12 }
 0x74a   : > { %v5326_v36 = vsel %vm5325_vm10, %v10890_v59, %v5322_v17  ;;  %8732 = vst [vmem:[%s12764_s20 + $0x408] sm:$0xff] %v7191_v8  ;;  %v5337_v1 = vadd.f32 %v10894_v45, %v5336_v27  ;;  %v5420_v48 = vor.u32 1.1754944e-38, %v5419_v53  ;;  %v5426_v11 = vmul.f32 %v10898_v63, %v5425_v40 }
 0x74b   : > { %v5331_v26 = vsel %vm15121_vm2, %v5330_v54, %v5326_v36  ;;  %v5412_v2 = vadd.f32 %v10896_v41, %v5411_v20  ;;  %vm5429_vm14 = vweird.f32 %v10898_v63  ;;  %v10900_v37 = vpop.eup %10899  ;;  %vm5428_vm1 = vweird.f32 %v15093_v7  ;;  %v4277_v36 = vpop.f32.mrf.mxu2 }
 0x74c   : > { %8608 = vst [vmem:[%s12764_s20 + $0x28] sm:$0xff] %v5331_v26  ;;  %v5341_v5 = vsel %vm5340_vm13, %v10894_v45, %v5337_v1  ;;  %vm15168_vm2 = vcmp.eq.f32.partialorder %v5432_v28, 8.507059e+37  ;;  %10903 = vpow2.f32 %v15083_v14  ;;  %v5427_v46 = vadd.f32 %v10898_v63, %v5426_v11  ;;  %vm5430_vm3 = vmor %vm5428_vm1, %vm5429_vm14  ;;  %v4052_v45 = vpop.f32.mrf.mxu3 }
 0x74d   : > { %v5346_v50 = vsel %vm15130_vm5, %v5345_v47, %v5341_v5  ;;  %v5416_v58 = vsel %vm5415_vm15, %v10896_v41, %v5412_v2  ;;  %v7284_v33 = vmul.f32 %v10900_v37, %v15127_v10  ;;  %v5435_v7 = vor.u32 1.1754944e-38, %v5434_v24 }
 0x74e   : > { %8609 = vst.msk [vmem:[%s12764_s20 + $0x30] sm:$0xff] %vm1588_vm0, %v5346_v50  ;;  %v5421_v62 = vsel %vm15136_vm8, %v5420_v48, %v5416_v58  ;;  %v7292_v60 = vand.u32 2147483647, %v15127_v10  ;;  %v7294_v29 = vand.u32 2147483648, %v15127_v10  ;;  %v5431_v14 = vsel %vm5430_vm3, %v10898_v63, %v5427_v46 }
 0x74f   : > { %8614 = vst [vmem:[%s12764_s20 + $0x58] sm:$0xff] %v5421_v62  ;;  %v7285_v34 = vsub.f32 1.0, %v7284_v33  ;;  %10905 = vpow2.f32 %v15088_v12  ;;  %v10057_v23 = vmul.f32 -1.442695, %v15097_v22  ;;  %v10902_v51 = vpop.eup %10901  ;;  %v5436_v49 = vsel %vm15168_vm2, %v5435_v7, %v5431_v14 }
 0x750   : > { %vm7288_vm4 = vweird.f32 %v15127_v10  ;;  %v4273_v38 = vadd.f32 %v15070_v30, %v15022_v39  ;;  %v4097_v54 = vadd.f32 %v15057_v9, %v14905_v13  ;;  %8615 = vst [vmem:[%s12764_s20 + $0x60] sm:$0xff] %v5436_v49  ;;  %vm7289_vm5 = vweird.f32 %v10900_v37  ;;  %v15206_v43 = vpop.f32.mrf.mxu0  ;;  %4158 = vmatmul.bf16.gmra.mxu0 %v13380_v3  ;;  %v15211_v10 = vpop.f32.mrf.mxu1  ;;  %4247 = vmatmul.bf16.gmra.mxu1 %v13380_v3 }
 0x751   : > { %v7286_v32 = vmul.f32 %v10900_v37, %v7285_v34  ;;  %v5439_v12 = vmul.f32 %v10902_v51, %v15144_v52  ;;  %10907 = vpow2.f32 %v10057_v23  ;;  %vm15194_vm6 = vcmp.eq.f32.partialorder %v7292_v60, 8.507059e+37  ;;  %vm7290_vm7 = vmor %vm7288_vm4, %vm7289_vm5 }
 0x752   : > { %v10904_v22 = vpop.eup %10903  ;;  %v7295_v41 = vor.u32 1.1754944e-38, %v7294_v29  ;;  %v9934_v25 = vmul.f32 -1.442695, %v4273_v38  ;;  %v4186_v30 = vadd.f32 %v15059_v6, %v15018_v18  ;;  %v9939_v15 = vmul.f32 -1.442695, %v4097_v54 }
 0x753   : > { %v7287_v21 = vadd.f32 %v10900_v37, %v7286_v32  ;;  %v5440_v47 = vsub.f32 1.0, %v5439_v12  ;;  %v15200_v9 = vadd.f32 1.0, %v10904_v22  ;;  %vm5444_vm8 = vweird.f32 %v10902_v51 }
 0x754   : > { %v5447_v56 = vand.u32 2147483647, %v15144_v52  ;;  %v5449_v31 = vand.u32 2147483648, %v15144_v52  ;;  %10909 = vpow2.f32 %v9934_v25  ;;  %v4053_v53 = vadd.f32 %v4052_v45, %v13587_v42  ;;  %v4055_v48 = vpop.f32.mrf.mxu3 }
 0x755   : > { %v10906_v6 = vpop.eup %10905  ;;  %v7291_v63 = vsel %vm7290_vm7, %v10900_v37, %v7287_v21  ;;  %v5441_v55 = vmul.f32 %v10902_v51, %v5440_v47  ;;  %10911 = vrcp.f32 %v15200_v9  ;;  %vm5443_vm9 = vweird.f32 %v15144_v52 }
 0x756   : > { %v7296_v17 = vsel %vm15194_vm6, %v7295_v41, %v7291_v63  ;;  %v15217_v44 = vadd.f32 1.0, %v10906_v6  ;;  %v9940_v0 = vmul.f32 -1.442695, %v4186_v30  ;;  %10913 = vpow2.f32 %v9939_v15  ;;  %vm5445_vm10 = vmor %vm5443_vm9, %vm5444_vm8  ;;  %v15265_v41 = vpop.f32.mrf.mxu2  ;;  %4336 = vmatmul.bf16.gmra.mxu2 %v13380_v3 }
 0x757   : > { %v10908_v16 = vpop.eup %10907  ;;  %8739 = vst [vmem:[%s12764_s20 + $0x440] sm:$0xff] %v7296_v17  ;;  %v5442_v8 = vadd.f32 %v10902_v51, %v5441_v55  ;;  %v4275_v27 = vadd.f32 %v15116_v57, %v15022_v39  ;;  %v4100_v28 = vadd.f32 %v15157_v4, %v14905_v13  ;;  %v5450_v20 = vor.u32 1.1754944e-38, %v5449_v31 }
 0x758   : > { %v5522_v52 = vand.u32 2147483647, %v15200_v9  ;;  %v5524_v40 = vand.u32 2147483648, %v15200_v9  ;;  %10915 = vrcp.f32 %v15217_v44  ;;  %vm5448_vm11 = vcmp.eq.f32.partialorder %v5447_v56, 8.507059e+37 }
 0x759   : > { %v5446_v26 = vsel %vm5445_vm10, %v10902_v51, %v5442_v8  ;;  %v15228_v1 = vadd.f32 1.0, %v10908_v16  ;;  %v10064_v24 = vmul.f32 -1.442695, %v4053_v53  ;;  %10917 = vpow2.f32 %v9940_v0 }
 0x75a   : > { %v10910_v57 = vpop.eup %10909  ;;  %v5451_v2 = vsel %vm5448_vm11, %v5450_v20, %v5446_v26  ;;  %v4189_v4 = vadd.f32 %v15162_v19, %v15018_v18  ;;  %vm5518_vm12 = vweird.f32 %v15200_v9  ;;  %v9941_v37 = vmul.f32 -1.442695, %v4275_v27 }
 0x75b   : > { %v10912_v11 = vpop.eup %10911  ;;  %8616 = vst.msk [vmem:[%s12764_s20 + $0x68] sm:$0xff] %vm1588_vm0, %v5451_v2  ;;  %10919 = vrcp.f32 %v15228_v1  ;;  %v15236_v5 = vmul.f32 -1.442695, %v4100_v28  ;;  %vm15239_vm13 = vcmp.eq.f32.partialorder %v5522_v52, 8.507059e+37  ;;  %v5525_v58 = vor.u32 1.1754944e-38, %v5524_v40 }
 0x75c   : > { %v5514_v59 = vmul.f32 %v10912_v11, %v15200_v9  ;;  %v5537_v19 = vand.u32 2147483647, %v15217_v44  ;;  %v10914_v46 = vpop.eup %10913  ;;  %v5539_v33 = vand.u32 2147483648, %v15217_v44  ;;  %v15245_v62 = vadd.f32 1.0, %v10910_v57 }
 0x75d   : > { %10921 = vpow2.f32 %v10064_v24  ;;  %v4056_v7 = vadd.f32 %v4055_v48, %v13587_v42  ;;  %vm5533_vm14 = vweird.f32 %v15217_v44  ;;  %v7397_v14 = vand.u32 2147483647, %v15228_v1 }
 0x75e   : > { %v10916_v60 = vpop.eup %10915  ;;  %v5515_v29 = vsub.f32 1.0, %v5514_v59  ;;  %v15250_v34 = vadd.f32 1.0, %v10914_v46  ;;  %v7399_v51 = vand.u32 2147483648, %v15228_v1  ;;  %10923 = vrcp.f32 %v15245_v62 }
 0x75f   : > { %v5529_v23 = vmul.f32 %v10916_v60, %v15217_v44  ;;  %v15255_v49 = vmul.f32 -1.442695, %v4189_v4  ;;  %v10918_v38 = vpop.eup %10917  ;;  %vm5519_vm15 = vweird.f32 %v10912_v11  ;;  %vm15257_vm1 = vcmp.eq.f32.partialorder %v5537_v19, 8.507059e+37 }
 0x760   : > { %v5516_v54 = vmul.f32 %v10912_v11, %v5515_v29  ;;  %10925 = vrcp.f32 %v15250_v34  ;;  %v5540_v22 = vor.u32 1.1754944e-38, %v5539_v33  ;;  %vm7393_vm2 = vweird.f32 %v15228_v1  ;;  %vm5520_vm4 = vmor %vm5518_vm12, %vm5519_vm15 }
 0x761   : > { %v10920_v32 = vpop.eup %10919  ;;  %v5530_v12 = vsub.f32 1.0, %v5529_v23  ;;  %v15263_v61 = vmul.f32 -1.442695, %v4056_v7  ;;  %vm15269_vm3 = vcmp.eq.f32.partialorder %v7397_v14, 8.507059e+37  ;;  %v4278_v47 = vadd.f32 %v4277_v36, %v15022_v39  ;;  %v15319_v23 = vpop.f32.mrf.mxu0 }
 0x762   : > { %v5517_v25 = vadd.f32 %v10912_v11, %v5516_v54  ;;  %v7389_v30 = vmul.f32 %v10920_v32, %v15228_v1  ;;  %vm5534_vm5 = vweird.f32 %v10916_v60  ;;  %v7400_v31 = vor.u32 1.1754944e-38, %v7399_v51  ;;  %v15321_v51 = vpop.f32.mrf.mxu1 }
 0x763   : > { %v10922_v15 = vpop.eup %10921  ;;  %v5531_v56 = vmul.f32 %v10916_v60, %v5530_v12  ;;  %v5552_v3 = vand.u32 2147483647, %v15245_v62  ;;  %v5554_v55 = vand.u32 2147483648, %v15245_v62  ;;  %v15279_v53 = vadd.f32 1.0, %v10918_v38  ;;  %vm5535_vm6 = vmor %vm5533_vm14, %vm5534_vm5 }
 0x764   : > { %v5521_v6 = vsel %vm5520_vm4, %v10912_v11, %v5517_v25  ;;  %v7390_v63 = vsub.f32 1.0, %v7389_v30  ;;  %v10924_v17 = vpop.eup %10923  ;;  %v15283_v8 = vadd.f32 1.0, %v10922_v15  ;;  %10927 = vpow2.f32 %v9941_v37 }
 0x765   : > { %v5526_v0 = vsel %vm15239_vm13, %v5525_v58, %v5521_v6  ;;  %v5532_v16 = vadd.f32 %v10916_v60, %v5531_v56  ;;  %vm7394_vm7 = vweird.f32 %v10920_v32  ;;  %v5544_v28 = vmul.f32 %v10924_v17, %v15245_v62 }
 0x766   : > { %v10926_v9 = vpop.eup %10925  ;;  %8621 = vst [vmem:[%s12764_s20 + $0x90] sm:$0xff] %v5526_v0  ;;  %v7391_v27 = vmul.f32 %v10920_v32, %v7390_v63  ;;  %10929 = vrcp.f32 %v15279_v53  ;;  %vm5548_vm8 = vweird.f32 %v15245_v62  ;;  %v5627_v52 = vand.u32 2147483647, %v15250_v34  ;;  %vm7395_vm10 = vmor %vm7393_vm2, %vm7394_vm7 }
 0x767   : > { %v5536_v36 = vsel %vm5535_vm6, %v10916_v60, %v5532_v16  ;;  %v5619_v20 = vmul.f32 %v10926_v9, %v15250_v34  ;;  %v5545_v24 = vsub.f32 1.0, %v5544_v28  ;;  %vm5623_vm9 = vweird.f32 %v15250_v34 }
 0x768   : > { %v5541_v40 = vsel %vm15257_vm1, %v5540_v22, %v5536_v36  ;;  %v7392_v26 = vadd.f32 %v10920_v32, %v7391_v27  ;;  %vm15299_vm11 = vcmp.eq.f32.partialorder %v5552_v3, 8.507059e+37  ;;  %v5629_v2 = vand.u32 2147483648, %v15250_v34 }
 0x769   : > { %8622 = vst [vmem:[%s12764_s20 + $0x98] sm:$0xff] %v5541_v40  ;;  %v5620_v57 = vsub.f32 1.0, %v5619_v20  ;;  %10931 = vrcp.f32 %v15283_v8  ;;  %v5546_v48 = vmul.f32 %v10924_v17, %v5545_v24  ;;  %vm5549_vm12 = vweird.f32 %v10924_v17 }
 0x76a   : > { %v7396_v4 = vsel %vm7395_vm10, %v10920_v32, %v7392_v26  ;;  %v5555_v11 = vor.u32 1.1754944e-38, %v5554_v55  ;;  %v10928_v37 = vpop.eup %10927  ;;  %vm5624_vm13 = vweird.f32 %v10926_v9  ;;  %vm15307_vm14 = vcmp.eq.f32.partialorder %v5627_v52, 8.507059e+37  ;;  %vm5550_vm15 = vmor %vm5548_vm8, %vm5549_vm12  ;;  %v15368_v26 = vpop.f32.mrf.mxu0  ;;  %4163 = vmatmul.bf16.gmra.mxu0 %v13569_v35 }
 0x76b   : > { %v7401_v59 = vsel %vm15269_vm3, %v7400_v31, %v7396_v4  ;;  %v5621_v1 = vmul.f32 %v10926_v9, %v5620_v57  ;;  %v5547_v19 = vadd.f32 %v10924_v17, %v5546_v48  ;;  %v5642_v46 = vand.u32 2147483647, %v15279_v53  ;;  %vm5625_vm1 = vmor %vm5623_vm9, %vm5624_vm13  ;;  %v15370_v24 = vpop.f32.mrf.mxu1  ;;  %4252 = vmatmul.bf16.gmra.mxu1 %v13569_v35 }
 0x76c   : > { %v10930_v58 = vpop.eup %10929  ;;  %8746 = vst [vmem:[%s12764_s20 + $0x478] sm:$0xff] %v7401_v59  ;;  %v15313_v33 = vadd.f32 1.0, %v10928_v37  ;;  %10933 = vpow2.f32 %v15236_v5  ;;  %v5630_v60 = vor.u32 1.1754944e-38, %v5629_v2  ;;  %v9948_v14 = vmul.f32 -1.442695, %v4278_v47  ;;  %v15379_v2 = vpop.f32.mrf.mxu2 }
 0x76d   : > { %v5622_v7 = vadd.f32 %v10926_v9, %v5621_v1  ;;  %v5634_v29 = vmul.f32 %v10930_v58, %v15279_v53  ;;  %v5551_v38 = vsel %vm5550_vm15, %v10924_v17, %v5547_v19  ;;  %vm5638_vm2 = vweird.f32 %v15279_v53  ;;  %v4057_v17 = vpop.f32.mrf.mxu3 }
 0x76e   : > { %v5644_v5 = vand.u32 2147483648, %v15279_v53  ;;  %10935 = vrcp.f32 %v15313_v33  ;;  %v5556_v54 = vsel %vm15299_vm11, %v5555_v11, %v5551_v38  ;;  %vm7498_vm3 = vweird.f32 %v15283_v8 }
 0x76f   : > { %v10932_v62 = vpop.eup %10931  ;;  %v5626_v45 = vsel %vm5625_vm1, %v10926_v9, %v5622_v7  ;;  %v5635_v32 = vsub.f32 1.0, %v5634_v29  ;;  %8623 = vst.msk [vmem:[%s12764_s20 + $0xa0] sm:$0xff] %vm1588_vm0, %v5556_v54  ;;  %vm15336_vm4 = vcmp.eq.f32.partialorder %v5642_v46, 8.507059e+37  ;;  %v7502_v25 = vand.u32 2147483647, %v15283_v8 }
 0x770   : > { %v5631_v34 = vsel %vm15307_vm14, %v5630_v60, %v5626_v45  ;;  %v7494_v22 = vmul.f32 %v10932_v62, %v15283_v8  ;;  %vm5639_vm5 = vweird.f32 %v10930_v58  ;;  %10937 = vpow2.f32 %v15255_v49 }
 0x771   : > { %8628 = vst [vmem:[%s12764_s20 + $0xc8] sm:$0xff] %v5631_v34  ;;  %v5636_v30 = vmul.f32 %v10930_v58, %v5635_v32  ;;  %v4102_v21 = vadd.f32 %v15206_v43, %v14905_v13  ;;  %v5645_v15 = vor.u32 1.1754944e-38, %v5644_v5  ;;  %10939 = vpow2.f32 %v15263_v61  ;;  %vm5640_vm6 = vmor %vm5638_vm2, %vm5639_vm5 }
 0x772   : > { %v10934_v47 = vpop.eup %10933  ;;  %v7495_v56 = vsub.f32 1.0, %v7494_v22  ;;  %v4191_v31 = vadd.f32 %v15211_v10, %v15018_v18  ;;  %v7504_v6 = vand.u32 2147483648, %v15283_v8  ;;  %vm7499_vm7 = vweird.f32 %v10932_v62 }
 0x773   : > { %v5637_v3 = vadd.f32 %v10930_v58, %v5636_v30  ;;  %v15350_v63 = vadd.f32 1.0, %v10934_v47  ;;  %v9953_v55 = vmul.f32 -1.442695, %v4102_v21  ;;  %v5657_v0 = vand.u32 2147483647, %v15313_v33  ;;  %vm15364_vm8 = vmor %vm7498_vm3, %vm7499_vm7 }
 0x774   : > { %v10936_v49 = vpop.eup %10935  ;;  %v7496_v43 = vmul.f32 %v10932_v62, %v7495_v56  ;;  %10941 = vpow2.f32 %v9948_v14  ;;  %v9954_v16 = vmul.f32 -1.442695, %v4191_v31  ;;  %v5659_v28 = vand.u32 2147483648, %v15313_v33 }
 0x775   : > { %v5641_v61 = vsel %vm5640_vm6, %v10930_v58, %v5637_v3  ;;  %v5649_v10 = vmul.f32 %v10936_v49, %v15313_v33  ;;  %10943 = vrcp.f32 %v15350_v63  ;;  %v4058_v53 = vadd.f32 %v4057_v17, %v13587_v42 }
 0x776   : > { %v5646_v9 = vsel %vm15336_vm4, %v5645_v15, %v5641_v61  ;;  %v7497_v27 = vadd.f32 %v10932_v62, %v7496_v43  ;;  %v10938_v36 = vpop.eup %10937  ;;  %vm7503_vm9 = vcmp.eq.f32.partialorder %v7502_v25, 8.507059e+37  ;;  %v7505_v52 = vor.u32 1.1754944e-38, %v7504_v6 }
 0x777   : > { %8629 = vst [vmem:[%s12764_s20 + $0xd0] sm:$0xff] %v5646_v9  ;;  %v5650_v40 = vsub.f32 1.0, %v5649_v10  ;;  %10945 = vpow2.f32 %v9953_v55  ;;  %v10940_v44 = vpop.eup %10939  ;;  %vm5653_vm10 = vweird.f32 %v15313_v33  ;;  %vm5654_vm11 = vweird.f32 %v10936_v49 }
 0x778   : > { %v7501_v8 = vsel %vm15364_vm8, %v10932_v62, %v7497_v27  ;;  %v15377_v57 = vadd.f32 1.0, %v10938_v36  ;;  %v15381_v11 = vadd.f32 1.0, %v10940_v44  ;;  %10947 = vpow2.f32 %v9954_v16  ;;  %vm5655_vm13 = vmor %vm5653_vm10, %vm5654_vm11 }
 0x779   : > { %v7506_v4 = vsel %vm7503_vm9, %v7505_v52, %v7501_v8  ;;  %v5651_v48 = vmul.f32 %v10936_v49, %v5650_v40  ;;  %vm15384_vm12 = vcmp.eq.f32.partialorder %v5657_v0, 8.507059e+37  ;;  %v5660_v1 = vor.u32 1.1754944e-38, %v5659_v28 }
 0x77a   : > { %v10942_v37 = vpop.eup %10941  ;;  %8753 = vst [vmem:[%s12764_s20 + $0x4b0] sm:$0xff] %v7506_v4  ;;  %10949 = vrcp.f32 %v15377_v57  ;;  %v10078_v50 = vmul.f32 -1.442695, %v4058_v53  ;;  %v5732_v46 = vand.u32 2147483647, %v15350_v63  ;;  %v4280_v7 = vadd.f32 %v15265_v41, %v15022_v39 }
 0x77b   : > { %v10944_v58 = vpop.eup %10943  ;;  %v5652_v19 = vadd.f32 %v10936_v49, %v5651_v48  ;;  %10951 = vrcp.f32 %v15381_v11  ;;  %vm5728_vm14 = vweird.f32 %v15350_v63  ;;  %v5734_v29 = vand.u32 2147483648, %v15350_v63 }
 0x77c   : > { %v5724_v60 = vmul.f32 %v10944_v58, %v15350_v63  ;;  %v5747_v14 = vand.u32 2147483647, %v15377_v57  ;;  %v5749_v62 = vand.u32 2147483648, %v15377_v57  ;;  %v7607_v54 = vand.u32 2147483647, %v15381_v11 }
 0x77d   : > { %v10946_v38 = vpop.eup %10945  ;;  %v5656_v5 = vsel %vm5655_vm13, %v10936_v49, %v5652_v19  ;;  %v15402_v41 = vadd.f32 1.0, %v10942_v37  ;;  %10953 = vpow2.f32 %v10078_v50  ;;  %vm15410_vm15 = vcmp.eq.f32.partialorder %v5732_v46, 8.507059e+37  ;;  %v15429_v49 = vpop.f32.mrf.mxu2  ;;  %4341 = vmatmul.bf16.gmra.mxu2 %v13569_v35 }
 0x77e   : > { %v5661_v33 = vsel %vm15384_vm12, %v5660_v1, %v5656_v5  ;;  %v5725_v45 = vsub.f32 1.0, %v5724_v60  ;;  %v15406_v32 = vadd.f32 1.0, %v10946_v38  ;;  %v10948_v34 = vpop.eup %10947  ;;  %v7609_v22 = vand.u32 2147483648, %v15381_v11  ;;  %v4060_v1 = vpop.f32.mrf.mxu3 }
 0x77f   : > { %8630 = vst.msk [vmem:[%s12764_s20 + $0xd8] sm:$0xff] %vm1588_vm0, %v5661_v33  ;;  %10955 = vrcp.f32 %v15402_v41  ;;  %v9955_v25 = vmul.f32 -1.442695, %v4280_v7  ;;  %vm5729_vm1 = vweird.f32 %v10944_v58  ;;  %v5735_v47 = vor.u32 1.1754944e-38, %v5734_v29 }
 0x780   : > { %v10950_v30 = vpop.eup %10949  ;;  %v5726_v21 = vmul.f32 %v10944_v58, %v5725_v45  ;;  %10957 = vrcp.f32 %v15406_v32  ;;  %vm5743_vm2 = vweird.f32 %v15377_v57  ;;  %vm15419_vm3 = vcmp.eq.f32.partialorder %v5747_v14, 8.507059e+37  ;;  %vm5730_vm6 = vmor %vm5728_vm14, %vm5729_vm1 }
 0x781   : > { %v10952_v15 = vpop.eup %10951  ;;  %v5739_v56 = vmul.f32 %v10950_v30, %v15377_v57  ;;  %vm7603_vm4 = vweird.f32 %v15381_v11  ;;  %v5750_v6 = vor.u32 1.1754944e-38, %v5749_v62  ;;  %vm15425_vm5 = vcmp.eq.f32.partialorder %v7607_v54, 8.507059e+37 }
 0x782   : > { %v5727_v3 = vadd.f32 %v10944_v58, %v5726_v21  ;;  %v7599_v55 = vmul.f32 %v10952_v15, %v15381_v11  ;;  %v7610_v0 = vor.u32 1.1754944e-38, %v7609_v22  ;;  %v5762_v61 = vand.u32 2147483647, %v15402_v41 }
 0x783   : > { %v5740_v43 = vsub.f32 1.0, %v5739_v56  ;;  %v15435_v10 = vadd.f32 1.0, %v10948_v34  ;;  %v10954_v16 = vpop.eup %10953  ;;  %vm5744_vm7 = vweird.f32 %v10950_v30  ;;  %vm5758_vm8 = vweird.f32 %v15402_v41 }
 0x784   : > { %v5731_v9 = vsel %vm5730_vm6, %v10944_v58, %v5727_v3  ;;  %v7600_v27 = vsub.f32 1.0, %v7599_v55  ;;  %10959 = vpow2.f32 %v9955_v25  ;;  %v4105_v53 = vadd.f32 %v15319_v23, %v14905_v13  ;;  %vm5745_vm12 = vmor %vm5743_vm2, %vm5744_vm7 }
 0x785   : > { %v10956_v28 = vpop.eup %10955  ;;  %v5736_v35 = vsel %vm15410_vm15, %v5735_v47, %v5731_v9  ;;  %v5741_v63 = vmul.f32 %v10950_v30, %v5740_v43  ;;  %10961 = vrcp.f32 %v15435_v10  ;;  %vm7604_vm9 = vweird.f32 %v10952_v15 }
 0x786   : > { %v10958_v36 = vpop.eup %10957  ;;  %8635 = vst [vmem:[%s12764_s20 + $0x100] sm:$0xff] %v5736_v35  ;;  %v7601_v20 = vmul.f32 %v10952_v15, %v7600_v27  ;;  %v5754_v52 = vmul.f32 %v10956_v28, %v15402_v41  ;;  %v5764_v40 = vand.u32 2147483648, %v15402_v41  ;;  %vm15446_vm10 = vcmp.eq.f32.partialorder %v5762_v61, 8.507059e+37  ;;  %vm7605_vm13 = vmor %vm7603_vm4, %vm7604_vm9  ;;  %v4062_v61 = vpop.f32.mrf.mxu3 }
 0x787   : > { %v5742_v44 = vadd.f32 %v10950_v30, %v5741_v63  ;;  %v5829_v4 = vmul.f32 %v10958_v36, %v15406_v32  ;;  %vm5833_vm11 = vweird.f32 %v15406_v32  ;;  %v5839_v37 = vand.u32 2147483648, %v15406_v32 }
 0x788   : > { %v7602_v23 = vadd.f32 %v10952_v15, %v7601_v20  ;;  %v5755_v48 = vsub.f32 1.0, %v5754_v52  ;;  %v15456_v59 = vadd.f32 1.0, %v10954_v16  ;;  %v5837_v19 = vand.u32 2147483647, %v15406_v32 }
 0x789   : > { %v5746_v50 = vsel %vm5745_vm12, %v10950_v30, %v5742_v44  ;;  %v5830_v58 = vsub.f32 1.0, %v5829_v4  ;;  %v9960_v46 = vmul.f32 -1.442695, %v4105_v53  ;;  %vm5759_vm14 = vweird.f32 %v10956_v28 }
 0x78a   : > { %v10960_v7 = vpop.eup %10959  ;;  %v5751_v57 = vsel %vm15419_vm3, %v5750_v6, %v5746_v50  ;;  %v7606_v60 = vsel %vm7605_vm13, %v10952_v15, %v7602_v23  ;;  %v5756_v29 = vmul.f32 %v10956_v28, %v5755_v48  ;;  %vm5834_vm15 = vweird.f32 %v10958_v36  ;;  %vm5760_vm1 = vmor %vm5758_vm8, %vm5759_vm14 }
 0x78b   : > { %v10962_v14 = vpop.eup %10961  ;;  %8636 = vst [vmem:[%s12764_s20 + $0x108] sm:$0xff] %v5751_v57  ;;  %v7611_v38 = vsel %vm15425_vm5, %v7610_v0, %v7606_v60  ;;  %v5831_v5 = vmul.f32 %v10958_v36, %v5830_v58  ;;  %10963 = vrcp.f32 %v15456_v59  ;;  %v5765_v62 = vor.u32 1.1754944e-38, %v5764_v40  ;;  %vm5835_vm2 = vmor %vm5833_vm11, %vm5834_vm15 }
 0x78c   : > { %8760 = vst [vmem:[%s12764_s20 + $0x4e8] sm:$0xff] %v7611_v38  ;;  %v5757_v11 = vadd.f32 %v10956_v28, %v5756_v29  ;;  %v5840_v54 = vor.u32 1.1754944e-38, %v5839_v37  ;;  %v5844_v33 = vmul.f32 %v10962_v14, %v15435_v10  ;;  %v5852_v34 = vand.u32 2147483647, %v15435_v10 }
 0x78d   : > { %v5832_v45 = vadd.f32 %v10958_v36, %v5831_v5  ;;  %v15472_v12 = vadd.f32 1.0, %v10960_v7  ;;  %10965 = vpow2.f32 %v9960_v46  ;;  %v5854_v30 = vand.u32 2147483648, %v15435_v10 }
 0x78e   : > { %v5761_v22 = vsel %vm5760_vm1, %v10956_v28, %v5757_v11  ;;  %v5845_v25 = vsub.f32 1.0, %v5844_v33  ;;  %v4194_v21 = vadd.f32 %v15321_v51, %v15018_v18  ;;  %vm5838_vm3 = vcmp.eq.f32.partialorder %v5837_v19, 8.507059e+37 }
 0x78f   : > { %v5766_v41 = vsel %vm15446_vm10, %v5765_v62, %v5761_v22  ;;  %v5836_v47 = vsel %vm5835_vm2, %v10958_v36, %v5832_v45  ;;  %10967 = vrcp.f32 %v15472_v12  ;;  %vm5848_vm4 = vweird.f32 %v15435_v10 }
 0x790   : > { %8637 = vst.msk [vmem:[%s12764_s20 + $0x110] sm:$0xff] %vm1588_vm0, %v5766_v41  ;;  %v5841_v15 = vsel %vm5838_vm3, %v5840_v54, %v5836_v47  ;;  %v5846_v56 = vmul.f32 %v10962_v14, %v5845_v25  ;;  %vm5849_vm5 = vweird.f32 %v10962_v14  ;;  %vm15486_vm6 = vcmp.eq.f32.partialorder %v5852_v34, 8.507059e+37 }
 0x791   : > { %v10964_v32 = vpop.eup %10963  ;;  %8642 = vst [vmem:[%s12764_s20 + $0x138] sm:$0xff] %v5841_v15  ;;  %v9961_v51 = vmul.f32 -1.442695, %v4194_v21  ;;  %v4061_v3 = vadd.f32 %v4060_v1, %v13587_v42  ;;  %v4283_v6 = vadd.f32 %v15379_v2, %v15022_v39  ;;  %v5855_v17 = vor.u32 1.1754944e-38, %v5854_v30  ;;  %vm5850_vm7 = vmor %vm5848_vm4, %vm5849_vm5  ;;  %v4109_v30 = vpop.f32.mrf.mxu0 }
 0x792   : > { %v5847_v55 = vadd.f32 %v10962_v14, %v5846_v56  ;;  %v7704_v43 = vmul.f32 %v10964_v32, %v15456_v59  ;;  %v7712_v0 = vand.u32 2147483647, %v15456_v59  ;;  %v7714_v16 = vand.u32 2147483648, %v15456_v59 }
 0x793   : > { %v10966_v10 = vpop.eup %10965  ;;  %10969 = vpow2.f32 %v9961_v51  ;;  %v10085_v9 = vmul.f32 -1.442695, %v4061_v3  ;;  %v9962_v27 = vmul.f32 -1.442695, %v4283_v6  ;;  %v4107_v2 = vadd.f32 %v15368_v26, %v14905_v13 }
 0x794   : > { %v5851_v28 = vsel %vm5850_vm7, %v10962_v14, %v5847_v55  ;;  %v7705_v35 = vsub.f32 1.0, %v7704_v43  ;;  %v15496_v63 = vadd.f32 1.0, %v10966_v10  ;;  %v4196_v20 = vadd.f32 %v15370_v24, %v15018_v18 }
 0x795   : > { %v10968_v53 = vpop.eup %10967  ;;  %v5856_v36 = vsel %vm15486_vm6, %v5855_v17, %v5851_v28  ;;  %10971 = vpow2.f32 %v10085_v9  ;;  %v4063_v52 = vadd.f32 %v4062_v61, %v13587_v42  ;;  %vm7709_vm8 = vweird.f32 %v10964_v32 }
 0x796   : > { %8643 = vst [vmem:[%s12764_s20 + $0x140] sm:$0xff] %v5856_v36  ;;  %v7706_v40 = vmul.f32 %v10964_v32, %v7705_v35  ;;  %v5859_v44 = vmul.f32 %v10968_v53, %v15472_v12  ;;  %10973 = vrcp.f32 %v15496_v63  ;;  %vm7708_vm9 = vweird.f32 %v15456_v59 }
 0x797   : > { %vm15509_vm10 = vcmp.eq.f32.partialorder %v7712_v0, 8.507059e+37  ;;  %v7715_v8 = vor.u32 1.1754944e-38, %v7714_v16  ;;  %10975 = vpow2.f32 %v9962_v27  ;;  %v9967_v24 = vmul.f32 -1.442695, %v4107_v2  ;;  %vm7710_vm11 = vmor %vm7708_vm9, %vm7709_vm8 }
 0x798   : > { %v7707_v4 = vadd.f32 %v10964_v32, %v7706_v40  ;;  %v5860_v23 = vsub.f32 1.0, %v5859_v44  ;;  %v9968_v48 = vmul.f32 -1.442695, %v4196_v20  ;;  %vm5864_vm12 = vweird.f32 %v10968_v53  ;;  %v4198_v20 = vpop.f32.mrf.mxu1 }
 0x799   : > { %v10970_v37 = vpop.eup %10969  ;;  %v5867_v1 = vand.u32 2147483647, %v15472_v12  ;;  %v5869_v50 = vand.u32 2147483648, %v15472_v12  ;;  %v10092_v58 = vmul.f32 -1.442695, %v4063_v52  ;;  %10977 = vpow2.f32 %v9967_v24 }
 0x79a   : > { %v7711_v59 = vsel %vm7710_vm11, %v10964_v32, %v7707_v4  ;;  %v5861_v19 = vmul.f32 %v10968_v53, %v5860_v23  ;;  %v15515_v46 = vadd.f32 1.0, %v10970_v37  ;;  %vm5863_vm13 = vweird.f32 %v15472_v12 }
 0x79b   : > { %v10972_v7 = vpop.eup %10971  ;;  %v7716_v57 = vsel %vm15509_vm10, %v7715_v8, %v7711_v59  ;;  %10979 = vpow2.f32 %v9968_v48  ;;  %v5942_v14 = vand.u32 2147483647, %v15496_v63  ;;  %v5944_v38 = vand.u32 2147483648, %v15496_v63  ;;  %vm5865_vm14 = vmor %vm5863_vm13, %vm5864_vm12 }
 0x79c   : > { %v10974_v60 = vpop.eup %10973  ;;  %8767 = vst [vmem:[%s12764_s20 + $0x520] sm:$0xff] %v7716_v57  ;;  %v5862_v29 = vadd.f32 %v10968_v53, %v5861_v19  ;;  %10981 = vrcp.f32 %v15515_v46  ;;  %v5870_v11 = vor.u32 1.1754944e-38, %v5869_v50  ;;  %v15526_v54 = vadd.f32 1.0, %v10972_v7 }
 0x79d   : > { %v10976_v5 = vpop.eup %10975  ;;  %v5934_v62 = vmul.f32 %v10974_v60, %v15496_v63  ;;  %v4285_v33 = vadd.f32 %v15429_v49, %v15022_v39  ;;  %vm5868_vm15 = vcmp.eq.f32.partialorder %v5867_v1, 8.507059e+37  ;;  %10983 = vpow2.f32 %v10092_v58 }
 0x79e   : > { %v5866_v45 = vsel %vm5865_vm14, %v10968_v53, %v5862_v29  ;;  %v15530_v34 = vadd.f32 1.0, %v10976_v5  ;;  %v5957_v25 = vand.u32 2147483647, %v15515_v46  ;;  %10985 = vrcp.f32 %v15526_v54  ;;  %v4065_v5 = vpop.f32.mrf.mxu3 }
 0x79f   : > { %v5871_v12 = vsel %vm5868_vm15, %v5870_v11, %v5866_v45  ;;  %v5935_v22 = vsub.f32 1.0, %v5934_v62  ;;  %v10978_v21 = vpop.eup %10977  ;;  %vm5938_vm1 = vweird.f32 %v15496_v63  ;;  %vm15537_vm2 = vcmp.eq.f32.partialorder %v5942_v14, 8.507059e+37 }
 0x7a0   : > { %8644 = vst.msk [vmem:[%s12764_s20 + $0x148] sm:$0xff] %vm1588_vm0, %v5871_v12  ;;  %v5945_v49 = vor.u32 1.1754944e-38, %v5944_v38  ;;  %10987 = vrcp.f32 %v15530_v34  ;;  %vm5939_vm3 = vweird.f32 %v10974_v60  ;;  %v5959_v56 = vand.u32 2147483648, %v15515_v46 }
 0x7a1   : > { %v10980_v47 = vpop.eup %10979  ;;  %v5936_v15 = vmul.f32 %v10974_v60, %v5935_v22  ;;  %v9969_v32 = vmul.f32 -1.442695, %v4285_v33  ;;  %vm5953_vm4 = vweird.f32 %v15515_v46  ;;  %v15544_v51 = vadd.f32 1.0, %v10978_v21  ;;  %vm5940_vm6 = vmor %vm5938_vm1, %vm5939_vm3 }
 0x7a2   : > { %v10982_v31 = vpop.eup %10981  ;;  %v15546_v3 = vadd.f32 1.0, %v10980_v47  ;;  %v4110_v6 = vadd.f32 %v4109_v30, %v14905_v13  ;;  %vm15550_vm5 = vcmp.eq.f32.partialorder %v5957_v25, 8.507059e+37  ;;  %v7817_v0 = vand.u32 2147483647, %v15526_v54  ;;  %v4287_v25 = vpop.f32.mrf.mxu2 }
 0x7a3   : > { %v5937_v55 = vadd.f32 %v10974_v60, %v5936_v15  ;;  %v5949_v17 = vmul.f32 %v10982_v31, %v15515_v46  ;;  %v10984_v61 = vpop.eup %10983  ;;  %v7819_v10 = vand.u32 2147483648, %v15526_v54  ;;  %v5972_v16 = vand.u32 2147483647, %v15530_v34 }
 0x7a4   : > { %v5974_v9 = vand.u32 2147483648, %v15530_v34  ;;  %10989 = vrcp.f32 %v15544_v51  ;;  %v10986_v27 = vpop.eup %10985  ;;  %v5960_v2 = vor.u32 1.1754944e-38, %v5959_v56  ;;  %vm7813_vm7 = vweird.f32 %v15526_v54  ;;  %v4200_v56 = vpop.f32.mrf.mxu1 }
 0x7a5   : > { %v5941_v28 = vsel %vm5940_vm6, %v10974_v60, %v5937_v55  ;;  %v5950_v35 = vsub.f32 1.0, %v5949_v17  ;;  %10991 = vrcp.f32 %v15546_v3  ;;  %v7809_v36 = vmul.f32 %v10986_v27, %v15526_v54 }
 0x7a6   : > { %v10988_v53 = vpop.eup %10987  ;;  %v5946_v63 = vsel %vm15537_vm2, %v5945_v49, %v5941_v28  ;;  %vm5968_vm8 = vweird.f32 %v15530_v34  ;;  %vm5954_vm9 = vweird.f32 %v10982_v31  ;;  %vm15568_vm10 = vcmp.eq.f32.partialorder %v7817_v0, 8.507059e+37  ;;  %v4111_v49 = vpop.f32.mrf.mxu0 }
 0x7a7   : > { %8649 = vst [vmem:[%s12764_s20 + $0x170] sm:$0xff] %v5946_v63  ;;  %v5951_v52 = vmul.f32 %v10982_v31, %v5950_v35  ;;  %v5964_v44 = vmul.f32 %v10988_v53, %v15530_v34  ;;  %v7810_v26 = vsub.f32 1.0, %v7809_v36  ;;  %v7820_v8 = vor.u32 1.1754944e-38, %v7819_v10  ;;  %vm5955_vm13 = vmor %vm5953_vm4, %vm5954_vm9 }
 0x7a8   : > { %vm15573_vm11 = vcmp.eq.f32.partialorder %v5972_v16, 8.507059e+37  ;;  %v5975_v23 = vor.u32 1.1754944e-38, %v5974_v9  ;;  %vm6043_vm12 = vweird.f32 %v15544_v51  ;;  %v15578_v37 = vadd.f32 1.0, %v10984_v61 }
 0x7a9   : > { %v5952_v24 = vadd.f32 %v10982_v31, %v5951_v52  ;;  %v5965_v48 = vsub.f32 1.0, %v5964_v44  ;;  %10993 = vpow2.f32 %v9969_v32  ;;  %v7811_v50 = vmul.f32 %v10986_v27, %v7810_v26  ;;  %v4067_v44 = vpop.f32.mrf.mxu3 }
 0x7aa   : > { %v10990_v1 = vpop.eup %10989  ;;  %vm7814_vm14 = vweird.f32 %v10986_v27  ;;  %vm5969_vm15 = vweird.f32 %v10988_v53  ;;  %v6047_v58 = vand.u32 2147483647, %v15544_v51  ;;  %v9974_v60 = vmul.f32 -1.442695, %v4110_v6 }
 0x7ab   : > { %v10992_v59 = vpop.eup %10991  ;;  %v5956_v19 = vsel %vm5955_vm13, %v10982_v31, %v5952_v24  ;;  %v5966_v7 = vmul.f32 %v10988_v53, %v5965_v48  ;;  %v6039_v57 = vmul.f32 %v10990_v1, %v15544_v51  ;;  %v7812_v14 = vadd.f32 %v10986_v27, %v7811_v50  ;;  %vm7815_vm1 = vmor %vm7813_vm7, %vm7814_vm14  ;;  %v4289_v24 = vpop.f32.mrf.mxu2 }
 0x7ac   : > { %v5961_v29 = vsel %vm15550_vm5, %v5960_v2, %v5956_v19  ;;  %v6049_v38 = vand.u32 2147483648, %v15544_v51  ;;  %v6054_v46 = vmul.f32 %v10992_v59, %v15546_v3  ;;  %v6062_v33 = vand.u32 2147483647, %v15546_v3  ;;  %vm5970_vm2 = vmor %vm5968_vm8, %vm5969_vm15 }
 0x7ad   : > { %8650 = vst [vmem:[%s12764_s20 + $0x178] sm:$0xff] %v5961_v29  ;;  %v5967_v11 = vadd.f32 %v10988_v53, %v5966_v7  ;;  %v6040_v62 = vsub.f32 1.0, %v6039_v57  ;;  %10995 = vrcp.f32 %v15578_v37  ;;  %v7816_v45 = vsel %vm7815_vm1, %v10986_v27, %v7812_v14 }
 0x7ae   : > { %vm6044_vm3 = vweird.f32 %v10990_v1  ;;  %v6055_v12 = vsub.f32 1.0, %v6054_v46  ;;  %v6064_v22 = vand.u32 2147483648, %v15546_v3  ;;  %v7821_v30 = vsel %vm15568_vm10, %v7820_v8, %v7816_v45 }
 0x7af   : > { %v10994_v54 = vpop.eup %10993  ;;  %v5971_v21 = vsel %vm5970_vm2, %v10988_v53, %v5967_v11  ;;  %v6041_v41 = vmul.f32 %v10990_v1, %v6040_v62  ;;  %10997 = vpow2.f32 %v9974_v60  ;;  %8774 = vst [vmem:[%s12764_s20 + $0x558] sm:$0xff] %v7821_v30  ;;  %vm15602_vm4 = vcmp.eq.f32.partialorder %v6047_v58, 8.507059e+37  ;;  %vm6045_vm6 = vmor %vm6043_vm12, %vm6044_vm3  ;;  %v4203_v60 = vpop.f32.mrf.mxu1 }
 0x7b0   : > { %v5976_v47 = vsel %vm15573_vm11, %v5975_v23, %v5971_v21  ;;  %v6056_v15 = vmul.f32 %v10992_v59, %v6055_v12  ;;  %vm6059_vm5 = vweird.f32 %v10992_v59  ;;  %v6050_v31 = vor.u32 1.1754944e-38, %v6049_v38 }
 0x7b1   : > { %8651 = vst.msk [vmem:[%s12764_s20 + $0x180] sm:$0xff] %vm1588_vm0, %v5976_v47  ;;  %v6042_v32 = vadd.f32 %v10990_v1, %v6041_v41  ;;  %v15608_v6 = vadd.f32 1.0, %v10994_v54  ;;  %v4199_v55 = vadd.f32 %v4198_v20, %v15018_v18  ;;  %vm6058_vm7 = vweird.f32 %v15546_v3 }
 0x7b2   : > { %v6057_v17 = vadd.f32 %v10992_v59, %v6056_v15  ;;  %vm6063_vm8 = vcmp.eq.f32.partialorder %v6062_v33, 8.507059e+37  ;;  %v4066_v43 = vadd.f32 %v4065_v5, %v13587_v42  ;;  %vm6060_vm9 = vmor %vm6058_vm7, %vm6059_vm5  ;;  %v6065_v10 = vor.u32 1.1754944e-38, %v6064_v22 }
 0x7b3   : > { %v10996_v0 = vpop.eup %10995  ;;  %v6046_v61 = vsel %vm6045_vm6, %v10990_v1, %v6042_v32  ;;  %10999 = vrcp.f32 %v15608_v6  ;;  %v4288_v16 = vadd.f32 %v4287_v25, %v15022_v39  ;;  %v4112_v3 = vadd.f32 %v4111_v49, %v14905_v13 }
 0x7b4   : > { %v6051_v51 = vsel %vm15602_vm4, %v6050_v31, %v6046_v61  ;;  %v6061_v9 = vsel %vm6060_vm9, %v10992_v59, %v6057_v17  ;;  %v7914_v27 = vmul.f32 %v10996_v0, %v15578_v37  ;;  %v7922_v2 = vand.u32 2147483647, %v15578_v37  ;;  %v4114_v59 = vpop.f32.mrf.mxu0  ;;  %v4070_v17 = vpop.f32.mrf.mxu3 }
 0x7b5   : > { %v10998_v28 = vpop.eup %10997  ;;  %8656 = vst [vmem:[%s12764_s20 + $0x1a8] sm:$0xff] %v6051_v51  ;;  %v6066_v35 = vsel %vm6063_vm8, %v6065_v10, %v6061_v9  ;;  %v9975_v53 = vmul.f32 -1.442695, %v4199_v55  ;;  %v4201_v63 = vadd.f32 %v4200_v56, %v15018_v18  ;;  %v7924_v20 = vand.u32 2147483648, %v15578_v37 }
 0x7b6   : > { %8657 = vst [vmem:[%s12764_s20 + $0x1b0] sm:$0xff] %v6066_v35  ;;  %v7915_v36 = vsub.f32 1.0, %v7914_v27  ;;  %v15627_v52 = vadd.f32 1.0, %v10998_v28  ;;  %v10099_v40 = vmul.f32 -1.442695, %v4066_v43  ;;  %vm7918_vm10 = vweird.f32 %v15578_v37 }
 0x7b7   : > { %v6077_v26 = vand.u32 2147483647, %v15608_v6  ;;  %11001 = vpow2.f32 %v9975_v53  ;;  %v9976_v8 = vmul.f32 -1.442695, %v4288_v16  ;;  %vm7919_vm11 = vweird.f32 %v10996_v0 }
 0x7b8   : > { %v7916_v4 = vmul.f32 %v10996_v0, %v7915_v36  ;;  %11003 = vrcp.f32 %v15627_v52  ;;  %v9981_v23 = vmul.f32 -1.442695, %v4112_v3  ;;  %vm15632_vm12 = vcmp.eq.f32.partialorder %v7922_v2, 8.507059e+37  ;;  %vm7920_vm14 = vmor %vm7918_vm10, %vm7919_vm11 }
 0x7b9   : > { %v11000_v48 = vpop.eup %10999  ;;  %11005 = vpow2.f32 %v10099_v40  ;;  %v9982_v50 = vmul.f32 -1.442695, %v4201_v63  ;;  %v4068_v58 = vadd.f32 %v4067_v44, %v13587_v42  ;;  %v7925_v7 = vor.u32 1.1754944e-38, %v7924_v20 }
 0x7ba   : > { %v7917_v19 = vadd.f32 %v10996_v0, %v7916_v4  ;;  %v6069_v57 = vmul.f32 %v11000_v48, %v15608_v6  ;;  %vm6073_vm13 = vweird.f32 %v15608_v6  ;;  %vm15642_vm15 = vcmp.eq.f32.partialorder %v6077_v26, 8.507059e+37 }
 0x7bb   : > { %v6079_v14 = vand.u32 2147483648, %v15608_v6  ;;  %11007 = vpow2.f32 %v9976_v8  ;;  %v4290_v38 = vadd.f32 %v4289_v24, %v15022_v39  ;;  %v4115_v11 = vadd.f32 %v4114_v59, %v14905_v13 }
 0x7bc   : > { %v7921_v46 = vsel %vm7920_vm14, %v10996_v0, %v7917_v19  ;;  %v6070_v5 = vsub.f32 1.0, %v6069_v57  ;;  %11009 = vpow2.f32 %v9981_v23  ;;  %v10106_v33 = vmul.f32 -1.442695, %v4068_v58 }
 0x7bd   : > { %v11002_v62 = vpop.eup %11001  ;;  %v7926_v37 = vsel %vm15632_vm12, %v7925_v7, %v7921_v46  ;;  %11011 = vpow2.f32 %v9982_v50  ;;  %v4204_v45 = vadd.f32 %v4203_v60, %v15018_v18  ;;  %vm6074_vm1 = vweird.f32 %v11000_v48 }
 0x7be   : > { %v11004_v12 = vpop.eup %11003  ;;  %8781 = vst [vmem:[%s12764_s20 + $0x590] sm:$0xff] %v7926_v37  ;;  %v6071_v22 = vmul.f32 %v11000_v48, %v6070_v5  ;;  %v15653_v25 = vadd.f32 1.0, %v11002_v62  ;;  %v9983_v54 = vmul.f32 -1.442695, %v4290_v38  ;;  %v6080_v21 = vor.u32 1.1754944e-38, %v6079_v14  ;;  %vm6075_vm3 = vmor %vm6073_vm13, %vm6074_vm1 }
 0x7bf   : > { %v11006_v30 = vpop.eup %11005  ;;  %v6144_v41 = vmul.f32 %v11004_v12, %v15627_v52  ;;  %vm6148_vm2 = vweird.f32 %v15627_v52  ;;  %v6152_v49 = vand.u32 2147483647, %v15627_v52  ;;  %v6154_v34 = vand.u32 2147483648, %v15627_v52 }
 0x7c0   : > { %v6072_v47 = vadd.f32 %v11000_v48, %v6071_v22  ;;  %11013 = vrcp.f32 %v15653_v25  ;;  %v9988_v15 = vmul.f32 -1.442695, %v4115_v11  ;;  %v15662_v31 = vadd.f32 1.0, %v11006_v30 }
 0x7c1   : > { %v11008_v56 = vpop.eup %11007  ;;  %v6145_v32 = vsub.f32 1.0, %v6144_v41  ;;  %11015 = vpow2.f32 %v10106_v33  ;;  %v9989_v55 = vmul.f32 -1.442695, %v4204_v45  ;;  %vm6149_vm4 = vweird.f32 %v11004_v12 }
 0x7c2   : > { %v11010_v43 = vpop.eup %11009  ;;  %v6076_v0 = vsel %vm6075_vm3, %v11000_v48, %v6072_v47  ;;  %v15664_v61 = vadd.f32 1.0, %v11008_v56  ;;  %11017 = vpow2.f32 %v9983_v54  ;;  %v6167_v6 = vand.u32 2147483647, %v15653_v25  ;;  %vm6150_vm7 = vmor %vm6148_vm2, %vm6149_vm4 }
 0x7c3   : > { %v11012_v10 = vpop.eup %11011  ;;  %v6081_v16 = vsel %vm15642_vm15, %v6080_v21, %v6076_v0  ;;  %v6146_v51 = vmul.f32 %v11004_v12, %v6145_v32  ;;  %11019 = vrcp.f32 %v15662_v31  ;;  %vm15672_vm5 = vcmp.eq.f32.partialorder %v6152_v49, 8.507059e+37 }
 0x7c4   : > { %8658 = vst.msk [vmem:[%s12764_s20 + $0x1b8] sm:$0xff] %vm1588_vm0, %v6081_v16  ;;  %v6155_v27 = vor.u32 1.1754944e-38, %v6154_v34  ;;  %11021 = vrcp.f32 %v15664_v61  ;;  %v15678_v3 = vadd.f32 %v4070_v17, %v13587_v42  ;;  %vm6163_vm6 = vweird.f32 %v15653_v25 }
 0x7c5   : > { %v6147_v28 = vadd.f32 %v11004_v12, %v6146_v51  ;;  %v6169_v35 = vand.u32 2147483648, %v15653_v25  ;;  %11023 = vpow2.f32 %v9988_v15  ;;  %v8027_v53 = vand.u32 2147483647, %v15662_v31 }
 0x7c6   : > { %v11014_v2 = vpop.eup %11013  ;;  %v8029_v63 = vand.u32 2147483648, %v15662_v31  ;;  %v15687_v36 = vadd.f32 1.0, %v11010_v43  ;;  %v15689_v20 = vadd.f32 1.0, %v11012_v10  ;;  %vm15692_vm8 = vcmp.eq.f32.partialorder %v6167_v6, 8.507059e+37 }
 0x7c7   : > { %v11016_v40 = vpop.eup %11015  ;;  %v6151_v44 = vsel %vm6150_vm7, %v11004_v12, %v6147_v28  ;;  %v6159_v26 = vmul.f32 %v11014_v2, %v15653_v25  ;;  %11025 = vpow2.f32 %v9989_v55  ;;  %v6182_v23 = vand.u32 2147483647, %v15664_v61 }
 0x7c8   : > { %v11018_v52 = vpop.eup %11017  ;;  %v6156_v4 = vsel %vm15672_vm5, %v6155_v27, %v6151_v44  ;;  %v6184_v24 = vand.u32 2147483648, %v15664_v61  ;;  %11027 = vrcp.f32 %v15687_v36  ;;  %v6170_v50 = vor.u32 1.1754944e-38, %v6169_v35 }
 0x7c9   : > { %v11020_v48 = vpop.eup %11019  ;;  %8663 = vst [vmem:[%s12764_s20 + $0x1e0] sm:$0xff] %v6156_v4  ;;  %v6160_v1 = vsub.f32 1.0, %v6159_v26  ;;  %vm8023_vm9 = vweird.f32 %v15662_v31  ;;  %11029 = vrcp.f32 %v15689_v20  ;;  %vm15705_vm10 = vcmp.eq.f32.partialorder %v8027_v53, 8.507059e+37 }
 0x7ca   : > { %v11022_v58 = vpop.eup %11021  ;;  %v8019_v59 = vmul.f32 %v11020_v48, %v15662_v31  ;;  %v8030_v7 = vor.u32 1.1754944e-38, %v8029_v63  ;;  %vm6178_vm11 = vweird.f32 %v15664_v61  ;;  %vm6164_vm12 = vweird.f32 %v11014_v2  ;;  %v4292_v63 = vpop.f32.mrf.mxu2 }
 0x7cb   : > { %v11024_v57 = vpop.eup %11023  ;;  %v6161_v60 = vmul.f32 %v11014_v2, %v6160_v1  ;;  %v6174_v29 = vmul.f32 %v11022_v58, %v15664_v61  ;;  %v6257_v14 = vand.u32 2147483647, %v15687_v36  ;;  %vm15712_vm13 = vcmp.eq.f32.partialorder %v6182_v23, 8.507059e+37  ;;  %vm6165_vm1 = vmor %vm6163_vm6, %vm6164_vm12  ;;  %v4116_v23 = vpop.f32.mrf.mxu0 }
 0x7cc   : > { %v8020_v38 = vsub.f32 1.0, %v8019_v59  ;;  %v6185_v5 = vor.u32 1.1754944e-38, %v6184_v24  ;;  %v6259_v11 = vand.u32 2147483648, %v15687_v36  ;;  %vm8024_vm14 = vweird.f32 %v11020_v48 }
 0x7cd   : > { %v11026_v62 = vpop.eup %11025  ;;  %v6162_v37 = vadd.f32 %v11014_v2, %v6161_v60  ;;  %v6175_v33 = vsub.f32 1.0, %v6174_v29  ;;  %vm6253_vm15 = vweird.f32 %v15687_v36  ;;  %v15718_v45 = vadd.f32 1.0, %v11016_v40  ;;  %vm8025_vm5 = vmor %vm8023_vm9, %vm8024_vm14 }
 0x7ce   : > { %v11028_v12 = vpop.eup %11027  ;;  %v8021_v22 = vmul.f32 %v11020_v48, %v8020_v38  ;;  %vm6179_vm2 = vweird.f32 %v11022_v58  ;;  %vm6268_vm3 = vweird.f32 %v15689_v20  ;;  %v6272_v54 = vand.u32 2147483647, %v15689_v20 }
 0x7cf   : > { %v11030_v30 = vpop.eup %11029  ;;  %v6166_v21 = vsel %vm6165_vm1, %v11014_v2, %v6162_v37  ;;  %v6176_v41 = vmul.f32 %v11022_v58, %v6175_v33  ;;  %v6249_v49 = vmul.f32 %v11028_v12, %v15687_v36  ;;  %vm15725_vm4 = vcmp.eq.f32.partialorder %v6257_v14, 8.507059e+37  ;;  %vm6180_vm6 = vmor %vm6178_vm11, %vm6179_vm2 }
 0x7d0   : > { %v15729_v34 = vadd.f32 1.0, %v11018_v52  ;;  %v6171_v25 = vsel %vm15692_vm8, %v6170_v50, %v6166_v21  ;;  %v8022_v15 = vadd.f32 %v11020_v48, %v8021_v22  ;;  %v6264_v56 = vmul.f32 %v11030_v30, %v15689_v20  ;;  %v4072_v22 = vpop.f32.mrf.mxu3 }
 0x7d1   : > { %v6274_v32 = vand.u32 2147483648, %v15689_v20  ;;  %8664 = vst [vmem:[%s12764_s20 + $0x1e8] sm:$0xff] %v6171_v25  ;;  %v6177_v55 = vadd.f32 %v11022_v58, %v6176_v41  ;;  %v6250_v17 = vsub.f32 1.0, %v6249_v49  ;;  %11031 = vrcp.f32 %v15718_v45 }
 0x7d2   : > { %v15740_v43 = vadd.f32 1.0, %v11024_v57  ;;  %v8026_v0 = vsel %vm8025_vm5, %v11020_v48, %v8022_v15  ;;  %vm6254_vm7 = vweird.f32 %v11028_v12  ;;  %v6265_v10 = vsub.f32 1.0, %v6264_v56 }
 0x7d3   : > { %vm6269_vm8 = vweird.f32 %v11030_v30  ;;  %v8031_v16 = vsel %vm15705_vm10, %v8030_v7, %v8026_v0  ;;  %v6181_v31 = vsel %vm6180_vm6, %v11022_v58, %v6177_v55  ;;  %v6251_v51 = vmul.f32 %v11028_v12, %v6250_v17  ;;  %vm6255_vm10 = vmor %vm6253_vm15, %vm6254_vm7  ;;  %v4205_v7 = vpop.f32.mrf.mxu1  ;;  %v4294_v55 = vpop.f32.mrf.mxu2 }
 0x7d4   : > { %11033 = vrcp.f32 %v15729_v34  ;;  %8788 = vst [vmem:[%s12764_s20 + $0x5c8] sm:$0xff] %v8031_v16  ;;  %v6186_v6 = vsel %vm15712_vm13, %v6185_v5, %v6181_v31  ;;  %v6266_v9 = vmul.f32 %v11030_v30, %v6265_v10  ;;  %v8132_v27 = vand.u32 2147483647, %v15718_v45  ;;  %vm6270_vm11 = vmor %vm6268_vm3, %vm6269_vm8 }
 0x7d5   : > { %v8134_v61 = vand.u32 2147483648, %v15718_v45  ;;  %8665 = vst.msk [vmem:[%s12764_s20 + $0x1f0] sm:$0xff] %vm1588_vm0, %v6186_v6  ;;  %v6252_v28 = vadd.f32 %v11028_v12, %v6251_v51  ;;  %v6260_v35 = vor.u32 1.1754944e-38, %v6259_v11  ;;  %vm15755_vm9 = vcmp.eq.f32.partialorder %v6272_v54, 8.507059e+37  ;;  %v4119_v51 = vpop.f32.mrf.mxu0 }
 0x7d6   : > { %v15759_v53 = vadd.f32 1.0, %v11026_v62  ;;  %v6267_v40 = vadd.f32 %v11030_v30, %v6266_v9  ;;  %v6287_v44 = vand.u32 2147483647, %v15729_v34  ;;  %v6289_v26 = vand.u32 2147483648, %v15729_v34 }
 0x7d7   : > { %11035 = vrcp.f32 %v15740_v43  ;;  %v11032_v8 = vpop.eup %11031  ;;  %v6256_v52 = vsel %vm6255_vm10, %v11028_v12, %v6252_v28  ;;  %v6275_v4 = vor.u32 1.1754944e-38, %v6274_v32  ;;  %vm8128_vm12 = vweird.f32 %v15718_v45 }
 0x7d8   : > { %v6364_v36 = vand.u32 2147483648, %v15740_v43  ;;  %v6261_v24 = vsel %vm15725_vm4, %v6260_v35, %v6256_v52  ;;  %v6271_v48 = vsel %vm6270_vm11, %v11030_v30, %v6267_v40  ;;  %v8124_v1 = vmul.f32 %v11032_v8, %v15718_v45 }
 0x7d9   : > { %vm15775_vm13 = vcmp.eq.f32.partialorder %v8132_v27, 8.507059e+37  ;;  %v8135_v58 = vor.u32 1.1754944e-38, %v8134_v61  ;;  %8670 = vst [vmem:[%s12764_s20 + $0x218] sm:$0xff] %v6261_v24  ;;  %v6276_v59 = vsel %vm15755_vm9, %v6275_v4, %v6271_v48  ;;  %vm6283_vm14 = vweird.f32 %v15729_v34  ;;  %v4075_v24 = vpop.f32.mrf.mxu3 }
 0x7da   : > { %v11034_v20 = vpop.eup %11033  ;;  %v6362_v19 = vand.u32 2147483647, %v15740_v43  ;;  %11037 = vrcp.f32 %v15759_v53  ;;  %8671 = vst [vmem:[%s12764_s20 + $0x220] sm:$0xff] %v6276_v59  ;;  %v8125_v57 = vsub.f32 1.0, %v8124_v1  ;;  %vm15787_vm15 = vcmp.eq.f32.partialorder %v6287_v44, 8.507059e+37 }
 0x7db   : > { %v6279_v60 = vmul.f32 %v11034_v20, %v15729_v34  ;;  %v6290_v14 = vor.u32 1.1754944e-38, %v6289_v26  ;;  %vm8129_vm1 = vweird.f32 %v11032_v8  ;;  %vm6358_vm2 = vweird.f32 %v15740_v43  ;;  %v4208_v40 = vpop.f32.mrf.mxu1 }
 0x7dc   : > { %v6365_v38 = vor.u32 1.1754944e-38, %v6364_v36  ;;  %v10113_v46 = vmul.f32 -1.442695, %v15678_v3  ;;  %v4293_v5 = vadd.f32 %v4292_v63, %v15022_v39  ;;  %v8126_v62 = vmul.f32 %v11032_v8, %v8125_v57  ;;  %vm8130_vm4 = vmor %vm8128_vm12, %vm8129_vm1 }
 0x7dd   : > { %v11036_v11 = vpop.eup %11035  ;;  %v6280_v37 = vsub.f32 1.0, %v6279_v60  ;;  %v4117_v33 = vadd.f32 %v4116_v23, %v14905_v13  ;;  %v4206_v12 = vadd.f32 %v4205_v7, %v15018_v18  ;;  %vm6284_vm3 = vweird.f32 %v11034_v20 }
 0x7de   : > { %v6354_v54 = vmul.f32 %v11036_v11, %v15740_v43  ;;  %v6377_v30 = vand.u32 2147483647, %v15759_v53  ;;  %v6379_v21 = vand.u32 2147483648, %v15759_v53  ;;  %v8127_v41 = vadd.f32 %v11032_v8, %v8126_v62  ;;  %vm6285_vm6 = vmor %vm6283_vm14, %vm6284_vm3 }
 0x7df   : > { %v6281_v49 = vmul.f32 %v11034_v20, %v6280_v37  ;;  %11039 = vpow2.f32 %v10113_v46  ;;  %v9990_v3 = vmul.f32 -1.442695, %v4293_v5  ;;  %v9995_v15 = vmul.f32 -1.442695, %v4117_v33 }
 0x7e0   : > { %v11038_v47 = vpop.eup %11037  ;;  %v6355_v25 = vsub.f32 1.0, %v6354_v54  ;;  %v9996_v56 = vmul.f32 -1.442695, %v4206_v12  ;;  %v4073_v32 = vadd.f32 %v4072_v22, %v13587_v42  ;;  %v8131_v17 = vsel %vm8130_vm4, %v11032_v8, %v8127_v41 }
 0x7e1   : > { %v6282_v0 = vadd.f32 %v11034_v20, %v6281_v49  ;;  %vm6359_vm5 = vweird.f32 %v11036_v11  ;;  %v6369_v10 = vmul.f32 %v11038_v47, %v15759_v53  ;;  %v8136_v16 = vsel %vm15775_vm13, %v8135_v58, %v8131_v17 }
 0x7e2   : > { %v6356_v45 = vmul.f32 %v11036_v11, %v6355_v25  ;;  %11041 = vpow2.f32 %v9990_v3  ;;  %v10120_v31 = vmul.f32 -1.442695, %v4073_v32  ;;  %8795 = vst [vmem:[%s12764_s20 + $0x600] sm:$0xff] %v8136_v16  ;;  %v4295_v27 = vadd.f32 %v4294_v55, %v15022_v39  ;;  %vm6360_vm8 = vmor %vm6358_vm2, %vm6359_vm5 }
 0x7e3   : > { %v6286_v6 = vsel %vm6285_vm6, %v11034_v20, %v6282_v0  ;;  %v6370_v9 = vsub.f32 1.0, %v6369_v10  ;;  %11043 = vpow2.f32 %v9995_v15  ;;  %vm6374_vm7 = vweird.f32 %v11038_v47 }
 0x7e4   : > { %v6291_v61 = vsel %vm15787_vm15, %v6290_v14, %v6286_v6  ;;  %v6357_v28 = vadd.f32 %v11036_v11, %v6356_v45  ;;  %11045 = vpow2.f32 %v9996_v56  ;;  %v9997_v2 = vmul.f32 -1.442695, %v4295_v27 }
 0x7e5   : > { %v11040_v35 = vpop.eup %11039  ;;  %8672 = vst.msk [vmem:[%s12764_s20 + $0x228] sm:$0xff] %vm1588_vm0, %v6291_v61  ;;  %v6371_v34 = vmul.f32 %v11038_v47, %v6370_v9  ;;  %11047 = vpow2.f32 %v10120_v31  ;;  %v4120_v63 = vadd.f32 %v4119_v51, %v14905_v13  ;;  %vm6363_vm9 = vcmp.eq.f32.partialorder %v6362_v19, 8.507059e+37 }
 0x7e6   : > { %v6361_v44 = vsel %vm6360_vm8, %v11036_v11, %v6357_v28  ;;  %v15821_v26 = vadd.f32 1.0, %v11040_v35  ;;  %vm6373_vm10 = vweird.f32 %v15759_v53  ;;  %11049 = vpow2.f32 %v9997_v2 }
 0x7e7   : > { %v6366_v8 = vsel %vm6363_vm9, %v6365_v38, %v6361_v44  ;;  %v6372_v52 = vadd.f32 %v11038_v47, %v6371_v34  ;;  %vm6375_vm11 = vmor %vm6373_vm10, %vm6374_vm7  ;;  %v6380_v36 = vor.u32 1.1754944e-38, %v6379_v21  ;;  %v4209_v23 = vadd.f32 %v4208_v40, %v15018_v18 }
 0x7e8   : > { %v11042_v4 = vpop.eup %11041  ;;  %8677 = vst [vmem:[%s12764_s20 + $0x250] sm:$0xff] %v6366_v8  ;;  %11051 = vrcp.f32 %v15821_v26  ;;  %vm6378_vm12 = vcmp.eq.f32.partialorder %v6377_v30, 8.507059e+37  ;;  %v10002_v50 = vmul.f32 -1.442695, %v4120_v63  ;;  %v4076_v19 = vadd.f32 %v4075_v24, %v13587_v42 }
 0x7e9   : > { %v11044_v43 = vpop.eup %11043  ;;  %v6376_v48 = vsel %vm6375_vm11, %v11038_v47, %v6372_v52  ;;  %v15828_v1 = vadd.f32 1.0, %v11042_v4  ;;  %v8237_v7 = vand.u32 2147483647, %v15821_v26  ;;  %v8239_v57 = vand.u32 2147483648, %v15821_v26  ;;  %v15862_v47 = vpop.f32.mrf.mxu2 }
 0x7ea   : > { %v11046_v58 = vpop.eup %11045  ;;  %v6381_v53 = vsel %vm6378_vm12, %v6380_v36, %v6376_v48  ;;  %v15830_v20 = vadd.f32 1.0, %v11044_v43  ;;  %v10003_v60 = vmul.f32 -1.442695, %v4209_v23  ;;  %vm8233_vm13 = vweird.f32 %v15821_v26 }
 0x7eb   : > { %v11048_v59 = vpop.eup %11047  ;;  %8678 = vst [vmem:[%s12764_s20 + $0x258] sm:$0xff] %v6381_v53  ;;  %11053 = vrcp.f32 %v15828_v1  ;;  %v6394_v14 = vand.u32 2147483648, %v15828_v1  ;;  %v15839_v38 = vadd.f32 1.0, %v11046_v58  ;;  %v6392_v11 = vand.u32 2147483647, %v15828_v1 }
 0x7ec   : > { %11055 = vrcp.f32 %v15830_v20  ;;  %v11050_v29 = vpop.eup %11049  ;;  %v15841_v46 = vadd.f32 1.0, %v11048_v59  ;;  %v6469_v62 = vand.u32 2147483648, %v15830_v20  ;;  %v6467_v12 = vand.u32 2147483647, %v15830_v20  ;;  %v4121_v59 = vpop.f32.mrf.mxu0 }
 0x7ed   : > { %11057 = vpow2.f32 %v10002_v50  ;;  %v15846_v37 = vadd.f32 1.0, %v11050_v29  ;;  %v15851_v22 = vmul.f32 -1.442695, %v4076_v19  ;;  %vm15853_vm14 = vcmp.eq.f32.partialorder %v8237_v7, 8.507059e+37 }
 0x7ee   : > { %v11052_v5 = vpop.eup %11051  ;;  %11059 = vrcp.f32 %v15839_v38  ;;  %v8240_v30 = vor.u32 1.1754944e-38, %v8239_v57  ;;  %vm6388_vm15 = vweird.f32 %v15828_v1  ;;  %v6395_v49 = vor.u32 1.1754944e-38, %v6394_v14 }
 0x7ef   : > { %v8229_v33 = vmul.f32 %v11052_v5, %v15821_v26  ;;  %11061 = vrcp.f32 %v15841_v46  ;;  %vm6463_vm1 = vweird.f32 %v15830_v20  ;;  %v6484_v3 = vand.u32 2147483648, %v15839_v38 }
 0x7f0   : > { %11063 = vrcp.f32 %v15846_v37  ;;  %vm15865_vm2 = vcmp.eq.f32.partialorder %v6392_v11, 8.507059e+37  ;;  %v6470_v32 = vor.u32 1.1754944e-38, %v6469_v62  ;;  %v6482_v55 = vand.u32 2147483647, %v15839_v38 }
 0x7f1   : > { %v11054_v21 = vpop.eup %11053  ;;  %v8230_v41 = vsub.f32 1.0, %v8229_v33  ;;  %v8344_v17 = vand.u32 2147483648, %v15841_v46  ;;  %vm8234_vm3 = vweird.f32 %v11052_v5  ;;  %vm15872_vm4 = vcmp.eq.f32.partialorder %v6467_v12, 8.507059e+37  ;;  %v4299_v11 = vpop.f32.mrf.mxu2 }
 0x7f2   : > { %v11056_v25 = vpop.eup %11055  ;;  %v6384_v15 = vmul.f32 %v11054_v21, %v15828_v1  ;;  %v8342_v31 = vand.u32 2147483647, %v15841_v46  ;;  %vm6389_vm5 = vweird.f32 %v11054_v21  ;;  %vm6478_vm6 = vweird.f32 %v15839_v38  ;;  %vm8235_vm9 = vmor %vm8233_vm13, %vm8234_vm3 }
 0x7f3   : > { %v11058_v0 = vpop.eup %11057  ;;  %v8231_v10 = vmul.f32 %v11052_v5, %v8230_v41  ;;  %v6459_v16 = vmul.f32 %v11056_v25, %v15830_v20  ;;  %11065 = vpow2.f32 %v10003_v60  ;;  %vm6464_vm7 = vweird.f32 %v11056_v25  ;;  %vm6390_vm12 = vmor %vm6388_vm15, %vm6389_vm5 }
 0x7f4   : > { %v6385_v51 = vsub.f32 1.0, %v6384_v15  ;;  %v11060_v6 = vpop.eup %11059  ;;  %v6485_v61 = vor.u32 1.1754944e-38, %v6484_v3  ;;  %vm8338_vm8 = vweird.f32 %v15841_v46  ;;  %vm15883_vm10 = vcmp.eq.f32.partialorder %v6482_v55, 8.507059e+37  ;;  %v4077_v15 = vpop.f32.mrf.mxu3 }
 0x7f5   : > { %v8232_v9 = vadd.f32 %v11052_v5, %v8231_v10  ;;  %v6460_v27 = vsub.f32 1.0, %v6459_v16  ;;  %v11062_v28 = vpop.eup %11061  ;;  %v6474_v34 = vmul.f32 %v11060_v6, %v15839_v38  ;;  %v8345_v63 = vor.u32 1.1754944e-38, %v8344_v17 }
 0x7f6   : > { %v6386_v35 = vmul.f32 %v11054_v21, %v6385_v51  ;;  %v15887_v40 = vadd.f32 1.0, %v11058_v0  ;;  %v11064_v44 = vpop.eup %11063  ;;  %v8334_v4 = vmul.f32 %v11062_v28, %v15841_v46  ;;  %vm15890_vm11 = vcmp.eq.f32.partialorder %v8342_v31, 8.507059e+37 }
 0x7f7   : > { %v8236_v8 = vsel %vm8235_vm9, %v11052_v5, %v8232_v9  ;;  %v6461_v52 = vmul.f32 %v11056_v25, %v6460_v27  ;;  %v6497_v26 = vand.u32 2147483647, %v15846_v37  ;;  %v6475_v43 = vsub.f32 1.0, %v6474_v34  ;;  %v4210_v5 = vpop.f32.mrf.mxu1 }
 0x7f8   : > { %v8241_v23 = vsel %vm15853_vm14, %v8240_v30, %v8236_v8  ;;  %v6387_v24 = vadd.f32 %v11054_v21, %v6386_v35  ;;  %v6489_v48 = vmul.f32 %v11064_v44, %v15846_v37  ;;  %vm6479_vm13 = vweird.f32 %v11060_v6  ;;  %vm6465_vm14 = vmor %vm6463_vm1, %vm6464_vm7 }
 0x7f9   : > { %8802 = vst [vmem:[%s12764_s20 + $0x638] sm:$0xff] %v8241_v23  ;;  %v6462_v50 = vadd.f32 %v11056_v25, %v6461_v52  ;;  %v8335_v58 = vsub.f32 1.0, %v8334_v4  ;;  %v6499_v53 = vand.u32 2147483648, %v15846_v37  ;;  %v11066_v19 = vpop.eup %11065  ;;  %v6476_v57 = vmul.f32 %v11060_v6, %v6475_v43  ;;  %vm6480_vm3 = vmor %vm6478_vm6, %vm6479_vm13 }
 0x7fa   : > { %v6391_v7 = vsel %vm6390_vm12, %v11054_v21, %v6387_v24  ;;  %v6490_v60 = vsub.f32 1.0, %v6489_v48  ;;  %11067 = vrcp.f32 %v15887_v40  ;;  %vm8339_vm15 = vweird.f32 %v11062_v28 }
 0x7fb   : > { %v6396_v1 = vsel %vm15865_vm2, %v6395_v49, %v6391_v7  ;;  %v6466_v29 = vsel %vm6465_vm14, %v11056_v25, %v6462_v50  ;;  %v8336_v14 = vmul.f32 %v11062_v28, %v8335_v58  ;;  %v6477_v20 = vadd.f32 %v11060_v6, %v6476_v57 }
 0x7fc   : > { %8679 = vst.msk [vmem:[%s12764_s20 + $0x260] sm:$0xff] %vm1588_vm0, %v6396_v1  ;;  %v6471_v62 = vsel %vm15872_vm4, %v6470_v32, %v6466_v29  ;;  %v6491_v33 = vmul.f32 %v11064_v44, %v6490_v60  ;;  %vm6494_vm1 = vweird.f32 %v11064_v44  ;;  %vm6493_vm2 = vweird.f32 %v15846_v37  ;;  %vm8340_vm4 = vmor %vm8338_vm8, %vm8339_vm15 }
 0x7fd   : > { %8684 = vst [vmem:[%s12764_s20 + $0x288] sm:$0xff] %v6471_v62  ;;  %v8337_v12 = vadd.f32 %v11062_v28, %v8336_v14  ;;  %v15918_v54 = vadd.f32 1.0, %v11066_v19  ;;  %11069 = vpow2.f32 %v15851_v22  ;;  %v6481_v30 = vsel %vm6480_vm3, %v11060_v6, %v6477_v20  ;;  %vm6495_vm5 = vmor %vm6493_vm2, %vm6494_vm1  ;;  %v4124_v6 = vpop.f32.mrf.mxu0 }
 0x7fe   : > { %v6492_v21 = vadd.f32 %v11064_v44, %v6491_v33  ;;  %v6500_v41 = vor.u32 1.1754944e-38, %v6499_v53  ;;  %v4298_v38 = vadd.f32 %v15862_v47, %v15022_v39  ;;  %v6486_v49 = vsel %vm15883_vm10, %v6485_v61, %v6481_v30 }
 0x7ff   : > { %v8341_v37 = vsel %vm8340_vm4, %v11062_v28, %v8337_v12  ;;  %v6572_v3 = vand.u32 2147483647, %v15887_v40  ;;  %11071 = vrcp.f32 %v15918_v54  ;;  %8685 = vst [vmem:[%s12764_s20 + $0x290] sm:$0xff] %v6486_v49  ;;  %vm6498_vm6 = vcmp.eq.f32.partialorder %v6497_v26, 8.507059e+37 }
 0x800   : > { %v11068_v22 = vpop.eup %11067  ;;  %v8346_v46 = vsel %vm15890_vm11, %v8345_v63, %v8341_v37  ;;  %v6496_v25 = vsel %vm6495_vm5, %v11064_v44, %v6492_v21  ;;  %v6574_v32 = vand.u32 2147483648, %v15887_v40  ;;  %vm6568_vm7 = vweird.f32 %v15887_v40  ;;  %v4213_v63 = vpop.f32.mrf.mxu1 }
 0x801   : > { %8809 = vst [vmem:[%s12764_s20 + $0x670] sm:$0xff] %v8346_v46  ;;  %v6501_v47 = vsel %vm6498_vm6, %v6500_v41, %v6496_v25  ;;  %v6564_v56 = vmul.f32 %v11068_v22, %v15887_v40  ;;  %v10004_v55 = vmul.f32 -1.442695, %v4298_v38  ;;  %v4122_v17 = vadd.f32 %v4121_v59, %v14905_v13  ;;  %v4302_v44 = vpop.f32.mrf.mxu2 }
 0x802   : > { %8686 = vst.msk [vmem:[%s12764_s20 + $0x298] sm:$0xff] %vm1588_vm0, %v6501_v47  ;;  %v4211_v0 = vadd.f32 %v4210_v5, %v15018_v18  ;;  %vm15941_vm8 = vcmp.eq.f32.partialorder %v6572_v3, 8.507059e+37  ;;  %v4078_v31 = vadd.f32 %v4077_v15, %v13587_v42  ;;  %v4300_v51 = vadd.f32 %v4299_v11, %v15022_v39 }
 0x803   : > { %v11070_v10 = vpop.eup %11069  ;;  %v6565_v16 = vsub.f32 1.0, %v6564_v56  ;;  %11073 = vpow2.f32 %v10004_v55  ;;  %v10009_v27 = vmul.f32 -1.442695, %v4122_v17  ;;  %vm6569_vm9 = vweird.f32 %v11068_v22 }
 0x804   : > { %v15947_v9 = vadd.f32 1.0, %v11070_v10  ;;  %v10010_v61 = vmul.f32 -1.442695, %v4211_v0  ;;  %v6575_v34 = vor.u32 1.1754944e-38, %v6574_v32  ;;  %v10134_v2 = vmul.f32 -1.442695, %v4078_v31  ;;  %vm6570_vm10 = vmor %vm6568_vm7, %vm6569_vm9 }
 0x805   : > { %v11072_v28 = vpop.eup %11071  ;;  %v6566_v35 = vmul.f32 %v11068_v22, %v6565_v16  ;;  %v10011_v42 = vmul.f32 -1.442695, %v4300_v51  ;;  %v4125_v52 = vadd.f32 %v4124_v6, %v14905_v13  ;;  %v6587_v36 = vand.u32 2147483647, %v15918_v54  ;;  %v4126_v11 = vpop.f32.mrf.mxu0 }
 0x806   : > { %v6579_v8 = vmul.f32 %v11072_v28, %v15918_v54  ;;  %11075 = vrcp.f32 %v15947_v9  ;;  %v6589_v26 = vand.u32 2147483648, %v15918_v54  ;;  %vm6584_vm11 = vweird.f32 %v11072_v28 }
 0x807   : > { %v6567_v4 = vadd.f32 %v11068_v22, %v6566_v35  ;;  %11077 = vpow2.f32 %v10009_v27  ;;  %v4214_v24 = vadd.f32 %v4213_v63, %v15018_v18  ;;  %v8447_v48 = vand.u32 2147483647, %v15947_v9 }
 0x808   : > { %v6580_v23 = vsub.f32 1.0, %v6579_v8  ;;  %11079 = vpow2.f32 %v10010_v61  ;;  %v8449_v50 = vand.u32 2147483648, %v15947_v9  ;;  %v10016_v19 = vmul.f32 -1.442695, %v4125_v52  ;;  %v4215_v38 = vpop.f32.mrf.mxu1 }
 0x809   : > { %v6571_v43 = vsel %vm6570_vm10, %v11068_v22, %v6567_v4  ;;  %11081 = vpow2.f32 %v10134_v2  ;;  %v11074_v58 = vpop.eup %11073  ;;  %v10017_v7 = vmul.f32 -1.442695, %v4214_v24  ;;  %vm6583_vm12 = vweird.f32 %v15918_v54  ;;  %v4304_v49 = vpop.f32.mrf.mxu2 }
 0x80a   : > { %v6576_v53 = vsel %vm15941_vm8, %v6575_v34, %v6571_v43  ;;  %v6581_v59 = vmul.f32 %v11072_v28, %v6580_v23  ;;  %11083 = vpow2.f32 %v10011_v42  ;;  %v15962_v40 = vadd.f32 1.0, %v11074_v58  ;;  %vm6585_vm14 = vmor %vm6583_vm12, %vm6584_vm11 }
 0x80b   : > { %8691 = vst [vmem:[%s12764_s20 + $0x2c0] sm:$0xff] %v6576_v53  ;;  %vm6588_vm13 = vcmp.eq.f32.partialorder %v6587_v36, 8.507059e+37  ;;  %v6590_v1 = vor.u32 1.1754944e-38, %v6589_v26  ;;  %vm8443_vm15 = vweird.f32 %v15947_v9  ;;  %vm15968_vm1 = vcmp.eq.f32.partialorder %v8447_v48, 8.507059e+37 }
 0x80c   : > { %v11076_v57 = vpop.eup %11075  ;;  %v6582_v60 = vadd.f32 %v11072_v28, %v6581_v59  ;;  %11085 = vrcp.f32 %v15962_v40  ;;  %v8450_v33 = vor.u32 1.1754944e-38, %v8449_v50  ;;  %v6602_v3 = vand.u32 2147483647, %v15962_v40 }
 0x80d   : > { %v11078_v29 = vpop.eup %11077  ;;  %v8439_v14 = vmul.f32 %v11076_v57, %v15947_v9  ;;  %11087 = vpow2.f32 %v10016_v19  ;;  %v4303_v22 = vadd.f32 %v4302_v44, %v15022_v39  ;;  %v15982_v46 = vadd.f32 %v4126_v11, %v14905_v13 }
 0x80e   : > { %v11080_v62 = vpop.eup %11079  ;;  %v6586_v20 = vsel %vm6585_vm14, %v11072_v28, %v6582_v60  ;;  %v15973_v12 = vadd.f32 1.0, %v11078_v29  ;;  %11089 = vpow2.f32 %v10017_v7  ;;  %vm8444_vm3 = vweird.f32 %v11076_v57 }
 0x80f   : > { %v11082_v54 = vpop.eup %11081  ;;  %v6591_v30 = vsel %vm6588_vm13, %v6590_v1, %v6586_v20  ;;  %v8440_v21 = vsub.f32 1.0, %v8439_v14  ;;  %v15975_v41 = vadd.f32 1.0, %v11080_v62  ;;  %v6604_v15 = vand.u32 2147483648, %v15962_v40  ;;  %vm8445_vm4 = vmor %vm8443_vm15, %vm8444_vm3 }
 0x810   : > { %v11084_v37 = vpop.eup %11083  ;;  %8692 = vst [vmem:[%s12764_s20 + $0x2c8] sm:$0xff] %v6591_v30  ;;  %11091 = vrcp.f32 %v15973_v12  ;;  %vm6598_vm2 = vweird.f32 %v15962_v40  ;;  %v15987_v47 = vadd.f32 1.0, %v11082_v54  ;;  %v15990_v56 = vadd.f32 %v4215_v38, %v15018_v18 }
 0x811   : > { %v8441_v25 = vmul.f32 %v11076_v57, %v8440_v21  ;;  %11093 = vrcp.f32 %v15975_v41  ;;  %v15993_v32 = vadd.f32 %v4304_v49, %v15022_v39  ;;  %v6677_v0 = vand.u32 2147483647, %v15973_v12  ;;  %v4307_v42 = vpop.f32.mrf.mxu2 }
 0x812   : > { %v11086_v55 = vpop.eup %11085  ;;  %v6679_v10 = vand.u32 2147483648, %v15973_v12  ;;  %v15997_v16 = vadd.f32 1.0, %v11084_v37  ;;  %vm16002_vm5 = vcmp.eq.f32.partialorder %v6602_v3, 8.507059e+37  ;;  %v6692_v6 = vand.u32 2147483647, %v15975_v41  ;;  %v4129_v3 = vpop.f32.mrf.mxu0 }
 0x813   : > { %v8442_v17 = vadd.f32 %v11076_v57, %v8441_v25  ;;  %v11088_v45 = vpop.eup %11087  ;;  %v6594_v31 = vmul.f32 %v11086_v55, %v15962_v40  ;;  %v10018_v27 = vmul.f32 -1.442695, %v4303_v22  ;;  %v6605_v35 = vor.u32 1.1754944e-38, %v6604_v15 }
 0x814   : > { %v11090_v61 = vpop.eup %11089  ;;  %v6694_v34 = vand.u32 2147483648, %v15975_v41  ;;  %11095 = vrcp.f32 %v15987_v47  ;;  %vm6673_vm6 = vweird.f32 %v15973_v12  ;;  %vm16015_vm7 = vcmp.eq.f32.partialorder %v6677_v0, 8.507059e+37 }
 0x815   : > { %v8446_v28 = vsel %vm8445_vm4, %v11076_v57, %v8442_v17  ;;  %v6595_v63 = vsub.f32 1.0, %v6594_v31  ;;  %11097 = vrcp.f32 %v15997_v16  ;;  %v6680_v52 = vor.u32 1.1754944e-38, %v6679_v10 }
 0x816   : > { %v11092_v2 = vpop.eup %11091  ;;  %v8451_v9 = vsel %vm15968_vm1, %v8450_v33, %v8446_v28  ;;  %vm6688_vm8 = vweird.f32 %v15975_v41  ;;  %vm6599_vm9 = vweird.f32 %v11086_v55  ;;  %vm16021_vm10 = vcmp.eq.f32.partialorder %v6692_v6, 8.507059e+37 }
 0x817   : > { %v11094_v44 = vpop.eup %11093  ;;  %8816 = vst [vmem:[%s12764_s20 + $0x6a8] sm:$0xff] %v8451_v9  ;;  %v6669_v8 = vmul.f32 %v11092_v2, %v15973_v12  ;;  %v6596_v4 = vmul.f32 %v11086_v55, %v6595_v63  ;;  %v6695_v24 = vor.u32 1.1754944e-38, %v6694_v34  ;;  %v8552_v43 = vand.u32 2147483647, %v15987_v47  ;;  %vm6600_vm12 = vmor %vm6598_vm2, %vm6599_vm9  ;;  %v4218_v9 = vpop.f32.mrf.mxu1 }
 0x818   : > { %v6684_v36 = vmul.f32 %v11094_v44, %v15975_v41  ;;  %v16026_v48 = vadd.f32 1.0, %v11088_v45  ;;  %vm8548_vm11 = vweird.f32 %v15987_v47  ;;  %v8554_v53 = vand.u32 2147483648, %v15987_v47 }
 0x819   : > { %v6670_v23 = vsub.f32 1.0, %v6669_v8  ;;  %v6597_v50 = vadd.f32 %v11086_v55, %v6596_v4  ;;  %11099 = vpow2.f32 %v10018_v27  ;;  %vm6674_vm13 = vweird.f32 %v11092_v2 }
 0x81a   : > { %v6685_v58 = vsub.f32 1.0, %v6684_v36  ;;  %v11096_v59 = vpop.eup %11095  ;;  %11101 = vrcp.f32 %v16026_v48  ;;  %v16033_v7 = vadd.f32 1.0, %v11090_v61  ;;  %vm6689_vm14 = vweird.f32 %v11094_v44  ;;  %vm6675_vm1 = vmor %vm6673_vm6, %vm6674_vm13 }
 0x81b   : > { %v6671_v19 = vmul.f32 %v11092_v2, %v6670_v23  ;;  %v11098_v57 = vpop.eup %11097  ;;  %v6601_v60 = vsel %vm6600_vm12, %v11086_v55, %v6597_v50  ;;  %v8544_v29 = vmul.f32 %v11096_v59, %v15987_v47  ;;  %vm16038_vm15 = vcmp.eq.f32.partialorder %v8552_v43, 8.507059e+37  ;;  %vm6690_vm2 = vmor %vm6688_vm8, %vm6689_vm14 }
 0x81c   : > { %v6686_v1 = vmul.f32 %v11094_v44, %v6685_v58  ;;  %v6606_v14 = vsel %vm16002_vm5, %v6605_v35, %v6601_v60  ;;  %v6699_v40 = vmul.f32 %v11098_v57, %v15997_v16  ;;  %vm6703_vm3 = vweird.f32 %v15997_v16 }
 0x81d   : > { %v6672_v5 = vadd.f32 %v11092_v2, %v6671_v19  ;;  %8693 = vst.msk [vmem:[%s12764_s20 + $0x2d0] sm:$0xff] %vm1588_vm0, %v6606_v14  ;;  %v8545_v20 = vsub.f32 1.0, %v8544_v29  ;;  %v6707_v33 = vand.u32 2147483647, %v15997_v16  ;;  %v6709_v21 = vand.u32 2147483648, %v15997_v16 }
 0x81e   : > { %v6687_v62 = vadd.f32 %v11094_v44, %v6686_v1  ;;  %v6700_v30 = vsub.f32 1.0, %v6699_v40  ;;  %11103 = vrcp.f32 %v16033_v7  ;;  %vm8549_vm4 = vweird.f32 %v11096_v59 }
 0x81f   : > { %v6676_v54 = vsel %vm6675_vm1, %v11092_v2, %v6672_v5  ;;  %v11100_v38 = vpop.eup %11099  ;;  %v8546_v37 = vmul.f32 %v11096_v59, %v8545_v20  ;;  %v8555_v25 = vor.u32 1.1754944e-38, %v8554_v53  ;;  %vm6704_vm5 = vweird.f32 %v11098_v57  ;;  %v4131_v53 = vpop.f32.mrf.mxu0 }
 0x820   : > { %v6681_v12 = vsel %vm16015_vm7, %v6680_v52, %v6676_v54  ;;  %v6691_v49 = vsel %vm6690_vm2, %v11094_v44, %v6687_v62  ;;  %v11102_v22 = vpop.eup %11101  ;;  %v6701_v15 = vmul.f32 %v11098_v57, %v6700_v30  ;;  %vm16059_vm6 = vcmp.eq.f32.partialorder %v6707_v33, 8.507059e+37  ;;  %vm8550_vm7 = vmor %vm8548_vm11, %vm8549_vm4 }
 0x821   : > { %8698 = vst [vmem:[%s12764_s20 + $0x2f8] sm:$0xff] %v6681_v12  ;;  %v6696_v41 = vsel %vm16021_vm10, %v6695_v24, %v6691_v49  ;;  %v8547_v55 = vadd.f32 %v11096_v59, %v8546_v37  ;;  %v6774_v0 = vmul.f32 %v11102_v22, %v16026_v48  ;;  %v6782_v10 = vand.u32 2147483647, %v16026_v48  ;;  %vm6705_vm8 = vmor %vm6703_vm3, %vm6704_vm5  ;;  %v4309_v37 = vpop.f32.mrf.mxu2 }
 0x822   : > { %8699 = vst [vmem:[%s12764_s20 + $0x300] sm:$0xff] %v6696_v41  ;;  %v6702_v45 = vadd.f32 %v11098_v57, %v6701_v15  ;;  %v6784_v31 = vand.u32 2147483648, %v16026_v48  ;;  %v16068_v51 = vadd.f32 1.0, %v11100_v38  ;;  %v10023_v6 = vmul.f32 -1.442695, %v15982_v46 }
 0x823   : > { %v8551_v27 = vsel %vm8550_vm7, %v11096_v59, %v8547_v55  ;;  %v6710_v61 = vor.u32 1.1754944e-38, %v6709_v21  ;;  %v6775_v28 = vsub.f32 1.0, %v6774_v0  ;;  %v10024_v35 = vmul.f32 -1.442695, %v15990_v56  ;;  %v4220_v21 = vpop.f32.mrf.mxu1 }
 0x824   : > { %v11104_v34 = vpop.eup %11103  ;;  %v8556_v47 = vsel %vm16038_vm15, %v8555_v25, %v8551_v27  ;;  %v6706_v2 = vsel %vm6705_vm8, %v11098_v57, %v6702_v45  ;;  %vm6778_vm9 = vweird.f32 %v16026_v48  ;;  %11105 = vrcp.f32 %v16068_v51 }
 0x825   : > { %8823 = vst [vmem:[%s12764_s20 + $0x6e0] sm:$0xff] %v8556_v47  ;;  %v6711_v46 = vsel %vm16059_vm6, %v6710_v61, %v6706_v2  ;;  %v6776_v16 = vmul.f32 %v11102_v22, %v6775_v28  ;;  %vm6779_vm10 = vweird.f32 %v11102_v22  ;;  %v6789_v63 = vmul.f32 %v11104_v34, %v16033_v7 }
 0x826   : > { %8700 = vst.msk [vmem:[%s12764_s20 + $0x308] sm:$0xff] %vm1588_vm0, %v6711_v46  ;;  %vm16084_vm11 = vcmp.eq.f32.partialorder %v6782_v10, 8.507059e+37  ;;  %v6785_v44 = vor.u32 1.1754944e-38, %v6784_v31  ;;  %v6797_v8 = vand.u32 2147483647, %v16033_v7  ;;  %11107 = vpow2.f32 %v10023_v6  ;;  %vm6780_vm12 = vmor %vm6778_vm9, %vm6779_vm10 }
 0x827   : > { %v6777_v52 = vadd.f32 %v11102_v22, %v6776_v16  ;;  %v6790_v4 = vsub.f32 1.0, %v6789_v63  ;;  %11109 = vpow2.f32 %v10024_v35  ;;  %v10025_v36 = vmul.f32 -1.442695, %v15993_v32  ;;  %v4134_v63 = vpop.f32.mrf.mxu0 }
 0x828   : > { %vm6794_vm13 = vweird.f32 %v11104_v34  ;;  %v6799_v26 = vand.u32 2147483648, %v16033_v7  ;;  %v4130_v23 = vadd.f32 %v4129_v3, %v14905_v13  ;;  %v4219_v24 = vadd.f32 %v4218_v9, %v15018_v18 }
 0x829   : > { %v6781_v43 = vsel %vm6780_vm12, %v11102_v22, %v6777_v52  ;;  %v6791_v50 = vmul.f32 %v11104_v34, %v6790_v4  ;;  %11111 = vpow2.f32 %v10025_v36  ;;  %v4308_v58 = vadd.f32 %v4307_v42, %v15022_v39 }
 0x82a   : > { %v11106_v59 = vpop.eup %11105  ;;  %v6786_v32 = vsel %vm16084_vm11, %v6785_v44, %v6781_v43  ;;  %vm6793_vm14 = vweird.f32 %v16033_v7  ;;  %v10030_v48 = vmul.f32 -1.442695, %v4130_v23  ;;  %v10031_v19 = vmul.f32 -1.442695, %v4219_v24 }
 0x82b   : > { %8705 = vst [vmem:[%s12764_s20 + $0x330] sm:$0xff] %v6786_v32  ;;  %v6792_v57 = vadd.f32 %v11104_v34, %v6791_v50  ;;  %vm6798_vm15 = vcmp.eq.f32.partialorder %v6797_v8, 8.507059e+37  ;;  %v6804_v60 = vmul.f32 %v11106_v59, %v16068_v51  ;;  %v10032_v1 = vmul.f32 -1.442695, %v4308_v58  ;;  %vm6795_vm1 = vmor %vm6793_vm14, %vm6794_vm13 }
 0x82c   : > { %v11108_v29 = vpop.eup %11107  ;;  %v6800_v14 = vor.u32 1.1754944e-38, %v6799_v26  ;;  %v6812_v5 = vand.u32 2147483647, %v16068_v51  ;;  %11113 = vpow2.f32 %v10030_v48  ;;  %v4132_v11 = vadd.f32 %v4131_v53, %v14905_v13 }
 0x82d   : > { %v11110_v40 = vpop.eup %11109  ;;  %v6796_v7 = vsel %vm6795_vm1, %v11104_v34, %v6792_v57  ;;  %v6805_v62 = vsub.f32 1.0, %v6804_v60  ;;  %v16104_v20 = vadd.f32 1.0, %v11108_v29  ;;  %11115 = vpow2.f32 %v10031_v19 }
 0x82e   : > { %v6801_v33 = vsel %vm6798_vm15, %v6800_v14, %v6796_v7  ;;  %v6814_v54 = vand.u32 2147483648, %v16068_v51  ;;  %v16107_v30 = vadd.f32 1.0, %v11110_v40  ;;  %11117 = vpow2.f32 %v10032_v1 }
 0x82f   : > { %v11112_v38 = vpop.eup %11111  ;;  %8706 = vst [vmem:[%s12764_s20 + $0x338] sm:$0xff] %v6801_v33  ;;  %v6806_v12 = vmul.f32 %v11106_v59, %v6805_v62  ;;  %vm6809_vm3 = vweird.f32 %v11106_v59  ;;  %11119 = vrcp.f32 %v16104_v20  ;;  %v10037_v49 = vmul.f32 -1.442695, %v4132_v11  ;;  %v4223_v33 = vpop.f32.mrf.mxu1 }
 0x830   : > { %11121 = vrcp.f32 %v16107_v30  ;;  %vm6808_vm2 = vweird.f32 %v16068_v51  ;;  %v16113_v22 = vadd.f32 1.0, %v11112_v38  ;;  %v4221_v41 = vadd.f32 %v4220_v21, %v15018_v18 }
 0x831   : > { %v6807_v3 = vadd.f32 %v11106_v59, %v6806_v12  ;;  %vm6810_vm4 = vmor %vm6808_vm2, %vm6809_vm3  ;;  %vm6813_vm5 = vcmp.eq.f32.partialorder %v6812_v5, 8.507059e+37  ;;  %v6815_v15 = vor.u32 1.1754944e-38, %v6814_v54  ;;  %v6887_v55 = vand.u32 2147483647, %v16104_v20 }
 0x832   : > { %v11114_v25 = vpop.eup %11113  ;;  %v6889_v17 = vand.u32 2147483648, %v16104_v20  ;;  %v6902_v45 = vand.u32 2147483647, %v16107_v30  ;;  %11123 = vrcp.f32 %v16113_v22  ;;  %v4310_v31 = vadd.f32 %v4309_v37, %v15022_v39 }
 0x833   : > { %v11116_v0 = vpop.eup %11115  ;;  %v6811_v10 = vsel %vm6810_vm4, %v11106_v59, %v6807_v3  ;;  %v6904_v27 = vand.u32 2147483648, %v16107_v30  ;;  %v16122_v61 = vadd.f32 1.0, %v11114_v25  ;;  %11125 = vpow2.f32 %v10037_v49 }
 0x834   : > { %v11118_v51 = vpop.eup %11117  ;;  %v6816_v6 = vsel %vm6813_vm5, %v6815_v15, %v6811_v10  ;;  %vm6883_vm6 = vweird.f32 %v16104_v20  ;;  %vm6898_vm7 = vweird.f32 %v16107_v30  ;;  %v16128_v35 = vadd.f32 1.0, %v11116_v0 }
 0x835   : > { %v11120_v28 = vpop.eup %11119  ;;  %8707 = vst.msk [vmem:[%s12764_s20 + $0x340] sm:$0xff] %vm1588_vm0, %v6816_v6  ;;  %v10038_v34 = vmul.f32 -1.442695, %v4221_v41  ;;  %vm16131_vm8 = vcmp.eq.f32.partialorder %v6887_v55, 8.507059e+37  ;;  %v6890_v46 = vor.u32 1.1754944e-38, %v6889_v17  ;;  %vm16137_vm9 = vcmp.eq.f32.partialorder %v6902_v45, 8.507059e+37 }
 0x836   : > { %v11122_v47 = vpop.eup %11121  ;;  %v6879_v2 = vmul.f32 %v11120_v28, %v16104_v20  ;;  %v6917_v16 = vand.u32 2147483647, %v16113_v22  ;;  %v6919_v8 = vand.u32 2147483648, %v16113_v22  ;;  %11127 = vrcp.f32 %v16122_v61 }
 0x837   : > { %v6894_v56 = vmul.f32 %v11122_v47, %v16107_v30  ;;  %v16143_v42 = vmul.f32 -1.442695, %v4310_v31  ;;  %v6905_v4 = vor.u32 1.1754944e-38, %v6904_v27  ;;  %11129 = vrcp.f32 %v16128_v35  ;;  %v4312_v31 = vpop.f32.mrf.mxu2  ;;  %v4136_v27 = vpop.f32.mrf.mxu0 }
 0x838   : > { %v6880_v52 = vsub.f32 1.0, %v6879_v2  ;;  %v16146_v36 = vadd.f32 1.0, %v11118_v51  ;;  %v11124_v26 = vpop.eup %11123  ;;  %vm6913_vm10 = vweird.f32 %v16113_v22  ;;  %11131 = vpow2.f32 %v10038_v34 }
 0x839   : > { %v6895_v23 = vsub.f32 1.0, %v6894_v56  ;;  %v16150_v24 = vadd.f32 %v4134_v63, %v14905_v13  ;;  %v11126_v43 = vpop.eup %11125  ;;  %vm6884_vm11 = vweird.f32 %v11120_v28  ;;  %v6909_v58 = vmul.f32 %v11124_v26, %v16113_v22 }
 0x83a   : > { %v6881_v50 = vmul.f32 %v11120_v28, %v6880_v52  ;;  %vm16153_vm12 = vcmp.eq.f32.partialorder %v6917_v16, 8.507059e+37  ;;  %vm6899_vm13 = vweird.f32 %v11122_v47  ;;  %v6920_v32 = vor.u32 1.1754944e-38, %v6919_v8  ;;  %vm6885_vm15 = vmor %vm6883_vm6, %vm6884_vm11 }
 0x83b   : > { %v6896_v59 = vmul.f32 %v11122_v47, %v6895_v23  ;;  %v6992_v48 = vand.u32 2147483647, %v16122_v61  ;;  %v6910_v57 = vsub.f32 1.0, %v6909_v58  ;;  %vm6988_vm14 = vweird.f32 %v16122_v61  ;;  %vm6900_vm3 = vmor %vm6898_vm7, %vm6899_vm13 }
 0x83c   : > { %v6882_v19 = vadd.f32 %v11120_v28, %v6881_v50  ;;  %v6994_v60 = vand.u32 2147483648, %v16122_v61  ;;  %11133 = vrcp.f32 %v16146_v36  ;;  %v11128_v1 = vpop.eup %11127  ;;  %vm7003_vm1 = vweird.f32 %v16128_v35 }
 0x83d   : > { %v6897_v29 = vadd.f32 %v11122_v47, %v6896_v59  ;;  %v7007_v14 = vand.u32 2147483647, %v16128_v35  ;;  %v7009_v5 = vand.u32 2147483648, %v16128_v35  ;;  %v16166_v11 = vadd.f32 1.0, %v11126_v43  ;;  %v11130_v40 = vpop.eup %11129 }
 0x83e   : > { %v6886_v7 = vsel %vm6885_vm15, %v11120_v28, %v6882_v19  ;;  %v6911_v62 = vmul.f32 %v11124_v26, %v6910_v57  ;;  %vm6914_vm2 = vweird.f32 %v11124_v26  ;;  %v6984_v20 = vmul.f32 %v11128_v1, %v16122_v61  ;;  %v11132_v54 = vpop.eup %11131 }
 0x83f   : > { %v6891_v21 = vsel %vm16131_vm8, %v6890_v46, %v6886_v7  ;;  %v6901_v38 = vsel %vm6900_vm3, %v11122_v47, %v6897_v29  ;;  %vm16174_vm4 = vcmp.eq.f32.partialorder %v6992_v48, 8.507059e+37  ;;  %v6999_v49 = vmul.f32 %v11130_v40, %v16128_v35  ;;  %vm6915_vm5 = vmor %vm6913_vm10, %vm6914_vm2 }
 0x840   : > { %8712 = vst [vmem:[%s12764_s20 + $0x368] sm:$0xff] %v6891_v21  ;;  %v6906_v30 = vsel %vm16137_vm9, %v6905_v4, %v6901_v38  ;;  %v6912_v37 = vadd.f32 %v11124_v26, %v6911_v62  ;;  %v6985_v3 = vsub.f32 1.0, %v6984_v20  ;;  %v6995_v41 = vor.u32 1.1754944e-38, %v6994_v60  ;;  %v4139_v20 = vpop.f32.mrf.mxu0 }
 0x841   : > { %8713 = vst [vmem:[%s12764_s20 + $0x370] sm:$0xff] %v6906_v30  ;;  %v7000_v25 = vsub.f32 1.0, %v6999_v49  ;;  %vm16185_vm6 = vcmp.eq.f32.partialorder %v7007_v14, 8.507059e+37  ;;  %v7010_v55 = vor.u32 1.1754944e-38, %v7009_v5  ;;  %11135 = vrcp.f32 %v16166_v11  ;;  %v4314_v5 = vpop.f32.mrf.mxu2 }
 0x842   : > { %v11134_v17 = vpop.eup %11133  ;;  %v6916_v0 = vsel %vm6915_vm5, %v11124_v26, %v6912_v37  ;;  %v6986_v10 = vmul.f32 %v11128_v1, %v6985_v3  ;;  %vm6989_vm7 = vweird.f32 %v11128_v1  ;;  %v7022_v45 = vand.u32 2147483647, %v16146_v36  ;;  %v4225_v26 = vpop.f32.mrf.mxu1 }
 0x843   : > { %v6921_v22 = vsel %vm16153_vm12, %v6920_v32, %v6916_v0  ;;  %v7001_v51 = vmul.f32 %v11130_v40, %v7000_v25  ;;  %vm7004_vm8 = vweird.f32 %v11130_v40  ;;  %v7014_v6 = vmul.f32 %v11134_v17, %v16146_v36  ;;  %vm6990_vm10 = vmor %vm6988_vm14, %vm6989_vm7 }
 0x844   : > { %8714 = vst.msk [vmem:[%s12764_s20 + $0x378] sm:$0xff] %vm1588_vm0, %v6921_v22  ;;  %v6987_v28 = vadd.f32 %v11128_v1, %v6986_v10  ;;  %vm7018_vm9 = vweird.f32 %v16146_v36  ;;  %v7024_v34 = vand.u32 2147483648, %v16146_v36  ;;  %v16198_v47 = vadd.f32 1.0, %v11132_v54  ;;  %vm7005_vm11 = vmor %vm7003_vm1, %vm7004_vm8 }
 0x845   : > { %v7002_v2 = vadd.f32 %v11130_v40, %v7001_v51  ;;  %v7015_v9 = vsub.f32 1.0, %v7014_v6  ;;  %11137 = vpow2.f32 %v16143_v42  ;;  %v10044_v46 = vmul.f32 -1.442695, %v16150_v24 }
 0x846   : > { %v6991_v16 = vsel %vm6990_vm10, %v11128_v1, %v6987_v28  ;;  %vm16206_vm12 = vcmp.eq.f32.partialorder %v7022_v45, 8.507059e+37  ;;  %v7097_v56 = vand.u32 2147483647, %v16166_v11  ;;  %11139 = vrcp.f32 %v16198_v47 }
 0x847   : > { %v11136_v61 = vpop.eup %11135  ;;  %v6996_v44 = vsel %vm16174_vm4, %v6995_v41, %v6991_v16  ;;  %v7006_v8 = vsel %vm7005_vm11, %v11130_v40, %v7002_v2  ;;  %v7016_v42 = vmul.f32 %v11134_v17, %v7015_v9  ;;  %vm7019_vm13 = vweird.f32 %v11134_v17 }
 0x848   : > { %8719 = vst [vmem:[%s12764_s20 + $0x3a0] sm:$0xff] %v6996_v44  ;;  %v7011_v35 = vsel %vm16185_vm6, %v7010_v55, %v7006_v8  ;;  %v7025_v52 = vor.u32 1.1754944e-38, %v7024_v34  ;;  %v7089_v4 = vmul.f32 %v11136_v61, %v16166_v11  ;;  %vm7093_vm14 = vweird.f32 %v16166_v11  ;;  %vm7020_vm15 = vmor %vm7018_vm9, %vm7019_vm13 }
 0x849   : > { %8720 = vst [vmem:[%s12764_s20 + $0x3a8] sm:$0xff] %v7011_v35  ;;  %v7017_v23 = vadd.f32 %v11134_v17, %v7016_v42  ;;  %v7099_v24 = vand.u32 2147483648, %v16166_v11  ;;  %11141 = vpow2.f32 %v10044_v46  ;;  %v4224_v43 = vadd.f32 %v4223_v33, %v15018_v18  ;;  %v4317_v8 = vpop.f32.mrf.mxu2 }
 0x84a   : > { %v7090_v50 = vsub.f32 1.0, %v7089_v4  ;;  %vm16224_vm1 = vcmp.eq.f32.partialorder %v7097_v56, 8.507059e+37  ;;  %v4313_v53 = vadd.f32 %v4312_v31, %v15022_v39  ;;  %v4137_v59 = vadd.f32 %v4136_v27, %v14905_v13 }
 0x84b   : > { %v11138_v32 = vpop.eup %11137  ;;  %v7021_v48 = vsel %vm7020_vm15, %v11134_v17, %v7017_v23  ;;  %vm7094_vm3 = vweird.f32 %v11136_v61  ;;  %v10045_v19 = vmul.f32 -1.442695, %v4224_v43  ;;  %v4226_v57 = vadd.f32 %v4225_v26, %v15018_v18 }
 0x84c   : > { %v11140_v60 = vpop.eup %11139  ;;  %v7026_v36 = vsel %vm16206_vm12, %v7025_v52, %v7021_v48  ;;  %v7091_v1 = vmul.f32 %v11136_v61, %v7090_v50  ;;  %v16233_v29 = vadd.f32 1.0, %v11138_v32  ;;  %v10046_v14 = vmul.f32 -1.442695, %v4313_v53  ;;  %vm7095_vm2 = vmor %vm7093_vm14, %vm7094_vm3 }
 0x84d   : > { %8721 = vst.msk [vmem:[%s12764_s20 + $0x3b0] sm:$0xff] %vm1588_vm0, %v7026_v36  ;;  %v7100_v40 = vor.u32 1.1754944e-38, %v7099_v24  ;;  %v7104_v7 = vmul.f32 %v11140_v60, %v16198_v47  ;;  %11143 = vpow2.f32 %v10045_v19  ;;  %v10051_v62 = vmul.f32 -1.442695, %v4137_v59 }
 0x84e   : > { %v7092_v33 = vadd.f32 %v11136_v61, %v7091_v1  ;;  %v7112_v54 = vand.u32 2147483647, %v16198_v47  ;;  %v7114_v21 = vand.u32 2147483648, %v16198_v47  ;;  %11145 = vrcp.f32 %v16233_v29 }
 0x84f   : > { %v11142_v38 = vpop.eup %11141  ;;  %v7105_v12 = vsub.f32 1.0, %v7104_v7  ;;  %11147 = vpow2.f32 %v10046_v14  ;;  %v10052_v49 = vmul.f32 -1.442695, %v4226_v57  ;;  %v4315_v30 = vadd.f32 %v4314_v5, %v15022_v39 }
 0x850   : > { %v7096_v37 = vsel %vm7095_vm2, %v11136_v61, %v7092_v33  ;;  %v16245_v3 = vadd.f32 1.0, %v11142_v38  ;;  %11149 = vpow2.f32 %v10051_v62  ;;  %v4140_v41 = vadd.f32 %v4139_v20, %v14905_v13  ;;  %v4141_v62 = vpop.f32.mrf.mxu0 }
 0x851   : > { %v7101_v25 = vsel %vm16224_vm1, %v7100_v40, %v7096_v37  ;;  %v7106_v15 = vmul.f32 %v11140_v60, %v7105_v12  ;;  %vm7109_vm4 = vweird.f32 %v11140_v60  ;;  %11151 = vpow2.f32 %v10052_v49 }
 0x852   : > { %8726 = vst [vmem:[%s12764_s20 + $0x3d8] sm:$0xff] %v7101_v25  ;;  %v7127_v11 = vand.u32 2147483647, %v16233_v29  ;;  %11153 = vrcp.f32 %v16245_v3  ;;  %vm7108_vm5 = vweird.f32 %v16198_v47  ;;  %vm7113_vm6 = vcmp.eq.f32.partialorder %v7112_v54, 8.507059e+37  ;;  %v4228_v47 = vpop.f32.mrf.mxu1 }
 0x853   : > { %v11144_v55 = vpop.eup %11143  ;;  %v7107_v17 = vadd.f32 %v11140_v60, %v7106_v15  ;;  %v10053_v0 = vmul.f32 -1.442695, %v4315_v30  ;;  %vm7110_vm7 = vmor %vm7108_vm5, %vm7109_vm4  ;;  %v7115_v45 = vor.u32 1.1754944e-38, %v7114_v21  ;;  %v7129_v31 = vand.u32 2147483648, %v16233_v29 }
 0x854   : > { %v11146_v10 = vpop.eup %11145  ;;  %v7204_v22 = vand.u32 2147483648, %v16245_v3  ;;  %v16256_v51 = vadd.f32 1.0, %v11144_v55  ;;  %v7202_v34 = vand.u32 2147483647, %v16245_v3  ;;  %v10058_v2 = vmul.f32 -1.442695, %v4140_v41 }
 0x855   : > { %v11148_v6 = vpop.eup %11147  ;;  %v7111_v27 = vsel %vm7110_vm7, %v11140_v60, %v7107_v17  ;;  %v7119_v28 = vmul.f32 %v11146_v10, %v16233_v29  ;;  %vm7123_vm8 = vweird.f32 %v16233_v29  ;;  %vm16261_vm9 = vcmp.eq.f32.partialorder %v7127_v11, 8.507059e+37 }
 0x856   : > { %v11150_v9 = vpop.eup %11149  ;;  %v7116_v46 = vsel %vm7113_vm6, %v7115_v45, %v7111_v27  ;;  %11155 = vrcp.f32 %v16256_v51  ;;  %v16267_v61 = vadd.f32 1.0, %v11148_v6  ;;  %v7130_v35 = vor.u32 1.1754944e-38, %v7129_v31 }
 0x857   : > { %v11152_v63 = vpop.eup %11151  ;;  %8727 = vst [vmem:[%s12764_s20 + $0x3e0] sm:$0xff] %v7116_v46  ;;  %v7120_v56 = vsub.f32 1.0, %v7119_v28  ;;  %v16269_v44 = vadd.f32 1.0, %v11150_v9  ;;  %11157 = vpow2.f32 %v10053_v0  ;;  %vm7198_vm10 = vweird.f32 %v16245_v3 }
 0x858   : > { %v11154_v42 = vpop.eup %11153  ;;  %v7205_v52 = vor.u32 1.1754944e-38, %v7204_v22  ;;  %v4229_v4 = vadd.f32 %v4228_v47, %v15018_v18  ;;  %vm7124_vm11 = vweird.f32 %v11146_v10  ;;  %vm16274_vm12 = vcmp.eq.f32.partialorder %v7202_v34, 8.507059e+37 }
 0x859   : > { %v7121_v26 = vmul.f32 %v11146_v10, %v7120_v56  ;;  %v7194_v23 = vmul.f32 %v11154_v42, %v16245_v3  ;;  %11159 = vpow2.f32 %v10058_v2  ;;  %v7217_v43 = vand.u32 2147483647, %v16256_v51  ;;  %vm7125_vm13 = vmor %vm7123_vm8, %vm7124_vm11  ;;  %v4319_v2 = vpop.f32.mrf.mxu2 }
 0x85a   : > { %11161 = vrcp.f32 %v16267_v61  ;;  %v16280_v50 = vadd.f32 1.0, %v11152_v63  ;;  %v16283_v58 = vadd.f32 %v4317_v8, %v15022_v39  ;;  %v7219_v32 = vand.u32 2147483648, %v16256_v51  ;;  %v4230_v34 = vpop.f32.mrf.mxu1 }
 0x85b   : > { %v7122_v53 = vadd.f32 %v11146_v10, %v7121_v26  ;;  %v7195_v59 = vsub.f32 1.0, %v7194_v23  ;;  %11163 = vrcp.f32 %v16269_v44  ;;  %vm7199_vm14 = vweird.f32 %v11154_v42  ;;  %v4144_v23 = vpop.f32.mrf.mxu0 }
 0x85c   : > { %v11156_v48 = vpop.eup %11155  ;;  %vm7213_vm15 = vweird.f32 %v16256_v51  ;;  %v7234_v19 = vand.u32 2147483648, %v16267_v61  ;;  %v10059_v57 = vmul.f32 -1.442695, %v4229_v4  ;;  %v7232_v5 = vand.u32 2147483647, %v16267_v61  ;;  %vm7200_vm2 = vmor %vm7198_vm10, %vm7199_vm14 }
 0x85d   : > { %v11158_v60 = vpop.eup %11157  ;;  %v7126_v36 = vsel %vm7125_vm13, %v11146_v10, %v7122_v53  ;;  %v7196_v1 = vmul.f32 %v11154_v42, %v7195_v59  ;;  %v7209_v14 = vmul.f32 %v11156_v48, %v16256_v51  ;;  %vm16295_vm1 = vcmp.eq.f32.partialorder %v7217_v43, 8.507059e+37 }
 0x85e   : > { %v7131_v40 = vsel %vm16261_vm9, %v7130_v35, %v7126_v36  ;;  %v7307_v7 = vand.u32 2147483647, %v16269_v44  ;;  %11165 = vrcp.f32 %v16280_v50  ;;  %v7220_v21 = vor.u32 1.1754944e-38, %v7219_v32 }
 0x85f   : > { %v11160_v20 = vpop.eup %11159  ;;  %8728 = vst.msk [vmem:[%s12764_s20 + $0x3e8] sm:$0xff] %vm1588_vm0, %v7131_v40  ;;  %v7197_v33 = vadd.f32 %v11154_v42, %v7196_v1  ;;  %v7210_v54 = vsub.f32 1.0, %v7209_v14  ;;  %vm7228_vm3 = vweird.f32 %v16267_v61  ;;  %v7235_v12 = vor.u32 1.1754944e-38, %v7234_v19 }
 0x860   : > { %v11162_v38 = vpop.eup %11161  ;;  %vm7303_vm4 = vweird.f32 %v16269_v44  ;;  %v7309_v49 = vand.u32 2147483648, %v16269_v44  ;;  %v16309_v30 = vadd.f32 1.0, %v11158_v60  ;;  %11167 = vpow2.f32 %v10059_v57 }
 0x861   : > { %v11164_v37 = vpop.eup %11163  ;;  %v7201_v41 = vsel %vm7200_vm2, %v11154_v42, %v7197_v33  ;;  %v7211_v25 = vmul.f32 %v11156_v48, %v7210_v54  ;;  %vm7214_vm5 = vweird.f32 %v11156_v48  ;;  %v7224_v15 = vmul.f32 %v11162_v38, %v16267_v61  ;;  %v4322_v33 = vpop.f32.mrf.mxu2 }
 0x862   : > { %vm16312_vm6 = vcmp.eq.f32.partialorder %v7232_v5, 8.507059e+37  ;;  %v7206_v3 = vsel %vm16274_vm12, %v7205_v52, %v7201_v41  ;;  %v7299_v55 = vmul.f32 %v11164_v37, %v16269_v44  ;;  %vm16319_vm7 = vcmp.eq.f32.partialorder %v7307_v7, 8.507059e+37  ;;  %vm7215_vm8 = vmor %vm7213_vm15, %vm7214_vm5 }
 0x863   : > { %v7322_v0 = vand.u32 2147483647, %v16280_v50  ;;  %8733 = vst [vmem:[%s12764_s20 + $0x410] sm:$0xff] %v7206_v3  ;;  %v7212_v10 = vadd.f32 %v11156_v48, %v7211_v25  ;;  %v7225_v45 = vsub.f32 1.0, %v7224_v15  ;;  %11169 = vrcp.f32 %v16309_v30 }
 0x864   : > { %v16326_v31 = vadd.f32 1.0, %v11160_v20  ;;  %v11166_v22 = vpop.eup %11165  ;;  %v7300_v6 = vsub.f32 1.0, %v7299_v55  ;;  %v7310_v27 = vor.u32 1.1754944e-38, %v7309_v49  ;;  %vm7318_vm9 = vweird.f32 %v16280_v50  ;;  %v4233_v20 = vpop.f32.mrf.mxu1 }
 0x865   : > { %v7324_v28 = vand.u32 2147483648, %v16280_v50  ;;  %v7216_v47 = vsel %vm7215_vm8, %v11156_v48, %v7212_v10  ;;  %v7226_v9 = vmul.f32 %v11162_v38, %v7225_v45  ;;  %vm7229_vm10 = vweird.f32 %v11162_v38  ;;  %v4146_v45 = vpop.f32.mrf.mxu0 }
 0x866   : > { %v7314_v46 = vmul.f32 %v11166_v22, %v16280_v50  ;;  %v11168_v16 = vpop.eup %11167  ;;  %v7221_v63 = vsel %vm16295_vm1, %v7220_v21, %v7216_v47  ;;  %v7301_v51 = vmul.f32 %v11164_v37, %v7300_v6  ;;  %vm7304_vm11 = vweird.f32 %v11164_v37  ;;  %vm7230_vm13 = vmor %vm7228_vm3, %vm7229_vm10 }
 0x867   : > { %vm16335_vm12 = vcmp.eq.f32.partialorder %v7322_v0, 8.507059e+37  ;;  %8734 = vst [vmem:[%s12764_s20 + $0x418] sm:$0xff] %v7221_v63  ;;  %v7227_v8 = vadd.f32 %v11162_v38, %v7226_v9  ;;  %v7337_v35 = vand.u32 2147483647, %v16309_v30  ;;  %11171 = vrcp.f32 %v16326_v31  ;;  %vm7305_vm15 = vmor %vm7303_vm4, %vm7304_vm11 }
 0x868   : > { %v7315_v42 = vsub.f32 1.0, %v7314_v46  ;;  %v7302_v52 = vadd.f32 %v11164_v37, %v7301_v51  ;;  %vm7319_vm14 = vweird.f32 %v11166_v22  ;;  %v7339_v4 = vand.u32 2147483648, %v16309_v30 }
 0x869   : > { %v16345_v26 = vadd.f32 1.0, %v11168_v16  ;;  %v11170_v24 = vpop.eup %11169  ;;  %v7231_v43 = vsel %vm7230_vm13, %v11162_v38, %v7227_v8  ;;  %v10060_v59 = vmul.f32 -1.442695, %v16283_v58  ;;  %v4142_v61 = vadd.f32 %v4141_v62, %v14905_v13  ;;  %vm7320_vm3 = vmor %vm7318_vm9, %vm7319_vm14 }
 0x86a   : > { %v7316_v53 = vmul.f32 %v11166_v22, %v7315_v42  ;;  %v7236_v32 = vsel %vm16312_vm6, %v7235_v12, %v7231_v43  ;;  %v7306_v48 = vsel %vm7305_vm15, %v11164_v37, %v7302_v52  ;;  %v7325_v19 = vor.u32 1.1754944e-38, %v7324_v28 }
 0x86b   : > { %v7329_v57 = vmul.f32 %v11170_v24, %v16309_v30  ;;  %8735 = vst.msk [vmem:[%s12764_s20 + $0x420] sm:$0xff] %vm1588_vm0, %v7236_v32  ;;  %v7311_v60 = vsel %vm16319_vm7, %v7310_v27, %v7306_v48  ;;  %vm7333_vm1 = vweird.f32 %v16309_v30  ;;  %v7412_v44 = vand.u32 2147483647, %v16326_v31  ;;  %v4324_v32 = vpop.f32.mrf.mxu2 }
 0x86c   : > { %v7317_v36 = vadd.f32 %v11166_v22, %v7316_v53  ;;  %8740 = vst [vmem:[%s12764_s20 + $0x448] sm:$0xff] %v7311_v60  ;;  %vm16365_vm2 = vcmp.eq.f32.partialorder %v7337_v35, 8.507059e+37  ;;  %v7340_v14 = vor.u32 1.1754944e-38, %v7339_v4  ;;  %11173 = vrcp.f32 %v16345_v26 }
 0x86d   : > { %v7330_v58 = vsub.f32 1.0, %v7329_v57  ;;  %v11172_v5 = vpop.eup %11171  ;;  %vm7408_vm4 = vweird.f32 %v16326_v31  ;;  %11175 = vpow2.f32 %v10060_v59  ;;  %v10065_v29 = vmul.f32 -1.442695, %v4142_v61 }
 0x86e   : > { %v7321_v40 = vsel %vm7320_vm3, %v11166_v22, %v7317_v36  ;;  %vm7334_vm5 = vweird.f32 %v11170_v24  ;;  %v7404_v62 = vmul.f32 %v11172_v5, %v16326_v31  ;;  %vm16375_vm6 = vcmp.eq.f32.partialorder %v7412_v44, 8.507059e+37 }
 0x86f   : > { %v7326_v7 = vsel %vm16335_vm12, %v7325_v19, %v7321_v40  ;;  %v7331_v50 = vmul.f32 %v11170_v24, %v7330_v58  ;;  %v7414_v21 = vand.u32 2147483648, %v16326_v31  ;;  %11177 = vpow2.f32 %v10065_v29  ;;  %vm7335_vm7 = vmor %vm7333_vm1, %vm7334_vm5  ;;  %v4235_v31 = vpop.f32.mrf.mxu1 }
 0x870   : > { %8741 = vst [vmem:[%s12764_s20 + $0x450] sm:$0xff] %v7326_v7  ;;  %v4231_v38 = vadd.f32 %v4230_v34, %v15018_v18  ;;  %v7405_v49 = vsub.f32 1.0, %v7404_v62  ;;  %v4320_v37 = vadd.f32 %v4319_v2, %v15022_v39  ;;  %v4145_v41 = vadd.f32 %v4144_v23, %v14905_v13 }
 0x871   : > { %v7332_v12 = vadd.f32 %v11170_v24, %v7331_v50  ;;  %vm7409_vm8 = vweird.f32 %v11172_v5  ;;  %v4234_v15 = vadd.f32 %v4233_v20, %v15018_v18  ;;  %v4323_v11 = vadd.f32 %v4322_v33, %v15022_v39 }
 0x872   : > { %v10066_v25 = vmul.f32 -1.442695, %v4231_v38  ;;  %v11174_v3 = vpop.eup %11173  ;;  %v7406_v17 = vmul.f32 %v11172_v5, %v7405_v49  ;;  %v10067_v0 = vmul.f32 -1.442695, %v4320_v37  ;;  %v10072_v10 = vmul.f32 -1.442695, %v4145_v41  ;;  %vm7410_vm9 = vmor %vm7408_vm4, %vm7409_vm8 }
 0x873   : > { %v7336_v55 = vsel %vm7335_vm7, %v11170_v24, %v7332_v12  ;;  %v11176_v22 = vpop.eup %11175  ;;  %v7415_v27 = vor.u32 1.1754944e-38, %v7414_v21  ;;  %v7419_v30 = vmul.f32 %v11174_v3, %v16345_v26  ;;  %v10073_v2 = vmul.f32 -1.442695, %v4234_v15 }
 0x874   : > { %v7341_v6 = vsel %vm16365_vm2, %v7340_v14, %v7336_v55  ;;  %11179 = vpow2.f32 %v10066_v25  ;;  %v7407_v28 = vadd.f32 %v11172_v5, %v7406_v17  ;;  %v16392_v34 = vadd.f32 1.0, %v11176_v22 }
 0x875   : > { %8742 = vst.msk [vmem:[%s12764_s20 + $0x458] sm:$0xff] %vm1588_vm0, %v7341_v6  ;;  %11181 = vpow2.f32 %v10067_v0  ;;  %v11178_v47 = vpop.eup %11177  ;;  %v7420_v9 = vsub.f32 1.0, %v7419_v30  ;;  %v7427_v46 = vand.u32 2147483647, %v16345_v26  ;;  %v4147_v16 = vadd.f32 %v4146_v45, %v14905_v13 }
 0x876   : > { %11183 = vpow2.f32 %v10072_v10  ;;  %v7411_v63 = vsel %vm7410_vm9, %v11172_v5, %v7407_v28  ;;  %v7429_v51 = vand.u32 2147483648, %v16345_v26  ;;  %v10074_v56 = vmul.f32 -1.442695, %v4323_v11 }
 0x877   : > { %11185 = vrcp.f32 %v16392_v34  ;;  %v7416_v8 = vsel %vm16375_vm6, %v7415_v27, %v7411_v63  ;;  %v7421_v42 = vmul.f32 %v11174_v3, %v7420_v9  ;;  %vm7424_vm10 = vweird.f32 %v11174_v3 }
 0x878   : > { %v16403_v35 = vadd.f32 1.0, %v11178_v47  ;;  %8747 = vst [vmem:[%s12764_s20 + $0x480] sm:$0xff] %v7416_v8  ;;  %vm7423_vm11 = vweird.f32 %v16345_v26  ;;  %11187 = vpow2.f32 %v10073_v2  ;;  %v7442_v23 = vand.u32 2147483647, %v16392_v34 }
 0x879   : > { %v7422_v4 = vadd.f32 %v11174_v3, %v7421_v42  ;;  %v10079_v24 = vmul.f32 -1.442695, %v4147_v16  ;;  %vm7425_vm12 = vmor %vm7423_vm11, %vm7424_vm10  ;;  %v7430_v53 = vor.u32 1.1754944e-38, %v7429_v51  ;;  %v7444_v59 = vand.u32 2147483648, %v16392_v34  ;;  %v4149_v51 = vpop.f32.mrf.mxu0 }
 0x87a   : > { %v11180_v52 = vpop.eup %11179  ;;  %11189 = vrcp.f32 %v16403_v35  ;;  %vm7428_vm13 = vcmp.eq.f32.partialorder %v7427_v46, 8.507059e+37  ;;  %v4236_v57 = vadd.f32 %v4235_v31, %v15018_v18  ;;  %vm7438_vm14 = vweird.f32 %v16392_v34 }
 0x87b   : > { %v11182_v43 = vpop.eup %11181  ;;  %v16410_v61 = vadd.f32 1.0, %v11180_v52  ;;  %11191 = vpow2.f32 %v10074_v56  ;;  %v7426_v48 = vsel %vm7425_vm12, %v11174_v3, %v7422_v4  ;;  %v7517_v44 = vand.u32 2147483647, %v16403_v35 }
 0x87c   : > { %v11184_v26 = vpop.eup %11183  ;;  %v16412_v19 = vadd.f32 1.0, %v11182_v43  ;;  %v7431_v36 = vsel %vm7428_vm13, %v7430_v53, %v7426_v48  ;;  %vm16420_vm15 = vcmp.eq.f32.partialorder %v7442_v23, 8.507059e+37  ;;  %v16425_v14 = vadd.f32 %v4324_v32, %v15022_v39  ;;  %v4238_v48 = vpop.f32.mrf.mxu1 }
 0x87d   : > { %v11186_v60 = vpop.eup %11185  ;;  %11193 = vrcp.f32 %v16410_v61  ;;  %8748 = vst [vmem:[%s12764_s20 + $0x488] sm:$0xff] %v7431_v36  ;;  %v7445_v40 = vor.u32 1.1754944e-38, %v7444_v59  ;;  %vm7513_vm1 = vweird.f32 %v16403_v35  ;;  %v7519_v29 = vand.u32 2147483648, %v16403_v35 }
 0x87e   : > { %v7434_v58 = vmul.f32 %v11186_v60, %v16392_v34  ;;  %11195 = vpow2.f32 %v10079_v24  ;;  %v11188_v5 = vpop.eup %11187  ;;  %v7532_v62 = vand.u32 2147483647, %v16410_v61  ;;  %v16431_v20 = vadd.f32 1.0, %v11184_v26 }
 0x87f   : > { %11197 = vrcp.f32 %v16412_v19  ;;  %v16433_v33 = vmul.f32 -1.442695, %v4236_v57  ;;  %vm7439_vm3 = vweird.f32 %v11186_v60  ;;  %vm16436_vm2 = vcmp.eq.f32.partialorder %v7517_v44, 8.507059e+37  ;;  %v4327_v44 = vpop.f32.mrf.mxu2 }
 0x880   : > { %v11190_v7 = vpop.eup %11189  ;;  %v7435_v50 = vsub.f32 1.0, %v7434_v58  ;;  %v7534_v12 = vand.u32 2147483648, %v16410_v61  ;;  %v7547_v37 = vand.u32 2147483647, %v16412_v19  ;;  %v7549_v41 = vand.u32 2147483648, %v16412_v19  ;;  %vm7440_vm7 = vmor %vm7438_vm14, %vm7439_vm3 }
 0x881   : > { %v11192_v54 = vpop.eup %11191  ;;  %v7509_v21 = vmul.f32 %v11190_v7, %v16403_v35  ;;  %11199 = vrcp.f32 %v16431_v20  ;;  %v7520_v11 = vor.u32 1.1754944e-38, %v7519_v29  ;;  %vm7528_vm4 = vweird.f32 %v16410_v61 }
 0x882   : > { %v7436_v49 = vmul.f32 %v11186_v60, %v7435_v50  ;;  %v16445_v3 = vadd.f32 1.0, %v11188_v5  ;;  %vm16448_vm5 = vcmp.eq.f32.partialorder %v7532_v62, 8.507059e+37  ;;  %vm7543_vm6 = vweird.f32 %v16412_v19 }
 0x883   : > { %v11194_v25 = vpop.eup %11193  ;;  %v7510_v15 = vsub.f32 1.0, %v7509_v21  ;;  %v16453_v45 = vadd.f32 1.0, %v11192_v54  ;;  %vm7514_vm8 = vweird.f32 %v11190_v7  ;;  %v7535_v27 = vor.u32 1.1754944e-38, %v7534_v12 }
 0x884   : > { %v11196_v55 = vpop.eup %11195  ;;  %v7437_v17 = vadd.f32 %v11186_v60, %v7436_v49  ;;  %v7524_v0 = vmul.f32 %v11194_v25, %v16410_v61  ;;  %11201 = vrcp.f32 %v16445_v3  ;;  %vm16460_vm9 = vcmp.eq.f32.partialorder %v7547_v37, 8.507059e+37  ;;  %vm7515_vm10 = vmor %vm7513_vm1, %vm7514_vm8  ;;  %v4151_v37 = vpop.f32.mrf.mxu0 }
 0x885   : > { %v11198_v22 = vpop.eup %11197  ;;  %v7511_v6 = vmul.f32 %v11190_v7, %v7510_v15  ;;  %v7550_v9 = vor.u32 1.1754944e-38, %v7549_v41  ;;  %v7622_v16 = vand.u32 2147483647, %v16431_v20  ;;  %v7624_v63 = vand.u32 2147483648, %v16431_v20 }
 0x886   : > { %v7441_v30 = vsel %vm7440_vm7, %v11186_v60, %v7437_v17  ;;  %v7525_v28 = vsub.f32 1.0, %v7524_v0  ;;  %v7539_v2 = vmul.f32 %v11198_v22, %v16412_v19  ;;  %vm7529_vm11 = vweird.f32 %v11194_v25 }
 0x887   : > { %v7446_v46 = vsel %vm16420_vm15, %v7445_v40, %v7441_v30  ;;  %v7512_v34 = vadd.f32 %v11190_v7, %v7511_v6  ;;  %v11200_v56 = vpop.eup %11199  ;;  %11203 = vrcp.f32 %v16453_v45  ;;  %vm7618_vm12 = vweird.f32 %v16431_v20  ;;  %vm7530_vm14 = vmor %vm7528_vm4, %vm7529_vm11 }
 0x888   : > { %8749 = vst.msk [vmem:[%s12764_s20 + $0x490] sm:$0xff] %vm1588_vm0, %v7446_v46  ;;  %v7526_v8 = vmul.f32 %v11194_v25, %v7525_v28  ;;  %v7540_v42 = vsub.f32 1.0, %v7539_v2  ;;  %v7614_v52 = vmul.f32 %v11200_v56, %v16431_v20  ;;  %v7637_v4 = vand.u32 2147483647, %v16445_v3  ;;  %v4240_v28 = vpop.f32.mrf.mxu1 }
 0x889   : > { %v7516_v31 = vsel %vm7515_vm10, %v11190_v7, %v7512_v34  ;;  %vm7544_vm13 = vweird.f32 %v11198_v22  ;;  %vm16482_vm15 = vcmp.eq.f32.partialorder %v7622_v16, 8.507059e+37  ;;  %v7625_v32 = vor.u32 1.1754944e-38, %v7624_v63  ;;  %v4329_v34 = vpop.f32.mrf.mxu2 }
 0x88a   : > { %v7521_v23 = vsel %vm16436_vm2, %v7520_v11, %v7516_v31  ;;  %v7527_v24 = vadd.f32 %v11194_v25, %v7526_v8  ;;  %v7541_v43 = vmul.f32 %v11198_v22, %v7540_v42  ;;  %v11202_v35 = vpop.eup %11201  ;;  %v7615_v53 = vsub.f32 1.0, %v7614_v52  ;;  %vm7545_vm3 = vmor %vm7543_vm6, %vm7544_vm13 }
 0x88b   : > { %8754 = vst [vmem:[%s12764_s20 + $0x4b8] sm:$0xff] %v7521_v23  ;;  %v7639_v26 = vand.u32 2147483648, %v16445_v3  ;;  %v7629_v36 = vmul.f32 %v11202_v35, %v16445_v3  ;;  %vm7633_vm1 = vweird.f32 %v16445_v3  ;;  %vm7619_vm2 = vweird.f32 %v11200_v56 }
 0x88c   : > { %v7531_v57 = vsel %vm7530_vm14, %v11194_v25, %v7527_v24  ;;  %v7542_v60 = vadd.f32 %v11198_v22, %v7541_v43  ;;  %v7616_v58 = vmul.f32 %v11200_v56, %v7615_v53  ;;  %vm16494_vm4 = vcmp.eq.f32.partialorder %v7637_v4, 8.507059e+37 }
 0x88d   : > { %v7536_v61 = vsel %vm16448_vm5, %v7535_v27, %v7531_v57  ;;  %v11204_v5 = vpop.eup %11203  ;;  %v7630_v29 = vsub.f32 1.0, %v7629_v36  ;;  %v16499_v7 = vadd.f32 1.0, %v11196_v55  ;;  %11205 = vpow2.f32 %v16433_v33  ;;  %vm7620_vm5 = vmor %vm7618_vm12, %vm7619_vm2 }
 0x88e   : > { %8755 = vst [vmem:[%s12764_s20 + $0x4c0] sm:$0xff] %v7536_v61  ;;  %v7546_v40 = vsel %vm7545_vm3, %v11198_v22, %v7542_v60  ;;  %v7617_v62 = vadd.f32 %v11200_v56, %v7616_v58  ;;  %v7640_v19 = vor.u32 1.1754944e-38, %v7639_v26  ;;  %v7644_v54 = vmul.f32 %v11204_v5, %v16453_v45 }
 0x88f   : > { %v7551_v50 = vsel %vm16460_vm9, %v7550_v9, %v7546_v40  ;;  %v7631_v21 = vmul.f32 %v11202_v35, %v7630_v29  ;;  %vm7634_vm6 = vweird.f32 %v11202_v35  ;;  %v7652_v38 = vand.u32 2147483647, %v16453_v45 }
 0x890   : > { %8756 = vst.msk [vmem:[%s12764_s20 + $0x4c8] sm:$0xff] %vm1588_vm0, %v7551_v50  ;;  %11207 = vrcp.f32 %v16499_v7  ;;  %v7621_v33 = vsel %vm7620_vm5, %v11200_v56, %v7617_v62  ;;  %v7645_v12 = vsub.f32 1.0, %v7644_v54  ;;  %vm7648_vm7 = vweird.f32 %v16453_v45  ;;  %vm7635_vm8 = vmor %vm7633_vm1, %vm7634_vm6 }
 0x891   : > { %v10081_v49 = vmul.f32 -1.442695, %v16425_v14  ;;  %v7626_v41 = vsel %vm16482_vm15, %v7625_v32, %v7621_v33  ;;  %v7632_v25 = vadd.f32 %v11202_v35, %v7631_v21  ;;  %v7654_v20 = vand.u32 2147483648, %v16453_v45 }
 0x892   : > { %v4150_v15 = vadd.f32 %v4149_v51, %v14905_v13  ;;  %8761 = vst [vmem:[%s12764_s20 + $0x4f0] sm:$0xff] %v7626_v41  ;;  %v7646_v11 = vmul.f32 %v11204_v5, %v7645_v12  ;;  %vm7649_vm9 = vweird.f32 %v11204_v5  ;;  %v4239_v55 = vadd.f32 %v4238_v48, %v15018_v18 }
 0x893   : > { %11209 = vpow2.f32 %v10081_v49  ;;  %v11206_v14 = vpop.eup %11205  ;;  %v7636_v17 = vsel %vm7635_vm8, %v11202_v35, %v7632_v25  ;;  %vm16521_vm10 = vcmp.eq.f32.partialorder %v7652_v38, 8.507059e+37  ;;  %v4328_v22 = vadd.f32 %v4327_v44, %v15022_v39  ;;  %vm7650_vm11 = vmor %vm7648_vm7, %vm7649_vm9  ;;  %v4154_v35 = vpop.f32.mrf.mxu0 }
 0x894   : > { %v10086_v10 = vmul.f32 -1.442695, %v4150_v15  ;;  %v7641_v6 = vsel %vm16494_vm4, %v7640_v19, %v7636_v17  ;;  %v7647_v3 = vadd.f32 %v11204_v5, %v7646_v11  ;;  %v16528_v27 = vadd.f32 1.0, %v11206_v14 }
 0x895   : > { %v10087_v30 = vmul.f32 -1.442695, %v4239_v55  ;;  %8762 = vst [vmem:[%s12764_s20 + $0x4f8] sm:$0xff] %v7641_v6  ;;  %v7655_v47 = vor.u32 1.1754944e-38, %v7654_v20  ;;  %v10088_v9 = vmul.f32 -1.442695, %v4328_v22  ;;  %v4152_v46 = vadd.f32 %v4151_v37, %v14905_v13  ;;  %v4243_v37 = vpop.f32.mrf.mxu1 }
 0x896   : > { %v11208_v2 = vpop.eup %11207  ;;  %11211 = vpow2.f32 %v10086_v10  ;;  %v7651_v16 = vsel %vm7650_vm11, %v11204_v5, %v7647_v3  ;;  %v7727_v51 = vand.u32 2147483647, %v16499_v7  ;;  %v7729_v8 = vand.u32 2147483648, %v16499_v7 }
 0x897   : > { %v7719_v63 = vmul.f32 %v11208_v2, %v16499_v7  ;;  %11213 = vrcp.f32 %v16528_v27  ;;  %v7656_v56 = vsel %vm16521_vm10, %v7655_v47, %v7651_v16  ;;  %v4241_v45 = vadd.f32 %v4240_v28, %v15018_v18 }
 0x898   : > { %8763 = vst.msk [vmem:[%s12764_s20 + $0x500] sm:$0xff] %vm1588_vm0, %v7656_v56  ;;  %11215 = vpow2.f32 %v10087_v30  ;;  %v4330_v52 = vadd.f32 %v4329_v34, %v15022_v39  ;;  %v10093_v23 = vmul.f32 -1.442695, %v4152_v46  ;;  %vm7723_vm12 = vweird.f32 %v16499_v7  ;;  %v4332_v56 = vpop.f32.mrf.mxu2 }
 0x899   : > { %v11210_v42 = vpop.eup %11209  ;;  %v7720_v31 = vsub.f32 1.0, %v7719_v63  ;;  %11217 = vpow2.f32 %v10088_v9  ;;  %vm7724_vm13 = vweird.f32 %v11208_v2  ;;  %vm16548_vm14 = vcmp.eq.f32.partialorder %v7727_v51, 8.507059e+37 }
 0x89a   : > { %v16545_v4 = vadd.f32 1.0, %v11210_v42  ;;  %v7730_v59 = vor.u32 1.1754944e-38, %v7729_v8  ;;  %vm7738_vm15 = vweird.f32 %v16528_v27  ;;  %v10094_v32 = vmul.f32 -1.442695, %v4241_v45  ;;  %vm7725_vm1 = vmor %vm7723_vm12, %vm7724_vm13 }
 0x89b   : > { %v7721_v24 = vmul.f32 %v11208_v2, %v7720_v31  ;;  %v7742_v57 = vand.u32 2147483647, %v16528_v27  ;;  %v10095_v36 = vmul.f32 -1.442695, %v4330_v52  ;;  %v7744_v61 = vand.u32 2147483648, %v16528_v27 }
 0x89c   : > { %v11212_v53 = vpop.eup %11211  ;;  %11219 = vrcp.f32 %v16545_v4  ;;  %v4155_v58 = vadd.f32 %v4154_v35, %v14905_v13  ;;  %v7757_v40 = vand.u32 2147483647, %v16545_v4  ;;  %v7759_v29 = vand.u32 2147483648, %v16545_v4 }
 0x89d   : > { %v11214_v26 = vpop.eup %11213  ;;  %v7722_v48 = vadd.f32 %v11208_v2, %v7721_v24  ;;  %v16555_v60 = vadd.f32 1.0, %v11212_v53  ;;  %11221 = vpow2.f32 %v10093_v23  ;;  %vm16568_vm2 = vcmp.eq.f32.partialorder %v7742_v57, 8.507059e+37 }
 0x89e   : > { %v7734_v44 = vmul.f32 %v11214_v26, %v16528_v27  ;;  %v11216_v1 = vpop.eup %11215  ;;  %vm7739_vm3 = vweird.f32 %v11214_v26  ;;  %v7745_v41 = vor.u32 1.1754944e-38, %v7744_v61  ;;  %vm7753_vm4 = vweird.f32 %v16545_v4 }
 0x89f   : > { %v7726_v5 = vsel %vm7725_vm1, %v11208_v2, %v7722_v48  ;;  %11223 = vrcp.f32 %v16555_v60  ;;  %v11218_v7 = vpop.eup %11217  ;;  %v16565_v19 = vadd.f32 1.0, %v11216_v1  ;;  %v7832_v12 = vand.u32 2147483647, %v16555_v60  ;;  %vm7740_vm6 = vmor %vm7738_vm15, %vm7739_vm3 }
 0x8a0   : > { %v7731_v50 = vsel %vm16548_vm14, %v7730_v59, %v7726_v5  ;;  %v7735_v62 = vsub.f32 1.0, %v7734_v44  ;;  %11225 = vpow2.f32 %v10094_v32  ;;  %v16572_v21 = vadd.f32 1.0, %v11218_v7 }
 0x8a1   : > { %8768 = vst [vmem:[%s12764_s20 + $0x528] sm:$0xff] %v7731_v50  ;;  %11227 = vpow2.f32 %v10095_v36  ;;  %v7834_v49 = vand.u32 2147483648, %v16555_v60  ;;  %v10100_v20 = vmul.f32 -1.442695, %v4155_v58  ;;  %vm16579_vm5 = vcmp.eq.f32.partialorder %v7757_v40, 8.507059e+37  ;;  %v4156_v36 = vpop.f32.mrf.mxu0 }
 0x8a2   : > { %v11220_v38 = vpop.eup %11219  ;;  %v7736_v33 = vmul.f32 %v11214_v26, %v7735_v62  ;;  %11229 = vrcp.f32 %v16565_v19  ;;  %v7760_v14 = vor.u32 1.1754944e-38, %v7759_v29  ;;  %vm7828_vm7 = vweird.f32 %v16555_v60  ;;  %v4245_v62 = vpop.f32.mrf.mxu1 }
 0x8a3   : > { %v7749_v25 = vmul.f32 %v11220_v38, %v16545_v4  ;;  %v11222_v15 = vpop.eup %11221  ;;  %11231 = vrcp.f32 %v16572_v21  ;;  %v7847_v10 = vand.u32 2147483647, %v16565_v19  ;;  %v16590_v22 = vadd.f32 %v4243_v37, %v15018_v18 }
 0x8a4   : > { %v7737_v11 = vadd.f32 %v11214_v26, %v7736_v33  ;;  %vm7754_vm8 = vweird.f32 %v11220_v38  ;;  %vm16593_vm9 = vcmp.eq.f32.partialorder %v7832_v12, 8.507059e+37  ;;  %v7835_v27 = vor.u32 1.1754944e-38, %v7834_v49 }
 0x8a5   : > { %v11224_v17 = vpop.eup %11223  ;;  %v7750_v0 = vsub.f32 1.0, %v7749_v25  ;;  %v7849_v46 = vand.u32 2147483648, %v16565_v19  ;;  %v16600_v34 = vadd.f32 1.0, %v11222_v15  ;;  %vm7843_vm10 = vweird.f32 %v16565_v19  ;;  %vm7755_vm13 = vmor %vm7753_vm4, %vm7754_vm8 }
 0x8a6   : > { %v11226_v6 = vpop.eup %11225  ;;  %v7741_v3 = vsel %vm7740_vm6, %v11214_v26, %v7737_v11  ;;  %v7824_v30 = vmul.f32 %v11224_v17, %v16555_v60  ;;  %v7862_v51 = vand.u32 2147483647, %v16572_v21  ;;  %11233 = vpow2.f32 %v10100_v20  ;;  %v4334_v11 = vpop.f32.mrf.mxu2 }
 0x8a7   : > { %v11228_v2 = vpop.eup %11227  ;;  %v7746_v47 = vsel %vm16568_vm2, %v7745_v41, %v7741_v3  ;;  %v7751_v9 = vmul.f32 %v11220_v38, %v7750_v0  ;;  %vm16606_vm11 = vcmp.eq.f32.partialorder %v7847_v10, 8.507059e+37  ;;  %vm7858_vm12 = vweird.f32 %v16572_v21 }
 0x8a8   : > { %v11230_v16 = vpop.eup %11229  ;;  %8769 = vst [vmem:[%s12764_s20 + $0x530] sm:$0xff] %v7746_v47  ;;  %v7825_v63 = vsub.f32 1.0, %v7824_v30  ;;  %11235 = vrcp.f32 %v16600_v34  ;;  %v16612_v31 = vadd.f32 1.0, %v11226_v6  ;;  %vm7829_vm14 = vweird.f32 %v11224_v17 }
 0x8a9   : > { %v7752_v8 = vadd.f32 %v11220_v38, %v7751_v9  ;;  %v7839_v45 = vmul.f32 %v11230_v16, %v16565_v19  ;;  %v11232_v52 = vpop.eup %11231  ;;  %v7864_v24 = vand.u32 2147483648, %v16572_v21  ;;  %v16618_v43 = vadd.f32 1.0, %v11228_v2  ;;  %vm7830_vm15 = vmor %vm7828_vm7, %vm7829_vm14 }
 0x8aa   : > { %v7826_v23 = vmul.f32 %v11224_v17, %v7825_v63  ;;  %v7850_v59 = vor.u32 1.1754944e-38, %v7849_v46  ;;  %v7854_v32 = vmul.f32 %v11232_v52, %v16572_v21  ;;  %v7937_v57 = vand.u32 2147483647, %v16600_v34  ;;  %v4159_v46 = vpop.f32.mrf.mxu0 }
 0x8ab   : > { %v7756_v35 = vsel %vm7755_vm13, %v11220_v38, %v7752_v8  ;;  %v7840_v53 = vsub.f32 1.0, %v7839_v45  ;;  %v7939_v4 = vand.u32 2147483648, %v16600_v34  ;;  %vm7844_vm1 = vweird.f32 %v11230_v16 }
 0x8ac   : > { %v7761_v26 = vsel %vm16579_vm5, %v7760_v14, %v7756_v35  ;;  %v7827_v48 = vadd.f32 %v11224_v17, %v7826_v23  ;;  %v7855_v61 = vsub.f32 1.0, %v7854_v32  ;;  %11237 = vrcp.f32 %v16612_v31  ;;  %v11234_v58 = vpop.eup %11233  ;;  %vm7845_vm4 = vmor %vm7843_vm10, %vm7844_vm1  ;;  %v4248_v23 = vpop.f32.mrf.mxu1 }
 0x8ad   : > { %8770 = vst.msk [vmem:[%s12764_s20 + $0x538] sm:$0xff] %vm1588_vm0, %v7761_v26  ;;  %v7841_v44 = vmul.f32 %v11230_v16, %v7840_v53  ;;  %vm16630_vm3 = vcmp.eq.f32.partialorder %v7862_v51, 8.507059e+37  ;;  %v7865_v40 = vor.u32 1.1754944e-38, %v7864_v24  ;;  %11239 = vrcp.f32 %v16618_v43 }
 0x8ae   : > { %v7831_v1 = vsel %vm7830_vm15, %v11224_v17, %v7827_v48  ;;  %v11236_v29 = vpop.eup %11235  ;;  %v7856_v50 = vmul.f32 %v11232_v52, %v7855_v61  ;;  %vm7859_vm2 = vweird.f32 %v11232_v52  ;;  %vm7933_vm5 = vweird.f32 %v16600_v34  ;;  %v4337_v61 = vpop.f32.mrf.mxu2 }
 0x8af   : > { %v7836_v60 = vsel %vm16593_vm9, %v7835_v27, %v7831_v1  ;;  %v7842_v7 = vadd.f32 %v11230_v16, %v7841_v44  ;;  %v7929_v54 = vmul.f32 %v11236_v29, %v16600_v34  ;;  %vm16643_vm6 = vcmp.eq.f32.partialorder %v7937_v57, 8.507059e+37  ;;  %vm7860_vm7 = vmor %vm7858_vm12, %vm7859_vm2 }
 0x8b0   : > { %8775 = vst [vmem:[%s12764_s20 + $0x560] sm:$0xff] %v7836_v60  ;;  %v7940_v33 = vor.u32 1.1754944e-38, %v7939_v4  ;;  %v7857_v49 = vadd.f32 %v11232_v52, %v7856_v50  ;;  %v7952_v37 = vand.u32 2147483647, %v16612_v31  ;;  %v7954_v41 = vand.u32 2147483648, %v16612_v31 }
 0x8b1   : > { %v7846_v12 = vsel %vm7845_vm4, %v11230_v16, %v7842_v7  ;;  %v7930_v25 = vsub.f32 1.0, %v7929_v54  ;;  %vm7948_vm8 = vweird.f32 %v16612_v31  ;;  %v7967_v20 = vand.u32 2147483647, %v16618_v43 }
 0x8b2   : > { %v7851_v19 = vsel %vm16606_vm11, %v7850_v59, %v7846_v12  ;;  %v16655_v15 = vadd.f32 1.0, %v11234_v58  ;;  %v11238_v55 = vpop.eup %11237  ;;  %v7861_v14 = vsel %vm7860_vm7, %v11232_v52, %v7857_v49  ;;  %vm7963_vm9 = vweird.f32 %v16618_v43  ;;  %v4161_v38 = vpop.f32.mrf.mxu0 }
 0x8b3   : > { %8776 = vst [vmem:[%s12764_s20 + $0x568] sm:$0xff] %v7851_v19  ;;  %v10101_v17 = vmul.f32 -1.442695, %v16590_v22  ;;  %v4333_v0 = vadd.f32 %v4332_v56, %v15022_v39  ;;  %v11240_v21 = vpop.eup %11239  ;;  %v7866_v10 = vsel %vm16630_vm3, %v7865_v40, %v7861_v14  ;;  %v7931_v6 = vmul.f32 %v11236_v29, %v7930_v25 }
 0x8b4   : > { %vm7934_vm10 = vweird.f32 %v11236_v29  ;;  %v7944_v3 = vmul.f32 %v11238_v55, %v16612_v31  ;;  %8777 = vst.msk [vmem:[%s12764_s20 + $0x570] sm:$0xff] %vm1588_vm0, %v7866_v10  ;;  %vm16666_vm11 = vcmp.eq.f32.partialorder %v7952_v37, 8.507059e+37  ;;  %v7955_v28 = vor.u32 1.1754944e-38, %v7954_v41 }
 0x8b5   : > { %v7959_v27 = vmul.f32 %v11240_v21, %v16618_v43  ;;  %11241 = vrcp.f32 %v16655_v15  ;;  %v7932_v22 = vadd.f32 %v11236_v29, %v7931_v6  ;;  %vm16672_vm12 = vcmp.eq.f32.partialorder %v7967_v20, 8.507059e+37  ;;  %vm7935_vm13 = vmor %vm7933_vm5, %vm7934_vm10 }
 0x8b6   : > { %v7945_v2 = vsub.f32 1.0, %v7944_v3  ;;  %v7969_v9 = vand.u32 2147483648, %v16618_v43  ;;  %11243 = vpow2.f32 %v10101_v17  ;;  %v10102_v63 = vmul.f32 -1.442695, %v4333_v0 }
 0x8b7   : > { %v7960_v16 = vsub.f32 1.0, %v7959_v27  ;;  %v4157_v51 = vadd.f32 %v4156_v36, %v14905_v13  ;;  %v7936_v56 = vsel %vm7935_vm13, %v11236_v29, %v7932_v22  ;;  %vm7949_vm14 = vweird.f32 %v11238_v55 }
 0x8b8   : > { %v7946_v8 = vmul.f32 %v11238_v55, %v7945_v2  ;;  %vm7964_vm15 = vweird.f32 %v11240_v21  ;;  %v7941_v45 = vsel %vm16643_vm6, %v7940_v33, %v7936_v56  ;;  %11245 = vpow2.f32 %v10102_v63  ;;  %vm7950_vm1 = vmor %vm7948_vm8, %vm7949_vm14 }
 0x8b9   : > { %v7961_v42 = vmul.f32 %v11240_v21, %v7960_v16  ;;  %v10107_v52 = vmul.f32 -1.442695, %v4157_v51  ;;  %8782 = vst [vmem:[%s12764_s20 + $0x598] sm:$0xff] %v7941_v45  ;;  %v4246_v34 = vadd.f32 %v4245_v62, %v15018_v18  ;;  %v4335_v35 = vadd.f32 %v4334_v11, %v15022_v39  ;;  %vm7965_vm3 = vmor %vm7963_vm9, %vm7964_vm15 }
 0x8ba   : > { %v7947_v24 = vadd.f32 %v11238_v55, %v7946_v8  ;;  %v4160_v53 = vadd.f32 %v4159_v46, %v14905_v13  ;;  %v7970_v26 = vor.u32 1.1754944e-38, %v7969_v9  ;;  %v8042_v48 = vand.u32 2147483647, %v16655_v15 }
 0x8bb   : > { %v11242_v59 = vpop.eup %11241  ;;  %v7962_v32 = vadd.f32 %v11240_v21, %v7961_v42  ;;  %11247 = vpow2.f32 %v10107_v52  ;;  %v10108_v36 = vmul.f32 -1.442695, %v4246_v34  ;;  %v4249_v44 = vadd.f32 %v4248_v23, %v15018_v18 }
 0x8bc   : > { %v7951_v57 = vsel %vm7950_vm1, %v11238_v55, %v7947_v24  ;;  %v8034_v4 = vmul.f32 %v11242_v59, %v16655_v15  ;;  %v11244_v31 = vpop.eup %11243  ;;  %v10109_v5 = vmul.f32 -1.442695, %v4335_v35  ;;  %v10114_v40 = vmul.f32 -1.442695, %v4160_v53 }
 0x8bd   : > { %v7956_v58 = vsel %vm16666_vm11, %v7955_v28, %v7951_v57  ;;  %v7966_v1 = vsel %vm7965_vm3, %v11240_v21, %v7962_v32  ;;  %v16699_v60 = vadd.f32 1.0, %v11244_v31  ;;  %11249 = vpow2.f32 %v10108_v36 }
 0x8be   : > { %8783 = vst [vmem:[%s12764_s20 + $0x5a0] sm:$0xff] %v7956_v58  ;;  %v7971_v29 = vsel %vm16672_vm12, %v7970_v26, %v7966_v1  ;;  %v8035_v43 = vsub.f32 1.0, %v8034_v4  ;;  %v11246_v7 = vpop.eup %11245  ;;  %v8044_v50 = vand.u32 2147483648, %v16655_v15  ;;  %11251 = vpow2.f32 %v10109_v5  ;;  %v16749_v26 = vpop.f32.mrf.mxu1 }
 0x8bf   : > { %8784 = vst.msk [vmem:[%s12764_s20 + $0x5a8] sm:$0xff] %vm1588_vm0, %v7971_v29  ;;  %v4338_v62 = vadd.f32 %v4337_v61, %v15022_v39  ;;  %vm8039_vm2 = vweird.f32 %v11242_v59  ;;  %11253 = vrcp.f32 %v16699_v60  ;;  %vm8038_vm4 = vweird.f32 %v16655_v15 }
 0x8c0   : > { %v8036_v54 = vmul.f32 %v11242_v59, %v8035_v43  ;;  %v16707_v12 = vadd.f32 1.0, %v11246_v7  ;;  %v10115_v49 = vmul.f32 -1.442695, %v4249_v44  ;;  %vm8043_vm5 = vcmp.eq.f32.partialorder %v8042_v48, 8.507059e+37  ;;  %vm8040_vm6 = vmor %vm8038_vm4, %vm8039_vm2 }
 0x8c1   : > { %v11248_v33 = vpop.eup %11247  ;;  %11255 = vpow2.f32 %v10114_v40  ;;  %v8045_v19 = vor.u32 1.1754944e-38, %v8044_v50  ;;  %v10116_v25 = vmul.f32 -1.442695, %v4338_v62  ;;  %v4162_v20 = vadd.f32 %v4161_v38, %v14905_v13  ;;  %v16768_v50 = vpop.f32.mrf.mxu2 }
 0x8c2   : > { %v8037_v37 = vadd.f32 %v11242_v59, %v8036_v54  ;;  %v16709_v41 = vadd.f32 1.0, %v11248_v33  ;;  %11257 = vrcp.f32 %v16707_v12  ;;  %v8057_v15 = vand.u32 2147483647, %v16699_v60 }
 0x8c3   : > { %v11250_v11 = vpop.eup %11249  ;;  %v8059_v14 = vand.u32 2147483648, %v16699_v60  ;;  %vm8053_vm7 = vweird.f32 %v16699_v60  ;;  %v8072_v10 = vand.u32 2147483647, %v16707_v12  ;;  %v8074_v6 = vand.u32 2147483648, %v16707_v12 }
 0x8c4   : > { %v8041_v55 = vsel %vm8040_vm6, %v11242_v59, %v8037_v37  ;;  %11259 = vrcp.f32 %v16709_v41  ;;  %v11252_v17 = vpop.eup %11251  ;;  %v16720_v3 = vadd.f32 1.0, %v11250_v11  ;;  %v8147_v27 = vand.u32 2147483647, %v16709_v41  ;;  %v4164_v11 = vpop.f32.mrf.mxu0 }
 0x8c5   : > { %v8046_v0 = vsel %vm8043_vm5, %v8045_v19, %v8041_v55  ;;  %11261 = vpow2.f32 %v10115_v49  ;;  %v11254_v21 = vpop.eup %11253  ;;  %v16722_v30 = vadd.f32 1.0, %v11252_v17  ;;  %v8149_v22 = vand.u32 2147483648, %v16709_v41 }
 0x8c6   : > { %8789 = vst [vmem:[%s12764_s20 + $0x5d0] sm:$0xff] %v8046_v0  ;;  %v8049_v28 = vmul.f32 %v11254_v21, %v16699_v60  ;;  %11263 = vpow2.f32 %v10116_v25  ;;  %vm16727_vm8 = vcmp.eq.f32.partialorder %v8057_v15, 8.507059e+37  ;;  %v8060_v9 = vor.u32 1.1754944e-38, %v8059_v14 }
 0x8c7   : > { %v11256_v2 = vpop.eup %11255  ;;  %11265 = vrcp.f32 %v16720_v3  ;;  %v10121_v46 = vmul.f32 -1.442695, %v4162_v20  ;;  %vm8068_vm9 = vweird.f32 %v16707_v12  ;;  %vm8143_vm10 = vweird.f32 %v16709_v41 }
 0x8c8   : > { %v11258_v16 = vpop.eup %11257  ;;  %v8050_v63 = vsub.f32 1.0, %v8049_v28  ;;  %11267 = vrcp.f32 %v16722_v30  ;;  %vm8054_vm11 = vweird.f32 %v11254_v21  ;;  %vm16736_vm12 = vcmp.eq.f32.partialorder %v8072_v10, 8.507059e+37 }
 0x8c9   : > { %v8064_v56 = vmul.f32 %v11258_v16, %v16707_v12  ;;  %v8075_v45 = vor.u32 1.1754944e-38, %v8074_v6  ;;  %vm16741_vm13 = vcmp.eq.f32.partialorder %v8147_v27, 8.507059e+37  ;;  %v8150_v34 = vor.u32 1.1754944e-38, %v8149_v22  ;;  %vm8055_vm1 = vmor %vm8053_vm7, %vm8054_vm11 }
 0x8ca   : > { %v11260_v51 = vpop.eup %11259  ;;  %v8051_v52 = vmul.f32 %v11254_v21, %v8050_v63  ;;  %v8162_v53 = vand.u32 2147483647, %v16720_v3  ;;  %v8164_v59 = vand.u32 2147483648, %v16720_v3  ;;  %v16747_v32 = vadd.f32 1.0, %v11256_v2  ;;  %v4253_v2 = vpop.f32.mrf.mxu1 }
 0x8cb   : > { %v11262_v42 = vpop.eup %11261  ;;  %v8139_v23 = vmul.f32 %v11260_v51, %v16709_v41  ;;  %v8065_v35 = vsub.f32 1.0, %v8064_v56  ;;  %vm8069_vm14 = vweird.f32 %v11258_v16  ;;  %vm8158_vm15 = vweird.f32 %v16720_v3 }
 0x8cc   : > { %v11264_v48 = vpop.eup %11263  ;;  %v8052_v57 = vadd.f32 %v11254_v21, %v8051_v52  ;;  %v8177_v36 = vand.u32 2147483647, %v16722_v30  ;;  %vm8144_vm3 = vweird.f32 %v11260_v51  ;;  %vm8173_vm2 = vweird.f32 %v16722_v30  ;;  %vm8070_vm5 = vmor %vm8068_vm9, %vm8069_vm14 }
 0x8cd   : > { %v8140_v4 = vsub.f32 1.0, %v8139_v23  ;;  %v11266_v44 = vpop.eup %11265  ;;  %v8066_v61 = vmul.f32 %v11258_v16, %v8065_v35  ;;  %11269 = vrcp.f32 %v16747_v32  ;;  %v16758_v31 = vadd.f32 1.0, %v11262_v42  ;;  %vm8145_vm6 = vmor %vm8143_vm10, %vm8144_vm3  ;;  %v4342_v23 = vpop.f32.mrf.mxu2 }
 0x8ce   : > { %v11268_v58 = vpop.eup %11267  ;;  %v8056_v1 = vsel %vm8055_vm1, %v11254_v21, %v8052_v57  ;;  %v8154_v40 = vmul.f32 %v11266_v44, %v16720_v3  ;;  %11271 = vpow2.f32 %v10121_v46  ;;  %vm16763_vm4 = vcmp.eq.f32.partialorder %v8162_v53, 8.507059e+37 }
 0x8cf   : > { %v8141_v5 = vmul.f32 %v11260_v51, %v8140_v4  ;;  %v8061_v29 = vsel %vm16727_vm8, %v8060_v9, %v8056_v1  ;;  %v8067_v43 = vadd.f32 %v11258_v16, %v8066_v61  ;;  %v8169_v7 = vmul.f32 %v11268_v58, %v16722_v30 }
 0x8d0   : > { %8790 = vst [vmem:[%s12764_s20 + $0x5d8] sm:$0xff] %v8061_v29  ;;  %v8155_v54 = vsub.f32 1.0, %v8154_v40  ;;  %v8165_v38 = vor.u32 1.1754944e-38, %v8164_v59  ;;  %v8179_v33 = vand.u32 2147483648, %v16722_v30  ;;  %11273 = vrcp.f32 %v16758_v31 }
 0x8d1   : > { %v8142_v62 = vadd.f32 %v11260_v51, %v8141_v5  ;;  %v8071_v49 = vsel %vm8070_vm5, %v11258_v16, %v8067_v43  ;;  %v8170_v37 = vsub.f32 1.0, %v8169_v7  ;;  %v16779_v19 = vadd.f32 1.0, %v11264_v48 }
 0x8d2   : > { %v8076_v12 = vsel %vm16736_vm12, %v8075_v45, %v8071_v49  ;;  %v8156_v20 = vmul.f32 %v11266_v44, %v8155_v54  ;;  %vm8159_vm7 = vweird.f32 %v11266_v44  ;;  %vm8174_vm8 = vweird.f32 %v11268_v58 }
 0x8d3   : > { %v8146_v25 = vsel %vm8145_vm6, %v11260_v51, %v8142_v62  ;;  %v11270_v55 = vpop.eup %11269  ;;  %8791 = vst.msk [vmem:[%s12764_s20 + $0x5e0] sm:$0xff] %vm1588_vm0, %v8076_v12  ;;  %v8171_v15 = vmul.f32 %v11268_v58, %v8170_v37  ;;  %vm16787_vm9 = vcmp.eq.f32.partialorder %v8177_v36, 8.507059e+37  ;;  %v8180_v21 = vor.u32 1.1754944e-38, %v8179_v33  ;;  %vm8160_vm10 = vmor %vm8158_vm15, %vm8159_vm7 }
 0x8d4   : > { %v8151_v41 = vsel %vm16741_vm13, %v8150_v34, %v8146_v25  ;;  %v11272_v17 = vpop.eup %11271  ;;  %v8157_v0 = vadd.f32 %v11266_v44, %v8156_v20  ;;  %v8244_v10 = vmul.f32 %v11270_v55, %v16747_v32  ;;  %v8252_v6 = vand.u32 2147483647, %v16747_v32  ;;  %vm8175_vm11 = vmor %vm8173_vm2, %vm8174_vm8 }
 0x8d5   : > { %8796 = vst [vmem:[%s12764_s20 + $0x608] sm:$0xff] %v8151_v41  ;;  %v8172_v28 = vadd.f32 %v11268_v58, %v8171_v15  ;;  %v8254_v27 = vand.u32 2147483648, %v16747_v32  ;;  %v8267_v22 = vand.u32 2147483647, %v16758_v31  ;;  %11275 = vrcp.f32 %v16779_v19  ;;  %v4344_v14 = vpop.f32.mrf.mxu2 }
 0x8d6   : > { %v8161_v47 = vsel %vm8160_vm10, %v11266_v44, %v8157_v0  ;;  %v8245_v9 = vsub.f32 1.0, %v8244_v10  ;;  %vm8248_vm12 = vweird.f32 %v16747_v32  ;;  %v8269_v3 = vand.u32 2147483648, %v16758_v31  ;;  %v11274_v46 = vpop.eup %11273 }
 0x8d7   : > { %v8166_v16 = vsel %vm16763_vm4, %v8165_v38, %v8161_v47  ;;  %v8176_v63 = vsel %vm8175_vm11, %v11268_v58, %v8172_v28  ;;  %vm8263_vm13 = vweird.f32 %v16758_v31  ;;  %v16807_v51 = vadd.f32 1.0, %v11272_v17  ;;  %v4166_v58 = vpop.f32.mrf.mxu0  ;;  %v4255_v38 = vpop.f32.mrf.mxu1 }
 0x8d8   : > { %8797 = vst [vmem:[%s12764_s20 + $0x610] sm:$0xff] %v8166_v16  ;;  %v8181_v56 = vsel %vm16787_vm9, %v8180_v21, %v8176_v63  ;;  %v8246_v30 = vmul.f32 %v11270_v55, %v8245_v9  ;;  %vm8249_vm14 = vweird.f32 %v11270_v55  ;;  %v8259_v8 = vmul.f32 %v11274_v46, %v16758_v31 }
 0x8d9   : > { %8798 = vst.msk [vmem:[%s12764_s20 + $0x618] sm:$0xff] %vm1588_vm0, %v8181_v56  ;;  %vm16815_vm15 = vcmp.eq.f32.partialorder %v8252_v6, 8.507059e+37  ;;  %v8255_v42 = vor.u32 1.1754944e-38, %v8254_v27  ;;  %vm16819_vm1 = vcmp.eq.f32.partialorder %v8267_v22, 8.507059e+37  ;;  %11277 = vrcp.f32 %v16807_v51  ;;  %vm8250_vm2 = vmor %vm8248_vm12, %vm8249_vm14 }
 0x8da   : > { %v8247_v24 = vadd.f32 %v11270_v55, %v8246_v30  ;;  %v8260_v34 = vsub.f32 1.0, %v8259_v8  ;;  %v8270_v35 = vor.u32 1.1754944e-38, %v8269_v3  ;;  %vm8278_vm3 = vweird.f32 %v16779_v19 }
 0x8db   : > { %v11276_v53 = vpop.eup %11275  ;;  %v4251_v59 = vadd.f32 %v16749_v26, %v15018_v18  ;;  %v4340_v48 = vadd.f32 %v16768_v50, %v15022_v39  ;;  %v4165_v57 = vadd.f32 %v4164_v11, %v14905_v13  ;;  %v4254_v4 = vadd.f32 %v4253_v2, %v15018_v18 }
 0x8dc   : > { %v8251_v36 = vsel %vm8250_vm2, %v11270_v55, %v8247_v24  ;;  %v8261_v44 = vmul.f32 %v11274_v46, %v8260_v34  ;;  %vm8264_vm4 = vweird.f32 %v11274_v46  ;;  %v8274_v61 = vmul.f32 %v11276_v53, %v16779_v19 }
 0x8dd   : > { %v8256_v32 = vsel %vm16815_vm15, %v8255_v42, %v8251_v36  ;;  %v8282_v1 = vand.u32 2147483647, %v16779_v19  ;;  %v8284_v26 = vand.u32 2147483648, %v16779_v19  ;;  %v10122_v5 = vmul.f32 -1.442695, %v4251_v59  ;;  %vm8265_vm5 = vmor %vm8263_vm13, %vm8264_vm4 }
 0x8de   : > { %8803 = vst [vmem:[%s12764_s20 + $0x640] sm:$0xff] %v8256_v32  ;;  %v8262_v40 = vadd.f32 %v11274_v46, %v8261_v44  ;;  %v8275_v29 = vsub.f32 1.0, %v8274_v61  ;;  %v10123_v43 = vmul.f32 -1.442695, %v4340_v48  ;;  %v10128_v60 = vmul.f32 -1.442695, %v4165_v57 }
 0x8df   : > { %v11278_v7 = vpop.eup %11277  ;;  %11279 = vpow2.f32 %v10122_v5  ;;  %v10129_v50 = vmul.f32 -1.442695, %v4254_v4  ;;  %v4343_v62 = vadd.f32 %v4342_v23, %v15022_v39  ;;  %v4167_v54 = vadd.f32 %v4166_v58, %v14905_v13 }
 0x8e0   : > { %v8266_v33 = vsel %vm8265_vm5, %v11274_v46, %v8262_v40  ;;  %v8276_v49 = vmul.f32 %v11276_v53, %v8275_v29  ;;  %vm8279_vm6 = vweird.f32 %v11276_v53  ;;  %v8349_v37 = vmul.f32 %v11278_v7, %v16807_v51 }
 0x8e1   : > { %v8271_v12 = vsel %vm16819_vm1, %v8270_v35, %v8266_v33  ;;  %vm16846_vm7 = vcmp.eq.f32.partialorder %v8282_v1, 8.507059e+37  ;;  %11281 = vpow2.f32 %v10123_v43  ;;  %v10130_v31 = vmul.f32 -1.442695, %v4343_v62  ;;  %vm8280_vm8 = vmor %vm8278_vm3, %vm8279_vm6 }
 0x8e2   : > { %8804 = vst [vmem:[%s12764_s20 + $0x648] sm:$0xff] %v8271_v12  ;;  %v8277_v20 = vadd.f32 %v11276_v53, %v8276_v49  ;;  %v8350_v11 = vsub.f32 1.0, %v8349_v37  ;;  %11283 = vpow2.f32 %v10128_v60  ;;  %v4256_v13 = vadd.f32 %v4255_v38, %v15018_v18 }
 0x8e3   : > { %v8285_v55 = vor.u32 1.1754944e-38, %v8284_v26  ;;  %v8359_v41 = vand.u32 2147483648, %v16807_v51  ;;  %11285 = vpow2.f32 %v10129_v50  ;;  %v10135_v15 = vmul.f32 -1.442695, %v4167_v54 }
 0x8e4   : > { %v8281_v17 = vsel %vm8280_vm8, %v11276_v53, %v8277_v20  ;;  %v8351_v0 = vmul.f32 %v11278_v7, %v8350_v11  ;;  %vm8354_vm9 = vweird.f32 %v11278_v7  ;;  %v8357_v21 = vand.u32 2147483647, %v16807_v51 }
 0x8e5   : > { %v11280_v10 = vpop.eup %11279  ;;  %v8286_v6 = vsel %vm16846_vm7, %v8285_v55, %v8281_v17  ;;  %vm8353_vm10 = vweird.f32 %v16807_v51  ;;  %v10136_v18 = vmul.f32 -1.442695, %v4256_v13  ;;  %11287 = vpow2.f32 %v10130_v31 }
 0x8e6   : > { %8805 = vst.msk [vmem:[%s12764_s20 + $0x650] sm:$0xff] %vm1588_vm0, %v8286_v6  ;;  %v8352_v19 = vadd.f32 %v11278_v7, %v8351_v0  ;;  %v16861_v28 = vadd.f32 1.0, %v11280_v10  ;;  %v4345_v27 = vadd.f32 %v4344_v14, %v15022_v39  ;;  %vm8355_vm11 = vmor %vm8353_vm10, %vm8354_vm9  ;;  %v8360_v2 = vor.u32 1.1754944e-38, %v8359_v41 }
 0x8e7   : > { %v11282_v22 = vpop.eup %11281  ;;  %11289 = vpow2.f32 %v10135_v15  ;;  %vm8358_vm12 = vcmp.eq.f32.partialorder %v8357_v21, 8.507059e+37 }
 0x8e8   : > { %v11284_v47 = vpop.eup %11283  ;;  %v8356_v9 = vsel %vm8355_vm11, %v11278_v7, %v8352_v19  ;;  %11291 = vrcp.f32 %v16861_v28  ;;  %v16865_v16 = vadd.f32 1.0, %v11282_v22  ;;  %v10137_v39 = vmul.f32 -1.442695, %v4345_v27 }
 0x8e9   : > { %v11286_v3 = vpop.eup %11285  ;;  %v8361_v46 = vsel %vm8358_vm12, %v8360_v2, %v8356_v9  ;;  %v16867_v63 = vadd.f32 1.0, %v11284_v47  ;;  %11293 = vpow2.f32 %v10136_v18  ;;  %v8372_v56 = vand.u32 2147483647, %v16861_v28 }
 0x8ea   : > { %8810 = vst [vmem:[%s12764_s20 + $0x678] sm:$0xff] %v8361_v46  ;;  %v16870_v51 = vadd.f32 1.0, %v11286_v3  ;;  %v8374_v30 = vand.u32 2147483648, %v16861_v28  ;;  %11295 = vrcp.f32 %v16865_v16  ;;  %vm8368_vm13 = vweird.f32 %v16861_v28 }
 0x8eb   : > { %v11288_v8 = vpop.eup %11287  ;;  %11297 = vrcp.f32 %v16867_v63  ;;  %v8387_v52 = vand.u32 2147483647, %v16865_v16  ;;  %v8389_v23 = vand.u32 2147483648, %v16865_v16  ;;  %vm16881_vm14 = vcmp.eq.f32.partialorder %v8372_v56, 8.507059e+37 }
 0x8ec   : > { %11299 = vrcp.f32 %v16870_v51  ;;  %v8375_v53 = vor.u32 1.1754944e-38, %v8374_v30  ;;  %v8462_v59 = vand.u32 2147483647, %v16867_v63  ;;  %v16886_v48 = vadd.f32 1.0, %v11288_v8 }
 0x8ed   : > { %v11290_v45 = vpop.eup %11289  ;;  %11301 = vpow2.f32 %v10137_v39  ;;  %vm8383_vm15 = vweird.f32 %v16865_v16  ;;  %v8464_v57 = vand.u32 2147483648, %v16867_v63  ;;  %v8477_v4 = vand.u32 2147483647, %v16870_v51 }
 0x8ee   : > { %v11292_v42 = vpop.eup %11291  ;;  %v16891_v36 = vadd.f32 1.0, %v11290_v45  ;;  %vm8458_vm1 = vweird.f32 %v16867_v63  ;;  %v8479_v58 = vand.u32 2147483648, %v16870_v51  ;;  %11303 = vrcp.f32 %v16886_v48 }
 0x8ef   : > { %v11294_v24 = vpop.eup %11293  ;;  %v8364_v34 = vmul.f32 %v11292_v42, %v16861_v28  ;;  %vm16897_vm3 = vcmp.eq.f32.partialorder %v8387_v52, 8.507059e+37  ;;  %v8390_v5 = vor.u32 1.1754944e-38, %v8389_v23  ;;  %vm8473_vm2 = vweird.f32 %v16870_v51 }
 0x8f0   : > { %v11296_v44 = vpop.eup %11295  ;;  %11305 = vrcp.f32 %v16891_v36  ;;  %v16903_v40 = vadd.f32 1.0, %v11294_v24  ;;  %vm8369_vm4 = vweird.f32 %v11292_v42  ;;  %vm16906_vm5 = vcmp.eq.f32.partialorder %v8462_v59, 8.507059e+37 }
 0x8f1   : > { %v8365_v61 = vsub.f32 1.0, %v8364_v34  ;;  %v11298_v32 = vpop.eup %11297  ;;  %v8379_v1 = vmul.f32 %v11296_v44, %v16865_v16  ;;  %v8465_v54 = vor.u32 1.1754944e-38, %v8464_v57  ;;  %vm16911_vm6 = vcmp.eq.f32.partialorder %v8477_v4, 8.507059e+37  ;;  %vm8370_vm7 = vmor %vm8368_vm13, %vm8369_vm4 }
 0x8f2   : > { %v11300_v29 = vpop.eup %11299  ;;  %v8454_v60 = vmul.f32 %v11298_v32, %v16867_v63  ;;  %v8480_v12 = vor.u32 1.1754944e-38, %v8479_v58  ;;  %v8492_v25 = vand.u32 2147483647, %v16886_v48  ;;  %vm8384_vm8 = vweird.f32 %v11296_v44 }
 0x8f3   : > { %v8366_v43 = vmul.f32 %v11292_v42, %v8365_v61  ;;  %v11302_v50 = vpop.eup %11301  ;;  %v8380_v62 = vsub.f32 1.0, %v8379_v1  ;;  %v8469_v38 = vmul.f32 %v11300_v29, %v16870_v51  ;;  %vm8488_vm9 = vweird.f32 %v16886_v48  ;;  %vm8385_vm12 = vmor %vm8383_vm15, %vm8384_vm8 }
 0x8f4   : > { %v8455_v37 = vsub.f32 1.0, %v8454_v60  ;;  %11307 = vrcp.f32 %v16903_v40  ;;  %v11304_v11 = vpop.eup %11303  ;;  %vm8459_vm10 = vweird.f32 %v11298_v32  ;;  %vm8474_vm11 = vweird.f32 %v11300_v29 }
 0x8f5   : > { %v8367_v49 = vadd.f32 %v11292_v42, %v8366_v43  ;;  %v8381_v31 = vmul.f32 %v11296_v44, %v8380_v62  ;;  %v8470_v20 = vsub.f32 1.0, %v8469_v38  ;;  %v8484_v0 = vmul.f32 %v11304_v11, %v16886_v48  ;;  %vm8475_vm15 = vmor %vm8473_vm2, %vm8474_vm11 }
 0x8f6   : > { %v8456_v55 = vmul.f32 %v11298_v32, %v8455_v37  ;;  %v11306_v41 = vpop.eup %11305  ;;  %vm16927_vm13 = vcmp.eq.f32.partialorder %v8492_v25, 8.507059e+37  ;;  %v8494_v6 = vand.u32 2147483648, %v16886_v48  ;;  %v8567_v22 = vand.u32 2147483647, %v16891_v36 }
 0x8f7   : > { %v8371_v13 = vsel %vm8370_vm7, %v11292_v42, %v8367_v49  ;;  %v8382_v14 = vadd.f32 %v11296_v44, %v8381_v31  ;;  %v8471_v17 = vmul.f32 %v11300_v29, %v8470_v20  ;;  %v8559_v18 = vmul.f32 %v11306_v41, %v16891_v36 }
 0x8f8   : > { %v8376_v15 = vsel %vm16881_vm14, %v8375_v53, %v8371_v13  ;;  %v8457_v21 = vadd.f32 %v11298_v32, %v8456_v55  ;;  %vm8460_vm14 = vmor %vm8458_vm1, %vm8459_vm10  ;;  %v8485_v27 = vsub.f32 1.0, %v8484_v0  ;;  %v8569_v3 = vand.u32 2147483648, %v16891_v36 }
 0x8f9   : > { %8811 = vst [vmem:[%s12764_s20 + $0x680] sm:$0xff] %v8376_v15  ;;  %v8386_v19 = vsel %vm8385_vm12, %v11296_v44, %v8382_v14  ;;  %v8472_v28 = vadd.f32 %v11300_v29, %v8471_v17  ;;  %v8560_v9 = vsub.f32 1.0, %v8559_v18  ;;  %vm8489_vm1 = vweird.f32 %v11304_v11 }
 0x8fa   : > { %v8391_v2 = vsel %vm16897_vm3, %v8390_v5, %v8386_v19  ;;  %v8461_v47 = vsel %vm8460_vm14, %v11298_v32, %v8457_v21  ;;  %v11308_v46 = vpop.eup %11307  ;;  %v8486_v39 = vmul.f32 %v11304_v11, %v8485_v27  ;;  %vm8564_vm3 = vweird.f32 %v11306_v41  ;;  %vm8490_vm4 = vmor %vm8488_vm9, %vm8489_vm1 }
 0x8fb   : > { %8812 = vst.msk [vmem:[%s12764_s20 + $0x688] sm:$0xff] %vm1588_vm0, %v8391_v2  ;;  %v8466_v16 = vsel %vm16906_vm5, %v8465_v54, %v8461_v47  ;;  %v8476_v63 = vsel %vm8475_vm15, %v11300_v29, %v8472_v28  ;;  %v8561_v30 = vmul.f32 %v11306_v41, %v8560_v9  ;;  %v8574_v51 = vmul.f32 %v11308_v46, %v16903_v40 }
 0x8fc   : > { %8817 = vst [vmem:[%s12764_s20 + $0x6b0] sm:$0xff] %v8466_v16  ;;  %v8481_v56 = vsel %vm16911_vm6, %v8480_v12, %v8476_v63  ;;  %v8487_v8 = vadd.f32 %v11304_v11, %v8486_v39  ;;  %v8495_v45 = vor.u32 1.1754944e-38, %v8494_v6  ;;  %vm8563_vm2 = vweird.f32 %v16891_v36 }
 0x8fd   : > { %8818 = vst [vmem:[%s12764_s20 + $0x6b8] sm:$0xff] %v8481_v56  ;;  %v5242_v42 = vadd.f32 1.0, %v11302_v50  ;;  %v8562_v52 = vadd.f32 %v11306_v41, %v8561_v30  ;;  %vm8568_vm5 = vcmp.eq.f32.partialorder %v8567_v22, 8.507059e+37  ;;  %v8570_v23 = vor.u32 1.1754944e-38, %v8569_v3  ;;  %vm8565_vm6 = vmor %vm8563_vm2, %vm8564_vm3 }
 0x8fe   : > { %v8575_v24 = vsub.f32 1.0, %v8574_v51  ;;  %v8491_v34 = vsel %vm8490_vm4, %v11304_v11, %v8487_v8  ;;  %v8582_v35 = vand.u32 2147483647, %v16903_v40  ;;  %v8584_v53 = vand.u32 2147483648, %v16903_v40 }
 0x8ff   : > { %11309 = vrcp.f32 %v5242_v42  ;;  %v8496_v59 = vsel %vm16927_vm13, %v8495_v45, %v8491_v34  ;;  %v8566_v57 = vsel %vm8565_vm6, %v11306_v41, %v8562_v52  ;;  %vm8579_vm7 = vweird.f32 %v11308_v46 }
 0x900   : > { %v8576_v4 = vmul.f32 %v11308_v46, %v8575_v24  ;;  %8819 = vst.msk [vmem:[%s12764_s20 + $0x6c0] sm:$0xff] %vm1588_vm0, %v8496_v59  ;;  %v8571_v48 = vsel %vm8568_vm5, %v8570_v23, %v8566_v57  ;;  %vm8578_vm8 = vweird.f32 %v16903_v40  ;;  %v8585_v44 = vor.u32 1.1754944e-38, %v8584_v53 }
 0x901   : > { %8824 = vst [vmem:[%s12764_s20 + $0x6e8] sm:$0xff] %v8571_v48  ;;  %vm8580_vm9 = vmor %vm8578_vm8, %vm8579_vm7  ;;  %vm8583_vm10 = vcmp.eq.f32.partialorder %v8582_v35, 8.507059e+37  ;;  %v8599_v5 = vand.u32 2147483648, %v5242_v42  ;;  %v8597_v43 = vand.u32 2147483647, %v5242_v42  ;;  %vm8593_vm12 = vweird.f32 %v5242_v42 }
 0x902   : > { %v8577_v36 = vadd.f32 %v11308_v46, %v8576_v4 }
 0x903   : > { %v8600_v7 = vor.u32 1.1754944e-38, %v8599_v5  ;;  %vm8598_vm14 = vcmp.eq.f32.partialorder %v8597_v43, 8.507059e+37 }
 0x904   : > { %v8581_v61 = vsel %vm8580_vm9, %v11308_v46, %v8577_v36 }
 0x905   : > { %v11310_v58 = vpop.eup %11309  ;;  %v8586_v32 = vsel %vm8583_vm10, %v8585_v44, %v8581_v61 }
 0x906   : > { %8825 = vst [vmem:[%s12764_s20 + $0x6f0] sm:$0xff] %v8586_v32  ;;  %v8589_v1 = vmul.f32 %v11310_v58, %v5242_v42  ;;  %vm8594_vm11 = vweird.f32 %v11310_v58 }
 0x907   : > { %vm8595_vm13 = vmor %vm8593_vm12, %vm8594_vm11 }
 0x908   : > { %v8590_v26 = vsub.f32 1.0, %v8589_v1 }
 0x90a   : > { %v8591_v29 = vmul.f32 %v11310_v58, %v8590_v26 }
 0x90c   : > { %v8592_v60 = vadd.f32 %v11310_v58, %v8591_v29 }
 0x90e   : > { %v8596_v50 = vsel %vm8595_vm13, %v11310_v58, %v8592_v60 }
 0x90f   : > { %v8601_v40 = vsel %vm8598_vm14, %v8600_v7, %v8596_v50 }
 0x910   : > { %8826 = vst.msk [vmem:[%s12764_s20 + $0x6f8] sm:$0xff] %vm1588_vm0, %v8601_v40 }
 0x911 PF: > { %s25_s18 = sadd.s32 1, %s11321_s18  }
 0x912   : > { %p22_p4 = scmp.ge.s32.totalorder %s25_s18, 4  }
 0x914   :  { %24 = sbr.rel (!%p22_p4) target bundleno = 1 (0x1), region = 110 }

</bundles_post_ra>
